<compile_context>
chip_gen: v7x
topology: tpu7x:2x2x1
jax: 0.10.0
libtpu: 0.0.40
codegen_flags: <defaults>
</compile_context>

<pallas_src>
import functools

import jax
import jax.numpy as jnp
from jax.experimental import pallas as pl
from jax.experimental.pallas import tpu as pltpu


# ----------------------------------------------------------------------------
# small helpers
# ----------------------------------------------------------------------------
def _largest_divisor_leq(n, cap):
    for d in range(min(n, cap), 0, -1):
        if n % d == 0:
            return d
    return 1


# ----------------------------------------------------------------------------
# Kernel 1: downsample conv (k=2, s=2) as a tiled matmul + fused GN statistics
# ----------------------------------------------------------------------------
def _down_matmul_kernel(p_ref, w_ref, b_ref, y_ref, sum_ref, sq_ref):
    # p_ref: (1, tm, K) bf16   w_ref: (K, C) bf16   b_ref: (1, C) f32
    # y_ref: (1, tm, C) f32    sum_ref/sq_ref: (1, 1, C) f32 accumulators over s
    @pl.when(pl.program_id(1) == 0)
    def _():
        sum_ref[...] = jnp.zeros_like(sum_ref)
        sq_ref[...] = jnp.zeros_like(sq_ref)

    p = p_ref[...][0]                                        # (tm, K) bf16
    z = jnp.dot(p, w_ref[...], preferred_element_type=jnp.float32)
    z = z + b_ref[...]                                       # (tm, C) f32
    y_ref[...] = z[None]
    sum_ref[...] += jnp.sum(z, axis=0, keepdims=True)[None]
    sq_ref[...] += jnp.sum(z * z, axis=0, keepdims=True)[None]


def downsample_conv(x, w, b, *, tm_target=1024):
    """Conv3d(k=2, s=2, bias) on NCDHW input -> y (N, S, Co) channels-last f32,
    plus per-(n, channel) sum and sum-of-squares for the following GroupNorm."""
    N, Ci, D, H, W = x.shape
    Co = w.shape[0]
    Do, Ho, Wo = D // 2, H // 2, W // 2
    S = Do * Ho * Wo
    K = 8 * Ci

    # k=2/s=2 taps tile the input exactly, so "im2col" is one cheap reshuffle of
    # the narrow (Cin-wide) input.  The expensive 27x im2col of the 3x3x3 convs
    # is done inside the conv kernel instead (see conv3x3x3).
    xp = x.reshape(N, Ci, Do, 2, Ho, 2, Wo, 2)
    xp = jnp.transpose(xp, (0, 2, 4, 6, 3, 5, 7, 1))         # (N,Do,Ho,Wo,2,2,2,Ci)
    patches = xp.reshape(N, S, K).astype(jnp.bfloat16)
    wm = jnp.transpose(w, (2, 3, 4, 1, 0)).reshape(K, Co).astype(jnp.bfloat16)
    b2 = b.reshape(1, Co).astype(jnp.float32)

    tm = _largest_divisor_leq(S, tm_target)
    y, csum, csq = pl.pallas_call(
        _down_matmul_kernel,
        out_shape=(
            jax.ShapeDtypeStruct((N, S, Co), jnp.float32),
            jax.ShapeDtypeStruct((N, 1, Co), jnp.float32),
            jax.ShapeDtypeStruct((N, 1, Co), jnp.float32),
        ),
        grid=(N, S // tm),
        in_specs=[
            pl.BlockSpec((1, tm, K), lambda n, s: (n, s, 0)),
            pl.BlockSpec((K, Co), lambda n, s: (0, 0)),       # resident weight
            pl.BlockSpec((1, Co), lambda n, s: (0, 0)),       # resident bias
        ],
        out_specs=(
            pl.BlockSpec((1, tm, Co), lambda n, s: (n, s, 0)),
            pl.BlockSpec((1, 1, Co), lambda n, s: (n, 0, 0)),  # stats accumulate
            pl.BlockSpec((1, 1, Co), lambda n, s: (n, 0, 0)),
        ),
        compiler_params=pltpu.CompilerParams(
            dimension_semantics=("parallel", "arbitrary")),
    )(patches, wm, b2)
    return y, csum[:, 0, :], csq[:, 0, :]


# ----------------------------------------------------------------------------
# Kernel 2: GroupNorm affine + LeakyReLU, channels-last and lane-dense
# ----------------------------------------------------------------------------
def _gn_lrelu_kernel(y_ref, scale_ref, shift_ref, o_ref, *, slope):
    a = y_ref[...] * scale_ref[...] + shift_ref[...]          # (1,tr,L)*(1,1,L)
    o_ref[...] = jnp.where(a >= 0, a, slope * a).astype(o_ref.dtype)


def groupnorm_leakyrelu(y, csum, csq, gamma, beta, *, groups, S,
                        eps=1e-5, slope=0.01):
    """y: (N, S, C) f32 with per-channel sum/sumsq (N, C) from the producing
    conv kernel.  Returns lrelu(groupnorm(y)) as (N, S, C) bf16, no transposes."""
    N, _, C = y.shape
    G = groups
    Cg = C // G
    cnt = float(Cg * S)

    gsum = csum.reshape(N, G, Cg).sum(-1)
    gsq = csq.reshape(N, G, Cg).sum(-1)
    mean = gsum / cnt
    var = gsq / cnt - mean * mean          # biased variance (matches PyTorch GN)
    inv = jax.lax.rsqrt(var + eps)
    mean_c = jnp.repeat(mean, Cg, axis=1)                     # (N, C)
    inv_c = jnp.repeat(inv, Cg, axis=1)
    scale_c = gamma[None, :] * inv_c
    shift_c = beta[None, :] - mean_c * scale_c

    # lane-dense view: flatten (spatial, channel) into rows x (k*C) lanes
    k = 1
    while (S % (2 * k) == 0) and (2 * k * C <= 512) and (S // (2 * k) >= 8):
        k *= 2
    L = k * C
    R = S // k
    tr = _largest_divisor_leq(R, 512)

    y3 = y.reshape(N, R, L)
    scale3 = jnp.tile(scale_c, (1, k)).reshape(N, 1, L)
    shift3 = jnp.tile(shift_c, (1, k)).reshape(N, 1, L)

    out = pl.pallas_call(
        functools.partial(_gn_lrelu_kernel, slope=slope),
        out_shape=jax.ShapeDtypeStruct((N, R, L), jnp.bfloat16),
        grid=(N, R // tr),
        in_specs=[
            pl.BlockSpec((1, tr, L), lambda n, r: (n, r, 0)),
            pl.BlockSpec((1, 1, L), lambda n, r: (n, 0, 0)),
            pl.BlockSpec((1, 1, L), lambda n, r: (n, 0, 0)),
        ],
        out_specs=pl.BlockSpec((1, tr, L), lambda n, r: (n, r, 0)),
        compiler_params=pltpu.CompilerParams(
            dimension_semantics=("parallel", "parallel")),
    )(y3, scale3, shift3)
    return out.reshape(N, S, C)


# ----------------------------------------------------------------------------
# Kernels 3/5: Conv3d(k=3, s=1, p=1) with in-kernel im2col (27 taps in VMEM),
# optional fused GN-statistics epilogue (conv1) or residual-add epilogue (conv2)
# ----------------------------------------------------------------------------
def _conv3x3_row(planes, w_ref, h, W):
    """27-tap accumulation for output row h: returns (W, Co) f32."""
    acc = None
    for kd in range(3):
        plane = planes[kd]                         # (H+2, W+2, Ci) bf16 value
        for kh in range(3):
            row = plane[h + kh]                    # (W+2, Ci)
            for kw in range(3):
                patch = row[kw:kw + W, :]          # (W, Ci)
                t = jnp.dot(patch, w_ref[kd * 9 + kh * 3 + kw],
                            preferred_element_type=jnp.float32)
                acc = t if acc is None else acc + t
    return acc


def _conv3x3_stats_kernel(x0_ref, x1_ref, x2_ref, w_ref, b_ref,
                          o_ref, sum_ref, sq_ref, *, H, W):
    @pl.when(pl.program_id(1) == 0)
    def _():
        sum_ref[...] = jnp.zeros_like(sum_ref)
        sq_ref[...] = jnp.zeros_like(sq_ref)

    planes = (x0_ref[...][0, 0], x1_ref[...][0, 0], x2_ref[...][0, 0])
    bias = b_ref[...]                               # (1, Co) f32
    sums = jnp.zeros_like(bias)
    sqs = jnp.zeros_like(bias)
    for h in range(H):
        z = _conv3x3_row(planes, w_ref, h, W) + bias            # (W, Co)
        o_ref[:, h * W:(h + 1) * W, :] = z[None]
        sums = sums + jnp.sum(z, axis=0, keepdims=True)
        sqs = sqs + jnp.sum(z * z, axis=0, keepdims=True)
    sum_ref[...] += sums[None]
    sq_ref[...] += sqs[None]


def _conv3x3_res_kernel(x0_ref, x1_ref, x2_ref, w_ref, b_ref, r_ref,
                        o_ref, *, H, W):
    planes = (x0_ref[...][0, 0], x1_ref[...][0, 0], x2_ref[...][0, 0])
    bias = b_ref[...]
    for h in range(H):
        z = (_conv3x3_row(planes, w_ref, h, W) + bias)[None]    # (1, W, Co)
        z = z + r_ref[:, h * W:(h + 1) * W, :]                  # fused shortcut
        o_ref[:, h * W:(h + 1) * W, :] = z


def conv3x3x3(a, w, b, *, spatial, residual=None, want_stats=False):
    """Conv3d(k=3, s=1, p=1, bias) on channels-last activation a: (N, S, C) bf16.

    Per (n, d) grid step three halo'd depth slices of the zero-padded activation
    are DMA'd (3 in_specs on the same array, offset by kd) and the 9 (kh, kw)
    shifts are taken as static slices in VMEM -- no 27x patch tensor in HBM."""
    N, S, Ci = a.shape
    D, H, W = spatial
    Co = w.shape[0]
    Hp, Wp = H + 2, W + 2

    a5 = a.reshape(N, D, H, W, Ci)
    ap = jnp.pad(a5, ((0, 0), (1, 1), (1, 1), (1, 1), (0, 0)))  # bf16 zero halo
    wm = jnp.transpose(w, (2, 3, 4, 1, 0)).reshape(27, Ci, Co).astype(jnp.bfloat16)
    b2 = b.reshape(1, Co).astype(jnp.float32)

    def x_spec(kd):
        return pl.BlockSpec((1, 1, Hp, Wp, Ci),
                            lambda n, d, kd=kd: (n, d + kd, 0, 0, 0))

    in_specs = [x_spec(0), x_spec(1), x_spec(2),
                pl.BlockSpec((27, Ci, Co), lambda n, d: (0, 0, 0)),
                pl.BlockSpec((1, Co), lambda n, d: (0, 0))]
    args = [ap, ap, ap, wm, b2]

    if want_stats:
        kernel = functools.partial(_conv3x3_stats_kernel, H=H, W=W)
        out_shape = (jax.ShapeDtypeStruct((N, S, Co), jnp.float32),
                     jax.ShapeDtypeStruct((N, 1, Co), jnp.float32),
                     jax.ShapeDtypeStruct((N, 1, Co), jnp.float32))
        out_specs = (pl.BlockSpec((1, H * W, Co), lambda n, d: (n, d, 0)),
                     pl.BlockSpec((1, 1, Co), lambda n, d: (n, 0, 0)),
                     pl.BlockSpec((1, 1, Co), lambda n, d: (n, 0, 0)))
        semantics = ("parallel", "arbitrary")
    else:
        kernel = functools.partial(_conv3x3_res_kernel, H=H, W=W)
        in_specs.append(pl.BlockSpec((1, H * W, Co), lambda n, d: (n, d, 0)))
        args.append(residual)
        out_shape = jax.ShapeDtypeStruct((N, S, Co), jnp.float32)
        out_specs = pl.BlockSpec((1, H * W, Co), lambda n, d: (n, d, 0))
        semantics = ("parallel", "parallel")

    res = pl.pallas_call(
        kernel, out_shape=out_shape, grid=(N, D),
        in_specs=in_specs, out_specs=out_specs,
        compiler_params=pltpu.CompilerParams(dimension_semantics=semantics),
    )(*args)
    if want_stats:
        o, csum, csq = res
        return o, csum[:, 0, :], csq[:, 0, :]
    return res


# ----------------------------------------------------------------------------
# Full UNetEncoderBlock forward
# ----------------------------------------------------------------------------
@jax.jit
def unet_encoder_block(x, params, *, groups=8):
    """x: (N, Cin, D, H, W) -> (N, Cout, D//2, H//2, W//2)  (NCDHW like PyTorch)."""
    N, Ci, D, H, W = x.shape
    Co = params["down_w"].shape[0]
    Do, Ho, Wo = D // 2, H // 2, W // 2
    S = Do * Ho * Wo

    # downsample Conv3d(k=2, s=2) + fused GN1 statistics
    y, s1, q1 = downsample_conv(x, params["down_w"], params["down_b"])

    # GN1 + LeakyReLU (channels-last, lane-dense, no layout transposes)
    a1 = groupnorm_leakyrelu(y, s1, q1, params["gn1_w"], params["gn1_b"],
                             groups=groups, S=S)

    # conv1 (3x3x3, pad 1): in-kernel im2col, fused bias + GN2 statistics
    o1, s2, q2 = conv3x3x3(a1, params["conv1_w"], params["conv1_b"],
                           spatial=(Do, Ho, Wo), want_stats=True)
    # drop1: p=0.0 -> identity

    # GN2 + LeakyReLU
    a2 = groupnorm_leakyrelu(o1, s2, q2, params["gn2_w"], params["gn2_b"],
                             groups=groups, S=S)

    # conv2 (3x3x3, pad 1): fused bias + identity-shortcut add (shortcut = y)
    out = conv3x3x3(a2, params["conv2_w"], params["conv2_b"],
                    spatial=(Do, Ho, Wo), residual=y, want_stats=False)
    # drop2: p=0.0 -> identity

    out = out.reshape(N, Do, Ho, Wo, Co)
    return jnp.transpose(out, (0, 4, 1, 2, 3))


# ----------------------------------------------------------------------------
# Pure-JAX f32 reference (lax.conv) for the correctness check
# ----------------------------------------------------------------------------
def reference_forward(x, p, groups=8, eps=1e-5, slope=0.01):
    def conv3d(t, w, b, stride, pad):
        y = jax.lax.conv_general_dilated(
            t, w, window_strides=(stride,) * 3, padding=[(pad, pad)] * 3,
            dimension_numbers=("NCDHW", "OIDHW", "NCDHW"))
        return y + b[None, :, None, None, None]

    def gn(t, gamma, beta):
        N, C = t.shape[:2]
        tg = t.reshape(N, groups, -1)
        mean = tg.mean(axis=2, keepdims=True)
        var = ((tg - mean) ** 2).mean(axis=2, keepdims=True)
        tn = ((tg - mean) / jnp.sqrt(var + eps)).reshape(t.shape)
        return tn * gamma[None, :, None, None, None] + beta[None, :, None, None, None]

    def lrelu(t):
        return jnp.where(t >= 0, t, slope * t)

    y = conv3d(x, p["down_w"], p["down_b"], 2, 0)
    out = lrelu(gn(y, p["gn1_w"], p["gn1_b"]))
    shortcut = y
    out = conv3d(out, p["conv1_w"], p["conv1_b"], 1, 1)
    out = lrelu(gn(out, p["gn2_w"], p["gn2_b"]))
    out = conv3d(out, p["conv2_w"], p["conv2_b"], 1, 1)
    return out + shortcut


# ----------------------------------------------------------------------------
def init_params(key, in_channels, out_channels):
    ks = jax.random.split(key, 8)
    s = 0.1
    return {
        "down_w": s * jax.random.normal(ks[0], (out_channels, in_channels, 2, 2, 2), jnp.float32),
        "down_b": s * jax.random.normal(ks[1], (out_channels,), jnp.float32),
        "gn1_w": 1.0 + s * jax.random.normal(ks[2], (out_channels,), jnp.float32),
        "gn1_b": s * jax.random.normal(ks[3], (out_channels,), jnp.float32),
        "conv1_w": s * jax.random.normal(ks[4], (out_channels, out_channels, 3, 3, 3), jnp.float32),
        "conv1_b": s * jax.random.normal(ks[5], (out_channels,), jnp.float32),
        "gn2_w": 1.0 + s * jax.random.normal(ks[6], (out_channels,), jnp.float32),
        "gn2_b": s * jax.random.normal(ks[7], (out_channels,), jnp.float32),
        "conv2_w": s * jax.random.normal(ks[0], (out_channels, out_channels, 3, 3, 3), jnp.float32),
        "conv2_b": s * jax.random.normal(ks[1], (out_channels,), jnp.float32),
    }


if __name__ == "__main__":
    key = jax.random.PRNGKey(0)
    kx, kp = jax.random.split(key)

    N, Cin, Cout = 2, 4, 16          # Cout must be divisible by GroupNorm groups (8)
    D = H = W = 8
    x = jax.random.normal(kx, (N, Cin, D, H, W), jnp.float32)
    params = init_params(kp, Cin, Cout)

    out = jax.block_until_ready(unet_encoder_block(x, params))
    assert out.shape == (N, Cout, D // 2, H // 2, W // 2), out.shape

    # conv matmuls run in bf16 with f32 accumulation -> compare with a loose,
    # norm-based tolerance against the f32 reference.
    ref = reference_forward(x, params)
    rel = jnp.linalg.norm(out - ref) / jnp.linalg.norm(ref)
    if float(rel) > 0.05:
        raise AssertionError(f"Pallas output mismatch: rel_err={float(rel):.4f}")

    print("KERNEL_OK")
</pallas_src>

<mosaic_0001>
module attributes {stable_mosaic.version = 11 : i64} {
  func.func @_down_matmul_kernel(%arg0: i32, %arg1: i32, %arg2: memref<1x64x32xbf16, #tpu.memory_space<vmem>>, %arg3: memref<32x16xbf16, #tpu.memory_space<vmem>>, %arg4: memref<1x16xf32, #tpu.memory_space<vmem>>, %arg5: memref<1x64x16xf32, #tpu.memory_space<vmem>>, %arg6: memref<1x1x16xf32, #tpu.memory_space<vmem>>, %arg7: memref<1x1x16xf32, #tpu.memory_space<vmem>>) attributes {dimension_semantics = [#tpu.dimension_semantics<parallel>, #tpu.dimension_semantics<arbitrary>], iteration_bounds = array<i64: 2, 1>, scalar_prefetch = 0 : i64, scratch_operands = 0 : i64, tpu.core_type = #tpu.core_type<tc>, window_params = [{transform_indices = @transform_0, window_bounds = array<i64: 1, 64, 32>}, {pipeline_mode = #tpu.pipeline_mode<synchronous>, transform_indices = @transform_1, window_bounds = array<i64: 32, 16>}, {pipeline_mode = #tpu.pipeline_mode<synchronous>, transform_indices = @transform_2, window_bounds = array<i64: 1, 16>}, {transform_indices = @transform_3, window_bounds = array<i64: 1, 64, 16>}, {transform_indices = @transform_4, window_bounds = array<i64: 1, 1, 16>}, {transform_indices = @transform_5, window_bounds = array<i64: 1, 1, 16>}]} {
    %c0_i32 = arith.constant 0 : i32
    %0 = arith.cmpi eq, %arg1, %c0_i32 : i32
    %1 = arith.extui %0 : i1 to i32
    %c0_i32_0 = arith.constant 0 : i32
    %2 = arith.cmpi ne, %1, %c0_i32_0 : i32
    scf.if %2 {
      %cst_24 = arith.constant 0.000000e+00 : f32
      %25 = vector.broadcast %cst_24 : f32 to vector<1x1x16xf32>
      %c0_25 = arith.constant 0 : index
      %c0_26 = arith.constant 0 : index
      %c0_27 = arith.constant 0 : index
      %26 = vector.load %arg6[%c0_25, %c0_26, %c0_27] : memref<1x1x16xf32, #tpu.memory_space<vmem>>, vector<1x1x16xf32>
      tpu.vector_store %arg6[%c0_25, %c0_26, %c0_27], %25 {strides = array<i32>} : memref<1x1x16xf32, #tpu.memory_space<vmem>>, vector<1x1x16xf32>,
      %cst_28 = arith.constant 0.000000e+00 : f32
      %27 = vector.broadcast %cst_28 : f32 to vector<1x1x16xf32>
      %c0_29 = arith.constant 0 : index
      %c0_30 = arith.constant 0 : index
      %c0_31 = arith.constant 0 : index
      %28 = vector.load %arg7[%c0_29, %c0_30, %c0_31] : memref<1x1x16xf32, #tpu.memory_space<vmem>>, vector<1x1x16xf32>
      tpu.vector_store %arg7[%c0_29, %c0_30, %c0_31], %27 {strides = array<i32>} : memref<1x1x16xf32, #tpu.memory_space<vmem>>, vector<1x1x16xf32>,
    } else {
    }
    %c0 = arith.constant 0 : index
    %c0_1 = arith.constant 0 : index
    %c0_2 = arith.constant 0 : index
    %3 = vector.load %arg2[%c0, %c0_1, %c0_2] : memref<1x64x32xbf16, #tpu.memory_space<vmem>>, vector<1x64x32xbf16>
    %4 = vector.shape_cast %3 : vector<1x64x32xbf16> to vector<64x32xbf16>
    %c0_3 = arith.constant 0 : index
    %c0_4 = arith.constant 0 : index
    %5 = vector.load %arg3[%c0_3, %c0_4] : memref<32x16xbf16, #tpu.memory_space<vmem>>, vector<32x16xbf16>
    %cst = arith.constant dense<0.000000e+00> : vector<64x16xf32>
    %6 = tpu.matmul %4, %5, %cst {dimension_numbers = #tpu.dot_dimension_numbers<[1], [0], [0], [1], [0, 0, 1, 1], [], []>} : vector<64x32xbf16>, vector<32x16xbf16>, vector<64x16xf32> -> vector<64x16xf32>
    %c0_5 = arith.constant 0 : index
    %c0_6 = arith.constant 0 : index
    %7 = vector.load %arg4[%c0_5, %c0_6] : memref<1x16xf32, #tpu.memory_space<vmem>>, vector<1x16xf32>
    %8 = vector.broadcast %7 : vector<1x16xf32> to vector<64x16xf32>
    %9 = arith.addf %6, %8 : vector<64x16xf32>
    %10 = vector.shape_cast %9 : vector<64x16xf32> to vector<1x64x16xf32>
    %c0_7 = arith.constant 0 : index
    %c0_8 = arith.constant 0 : index
    %c0_9 = arith.constant 0 : index
    %11 = vector.load %arg5[%c0_7, %c0_8, %c0_9] : memref<1x64x16xf32, #tpu.memory_space<vmem>>, vector<1x64x16xf32>
    tpu.vector_store %arg5[%c0_7, %c0_8, %c0_9], %10 {strides = array<i32>} : memref<1x64x16xf32, #tpu.memory_space<vmem>>, vector<1x64x16xf32>,
    %c0_10 = arith.constant 0 : index
    %c0_11 = arith.constant 0 : index
    %c0_12 = arith.constant 0 : index
    %12 = vector.load %arg6[%c0_10, %c0_11, %c0_12] : memref<1x1x16xf32, #tpu.memory_space<vmem>>, vector<1x1x16xf32>
    %cst_13 = arith.constant dense<0.000000e+00> : vector<16xf32>
    %13 = vector.multi_reduction <add>, %9, %cst_13 [0] : vector<64x16xf32> to vector<16xf32>
    %14 = vector.shape_cast %13 : vector<16xf32> to vector<1x16xf32>
    %15 = vector.shape_cast %14 : vector<1x16xf32> to vector<1x1x16xf32>
    %16 = arith.addf %12, %15 : vector<1x1x16xf32>
    %c0_14 = arith.constant 0 : index
    %c0_15 = arith.constant 0 : index
    %c0_16 = arith.constant 0 : index
    %17 = vector.load %arg6[%c0_14, %c0_15, %c0_16] : memref<1x1x16xf32, #tpu.memory_space<vmem>>, vector<1x1x16xf32>
    tpu.vector_store %arg6[%c0_14, %c0_15, %c0_16], %16 {strides = array<i32>} : memref<1x1x16xf32, #tpu.memory_space<vmem>>, vector<1x1x16xf32>,
    %c0_17 = arith.constant 0 : index
    %c0_18 = arith.constant 0 : index
    %c0_19 = arith.constant 0 : index
    %18 = vector.load %arg7[%c0_17, %c0_18, %c0_19] : memref<1x1x16xf32, #tpu.memory_space<vmem>>, vector<1x1x16xf32>
    %19 = arith.mulf %9, %9 : vector<64x16xf32>
    %cst_20 = arith.constant dense<0.000000e+00> : vector<16xf32>
    %20 = vector.multi_reduction <add>, %19, %cst_20 [0] : vector<64x16xf32> to vector<16xf32>
    %21 = vector.shape_cast %20 : vector<16xf32> to vector<1x16xf32>
    %22 = vector.shape_cast %21 : vector<1x16xf32> to vector<1x1x16xf32>
    %23 = arith.addf %18, %22 : vector<1x1x16xf32>
    %c0_21 = arith.constant 0 : index
    %c0_22 = arith.constant 0 : index
    %c0_23 = arith.constant 0 : index
    %24 = vector.load %arg7[%c0_21, %c0_22, %c0_23] : memref<1x1x16xf32, #tpu.memory_space<vmem>>, vector<1x1x16xf32>
    tpu.vector_store %arg7[%c0_21, %c0_22, %c0_23], %23 {strides = array<i32>} : memref<1x1x16xf32, #tpu.memory_space<vmem>>, vector<1x1x16xf32>,
    return
  }
  func.func @transform_0(%arg0: i32, %arg1: i32) -> (i32, i32, i32) {
    %c0_i32 = arith.constant 0 : i32
    %c0_i32_0 = arith.constant 0 : i32
    return %arg0, %arg1, %c0_i32 : i32, i32, i32
  }
  func.func @transform_1(%arg0: i32, %arg1: i32) -> (i32, i32) {
    %c0_i32 = arith.constant 0 : i32
    %c0_i32_0 = arith.constant 0 : i32
    %c0_i32_1 = arith.constant 0 : i32
    return %c0_i32, %c0_i32_0 : i32, i32
  }
  func.func @transform_2(%arg0: i32, %arg1: i32) -> (i32, i32) {
    %c0_i32 = arith.constant 0 : i32
    %c0_i32_0 = arith.constant 0 : i32
    %c0_i32_1 = arith.constant 0 : i32
    return %c0_i32, %c0_i32_0 : i32, i32
  }
  func.func @transform_3(%arg0: i32, %arg1: i32) -> (i32, i32, i32) {
    %c0_i32 = arith.constant 0 : i32
    %c0_i32_0 = arith.constant 0 : i32
    return %arg0, %arg1, %c0_i32 : i32, i32, i32
  }
  func.func @transform_4(%arg0: i32, %arg1: i32) -> (i32, i32, i32) {
    %c0_i32 = arith.constant 0 : i32
    %c0_i32_0 = arith.constant 0 : i32
    %c0_i32_1 = arith.constant 0 : i32
    return %arg0, %c0_i32, %c0_i32_0 : i32, i32, i32
  }
  func.func @transform_5(%arg0: i32, %arg1: i32) -> (i32, i32, i32) {
    %c0_i32 = arith.constant 0 : i32
    %c0_i32_0 = arith.constant 0 : i32
    %c0_i32_1 = arith.constant 0 : i32
    return %arg0, %c0_i32, %c0_i32_0 : i32, i32, i32
  }
}

module attributes {stable_mosaic.version = 11 : i64} {
  func.func @_gn_lrelu_kernel(%arg0: i32, %arg1: i32, %arg2: memref<1x8x128xf32, #tpu.memory_space<vmem>>, %arg3: memref<1x1x128xf32, #tpu.memory_space<vmem>>, %arg4: memref<1x1x128xf32, #tpu.memory_space<vmem>>, %arg5: memref<1x8x128xbf16, #tpu.memory_space<vmem>>) attributes {dimension_semantics = [#tpu.dimension_semantics<parallel>, #tpu.dimension_semantics<parallel>], iteration_bounds = array<i64: 2, 1>, scalar_prefetch = 0 : i64, scratch_operands = 0 : i64, tpu.core_type = #tpu.core_type<tc>, window_params = [{transform_indices = @transform_0, window_bounds = array<i64: 1, 8, 128>}, {transform_indices = @transform_1, window_bounds = array<i64: 1, 1, 128>}, {transform_indices = @transform_2, window_bounds = array<i64: 1, 1, 128>}, {transform_indices = @transform_3, window_bounds = array<i64: 1, 8, 128>}]} {
    %c0 = arith.constant 0 : index
    %c0_0 = arith.constant 0 : index
    %c0_1 = arith.constant 0 : index
    %0 = vector.load %arg2[%c0, %c0_0, %c0_1] : memref<1x8x128xf32, #tpu.memory_space<vmem>>, vector<1x8x128xf32>
    %c0_2 = arith.constant 0 : index
    %c0_3 = arith.constant 0 : index
    %c0_4 = arith.constant 0 : index
    %1 = vector.load %arg3[%c0_2, %c0_3, %c0_4] : memref<1x1x128xf32, #tpu.memory_space<vmem>>, vector<1x1x128xf32>
    %2 = vector.broadcast %1 : vector<1x1x128xf32> to vector<1x8x128xf32>
    %3 = arith.mulf %0, %2 : vector<1x8x128xf32>
    %c0_5 = arith.constant 0 : index
    %c0_6 = arith.constant 0 : index
    %c0_7 = arith.constant 0 : index
    %4 = vector.load %arg4[%c0_5, %c0_6, %c0_7] : memref<1x1x128xf32, #tpu.memory_space<vmem>>, vector<1x1x128xf32>
    %5 = vector.broadcast %4 : vector<1x1x128xf32> to vector<1x8x128xf32>
    %6 = arith.addf %3, %5 : vector<1x8x128xf32>
    %cst = arith.constant 0.000000e+00 : f32
    %7 = vector.broadcast %cst : f32 to vector<1x8x128xf32>
    %8 = arith.cmpf oge, %6, %7 : vector<1x8x128xf32>
    %cst_8 = arith.constant 0.00999999977 : f32
    %9 = vector.broadcast %cst_8 : f32 to vector<1x8x128xf32>
    %10 = arith.mulf %9, %6 : vector<1x8x128xf32>
    %11 = arith.select %8, %6, %10 : vector<1x8x128xi1>, vector<1x8x128xf32>
    %12 = arith.truncf %11 : vector<1x8x128xf32> to vector<1x8x128xbf16>
    %c0_9 = arith.constant 0 : index
    %c0_10 = arith.constant 0 : index
    %c0_11 = arith.constant 0 : index
    %13 = vector.load %arg5[%c0_9, %c0_10, %c0_11] : memref<1x8x128xbf16, #tpu.memory_space<vmem>>, vector<1x8x128xbf16>
    tpu.vector_store %arg5[%c0_9, %c0_10, %c0_11], %12 {strides = array<i32>} : memref<1x8x128xbf16, #tpu.memory_space<vmem>>, vector<1x8x128xbf16>,
    return
  }
  func.func @transform_0(%arg0: i32, %arg1: i32) -> (i32, i32, i32) {
    %c0_i32 = arith.constant 0 : i32
    %c0_i32_0 = arith.constant 0 : i32
    return %arg0, %arg1, %c0_i32 : i32, i32, i32
  }
  func.func @transform_1(%arg0: i32, %arg1: i32) -> (i32, i32, i32) {
    %c0_i32 = arith.constant 0 : i32
    %c0_i32_0 = arith.constant 0 : i32
    %c0_i32_1 = arith.constant 0 : i32
    return %arg0, %c0_i32, %c0_i32_0 : i32, i32, i32
  }
  func.func @transform_2(%arg0: i32, %arg1: i32) -> (i32, i32, i32) {
    %c0_i32 = arith.constant 0 : i32
    %c0_i32_0 = arith.constant 0 : i32
    %c0_i32_1 = arith.constant 0 : i32
    return %arg0, %c0_i32, %c0_i32_0 : i32, i32, i32
  }
  func.func @transform_3(%arg0: i32, %arg1: i32) -> (i32, i32, i32) {
    %c0_i32 = arith.constant 0 : i32
    %c0_i32_0 = arith.constant 0 : i32
    return %arg0, %arg1, %c0_i32 : i32, i32, i32
  }
}

module attributes {stable_mosaic.version = 11 : i64} {
  func.func @_conv3x3_res_kernel(%arg0: i32, %arg1: i32, %arg2: memref<1x1x6x6x16xbf16, #tpu.memory_space<vmem>>, %arg3: memref<1x1x6x6x16xbf16, #tpu.memory_space<vmem>>, %arg4: memref<1x1x6x6x16xbf16, #tpu.memory_space<vmem>>, %arg5: memref<27x16x16xbf16, #tpu.memory_space<vmem>>, %arg6: memref<1x16xf32, #tpu.memory_space<vmem>>, %arg7: memref<1x16x16xf32, #tpu.memory_space<vmem>>, %arg8: memref<1x16x16xf32, #tpu.memory_space<vmem>>) attributes {dimension_semantics = [#tpu.dimension_semantics<parallel>, #tpu.dimension_semantics<parallel>], iteration_bounds = array<i64: 2, 4>, scalar_prefetch = 0 : i64, scratch_operands = 0 : i64, tpu.core_type = #tpu.core_type<tc>, window_params = [{transform_indices = @transform_0, window_bounds = array<i64: 1, 1, 6, 6, 16>}, {transform_indices = @transform_1, window_bounds = array<i64: 1, 1, 6, 6, 16>}, {transform_indices = @transform_2, window_bounds = array<i64: 1, 1, 6, 6, 16>}, {pipeline_mode = #tpu.pipeline_mode<synchronous>, transform_indices = @transform_3, window_bounds = array<i64: 27, 16, 16>}, {pipeline_mode = #tpu.pipeline_mode<synchronous>, transform_indices = @transform_4, window_bounds = array<i64: 1, 16>}, {transform_indices = @transform_5, window_bounds = array<i64: 1, 16, 16>}, {transform_indices = @transform_6, window_bounds = array<i64: 1, 16, 16>}]} {
    %c0 = arith.constant 0 : index
    %c0_0 = arith.constant 0 : index
    %c0_1 = arith.constant 0 : index
    %c0_2 = arith.constant 0 : index
    %c0_3 = arith.constant 0 : index
    %0 = vector.load %arg2[%c0, %c0_0, %c0_1, %c0_2, %c0_3] : memref<1x1x6x6x16xbf16, #tpu.memory_space<vmem>>, vector<1x1x6x6x16xbf16>
    %1 = vector.shape_cast %0 : vector<1x1x6x6x16xbf16> to vector<6x6x16xbf16>
    %c0_4 = arith.constant 0 : index
    %c0_5 = arith.constant 0 : index
    %c0_6 = arith.constant 0 : index
    %c0_7 = arith.constant 0 : index
    %c0_8 = arith.constant 0 : index
    %2 = vector.load %arg3[%c0_4, %c0_5, %c0_6, %c0_7, %c0_8] : memref<1x1x6x6x16xbf16, #tpu.memory_space<vmem>>, vector<1x1x6x6x16xbf16>
    %3 = vector.shape_cast %2 : vector<1x1x6x6x16xbf16> to vector<6x6x16xbf16>
    %c0_9 = arith.constant 0 : index
    %c0_10 = arith.constant 0 : index
    %c0_11 = arith.constant 0 : index
    %c0_12 = arith.constant 0 : index
    %c0_13 = arith.constant 0 : index
    %4 = vector.load %arg4[%c0_9, %c0_10, %c0_11, %c0_12, %c0_13] : memref<1x1x6x6x16xbf16, #tpu.memory_space<vmem>>, vector<1x1x6x6x16xbf16>
    %5 = vector.shape_cast %4 : vector<1x1x6x6x16xbf16> to vector<6x6x16xbf16>
    %c0_14 = arith.constant 0 : index
    %c0_15 = arith.constant 0 : index
    %6 = vector.load %arg6[%c0_14, %c0_15] : memref<1x16xf32, #tpu.memory_space<vmem>>, vector<1x16xf32>
    %7 = vector.extract_strided_slice %1 {offsets = [0, 0, 0], sizes = [1, 6, 16], strides = [1, 1, 1]} : vector<6x6x16xbf16> to vector<1x6x16xbf16>
    %8 = vector.shape_cast %7 : vector<1x6x16xbf16> to vector<6x16xbf16>
    %9 = vector.extract_strided_slice %8 {offsets = [0, 0], sizes = [4, 16], strides = [1, 1]} : vector<6x16xbf16> to vector<4x16xbf16>
    %c0_16 = arith.constant 0 : index
    %c0_17 = arith.constant 0 : index
    %c0_18 = arith.constant 0 : index
    %10 = vector.load %arg5[%c0_16, %c0_17, %c0_18] : memref<27x16x16xbf16, #tpu.memory_space<vmem>>, vector<1x16x16xbf16>
    %11 = vector.shape_cast %10 : vector<1x16x16xbf16> to vector<16x16xbf16>
    %cst = arith.constant dense<0.000000e+00> : vector<4x16xf32>
    %12 = tpu.matmul %9, %11, %cst {dimension_numbers = #tpu.dot_dimension_numbers<[1], [0], [0], [1], [0, 0, 1, 1], [], []>} : vector<4x16xbf16>, vector<16x16xbf16>, vector<4x16xf32> -> vector<4x16xf32>
    %13 = vector.extract_strided_slice %8 {offsets = [1, 0], sizes = [4, 16], strides = [1, 1]} : vector<6x16xbf16> to vector<4x16xbf16>
    %c1 = arith.constant 1 : index
    %c0_19 = arith.constant 0 : index
    %c0_20 = arith.constant 0 : index
    %14 = vector.load %arg5[%c1, %c0_19, %c0_20] : memref<27x16x16xbf16, #tpu.memory_space<vmem>>, vector<1x16x16xbf16>
    %15 = vector.shape_cast %14 : vector<1x16x16xbf16> to vector<16x16xbf16>
    %cst_21 = arith.constant dense<0.000000e+00> : vector<4x16xf32>
    %16 = tpu.matmul %13, %15, %cst_21 {dimension_numbers = #tpu.dot_dimension_numbers<[1], [0], [0], [1], [0, 0, 1, 1], [], []>} : vector<4x16xbf16>, vector<16x16xbf16>, vector<4x16xf32> -> vector<4x16xf32>
    %17 = arith.addf %12, %16 : vector<4x16xf32>
    %18 = vector.extract_strided_slice %8 {offsets = [2, 0], sizes = [4, 16], strides = [1, 1]} : vector<6x16xbf16> to vector<4x16xbf16>
    %c2 = arith.constant 2 : index
    %c0_22 = arith.constant 0 : index
    %c0_23 = arith.constant 0 : index
    %19 = vector.load %arg5[%c2, %c0_22, %c0_23] : memref<27x16x16xbf16, #tpu.memory_space<vmem>>, vector<1x16x16xbf16>
    %20 = vector.shape_cast %19 : vector<1x16x16xbf16> to vector<16x16xbf16>
    %cst_24 = arith.constant dense<0.000000e+00> : vector<4x16xf32>
    %21 = tpu.matmul %18, %20, %cst_24 {dimension_numbers = #tpu.dot_dimension_numbers<[1], [0], [0], [1], [0, 0, 1, 1], [], []>} : vector<4x16xbf16>, vector<16x16xbf16>, vector<4x16xf32> -> vector<4x16xf32>
    %22 = arith.addf %17, %21 : vector<4x16xf32>
    %23 = vector.extract_strided_slice %1 {offsets = [1, 0, 0], sizes = [1, 6, 16], strides = [1, 1, 1]} : vector<6x6x16xbf16> to vector<1x6x16xbf16>
    %24 = vector.shape_cast %23 : vector<1x6x16xbf16> to vector<6x16xbf16>
    %25 = vector.extract_strided_slice %24 {offsets = [0, 0], sizes = [4, 16], strides = [1, 1]} : vector<6x16xbf16> to vector<4x16xbf16>
    %c3 = arith.constant 3 : index
    %c0_25 = arith.constant 0 : index
    %c0_26 = arith.constant 0 : index
    %26 = vector.load %arg5[%c3, %c0_25, %c0_26] : memref<27x16x16xbf16, #tpu.memory_space<vmem>>, vector<1x16x16xbf16>
    %27 = vector.shape_cast %26 : vector<1x16x16xbf16> to vector<16x16xbf16>
    %cst_27 = arith.constant dense<0.000000e+00> : vector<4x16xf32>
    %28 = tpu.matmul %25, %27, %cst_27 {dimension_numbers = #tpu.dot_dimension_numbers<[1], [0], [0], [1], [0, 0, 1, 1], [], []>} : vector<4x16xbf16>, vector<16x16xbf16>, vector<4x16xf32> -> vector<4x16xf32>
    %29 = arith.addf %22, %28 : vector<4x16xf32>
    %30 = vector.extract_strided_slice %24 {offsets = [1, 0], sizes = [4, 16], strides = [1, 1]} : vector<6x16xbf16> to vector<4x16xbf16>
    %c4 = arith.constant 4 : index
    %c0_28 = arith.constant 0 : index
    %c0_29 = arith.constant 0 : index
    %31 = vector.load %arg5[%c4, %c0_28, %c0_29] : memref<27x16x16xbf16, #tpu.memory_space<vmem>>, vector<1x16x16xbf16>
    %32 = vector.shape_cast %31 : vector<1x16x16xbf16> to vector<16x16xbf16>
    %cst_30 = arith.constant dense<0.000000e+00> : vector<4x16xf32>
    %33 = tpu.matmul %30, %32, %cst_30 {dimension_numbers = #tpu.dot_dimension_numbers<[1], [0], [0], [1], [0, 0, 1, 1], [], []>} : vector<4x16xbf16>, vector<16x16xbf16>, vector<4x16xf32> -> vector<4x16xf32>
    %34 = arith.addf %29, %33 : vector<4x16xf32>
    %35 = vector.extract_strided_slice %24 {offsets = [2, 0], sizes = [4, 16], strides = [1, 1]} : vector<6x16xbf16> to vector<4x16xbf16>
    %c5 = arith.constant 5 : index
    %c0_31 = arith.constant 0 : index
    %c0_32 = arith.constant 0 : index
    %36 = vector.load %arg5[%c5, %c0_31, %c0_32] : memref<27x16x16xbf16, #tpu.memory_space<vmem>>, vector<1x16x16xbf16>
    %37 = vector.shape_cast %36 : vector<1x16x16xbf16> to vector<16x16xbf16>
    %cst_33 = arith.constant dense<0.000000e+00> : vector<4x16xf32>
    %38 = tpu.matmul %35, %37, %cst_33 {dimension_numbers = #tpu.dot_dimension_numbers<[1], [0], [0], [1], [0, 0, 1, 1], [], []>} : vector<4x16xbf16>, vector<16x16xbf16>, vector<4x16xf32> -> vector<4x16xf32>
    %39 = arith.addf %34, %38 : vector<4x16xf32>
    %40 = vector.extract_strided_slice %1 {offsets = [2, 0, 0], sizes = [1, 6, 16], strides = [1, 1, 1]} : vector<6x6x16xbf16> to vector<1x6x16xbf16>
    %41 = vector.shape_cast %40 : vector<1x6x16xbf16> to vector<6x16xbf16>
    %42 = vector.extract_strided_slice %41 {offsets = [0, 0], sizes = [4, 16], strides = [1, 1]} : vector<6x16xbf16> to vector<4x16xbf16>
    %c6 = arith.constant 6 : index
    %c0_34 = arith.constant 0 : index
    %c0_35 = arith.constant 0 : index
    %43 = vector.load %arg5[%c6, %c0_34, %c0_35] : memref<27x16x16xbf16, #tpu.memory_space<vmem>>, vector<1x16x16xbf16>
    %44 = vector.shape_cast %43 : vector<1x16x16xbf16> to vector<16x16xbf16>
    %cst_36 = arith.constant dense<0.000000e+00> : vector<4x16xf32>
    %45 = tpu.matmul %42, %44, %cst_36 {dimension_numbers = #tpu.dot_dimension_numbers<[1], [0], [0], [1], [0, 0, 1, 1], [], []>} : vector<4x16xbf16>, vector<16x16xbf16>, vector<4x16xf32> -> vector<4x16xf32>
    %46 = arith.addf %39, %45 : vector<4x16xf32>
    %47 = vector.extract_strided_slice %41 {offsets = [1, 0], sizes = [4, 16], strides = [1, 1]} : vector<6x16xbf16> to vector<4x16xbf16>
    %c7 = arith.constant 7 : index
    %c0_37 = arith.constant 0 : index
    %c0_38 = arith.constant 0 : index
    %48 = vector.load %arg5[%c7, %c0_37, %c0_38] : memref<27x16x16xbf16, #tpu.memory_space<vmem>>, vector<1x16x16xbf16>
    %49 = vector.shape_cast %48 : vector<1x16x16xbf16> to vector<16x16xbf16>
    %cst_39 = arith.constant dense<0.000000e+00> : vector<4x16xf32>
    %50 = tpu.matmul %47, %49, %cst_39 {dimension_numbers = #tpu.dot_dimension_numbers<[1], [0], [0], [1], [0, 0, 1, 1], [], []>} : vector<4x16xbf16>, vector<16x16xbf16>, vector<4x16xf32> -> vector<4x16xf32>
    %51 = arith.addf %46, %50 : vector<4x16xf32>
    %52 = vector.extract_strided_slice %41 {offsets = [2, 0], sizes = [4, 16], strides = [1, 1]} : vector<6x16xbf16> to vector<4x16xbf16>
    %c8 = arith.constant 8 : index
    %c0_40 = arith.constant 0 : index
    %c0_41 = arith.constant 0 : index
    %53 = vector.load %arg5[%c8, %c0_40, %c0_41] : memref<27x16x16xbf16, #tpu.memory_space<vmem>>, vector<1x16x16xbf16>
    %54 = vector.shape_cast %53 : vector<1x16x16xbf16> to vector<16x16xbf16>
    %cst_42 = arith.constant dense<0.000000e+00> : vector<4x16xf32>
    %55 = tpu.matmul %52, %54, %cst_42 {dimension_numbers = #tpu.dot_dimension_numbers<[1], [0], [0], [1], [0, 0, 1, 1], [], []>} : vector<4x16xbf16>, vector<16x16xbf16>, vector<4x16xf32> -> vector<4x16xf32>
    %56 = arith.addf %51, %55 : vector<4x16xf32>
    %57 = vector.extract_strided_slice %3 {offsets = [0, 0, 0], sizes = [1, 6, 16], strides = [1, 1, 1]} : vector<6x6x16xbf16> to vector<1x6x16xbf16>
    %58 = vector.shape_cast %57 : vector<1x6x16xbf16> to vector<6x16xbf16>
    %59 = vector.extract_strided_slice %58 {offsets = [0, 0], sizes = [4, 16], strides = [1, 1]} : vector<6x16xbf16> to vector<4x16xbf16>
    %c9 = arith.constant 9 : index
    %c0_43 = arith.constant 0 : index
    %c0_44 = arith.constant 0 : index
    %60 = vector.load %arg5[%c9, %c0_43, %c0_44] : memref<27x16x16xbf16, #tpu.memory_space<vmem>>, vector<1x16x16xbf16>
    %61 = vector.shape_cast %60 : vector<1x16x16xbf16> to vector<16x16xbf16>
    %cst_45 = arith.constant dense<0.000000e+00> : vector<4x16xf32>
    %62 = tpu.matmul %59, %61, %cst_45 {dimension_numbers = #tpu.dot_dimension_numbers<[1], [0], [0], [1], [0, 0, 1, 1], [], []>} : vector<4x16xbf16>, vector<16x16xbf16>, vector<4x16xf32> -> vector<4x16xf32>
    %63 = arith.addf %56, %62 : vector<4x16xf32>
    %64 = vector.extract_strided_slice %58 {offsets = [1, 0], sizes = [4, 16], strides = [1, 1]} : vector<6x16xbf16> to vector<4x16xbf16>
    %c10 = arith.constant 10 : index
    %c0_46 = arith.constant 0 : index
    %c0_47 = arith.constant 0 : index
    %65 = vector.load %arg5[%c10, %c0_46, %c0_47] : memref<27x16x16xbf16, #tpu.memory_space<vmem>>, vector<1x16x16xbf16>
    %66 = vector.shape_cast %65 : vector<1x16x16xbf16> to vector<16x16xbf16>
    %cst_48 = arith.constant dense<0.000000e+00> : vector<4x16xf32>
    %67 = tpu.matmul %64, %66, %cst_48 {dimension_numbers = #tpu.dot_dimension_numbers<[1], [0], [0], [1], [0, 0, 1, 1], [], []>} : vector<4x16xbf16>, vector<16x16xbf16>, vector<4x16xf32> -> vector<4x16xf32>
    %68 = arith.addf %63, %67 : vector<4x16xf32>
    %69 = vector.extract_strided_slice %58 {offsets = [2, 0], sizes = [4, 16], strides = [1, 1]} : vector<6x16xbf16> to vector<4x16xbf16>
    %c11 = arith.constant 11 : index
    %c0_49 = arith.constant 0 : index
    %c0_50 = arith.constant 0 : index
    %70 = vector.load %arg5[%c11, %c0_49, %c0_50] : memref<27x16x16xbf16, #tpu.memory_space<vmem>>, vector<1x16x16xbf16>
    %71 = vector.shape_cast %70 : vector<1x16x16xbf16> to vector<16x16xbf16>
    %cst_51 = arith.constant dense<0.000000e+00> : vector<4x16xf32>
    %72 = tpu.matmul %69, %71, %cst_51 {dimension_numbers = #tpu.dot_dimension_numbers<[1], [0], [0], [1], [0, 0, 1, 1], [], []>} : vector<4x16xbf16>, vector<16x16xbf16>, vector<4x16xf32> -> vector<4x16xf32>
    %73 = arith.addf %68, %72 : vector<4x16xf32>
    %74 = vector.extract_strided_slice %3 {offsets = [1, 0, 0], sizes = [1, 6, 16], strides = [1, 1, 1]} : vector<6x6x16xbf16> to vector<1x6x16xbf16>
    %75 = vector.shape_cast %74 : vector<1x6x16xbf16> to vector<6x16xbf16>
    %76 = vector.extract_strided_slice %75 {offsets = [0, 0], sizes = [4, 16], strides = [1, 1]} : vector<6x16xbf16> to vector<4x16xbf16>
    %c12 = arith.constant 12 : index
    %c0_52 = arith.constant 0 : index
    %c0_53 = arith.constant 0 : index
    %77 = vector.load %arg5[%c12, %c0_52, %c0_53] : memref<27x16x16xbf16, #tpu.memory_space<vmem>>, vector<1x16x16xbf16>
    %78 = vector.shape_cast %77 : vector<1x16x16xbf16> to vector<16x16xbf16>
    %cst_54 = arith.constant dense<0.000000e+00> : vector<4x16xf32>
    %79 = tpu.matmul %76, %78, %cst_54 {dimension_numbers = #tpu.dot_dimension_numbers<[1], [0], [0], [1], [0, 0, 1, 1], [], []>} : vector<4x16xbf16>, vector<16x16xbf16>, vector<4x16xf32> -> vector<4x16xf32>
    %80 = arith.addf %73, %79 : vector<4x16xf32>
    %81 = vector.extract_strided_slice %75 {offsets = [1, 0], sizes = [4, 16], strides = [1, 1]} : vector<6x16xbf16> to vector<4x16xbf16>
    %c13 = arith.constant 13 : index
    %c0_55 = arith.constant 0 : index
    %c0_56 = arith.constant 0 : index
    %82 = vector.load %arg5[%c13, %c0_55, %c0_56] : memref<27x16x16xbf16, #tpu.memory_space<vmem>>, vector<1x16x16xbf16>
    %83 = vector.shape_cast %82 : vector<1x16x16xbf16> to vector<16x16xbf16>
    %cst_57 = arith.constant dense<0.000000e+00> : vector<4x16xf32>
    %84 = tpu.matmul %81, %83, %cst_57 {dimension_numbers = #tpu.dot_dimension_numbers<[1], [0], [0], [1], [0, 0, 1, 1], [], []>} : vector<4x16xbf16>, vector<16x16xbf16>, vector<4x16xf32> -> vector<4x16xf32>
    %85 = arith.addf %80, %84 : vector<4x16xf32>
    %86 = vector.extract_strided_slice %75 {offsets = [2, 0], sizes = [4, 16], strides = [1, 1]} : vector<6x16xbf16> to vector<4x16xbf16>
    %c14 = arith.constant 14 : index
    %c0_58 = arith.constant 0 : index
    %c0_59 = arith.constant 0 : index
    %87 = vector.load %arg5[%c14, %c0_58, %c0_59] : memref<27x16x16xbf16, #tpu.memory_space<vmem>>, vector<1x16x16xbf16>
    %88 = vector.shape_cast %87 : vector<1x16x16xbf16> to vector<16x16xbf16>
    %cst_60 = arith.constant dense<0.000000e+00> : vector<4x16xf32>
    %89 = tpu.matmul %86, %88, %cst_60 {dimension_numbers = #tpu.dot_dimension_numbers<[1], [0], [0], [1], [0, 0, 1, 1], [], []>} : vector<4x16xbf16>, vector<16x16xbf16>, vector<4x16xf32> -> vector<4x16xf32>
    %90 = arith.addf %85, %89 : vector<4x16xf32>
    %91 = vector.extract_strided_slice %3 {offsets = [2, 0, 0], sizes = [1, 6, 16], strides = [1, 1, 1]} : vector<6x6x16xbf16> to vector<1x6x16xbf16>
    %92 = vector.shape_cast %91 : vector<1x6x16xbf16> to vector<6x16xbf16>
    %93 = vector.extract_strided_slice %92 {offsets = [0, 0], sizes = [4, 16], strides = [1, 1]} : vector<6x16xbf16> to vector<4x16xbf16>
    %c15 = arith.constant 15 : index
    %c0_61 = arith.constant 0 : index
    %c0_62 = arith.constant 0 : index
    %94 = vector.load %arg5[%c15, %c0_61, %c0_62] : memref<27x16x16xbf16, #tpu.memory_space<vmem>>, vector<1x16x16xbf16>
    %95 = vector.shape_cast %94 : vector<1x16x16xbf16> to vector<16x16xbf16>
    %cst_63 = arith.constant dense<0.000000e+00> : vector<4x16xf32>
    %96 = tpu.matmul %93, %95, %cst_63 {dimension_numbers = #tpu.dot_dimension_numbers<[1], [0], [0], [1], [0, 0, 1, 1], [], []>} : vector<4x16xbf16>, vector<16x16xbf16>, vector<4x16xf32> -> vector<4x16xf32>
    %97 = arith.addf %90, %96 : vector<4x16xf32>
    %98 = vector.extract_strided_slice %92 {offsets = [1, 0], sizes = [4, 16], strides = [1, 1]} : vector<6x16xbf16> to vector<4x16xbf16>
    %c16 = arith.constant 16 : index
    %c0_64 = arith.constant 0 : index
    %c0_65 = arith.constant 0 : index
    %99 = vector.load %arg5[%c16, %c0_64, %c0_65] : memref<27x16x16xbf16, #tpu.memory_space<vmem>>, vector<1x16x16xbf16>
    %100 = vector.shape_cast %99 : vector<1x16x16xbf16> to vector<16x16xbf16>
    %cst_66 = arith.constant dense<0.000000e+00> : vector<4x16xf32>
    %101 = tpu.matmul %98, %100, %cst_66 {dimension_numbers = #tpu.dot_dimension_numbers<[1], [0], [0], [1], [0, 0, 1, 1], [], []>} : vector<4x16xbf16>, vector<16x16xbf16>, vector<4x16xf32> -> vector<4x16xf32>
    %102 = arith.addf %97, %101 : vector<4x16xf32>
    %103 = vector.extract_strided_slice %92 {offsets = [2, 0], sizes = [4, 16], strides = [1, 1]} : vector<6x16xbf16> to vector<4x16xbf16>
    %c17 = arith.constant 17 : index
    %c0_67 = arith.constant 0 : index
    %c0_68 = arith.constant 0 : index
    %104 = vector.load %arg5[%c17, %c0_67, %c0_68] : memref<27x16x16xbf16, #tpu.memory_space<vmem>>, vector<1x16x16xbf16>
    %105 = vector.shape_cast %104 : vector<1x16x16xbf16> to vector<16x16xbf16>
    %cst_69 = arith.constant dense<0.000000e+00> : vector<4x16xf32>
    %106 = tpu.matmul %103, %105, %cst_69 {dimension_numbers = #tpu.dot_dimension_numbers<[1], [0], [0], [1], [0, 0, 1, 1], [], []>} : vector<4x16xbf16>, vector<16x16xbf16>, vector<4x16xf32> -> vector<4x16xf32>
    %107 = arith.addf %102, %106 : vector<4x16xf32>
    %108 = vector.extract_strided_slice %5 {offsets = [0, 0, 0], sizes = [1, 6, 16], strides = [1, 1, 1]} : vector<6x6x16xbf16> to vector<1x6x16xbf16>
    %109 = vector.shape_cast %108 : vector<1x6x16xbf16> to vector<6x16xbf16>
    %110 = vector.extract_strided_slice %109 {offsets = [0, 0], sizes = [4, 16], strides = [1, 1]} : vector<6x16xbf16> to vector<4x16xbf16>
    %c18 = arith.constant 18 : index
    %c0_70 = arith.constant 0 : index
    %c0_71 = arith.constant 0 : index
    %111 = vector.load %arg5[%c18, %c0_70, %c0_71] : memref<27x16x16xbf16, #tpu.memory_space<vmem>>, vector<1x16x16xbf16>
    %112 = vector.shape_cast %111 : vector<1x16x16xbf16> to vector<16x16xbf16>
    %cst_72 = arith.constant dense<0.000000e+00> : vector<4x16xf32>
    %113 = tpu.matmul %110, %112, %cst_72 {dimension_numbers = #tpu.dot_dimension_numbers<[1], [0], [0], [1], [0, 0, 1, 1], [], []>} : vector<4x16xbf16>, vector<16x16xbf16>, vector<4x16xf32> -> vector<4x16xf32>
    %114 = arith.addf %107, %113 : vector<4x16xf32>
    %115 = vector.extract_strided_slice %109 {offsets = [1, 0], sizes = [4, 16], strides = [1, 1]} : vector<6x16xbf16> to vector<4x16xbf16>
    %c19 = arith.constant 19 : index
    %c0_73 = arith.constant 0 : index
    %c0_74 = arith.constant 0 : index
    %116 = vector.load %arg5[%c19, %c0_73, %c0_74] : memref<27x16x16xbf16, #tpu.memory_space<vmem>>, vector<1x16x16xbf16>
    %117 = vector.shape_cast %116 : vector<1x16x16xbf16> to vector<16x16xbf16>
    %cst_75 = arith.constant dense<0.000000e+00> : vector<4x16xf32>
    %118 = tpu.matmul %115, %117, %cst_75 {dimension_numbers = #tpu.dot_dimension_numbers<[1], [0], [0], [1], [0, 0, 1, 1], [], []>} : vector<4x16xbf16>, vector<16x16xbf16>, vector<4x16xf32> -> vector<4x16xf32>
    %119 = arith.addf %114, %118 : vector<4x16xf32>
    %120 = vector.extract_strided_slice %109 {offsets = [2, 0], sizes = [4, 16], strides = [1, 1]} : vector<6x16xbf16> to vector<4x16xbf16>
    %c20 = arith.constant 20 : index
    %c0_76 = arith.constant 0 : index
    %c0_77 = arith.constant 0 : index
    %121 = vector.load %arg5[%c20, %c0_76, %c0_77] : memref<27x16x16xbf16, #tpu.memory_space<vmem>>, vector<1x16x16xbf16>
    %122 = vector.shape_cast %121 : vector<1x16x16xbf16> to vector<16x16xbf16>
    %cst_78 = arith.constant dense<0.000000e+00> : vector<4x16xf32>
    %123 = tpu.matmul %120, %122, %cst_78 {dimension_numbers = #tpu.dot_dimension_numbers<[1], [0], [0], [1], [0, 0, 1, 1], [], []>} : vector<4x16xbf16>, vector<16x16xbf16>, vector<4x16xf32> -> vector<4x16xf32>
    %124 = arith.addf %119, %123 : vector<4x16xf32>
    %125 = vector.extract_strided_slice %5 {offsets = [1, 0, 0], sizes = [1, 6, 16], strides = [1, 1, 1]} : vector<6x6x16xbf16> to vector<1x6x16xbf16>
    %126 = vector.shape_cast %125 : vector<1x6x16xbf16> to vector<6x16xbf16>
    %127 = vector.extract_strided_slice %126 {offsets = [0, 0], sizes = [4, 16], strides = [1, 1]} : vector<6x16xbf16> to vector<4x16xbf16>
    %c21 = arith.constant 21 : index
    %c0_79 = arith.constant 0 : index
    %c0_80 = arith.constant 0 : index
    %128 = vector.load %arg5[%c21, %c0_79, %c0_80] : memref<27x16x16xbf16, #tpu.memory_space<vmem>>, vector<1x16x16xbf16>
    %129 = vector.shape_cast %128 : vector<1x16x16xbf16> to vector<16x16xbf16>
    %cst_81 = arith.constant dense<0.000000e+00> : vector<4x16xf32>
    %130 = tpu.matmul %127, %129, %cst_81 {dimension_numbers = #tpu.dot_dimension_numbers<[1], [0], [0], [1], [0, 0, 1, 1], [], []>} : vector<4x16xbf16>, vector<16x16xbf16>, vector<4x16xf32> -> vector<4x16xf32>
    %131 = arith.addf %124, %130 : vector<4x16xf32>
    %132 = vector.extract_strided_slice %126 {offsets = [1, 0], sizes = [4, 16], strides = [1, 1]} : vector<6x16xbf16> to vector<4x16xbf16>
    %c22 = arith.constant 22 : index
    %c0_82 = arith.constant 0 : index
    %c0_83 = arith.constant 0 : index
    %133 = vector.load %arg5[%c22, %c0_82, %c0_83] : memref<27x16x16xbf16, #tpu.memory_space<vmem>>, vector<1x16x16xbf16>
    %134 = vector.shape_cast %133 : vector<1x16x16xbf16> to vector<16x16xbf16>
    %cst_84 = arith.constant dense<0.000000e+00> : vector<4x16xf32>
    %135 = tpu.matmul %132, %134, %cst_84 {dimension_numbers = #tpu.dot_dimension_numbers<[1], [0], [0], [1], [0, 0, 1, 1], [], []>} : vector<4x16xbf16>, vector<16x16xbf16>, vector<4x16xf32> -> vector<4x16xf32>
    %136 = arith.addf %131, %135 : vector<4x16xf32>
    %137 = vector.extract_strided_slice %126 {offsets = [2, 0], sizes = [4, 16], strides = [1, 1]} : vector<6x16xbf16> to vector<4x16xbf16>
    %c23 = arith.constant 23 : index
    %c0_85 = arith.constant 0 : index
    %c0_86 = arith.constant 0 : index
    %138 = vector.load %arg5[%c23, %c0_85, %c0_86] : memref<27x16x16xbf16, #tpu.memory_space<vmem>>, vector<1x16x16xbf16>
    %139 = vector.shape_cast %138 : vector<1x16x16xbf16> to vector<16x16xbf16>
    %cst_87 = arith.constant dense<0.000000e+00> : vector<4x16xf32>
    %140 = tpu.matmul %137, %139, %cst_87 {dimension_numbers = #tpu.dot_dimension_numbers<[1], [0], [0], [1], [0, 0, 1, 1], [], []>} : vector<4x16xbf16>, vector<16x16xbf16>, vector<4x16xf32> -> vector<4x16xf32>
    %141 = arith.addf %136, %140 : vector<4x16xf32>
    %142 = vector.extract_strided_slice %5 {offsets = [2, 0, 0], sizes = [1, 6, 16], strides = [1, 1, 1]} : vector<6x6x16xbf16> to vector<1x6x16xbf16>
    %143 = vector.shape_cast %142 : vector<1x6x16xbf16> to vector<6x16xbf16>
    %144 = vector.extract_strided_slice %143 {offsets = [0, 0], sizes = [4, 16], strides = [1, 1]} : vector<6x16xbf16> to vector<4x16xbf16>
    %c24 = arith.constant 24 : index
    %c0_88 = arith.constant 0 : index
    %c0_89 = arith.constant 0 : index
    %145 = vector.load %arg5[%c24, %c0_88, %c0_89] : memref<27x16x16xbf16, #tpu.memory_space<vmem>>, vector<1x16x16xbf16>
    %146 = vector.shape_cast %145 : vector<1x16x16xbf16> to vector<16x16xbf16>
    %cst_90 = arith.constant dense<0.000000e+00> : vector<4x16xf32>
    %147 = tpu.matmul %144, %146, %cst_90 {dimension_numbers = #tpu.dot_dimension_numbers<[1], [0], [0], [1], [0, 0, 1, 1], [], []>} : vector<4x16xbf16>, vector<16x16xbf16>, vector<4x16xf32> -> vector<4x16xf32>
    %148 = arith.addf %141, %147 : vector<4x16xf32>
    %149 = vector.extract_strided_slice %143 {offsets = [1, 0], sizes = [4, 16], strides = [1, 1]} : vector<6x16xbf16> to vector<4x16xbf16>
    %c25 = arith.constant 25 : index
    %c0_91 = arith.constant 0 : index
    %c0_92 = arith.constant 0 : index
    %150 = vector.load %arg5[%c25, %c0_91, %c0_92] : memref<27x16x16xbf16, #tpu.memory_space<vmem>>, vector<1x16x16xbf16>
    %151 = vector.shape_cast %150 : vector<1x16x16xbf16> to vector<16x16xbf16>
    %cst_93 = arith.constant dense<0.000000e+00> : vector<4x16xf32>
    %152 = tpu.matmul %149, %151, %cst_93 {dimension_numbers = #tpu.dot_dimension_numbers<[1], [0], [0], [1], [0, 0, 1, 1], [], []>} : vector<4x16xbf16>, vector<16x16xbf16>, vector<4x16xf32> -> vector<4x16xf32>
    %153 = arith.addf %148, %152 : vector<4x16xf32>
    %154 = vector.extract_strided_slice %143 {offsets = [2, 0], sizes = [4, 16], strides = [1, 1]} : vector<6x16xbf16> to vector<4x16xbf16>
    %c26 = arith.constant 26 : index
    %c0_94 = arith.constant 0 : index
    %c0_95 = arith.constant 0 : index
    %155 = vector.load %arg5[%c26, %c0_94, %c0_95] : memref<27x16x16xbf16, #tpu.memory_space<vmem>>, vector<1x16x16xbf16>
    %156 = vector.shape_cast %155 : vector<1x16x16xbf16> to vector<16x16xbf16>
    %cst_96 = arith.constant dense<0.000000e+00> : vector<4x16xf32>
    %157 = tpu.matmul %154, %156, %cst_96 {dimension_numbers = #tpu.dot_dimension_numbers<[1], [0], [0], [1], [0, 0, 1, 1], [], []>} : vector<4x16xbf16>, vector<16x16xbf16>, vector<4x16xf32> -> vector<4x16xf32>
    %158 = arith.addf %153, %157 : vector<4x16xf32>
    %159 = vector.broadcast %6 : vector<1x16xf32> to vector<4x16xf32>
    %160 = arith.addf %158, %159 : vector<4x16xf32>
    %161 = vector.shape_cast %160 : vector<4x16xf32> to vector<1x4x16xf32>
    %c0_97 = arith.constant 0 : index
    %c0_98 = arith.constant 0 : index
    %c0_99 = arith.constant 0 : index
    %162 = vector.load %arg7[%c0_97, %c0_98, %c0_99] : memref<1x16x16xf32, #tpu.memory_space<vmem>>, vector<1x4x16xf32>
    %163 = arith.addf %161, %162 : vector<1x4x16xf32>
    %c0_100 = arith.constant 0 : index
    %c0_101 = arith.constant 0 : index
    %c0_102 = arith.constant 0 : index
    %164 = vector.load %arg8[%c0_100, %c0_101, %c0_102] : memref<1x16x16xf32, #tpu.memory_space<vmem>>, vector<1x4x16xf32>
    tpu.vector_store %arg8[%c0_100, %c0_101, %c0_102], %163 {strides = array<i32>} : memref<1x16x16xf32, #tpu.memory_space<vmem>>, vector<1x4x16xf32>,
    %165 = vector.extract_strided_slice %1 {offsets = [1, 0, 0], sizes = [1, 6, 16], strides = [1, 1, 1]} : vector<6x6x16xbf16> to vector<1x6x16xbf16>
    %166 = vector.shape_cast %165 : vector<1x6x16xbf16> to vector<6x16xbf16>
    %167 = vector.extract_strided_slice %166 {offsets = [0, 0], sizes = [4, 16], strides = [1, 1]} : vector<6x16xbf16> to vector<4x16xbf16>
    %c0_103 = arith.constant 0 : index
    %c0_104 = arith.constant 0 : index
    %c0_105 = arith.constant 0 : index
    %168 = vector.load %arg5[%c0_103, %c0_104, %c0_105] : memref<27x16x16xbf16, #tpu.memory_space<vmem>>, vector<1x16x16xbf16>
    %169 = vector.shape_cast %168 : vector<1x16x16xbf16> to vector<16x16xbf16>
    %cst_106 = arith.constant dense<0.000000e+00> : vector<4x16xf32>
    %170 = tpu.matmul %167, %169, %cst_106 {dimension_numbers = #tpu.dot_dimension_numbers<[1], [0], [0], [1], [0, 0, 1, 1], [], []>} : vector<4x16xbf16>, vector<16x16xbf16>, vector<4x16xf32> -> vector<4x16xf32>
    %171 = vector.extract_strided_slice %166 {offsets = [1, 0], sizes = [4, 16], strides = [1, 1]} : vector<6x16xbf16> to vector<4x16xbf16>
    %c1_107 = arith.constant 1 : index
    %c0_108 = arith.constant 0 : index
    %c0_109 = arith.constant 0 : index
    %172 = vector.load %arg5[%c1_107, %c0_108, %c0_109] : memref<27x16x16xbf16, #tpu.memory_space<vmem>>, vector<1x16x16xbf16>
    %173 = vector.shape_cast %172 : vector<1x16x16xbf16> to vector<16x16xbf16>
    %cst_110 = arith.constant dense<0.000000e+00> : vector<4x16xf32>
    %174 = tpu.matmul %171, %173, %cst_110 {dimension_numbers = #tpu.dot_dimension_numbers<[1], [0], [0], [1], [0, 0, 1, 1], [], []>} : vector<4x16xbf16>, vector<16x16xbf16>, vector<4x16xf32> -> vector<4x16xf32>
    %175 = arith.addf %170, %174 : vector<4x16xf32>
    %176 = vector.extract_strided_slice %166 {offsets = [2, 0], sizes = [4, 16], strides = [1, 1]} : vector<6x16xbf16> to vector<4x16xbf16>
    %c2_111 = arith.constant 2 : index
    %c0_112 = arith.constant 0 : index
    %c0_113 = arith.constant 0 : index
    %177 = vector.load %arg5[%c2_111, %c0_112, %c0_113] : memref<27x16x16xbf16, #tpu.memory_space<vmem>>, vector<1x16x16xbf16>
    %178 = vector.shape_cast %177 : vector<1x16x16xbf16> to vector<16x16xbf16>
    %cst_114 = arith.constant dense<0.000000e+00> : vector<4x16xf32>
    %179 = tpu.matmul %176, %178, %cst_114 {dimension_numbers = #tpu.dot_dimension_numbers<[1], [0], [0], [1], [0, 0, 1, 1], [], []>} : vector<4x16xbf16>, vector<16x16xbf16>, vector<4x16xf32> -> vector<4x16xf32>
    %180 = arith.addf %175, %179 : vector<4x16xf32>
    %181 = vector.extract_strided_slice %1 {offsets = [2, 0, 0], sizes = [1, 6, 16], strides = [1, 1, 1]} : vector<6x6x16xbf16> to vector<1x6x16xbf16>
    %182 = vector.shape_cast %181 : vector<1x6x16xbf16> to vector<6x16xbf16>
    %183 = vector.extract_strided_slice %182 {offsets = [0, 0], sizes = [4, 16], strides = [1, 1]} : vector<6x16xbf16> to vector<4x16xbf16>
    %c3_115 = arith.constant 3 : index
    %c0_116 = arith.constant 0 : index
    %c0_117 = arith.constant 0 : index
    %184 = vector.load %arg5[%c3_115, %c0_116, %c0_117] : memref<27x16x16xbf16, #tpu.memory_space<vmem>>, vector<1x16x16xbf16>
    %185 = vector.shape_cast %184 : vector<1x16x16xbf16> to vector<16x16xbf16>
    %cst_118 = arith.constant dense<0.000000e+00> : vector<4x16xf32>
    %186 = tpu.matmul %183, %185, %cst_118 {dimension_numbers = #tpu.dot_dimension_numbers<[1], [0], [0], [1], [0, 0, 1, 1], [], []>} : vector<4x16xbf16>, vector<16x16xbf16>, vector<4x16xf32> -> vector<4x16xf32>
    %187 = arith.addf %180, %186 : vector<4x16xf32>
    %188 = vector.extract_strided_slice %182 {offsets = [1, 0], sizes = [4, 16], strides = [1, 1]} : vector<6x16xbf16> to vector<4x16xbf16>
    %c4_119 = arith.constant 4 : index
    %c0_120 = arith.constant 0 : index
    %c0_121 = arith.constant 0 : index
    %189 = vector.load %arg5[%c4_119, %c0_120, %c0_121] : memref<27x16x16xbf16, #tpu.memory_space<vmem>>, vector<1x16x16xbf16>
    %190 = vector.shape_cast %189 : vector<1x16x16xbf16> to vector<16x16xbf16>
    %cst_122 = arith.constant dense<0.000000e+00> : vector<4x16xf32>
    %191 = tpu.matmul %188, %190, %cst_122 {dimension_numbers = #tpu.dot_dimension_numbers<[1], [0], [0], [1], [0, 0, 1, 1], [], []>} : vector<4x16xbf16>, vector<16x16xbf16>, vector<4x16xf32> -> vector<4x16xf32>
    %192 = arith.addf %187, %191 : vector<4x16xf32>
    %193 = vector.extract_strided_slice %182 {offsets = [2, 0], sizes = [4, 16], strides = [1, 1]} : vector<6x16xbf16> to vector<4x16xbf16>
    %c5_123 = arith.constant 5 : index
    %c0_124 = arith.constant 0 : index
    %c0_125 = arith.constant 0 : index
    %194 = vector.load %arg5[%c5_123, %c0_124, %c0_125] : memref<27x16x16xbf16, #tpu.memory_space<vmem>>, vector<1x16x16xbf16>
    %195 = vector.shape_cast %194 : vector<1x16x16xbf16> to vector<16x16xbf16>
    %cst_126 = arith.constant dense<0.000000e+00> : vector<4x16xf32>
    %196 = tpu.matmul %193, %195, %cst_126 {dimension_numbers = #tpu.dot_dimension_numbers<[1], [0], [0], [1], [0, 0, 1, 1], [], []>} : vector<4x16xbf16>, vector<16x16xbf16>, vector<4x16xf32> -> vector<4x16xf32>
    %197 = arith.addf %192, %196 : vector<4x16xf32>
    %198 = vector.extract_strided_slice %1 {offsets = [3, 0, 0], sizes = [1, 6, 16], strides = [1, 1, 1]} : vector<6x6x16xbf16> to vector<1x6x16xbf16>
    %199 = vector.shape_cast %198 : vector<1x6x16xbf16> to vector<6x16xbf16>
    %200 = vector.extract_strided_slice %199 {offsets = [0, 0], sizes = [4, 16], strides = [1, 1]} : vector<6x16xbf16> to vector<4x16xbf16>
    %c6_127 = arith.constant 6 : index
    %c0_128 = arith.constant 0 : index
    %c0_129 = arith.constant 0 : index
    %201 = vector.load %arg5[%c6_127, %c0_128, %c0_129] : memref<27x16x16xbf16, #tpu.memory_space<vmem>>, vector<1x16x16xbf16>
    %202 = vector.shape_cast %201 : vector<1x16x16xbf16> to vector<16x16xbf16>
    %cst_130 = arith.constant dense<0.000000e+00> : vector<4x16xf32>
    %203 = tpu.matmul %200, %202, %cst_130 {dimension_numbers = #tpu.dot_dimension_numbers<[1], [0], [0], [1], [0, 0, 1, 1], [], []>} : vector<4x16xbf16>, vector<16x16xbf16>, vector<4x16xf32> -> vector<4x16xf32>
    %204 = arith.addf %197, %203 : vector<4x16xf32>
    %205 = vector.extract_strided_slice %199 {offsets = [1, 0], sizes = [4, 16], strides = [1, 1]} : vector<6x16xbf16> to vector<4x16xbf16>
    %c7_131 = arith.constant 7 : index
    %c0_132 = arith.constant 0 : index
    %c0_133 = arith.constant 0 : index
    %206 = vector.load %arg5[%c7_131, %c0_132, %c0_133] : memref<27x16x16xbf16, #tpu.memory_space<vmem>>, vector<1x16x16xbf16>
    %207 = vector.shape_cast %206 : vector<1x16x16xbf16> to vector<16x16xbf16>
    %cst_134 = arith.constant dense<0.000000e+00> : vector<4x16xf32>
    %208 = tpu.matmul %205, %207, %cst_134 {dimension_numbers = #tpu.dot_dimension_numbers<[1], [0], [0], [1], [0, 0, 1, 1], [], []>} : vector<4x16xbf16>, vector<16x16xbf16>, vector<4x16xf32> -> vector<4x16xf32>
    %209 = arith.addf %204, %208 : vector<4x16xf32>
    %210 = vector.extract_strided_slice %199 {offsets = [2, 0], sizes = [4, 16], strides = [1, 1]} : vector<6x16xbf16> to vector<4x16xbf16>
    %c8_135 = arith.constant 8 : index
    %c0_136 = arith.constant 0 : index
    %c0_137 = arith.constant 0 : index
    %211 = vector.load %arg5[%c8_135, %c0_136, %c0_137] : memref<27x16x16xbf16, #tpu.memory_space<vmem>>, vector<1x16x16xbf16>
    %212 = vector.shape_cast %211 : vector<1x16x16xbf16> to vector<16x16xbf16>
    %cst_138 = arith.constant dense<0.000000e+00> : vector<4x16xf32>
    %213 = tpu.matmul %210, %212, %cst_138 {dimension_numbers = #tpu.dot_dimension_numbers<[1], [0], [0], [1], [0, 0, 1, 1], [], []>} : vector<4x16xbf16>, vector<16x16xbf16>, vector<4x16xf32> -> vector<4x16xf32>
    %214 = arith.addf %209, %213 : vector<4x16xf32>
    %215 = vector.extract_strided_slice %3 {offsets = [1, 0, 0], sizes = [1, 6, 16], strides = [1, 1, 1]} : vector<6x6x16xbf16> to vector<1x6x16xbf16>
    %216 = vector.shape_cast %215 : vector<1x6x16xbf16> to vector<6x16xbf16>
    %217 = vector.extract_strided_slice %216 {offsets = [0, 0], sizes = [4, 16], strides = [1, 1]} : vector<6x16xbf16> to vector<4x16xbf16>
    %c9_139 = arith.constant 9 : index
    %c0_140 = arith.constant 0 : index
    %c0_141 = arith.constant 0 : index
    %218 = vector.load %arg5[%c9_139, %c0_140, %c0_141] : memref<27x16x16xbf16, #tpu.memory_space<vmem>>, vector<1x16x16xbf16>
    %219 = vector.shape_cast %218 : vector<1x16x16xbf16> to vector<16x16xbf16>
    %cst_142 = arith.constant dense<0.000000e+00> : vector<4x16xf32>
    %220 = tpu.matmul %217, %219, %cst_142 {dimension_numbers = #tpu.dot_dimension_numbers<[1], [0], [0], [1], [0, 0, 1, 1], [], []>} : vector<4x16xbf16>, vector<16x16xbf16>, vector<4x16xf32> -> vector<4x16xf32>
    %221 = arith.addf %214, %220 : vector<4x16xf32>
    %222 = vector.extract_strided_slice %216 {offsets = [1, 0], sizes = [4, 16], strides = [1, 1]} : vector<6x16xbf16> to vector<4x16xbf16>
    %c10_143 = arith.constant 10 : index
    %c0_144 = arith.constant 0 : index
    %c0_145 = arith.constant 0 : index
    %223 = vector.load %arg5[%c10_143, %c0_144, %c0_145] : memref<27x16x16xbf16, #tpu.memory_space<vmem>>, vector<1x16x16xbf16>
    %224 = vector.shape_cast %223 : vector<1x16x16xbf16> to vector<16x16xbf16>
    %cst_146 = arith.constant dense<0.000000e+00> : vector<4x16xf32>
    %225 = tpu.matmul %222, %224, %cst_146 {dimension_numbers = #tpu.dot_dimension_numbers<[1], [0], [0], [1], [0, 0, 1, 1], [], []>} : vector<4x16xbf16>, vector<16x16xbf16>, vector<4x16xf32> -> vector<4x16xf32>
    %226 = arith.addf %221, %225 : vector<4x16xf32>
    %227 = vector.extract_strided_slice %216 {offsets = [2, 0], sizes = [4, 16], strides = [1, 1]} : vector<6x16xbf16> to vector<4x16xbf16>
    %c11_147 = arith.constant 11 : index
    %c0_148 = arith.constant 0 : index
    %c0_149 = arith.constant 0 : index
    %228 = vector.load %arg5[%c11_147, %c0_148, %c0_149] : memref<27x16x16xbf16, #tpu.memory_space<vmem>>, vector<1x16x16xbf16>
    %229 = vector.shape_cast %228 : vector<1x16x16xbf16> to vector<16x16xbf16>
    %cst_150 = arith.constant dense<0.000000e+00> : vector<4x16xf32>
    %230 = tpu.matmul %227, %229, %cst_150 {dimension_numbers = #tpu.dot_dimension_numbers<[1], [0], [0], [1], [0, 0, 1, 1], [], []>} : vector<4x16xbf16>, vector<16x16xbf16>, vector<4x16xf32> -> vector<4x16xf32>
    %231 = arith.addf %226, %230 : vector<4x16xf32>
    %232 = vector.extract_strided_slice %3 {offsets = [2, 0, 0], sizes = [1, 6, 16], strides = [1, 1, 1]} : vector<6x6x16xbf16> to vector<1x6x16xbf16>
    %233 = vector.shape_cast %232 : vector<1x6x16xbf16> to vector<6x16xbf16>
    %234 = vector.extract_strided_slice %233 {offsets = [0, 0], sizes = [4, 16], strides = [1, 1]} : vector<6x16xbf16> to vector<4x16xbf16>
    %c12_151 = arith.constant 12 : index
    %c0_152 = arith.constant 0 : index
    %c0_153 = arith.constant 0 : index
    %235 = vector.load %arg5[%c12_151, %c0_152, %c0_153] : memref<27x16x16xbf16, #tpu.memory_space<vmem>>, vector<1x16x16xbf16>
    %236 = vector.shape_cast %235 : vector<1x16x16xbf16> to vector<16x16xbf16>
    %cst_154 = arith.constant dense<0.000000e+00> : vector<4x16xf32>
    %237 = tpu.matmul %234, %236, %cst_154 {dimension_numbers = #tpu.dot_dimension_numbers<[1], [0], [0], [1], [0, 0, 1, 1], [], []>} : vector<4x16xbf16>, vector<16x16xbf16>, vector<4x16xf32> -> vector<4x16xf32>
    %238 = arith.addf %231, %237 : vector<4x16xf32>
    %239 = vector.extract_strided_slice %233 {offsets = [1, 0], sizes = [4, 16], strides = [1, 1]} : vector<6x16xbf16> to vector<4x16xbf16>
    %c13_155 = arith.constant 13 : index
    %c0_156 = arith.constant 0 : index
    %c0_157 = arith.constant 0 : index
    %240 = vector.load %arg5[%c13_155, %c0_156, %c0_157] : memref<27x16x16xbf16, #tpu.memory_space<vmem>>, vector<1x16x16xbf16>
    %241 = vector.shape_cast %240 : vector<1x16x16xbf16> to vector<16x16xbf16>
    %cst_158 = arith.constant dense<0.000000e+00> : vector<4x16xf32>
    %242 = tpu.matmul %239, %241, %cst_158 {dimension_numbers = #tpu.dot_dimension_numbers<[1], [0], [0], [1], [0, 0, 1, 1], [], []>} : vector<4x16xbf16>, vector<16x16xbf16>, vector<4x16xf32> -> vector<4x16xf32>
    %243 = arith.addf %238, %242 : vector<4x16xf32>
    %244 = vector.extract_strided_slice %233 {offsets = [2, 0], sizes = [4, 16], strides = [1, 1]} : vector<6x16xbf16> to vector<4x16xbf16>
    %c14_159 = arith.constant 14 : index
    %c0_160 = arith.constant 0 : index
    %c0_161 = arith.constant 0 : index
    %245 = vector.load %arg5[%c14_159, %c0_160, %c0_161] : memref<27x16x16xbf16, #tpu.memory_space<vmem>>, vector<1x16x16xbf16>
    %246 = vector.shape_cast %245 : vector<1x16x16xbf16> to vector<16x16xbf16>
    %cst_162 = arith.constant dense<0.000000e+00> : vector<4x16xf32>
    %247 = tpu.matmul %244, %246, %cst_162 {dimension_numbers = #tpu.dot_dimension_numbers<[1], [0], [0], [1], [0, 0, 1, 1], [], []>} : vector<4x16xbf16>, vector<16x16xbf16>, vector<4x16xf32> -> vector<4x16xf32>
    %248 = arith.addf %243, %247 : vector<4x16xf32>
    %249 = vector.extract_strided_slice %3 {offsets = [3, 0, 0], sizes = [1, 6, 16], strides = [1, 1, 1]} : vector<6x6x16xbf16> to vector<1x6x16xbf16>
    %250 = vector.shape_cast %249 : vector<1x6x16xbf16> to vector<6x16xbf16>
    %251 = vector.extract_strided_slice %250 {offsets = [0, 0], sizes = [4, 16], strides = [1, 1]} : vector<6x16xbf16> to vector<4x16xbf16>
    %c15_163 = arith.constant 15 : index
    %c0_164 = arith.constant 0 : index
    %c0_165 = arith.constant 0 : index
    %252 = vector.load %arg5[%c15_163, %c0_164, %c0_165] : memref<27x16x16xbf16, #tpu.memory_space<vmem>>, vector<1x16x16xbf16>
    %253 = vector.shape_cast %252 : vector<1x16x16xbf16> to vector<16x16xbf16>
    %cst_166 = arith.constant dense<0.000000e+00> : vector<4x16xf32>
    %254 = tpu.matmul %251, %253, %cst_166 {dimension_numbers = #tpu.dot_dimension_numbers<[1], [0], [0], [1], [0, 0, 1, 1], [], []>} : vector<4x16xbf16>, vector<16x16xbf16>, vector<4x16xf32> -> vector<4x16xf32>
    %255 = arith.addf %248, %254 : vector<4x16xf32>
    %256 = vector.extract_strided_slice %250 {offsets = [1, 0], sizes = [4, 16], strides = [1, 1]} : vector<6x16xbf16> to vector<4x16xbf16>
    %c16_167 = arith.constant 16 : index
    %c0_168 = arith.constant 0 : index
    %c0_169 = arith.constant 0 : index
    %257 = vector.load %arg5[%c16_167, %c0_168, %c0_169] : memref<27x16x16xbf16, #tpu.memory_space<vmem>>, vector<1x16x16xbf16>
    %258 = vector.shape_cast %257 : vector<1x16x16xbf16> to vector<16x16xbf16>
    %cst_170 = arith.constant dense<0.000000e+00> : vector<4x16xf32>
    %259 = tpu.matmul %256, %258, %cst_170 {dimension_numbers = #tpu.dot_dimension_numbers<[1], [0], [0], [1], [0, 0, 1, 1], [], []>} : vector<4x16xbf16>, vector<16x16xbf16>, vector<4x16xf32> -> vector<4x16xf32>
    %260 = arith.addf %255, %259 : vector<4x16xf32>
    %261 = vector.extract_strided_slice %250 {offsets = [2, 0], sizes = [4, 16], strides = [1, 1]} : vector<6x16xbf16> to vector<4x16xbf16>
    %c17_171 = arith.constant 17 : index
    %c0_172 = arith.constant 0 : index
    %c0_173 = arith.constant 0 : index
    %262 = vector.load %arg5[%c17_171, %c0_172, %c0_173] : memref<27x16x16xbf16, #tpu.memory_space<vmem>>, vector<1x16x16xbf16>
    %263 = vector.shape_cast %262 : vector<1x16x16xbf16> to vector<16x16xbf16>
    %cst_174 = arith.constant dense<0.000000e+00> : vector<4x16xf32>
    %264 = tpu.matmul %261, %263, %cst_174 {dimension_numbers = #tpu.dot_dimension_numbers<[1], [0], [0], [1], [0, 0, 1, 1], [], []>} : vector<4x16xbf16>, vector<16x16xbf16>, vector<4x16xf32> -> vector<4x16xf32>
    %265 = arith.addf %260, %264 : vector<4x16xf32>
    %266 = vector.extract_strided_slice %5 {offsets = [1, 0, 0], sizes = [1, 6, 16], strides = [1, 1, 1]} : vector<6x6x16xbf16> to vector<1x6x16xbf16>
    %267 = vector.shape_cast %266 : vector<1x6x16xbf16> to vector<6x16xbf16>
    %268 = vector.extract_strided_slice %267 {offsets = [0, 0], sizes = [4, 16], strides = [1, 1]} : vector<6x16xbf16> to vector<4x16xbf16>
    %c18_175 = arith.constant 18 : index
    %c0_176 = arith.constant 0 : index
    %c0_177 = arith.constant 0 : index
    %269 = vector.load %arg5[%c18_175, %c0_176, %c0_177] : memref<27x16x16xbf16, #tpu.memory_space<vmem>>, vector<1x16x16xbf16>
    %270 = vector.shape_cast %269 : vector<1x16x16xbf16> to vector<16x16xbf16>
    %cst_178 = arith.constant dense<0.000000e+00> : vector<4x16xf32>
    %271 = tpu.matmul %268, %270, %cst_178 {dimension_numbers = #tpu.dot_dimension_numbers<[1], [0], [0], [1], [0, 0, 1, 1], [], []>} : vector<4x16xbf16>, vector<16x16xbf16>, vector<4x16xf32> -> vector<4x16xf32>
    %272 = arith.addf %265, %271 : vector<4x16xf32>
    %273 = vector.extract_strided_slice %267 {offsets = [1, 0], sizes = [4, 16], strides = [1, 1]} : vector<6x16xbf16> to vector<4x16xbf16>
    %c19_179 = arith.constant 19 : index
    %c0_180 = arith.constant 0 : index
    %c0_181 = arith.constant 0 : index
    %274 = vector.load %arg5[%c19_179, %c0_180, %c0_181] : memref<27x16x16xbf16, #tpu.memory_space<vmem>>, vector<1x16x16xbf16>
    %275 = vector.shape_cast %274 : vector<1x16x16xbf16> to vector<16x16xbf16>
    %cst_182 = arith.constant dense<0.000000e+00> : vector<4x16xf32>
    %276 = tpu.matmul %273, %275, %cst_182 {dimension_numbers = #tpu.dot_dimension_numbers<[1], [0], [0], [1], [0, 0, 1, 1], [], []>} : vector<4x16xbf16>, vector<16x16xbf16>, vector<4x16xf32> -> vector<4x16xf32>
    %277 = arith.addf %272, %276 : vector<4x16xf32>
    %278 = vector.extract_strided_slice %267 {offsets = [2, 0], sizes = [4, 16], strides = [1, 1]} : vector<6x16xbf16> to vector<4x16xbf16>
    %c20_183 = arith.constant 20 : index
    %c0_184 = arith.constant 0 : index
    %c0_185 = arith.constant 0 : index
    %279 = vector.load %arg5[%c20_183, %c0_184, %c0_185] : memref<27x16x16xbf16, #tpu.memory_space<vmem>>, vector<1x16x16xbf16>
    %280 = vector.shape_cast %279 : vector<1x16x16xbf16> to vector<16x16xbf16>
    %cst_186 = arith.constant dense<0.000000e+00> : vector<4x16xf32>
    %281 = tpu.matmul %278, %280, %cst_186 {dimension_numbers = #tpu.dot_dimension_numbers<[1], [0], [0], [1], [0, 0, 1, 1], [], []>} : vector<4x16xbf16>, vector<16x16xbf16>, vector<4x16xf32> -> vector<4x16xf32>
    %282 = arith.addf %277, %281 : vector<4x16xf32>
    %283 = vector.extract_strided_slice %5 {offsets = [2, 0, 0], sizes = [1, 6, 16], strides = [1, 1, 1]} : vector<6x6x16xbf16> to vector<1x6x16xbf16>
    %284 = vector.shape_cast %283 : vector<1x6x16xbf16> to vector<6x16xbf16>
    %285 = vector.extract_strided_slice %284 {offsets = [0, 0], sizes = [4, 16], strides = [1, 1]} : vector<6x16xbf16> to vector<4x16xbf16>
    %c21_187 = arith.constant 21 : index
    %c0_188 = arith.constant 0 : index
    %c0_189 = arith.constant 0 : index
    %286 = vector.load %arg5[%c21_187, %c0_188, %c0_189] : memref<27x16x16xbf16, #tpu.memory_space<vmem>>, vector<1x16x16xbf16>
    %287 = vector.shape_cast %286 : vector<1x16x16xbf16> to vector<16x16xbf16>
    %cst_190 = arith.constant dense<0.000000e+00> : vector<4x16xf32>
    %288 = tpu.matmul %285, %287, %cst_190 {dimension_numbers = #tpu.dot_dimension_numbers<[1], [0], [0], [1], [0, 0, 1, 1], [], []>} : vector<4x16xbf16>, vector<16x16xbf16>, vector<4x16xf32> -> vector<4x16xf32>
    %289 = arith.addf %282, %288 : vector<4x16xf32>
    %290 = vector.extract_strided_slice %284 {offsets = [1, 0], sizes = [4, 16], strides = [1, 1]} : vector<6x16xbf16> to vector<4x16xbf16>
    %c22_191 = arith.constant 22 : index
    %c0_192 = arith.constant 0 : index
    %c0_193 = arith.constant 0 : index
    %291 = vector.load %arg5[%c22_191, %c0_192, %c0_193] : memref<27x16x16xbf16, #tpu.memory_space<vmem>>, vector<1x16x16xbf16>
    %292 = vector.shape_cast %291 : vector<1x16x16xbf16> to vector<16x16xbf16>
    %cst_194 = arith.constant dense<0.000000e+00> : vector<4x16xf32>
    %293 = tpu.matmul %290, %292, %cst_194 {dimension_numbers = #tpu.dot_dimension_numbers<[1], [0], [0], [1], [0, 0, 1, 1], [], []>} : vector<4x16xbf16>, vector<16x16xbf16>, vector<4x16xf32> -> vector<4x16xf32>
    %294 = arith.addf %289, %293 : vector<4x16xf32>
    %295 = vector.extract_strided_slice %284 {offsets = [2, 0], sizes = [4, 16], strides = [1, 1]} : vector<6x16xbf16> to vector<4x16xbf16>
    %c23_195 = arith.constant 23 : index
    %c0_196 = arith.constant 0 : index
    %c0_197 = arith.constant 0 : index
    %296 = vector.load %arg5[%c23_195, %c0_196, %c0_197] : memref<27x16x16xbf16, #tpu.memory_space<vmem>>, vector<1x16x16xbf16>
    %297 = vector.shape_cast %296 : vector<1x16x16xbf16> to vector<16x16xbf16>
    %cst_198 = arith.constant dense<0.000000e+00> : vector<4x16xf32>
    %298 = tpu.matmul %295, %297, %cst_198 {dimension_numbers = #tpu.dot_dimension_numbers<[1], [0], [0], [1], [0, 0, 1, 1], [], []>} : vector<4x16xbf16>, vector<16x16xbf16>, vector<4x16xf32> -> vector<4x16xf32>
    %299 = arith.addf %294, %298 : vector<4x16xf32>
    %300 = vector.extract_strided_slice %5 {offsets = [3, 0, 0], sizes = [1, 6, 16], strides = [1, 1, 1]} : vector<6x6x16xbf16> to vector<1x6x16xbf16>
    %301 = vector.shape_cast %300 : vector<1x6x16xbf16> to vector<6x16xbf16>
    %302 = vector.extract_strided_slice %301 {offsets = [0, 0], sizes = [4, 16], strides = [1, 1]} : vector<6x16xbf16> to vector<4x16xbf16>
    %c24_199 = arith.constant 24 : index
    %c0_200 = arith.constant 0 : index
    %c0_201 = arith.constant 0 : index
    %303 = vector.load %arg5[%c24_199, %c0_200, %c0_201] : memref<27x16x16xbf16, #tpu.memory_space<vmem>>, vector<1x16x16xbf16>
    %304 = vector.shape_cast %303 : vector<1x16x16xbf16> to vector<16x16xbf16>
    %cst_202 = arith.constant dense<0.000000e+00> : vector<4x16xf32>
    %305 = tpu.matmul %302, %304, %cst_202 {dimension_numbers = #tpu.dot_dimension_numbers<[1], [0], [0], [1], [0, 0, 1, 1], [], []>} : vector<4x16xbf16>, vector<16x16xbf16>, vector<4x16xf32> -> vector<4x16xf32>
    %306 = arith.addf %299, %305 : vector<4x16xf32>
    %307 = vector.extract_strided_slice %301 {offsets = [1, 0], sizes = [4, 16], strides = [1, 1]} : vector<6x16xbf16> to vector<4x16xbf16>
    %c25_203 = arith.constant 25 : index
    %c0_204 = arith.constant 0 : index
    %c0_205 = arith.constant 0 : index
    %308 = vector.load %arg5[%c25_203, %c0_204, %c0_205] : memref<27x16x16xbf16, #tpu.memory_space<vmem>>, vector<1x16x16xbf16>
    %309 = vector.shape_cast %308 : vector<1x16x16xbf16> to vector<16x16xbf16>
    %cst_206 = arith.constant dense<0.000000e+00> : vector<4x16xf32>
    %310 = tpu.matmul %307, %309, %cst_206 {dimension_numbers = #tpu.dot_dimension_numbers<[1], [0], [0], [1], [0, 0, 1, 1], [], []>} : vector<4x16xbf16>, vector<16x16xbf16>, vector<4x16xf32> -> vector<4x16xf32>
    %311 = arith.addf %306, %310 : vector<4x16xf32>
    %312 = vector.extract_strided_slice %301 {offsets = [2, 0], sizes = [4, 16], strides = [1, 1]} : vector<6x16xbf16> to vector<4x16xbf16>
    %c26_207 = arith.constant 26 : index
    %c0_208 = arith.constant 0 : index
    %c0_209 = arith.constant 0 : index
    %313 = vector.load %arg5[%c26_207, %c0_208, %c0_209] : memref<27x16x16xbf16, #tpu.memory_space<vmem>>, vector<1x16x16xbf16>
    %314 = vector.shape_cast %313 : vector<1x16x16xbf16> to vector<16x16xbf16>
    %cst_210 = arith.constant dense<0.000000e+00> : vector<4x16xf32>
    %315 = tpu.matmul %312, %314, %cst_210 {dimension_numbers = #tpu.dot_dimension_numbers<[1], [0], [0], [1], [0, 0, 1, 1], [], []>} : vector<4x16xbf16>, vector<16x16xbf16>, vector<4x16xf32> -> vector<4x16xf32>
    %316 = arith.addf %311, %315 : vector<4x16xf32>
    %317 = vector.broadcast %6 : vector<1x16xf32> to vector<4x16xf32>
    %318 = arith.addf %316, %317 : vector<4x16xf32>
    %319 = vector.shape_cast %318 : vector<4x16xf32> to vector<1x4x16xf32>
    %c0_211 = arith.constant 0 : index
    %c4_212 = arith.constant 4 : index
    %c0_213 = arith.constant 0 : index
    %320 = vector.load %arg7[%c0_211, %c4_212, %c0_213] : memref<1x16x16xf32, #tpu.memory_space<vmem>>, vector<1x4x16xf32>
    %321 = arith.addf %319, %320 : vector<1x4x16xf32>
    %c0_214 = arith.constant 0 : index
    %c4_215 = arith.constant 4 : index
    %c0_216 = arith.constant 0 : index
    %322 = vector.load %arg8[%c0_214, %c4_215, %c0_216] : memref<1x16x16xf32, #tpu.memory_space<vmem>>, vector<1x4x16xf32>
    tpu.vector_store %arg8[%c0_214, %c4_215, %c0_216], %321 {strides = array<i32>} : memref<1x16x16xf32, #tpu.memory_space<vmem>>, vector<1x4x16xf32>,
    %323 = vector.extract_strided_slice %1 {offsets = [2, 0, 0], sizes = [1, 6, 16], strides = [1, 1, 1]} : vector<6x6x16xbf16> to vector<1x6x16xbf16>
    %324 = vector.shape_cast %323 : vector<1x6x16xbf16> to vector<6x16xbf16>
    %325 = vector.extract_strided_slice %324 {offsets = [0, 0], sizes = [4, 16], strides = [1, 1]} : vector<6x16xbf16> to vector<4x16xbf16>
    %c0_217 = arith.constant 0 : index
    %c0_218 = arith.constant 0 : index
    %c0_219 = arith.constant 0 : index
    %326 = vector.load %arg5[%c0_217, %c0_218, %c0_219] : memref<27x16x16xbf16, #tpu.memory_space<vmem>>, vector<1x16x16xbf16>
    %327 = vector.shape_cast %326 : vector<1x16x16xbf16> to vector<16x16xbf16>
    %cst_220 = arith.constant dense<0.000000e+00> : vector<4x16xf32>
    %328 = tpu.matmul %325, %327, %cst_220 {dimension_numbers = #tpu.dot_dimension_numbers<[1], [0], [0], [1], [0, 0, 1, 1], [], []>} : vector<4x16xbf16>, vector<16x16xbf16>, vector<4x16xf32> -> vector<4x16xf32>
    %329 = vector.extract_strided_slice %324 {offsets = [1, 0], sizes = [4, 16], strides = [1, 1]} : vector<6x16xbf16> to vector<4x16xbf16>
    %c1_221 = arith.constant 1 : index
    %c0_222 = arith.constant 0 : index
    %c0_223 = arith.constant 0 : index
    %330 = vector.load %arg5[%c1_221, %c0_222, %c0_223] : memref<27x16x16xbf16, #tpu.memory_space<vmem>>, vector<1x16x16xbf16>
    %331 = vector.shape_cast %330 : vector<1x16x16xbf16> to vector<16x16xbf16>
    %cst_224 = arith.constant dense<0.000000e+00> : vector<4x16xf32>
    %332 = tpu.matmul %329, %331, %cst_224 {dimension_numbers = #tpu.dot_dimension_numbers<[1], [0], [0], [1], [0, 0, 1, 1], [], []>} : vector<4x16xbf16>, vector<16x16xbf16>, vector<4x16xf32> -> vector<4x16xf32>
    %333 = arith.addf %328, %332 : vector<4x16xf32>
    %334 = vector.extract_strided_slice %324 {offsets = [2, 0], sizes = [4, 16], strides = [1, 1]} : vector<6x16xbf16> to vector<4x16xbf16>
    %c2_225 = arith.constant 2 : index
    %c0_226 = arith.constant 0 : index
    %c0_227 = arith.constant 0 : index
    %335 = vector.load %arg5[%c2_225, %c0_226, %c0_227] : memref<27x16x16xbf16, #tpu.memory_space<vmem>>, vector<1x16x16xbf16>
    %336 = vector.shape_cast %335 : vector<1x16x16xbf16> to vector<16x16xbf16>
    %cst_228 = arith.constant dense<0.000000e+00> : vector<4x16xf32>
    %337 = tpu.matmul %334, %336, %cst_228 {dimension_numbers = #tpu.dot_dimension_numbers<[1], [0], [0], [1], [0, 0, 1, 1], [], []>} : vector<4x16xbf16>, vector<16x16xbf16>, vector<4x16xf32> -> vector<4x16xf32>
    %338 = arith.addf %333, %337 : vector<4x16xf32>
    %339 = vector.extract_strided_slice %1 {offsets = [3, 0, 0], sizes = [1, 6, 16], strides = [1, 1, 1]} : vector<6x6x16xbf16> to vector<1x6x16xbf16>
    %340 = vector.shape_cast %339 : vector<1x6x16xbf16> to vector<6x16xbf16>
    %341 = vector.extract_strided_slice %340 {offsets = [0, 0], sizes = [4, 16], strides = [1, 1]} : vector<6x16xbf16> to vector<4x16xbf16>
    %c3_229 = arith.constant 3 : index
    %c0_230 = arith.constant 0 : index
    %c0_231 = arith.constant 0 : index
    %342 = vector.load %arg5[%c3_229, %c0_230, %c0_231] : memref<27x16x16xbf16, #tpu.memory_space<vmem>>, vector<1x16x16xbf16>
    %343 = vector.shape_cast %342 : vector<1x16x16xbf16> to vector<16x16xbf16>
    %cst_232 = arith.constant dense<0.000000e+00> : vector<4x16xf32>
    %344 = tpu.matmul %341, %343, %cst_232 {dimension_numbers = #tpu.dot_dimension_numbers<[1], [0], [0], [1], [0, 0, 1, 1], [], []>} : vector<4x16xbf16>, vector<16x16xbf16>, vector<4x16xf32> -> vector<4x16xf32>
    %345 = arith.addf %338, %344 : vector<4x16xf32>
    %346 = vector.extract_strided_slice %340 {offsets = [1, 0], sizes = [4, 16], strides = [1, 1]} : vector<6x16xbf16> to vector<4x16xbf16>
    %c4_233 = arith.constant 4 : index
    %c0_234 = arith.constant 0 : index
    %c0_235 = arith.constant 0 : index
    %347 = vector.load %arg5[%c4_233, %c0_234, %c0_235] : memref<27x16x16xbf16, #tpu.memory_space<vmem>>, vector<1x16x16xbf16>
    %348 = vector.shape_cast %347 : vector<1x16x16xbf16> to vector<16x16xbf16>
    %cst_236 = arith.constant dense<0.000000e+00> : vector<4x16xf32>
    %349 = tpu.matmul %346, %348, %cst_236 {dimension_numbers = #tpu.dot_dimension_numbers<[1], [0], [0], [1], [0, 0, 1, 1], [], []>} : vector<4x16xbf16>, vector<16x16xbf16>, vector<4x16xf32> -> vector<4x16xf32>
    %350 = arith.addf %345, %349 : vector<4x16xf32>
    %351 = vector.extract_strided_slice %340 {offsets = [2, 0], sizes = [4, 16], strides = [1, 1]} : vector<6x16xbf16> to vector<4x16xbf16>
    %c5_237 = arith.constant 5 : index
    %c0_238 = arith.constant 0 : index
    %c0_239 = arith.constant 0 : index
    %352 = vector.load %arg5[%c5_237, %c0_238, %c0_239] : memref<27x16x16xbf16, #tpu.memory_space<vmem>>, vector<1x16x16xbf16>
    %353 = vector.shape_cast %352 : vector<1x16x16xbf16> to vector<16x16xbf16>
    %cst_240 = arith.constant dense<0.000000e+00> : vector<4x16xf32>
    %354 = tpu.matmul %351, %353, %cst_240 {dimension_numbers = #tpu.dot_dimension_numbers<[1], [0], [0], [1], [0, 0, 1, 1], [], []>} : vector<4x16xbf16>, vector<16x16xbf16>, vector<4x16xf32> -> vector<4x16xf32>
    %355 = arith.addf %350, %354 : vector<4x16xf32>
    %356 = vector.extract_strided_slice %1 {offsets = [4, 0, 0], sizes = [1, 6, 16], strides = [1, 1, 1]} : vector<6x6x16xbf16> to vector<1x6x16xbf16>
    %357 = vector.shape_cast %356 : vector<1x6x16xbf16> to vector<6x16xbf16>
    %358 = vector.extract_strided_slice %357 {offsets = [0, 0], sizes = [4, 16], strides = [1, 1]} : vector<6x16xbf16> to vector<4x16xbf16>
    %c6_241 = arith.constant 6 : index
    %c0_242 = arith.constant 0 : index
    %c0_243 = arith.constant 0 : index
    %359 = vector.load %arg5[%c6_241, %c0_242, %c0_243] : memref<27x16x16xbf16, #tpu.memory_space<vmem>>, vector<1x16x16xbf16>
    %360 = vector.shape_cast %359 : vector<1x16x16xbf16> to vector<16x16xbf16>
    %cst_244 = arith.constant dense<0.000000e+00> : vector<4x16xf32>
    %361 = tpu.matmul %358, %360, %cst_244 {dimension_numbers = #tpu.dot_dimension_numbers<[1], [0], [0], [1], [0, 0, 1, 1], [], []>} : vector<4x16xbf16>, vector<16x16xbf16>, vector<4x16xf32> -> vector<4x16xf32>
    %362 = arith.addf %355, %361 : vector<4x16xf32>
    %363 = vector.extract_strided_slice %357 {offsets = [1, 0], sizes = [4, 16], strides = [1, 1]} : vector<6x16xbf16> to vector<4x16xbf16>
    %c7_245 = arith.constant 7 : index
    %c0_246 = arith.constant 0 : index
    %c0_247 = arith.constant 0 : index
    %364 = vector.load %arg5[%c7_245, %c0_246, %c0_247] : memref<27x16x16xbf16, #tpu.memory_space<vmem>>, vector<1x16x16xbf16>
    %365 = vector.shape_cast %364 : vector<1x16x16xbf16> to vector<16x16xbf16>
    %cst_248 = arith.constant dense<0.000000e+00> : vector<4x16xf32>
    %366 = tpu.matmul %363, %365, %cst_248 {dimension_numbers = #tpu.dot_dimension_numbers<[1], [0], [0], [1], [0, 0, 1, 1], [], []>} : vector<4x16xbf16>, vector<16x16xbf16>, vector<4x16xf32> -> vector<4x16xf32>
    %367 = arith.addf %362, %366 : vector<4x16xf32>
    %368 = vector.extract_strided_slice %357 {offsets = [2, 0], sizes = [4, 16], strides = [1, 1]} : vector<6x16xbf16> to vector<4x16xbf16>
    %c8_249 = arith.constant 8 : index
    %c0_250 = arith.constant 0 : index
    %c0_251 = arith.constant 0 : index
    %369 = vector.load %arg5[%c8_249, %c0_250, %c0_251] : memref<27x16x16xbf16, #tpu.memory_space<vmem>>, vector<1x16x16xbf16>
    %370 = vector.shape_cast %369 : vector<1x16x16xbf16> to vector<16x16xbf16>
    %cst_252 = arith.constant dense<0.000000e+00> : vector<4x16xf32>
    %371 = tpu.matmul %368, %370, %cst_252 {dimension_numbers = #tpu.dot_dimension_numbers<[1], [0], [0], [1], [0, 0, 1, 1], [], []>} : vector<4x16xbf16>, vector<16x16xbf16>, vector<4x16xf32> -> vector<4x16xf32>
    %372 = arith.addf %367, %371 : vector<4x16xf32>
    %373 = vector.extract_strided_slice %3 {offsets = [2, 0, 0], sizes = [1, 6, 16], strides = [1, 1, 1]} : vector<6x6x16xbf16> to vector<1x6x16xbf16>
    %374 = vector.shape_cast %373 : vector<1x6x16xbf16> to vector<6x16xbf16>
    %375 = vector.extract_strided_slice %374 {offsets = [0, 0], sizes = [4, 16], strides = [1, 1]} : vector<6x16xbf16> to vector<4x16xbf16>
    %c9_253 = arith.constant 9 : index
    %c0_254 = arith.constant 0 : index
    %c0_255 = arith.constant 0 : index
    %376 = vector.load %arg5[%c9_253, %c0_254, %c0_255] : memref<27x16x16xbf16, #tpu.memory_space<vmem>>, vector<1x16x16xbf16>
    %377 = vector.shape_cast %376 : vector<1x16x16xbf16> to vector<16x16xbf16>
    %cst_256 = arith.constant dense<0.000000e+00> : vector<4x16xf32>
    %378 = tpu.matmul %375, %377, %cst_256 {dimension_numbers = #tpu.dot_dimension_numbers<[1], [0], [0], [1], [0, 0, 1, 1], [], []>} : vector<4x16xbf16>, vector<16x16xbf16>, vector<4x16xf32> -> vector<4x16xf32>
    %379 = arith.addf %372, %378 : vector<4x16xf32>
    %380 = vector.extract_strided_slice %374 {offsets = [1, 0], sizes = [4, 16], strides = [1, 1]} : vector<6x16xbf16> to vector<4x16xbf16>
    %c10_257 = arith.constant 10 : index
    %c0_258 = arith.constant 0 : index
    %c0_259 = arith.constant 0 : index
    %381 = vector.load %arg5[%c10_257, %c0_258, %c0_259] : memref<27x16x16xbf16, #tpu.memory_space<vmem>>, vector<1x16x16xbf16>
    %382 = vector.shape_cast %381 : vector<1x16x16xbf16> to vector<16x16xbf16>
    %cst_260 = arith.constant dense<0.000000e+00> : vector<4x16xf32>
    %383 = tpu.matmul %380, %382, %cst_260 {dimension_numbers = #tpu.dot_dimension_numbers<[1], [0], [0], [1], [0, 0, 1, 1], [], []>} : vector<4x16xbf16>, vector<16x16xbf16>, vector<4x16xf32> -> vector<4x16xf32>
    %384 = arith.addf %379, %383 : vector<4x16xf32>
    %385 = vector.extract_strided_slice %374 {offsets = [2, 0], sizes = [4, 16], strides = [1, 1]} : vector<6x16xbf16> to vector<4x16xbf16>
    %c11_261 = arith.constant 11 : index
    %c0_262 = arith.constant 0 : index
    %c0_263 = arith.constant 0 : index
    %386 = vector.load %arg5[%c11_261, %c0_262, %c0_263] : memref<27x16x16xbf16, #tpu.memory_space<vmem>>, vector<1x16x16xbf16>
    %387 = vector.shape_cast %386 : vector<1x16x16xbf16> to vector<16x16xbf16>
    %cst_264 = arith.constant dense<0.000000e+00> : vector<4x16xf32>
    %388 = tpu.matmul %385, %387, %cst_264 {dimension_numbers = #tpu.dot_dimension_numbers<[1], [0], [0], [1], [0, 0, 1, 1], [], []>} : vector<4x16xbf16>, vector<16x16xbf16>, vector<4x16xf32> -> vector<4x16xf32>
    %389 = arith.addf %384, %388 : vector<4x16xf32>
    %390 = vector.extract_strided_slice %3 {offsets = [3, 0, 0], sizes = [1, 6, 16], strides = [1, 1, 1]} : vector<6x6x16xbf16> to vector<1x6x16xbf16>
    %391 = vector.shape_cast %390 : vector<1x6x16xbf16> to vector<6x16xbf16>
    %392 = vector.extract_strided_slice %391 {offsets = [0, 0], sizes = [4, 16], strides = [1, 1]} : vector<6x16xbf16> to vector<4x16xbf16>
    %c12_265 = arith.constant 12 : index
    %c0_266 = arith.constant 0 : index
    %c0_267 = arith.constant 0 : index
    %393 = vector.load %arg5[%c12_265, %c0_266, %c0_267] : memref<27x16x16xbf16, #tpu.memory_space<vmem>>, vector<1x16x16xbf16>
    %394 = vector.shape_cast %393 : vector<1x16x16xbf16> to vector<16x16xbf16>
    %cst_268 = arith.constant dense<0.000000e+00> : vector<4x16xf32>
    %395 = tpu.matmul %392, %394, %cst_268 {dimension_numbers = #tpu.dot_dimension_numbers<[1], [0], [0], [1], [0, 0, 1, 1], [], []>} : vector<4x16xbf16>, vector<16x16xbf16>, vector<4x16xf32> -> vector<4x16xf32>
    %396 = arith.addf %389, %395 : vector<4x16xf32>
    %397 = vector.extract_strided_slice %391 {offsets = [1, 0], sizes = [4, 16], strides = [1, 1]} : vector<6x16xbf16> to vector<4x16xbf16>
    %c13_269 = arith.constant 13 : index
    %c0_270 = arith.constant 0 : index
    %c0_271 = arith.constant 0 : index
    %398 = vector.load %arg5[%c13_269, %c0_270, %c0_271] : memref<27x16x16xbf16, #tpu.memory_space<vmem>>, vector<1x16x16xbf16>
    %399 = vector.shape_cast %398 : vector<1x16x16xbf16> to vector<16x16xbf16>
    %cst_272 = arith.constant dense<0.000000e+00> : vector<4x16xf32>
    %400 = tpu.matmul %397, %399, %cst_272 {dimension_numbers = #tpu.dot_dimension_numbers<[1], [0], [0], [1], [0, 0, 1, 1], [], []>} : vector<4x16xbf16>, vector<16x16xbf16>, vector<4x16xf32> -> vector<4x16xf32>
    %401 = arith.addf %396, %400 : vector<4x16xf32>
    %402 = vector.extract_strided_slice %391 {offsets = [2, 0], sizes = [4, 16], strides = [1, 1]} : vector<6x16xbf16> to vector<4x16xbf16>
    %c14_273 = arith.constant 14 : index
    %c0_274 = arith.constant 0 : index
    %c0_275 = arith.constant 0 : index
    %403 = vector.load %arg5[%c14_273, %c0_274, %c0_275] : memref<27x16x16xbf16, #tpu.memory_space<vmem>>, vector<1x16x16xbf16>
    %404 = vector.shape_cast %403 : vector<1x16x16xbf16> to vector<16x16xbf16>
    %cst_276 = arith.constant dense<0.000000e+00> : vector<4x16xf32>
    %405 = tpu.matmul %402, %404, %cst_276 {dimension_numbers = #tpu.dot_dimension_numbers<[1], [0], [0], [1], [0, 0, 1, 1], [], []>} : vector<4x16xbf16>, vector<16x16xbf16>, vector<4x16xf32> -> vector<4x16xf32>
    %406 = arith.addf %401, %405 : vector<4x16xf32>
    %407 = vector.extract_strided_slice %3 {offsets = [4, 0, 0], sizes = [1, 6, 16], strides = [1, 1, 1]} : vector<6x6x16xbf16> to vector<1x6x16xbf16>
    %408 = vector.shape_cast %407 : vector<1x6x16xbf16> to vector<6x16xbf16>
    %409 = vector.extract_strided_slice %408 {offsets = [0, 0], sizes = [4, 16], strides = [1, 1]} : vector<6x16xbf16> to vector<4x16xbf16>
    %c15_277 = arith.constant 15 : index
    %c0_278 = arith.constant 0 : index
    %c0_279 = arith.constant 0 : index
    %410 = vector.load %arg5[%c15_277, %c0_278, %c0_279] : memref<27x16x16xbf16, #tpu.memory_space<vmem>>, vector<1x16x16xbf16>
    %411 = vector.shape_cast %410 : vector<1x16x16xbf16> to vector<16x16xbf16>
    %cst_280 = arith.constant dense<0.000000e+00> : vector<4x16xf32>
    %412 = tpu.matmul %409, %411, %cst_280 {dimension_numbers = #tpu.dot_dimension_numbers<[1], [0], [0], [1], [0, 0, 1, 1], [], []>} : vector<4x16xbf16>, vector<16x16xbf16>, vector<4x16xf32> -> vector<4x16xf32>
    %413 = arith.addf %406, %412 : vector<4x16xf32>
    %414 = vector.extract_strided_slice %408 {offsets = [1, 0], sizes = [4, 16], strides = [1, 1]} : vector<6x16xbf16> to vector<4x16xbf16>
    %c16_281 = arith.constant 16 : index
    %c0_282 = arith.constant 0 : index
    %c0_283 = arith.constant 0 : index
    %415 = vector.load %arg5[%c16_281, %c0_282, %c0_283] : memref<27x16x16xbf16, #tpu.memory_space<vmem>>, vector<1x16x16xbf16>
    %416 = vector.shape_cast %415 : vector<1x16x16xbf16> to vector<16x16xbf16>
    %cst_284 = arith.constant dense<0.000000e+00> : vector<4x16xf32>
    %417 = tpu.matmul %414, %416, %cst_284 {dimension_numbers = #tpu.dot_dimension_numbers<[1], [0], [0], [1], [0, 0, 1, 1], [], []>} : vector<4x16xbf16>, vector<16x16xbf16>, vector<4x16xf32> -> vector<4x16xf32>
    %418 = arith.addf %413, %417 : vector<4x16xf32>
    %419 = vector.extract_strided_slice %408 {offsets = [2, 0], sizes = [4, 16], strides = [1, 1]} : vector<6x16xbf16> to vector<4x16xbf16>
    %c17_285 = arith.constant 17 : index
    %c0_286 = arith.constant 0 : index
    %c0_287 = arith.constant 0 : index
    %420 = vector.load %arg5[%c17_285, %c0_286, %c0_287] : memref<27x16x16xbf16, #tpu.memory_space<vmem>>, vector<1x16x16xbf16>
    %421 = vector.shape_cast %420 : vector<1x16x16xbf16> to vector<16x16xbf16>
    %cst_288 = arith.constant dense<0.000000e+00> : vector<4x16xf32>
    %422 = tpu.matmul %419, %421, %cst_288 {dimension_numbers = #tpu.dot_dimension_numbers<[1], [0], [0], [1], [0, 0, 1, 1], [], []>} : vector<4x16xbf16>, vector<16x16xbf16>, vector<4x16xf32> -> vector<4x16xf32>
    %423 = arith.addf %418, %422 : vector<4x16xf32>
    %424 = vector.extract_strided_slice %5 {offsets = [2, 0, 0], sizes = [1, 6, 16], strides = [1, 1, 1]} : vector<6x6x16xbf16> to vector<1x6x16xbf16>
    %425 = vector.shape_cast %424 : vector<1x6x16xbf16> to vector<6x16xbf16>
    %426 = vector.extract_strided_slice %425 {offsets = [0, 0], sizes = [4, 16], strides = [1, 1]} : vector<6x16xbf16> to vector<4x16xbf16>
    %c18_289 = arith.constant 18 : index
    %c0_290 = arith.constant 0 : index
    %c0_291 = arith.constant 0 : index
    %427 = vector.load %arg5[%c18_289, %c0_290, %c0_291] : memref<27x16x16xbf16, #tpu.memory_space<vmem>>, vector<1x16x16xbf16>
    %428 = vector.shape_cast %427 : vector<1x16x16xbf16> to vector<16x16xbf16>
    %cst_292 = arith.constant dense<0.000000e+00> : vector<4x16xf32>
    %429 = tpu.matmul %426, %428, %cst_292 {dimension_numbers = #tpu.dot_dimension_numbers<[1], [0], [0], [1], [0, 0, 1, 1], [], []>} : vector<4x16xbf16>, vector<16x16xbf16>, vector<4x16xf32> -> vector<4x16xf32>
    %430 = arith.addf %423, %429 : vector<4x16xf32>
    %431 = vector.extract_strided_slice %425 {offsets = [1, 0], sizes = [4, 16], strides = [1, 1]} : vector<6x16xbf16> to vector<4x16xbf16>
    %c19_293 = arith.constant 19 : index
    %c0_294 = arith.constant 0 : index
    %c0_295 = arith.constant 0 : index
    %432 = vector.load %arg5[%c19_293, %c0_294, %c0_295] : memref<27x16x16xbf16, #tpu.memory_space<vmem>>, vector<1x16x16xbf16>
    %433 = vector.shape_cast %432 : vector<1x16x16xbf16> to vector<16x16xbf16>
    %cst_296 = arith.constant dense<0.000000e+00> : vector<4x16xf32>
    %434 = tpu.matmul %431, %433, %cst_296 {dimension_numbers = #tpu.dot_dimension_numbers<[1], [0], [0], [1], [0, 0, 1, 1], [], []>} : vector<4x16xbf16>, vector<16x16xbf16>, vector<4x16xf32> -> vector<4x16xf32>
    %435 = arith.addf %430, %434 : vector<4x16xf32>
    %436 = vector.extract_strided_slice %425 {offsets = [2, 0], sizes = [4, 16], strides = [1, 1]} : vector<6x16xbf16> to vector<4x16xbf16>
    %c20_297 = arith.constant 20 : index
    %c0_298 = arith.constant 0 : index
    %c0_299 = arith.constant 0 : index
    %437 = vector.load %arg5[%c20_297, %c0_298, %c0_299] : memref<27x16x16xbf16, #tpu.memory_space<vmem>>, vector<1x16x16xbf16>
    %438 = vector.shape_cast %437 : vector<1x16x16xbf16> to vector<16x16xbf16>
    %cst_300 = arith.constant dense<0.000000e+00> : vector<4x16xf32>
    %439 = tpu.matmul %436, %438, %cst_300 {dimension_numbers = #tpu.dot_dimension_numbers<[1], [0], [0], [1], [0, 0, 1, 1], [], []>} : vector<4x16xbf16>, vector<16x16xbf16>, vector<4x16xf32> -> vector<4x16xf32>
    %440 = arith.addf %435, %439 : vector<4x16xf32>
    %441 = vector.extract_strided_slice %5 {offsets = [3, 0, 0], sizes = [1, 6, 16], strides = [1, 1, 1]} : vector<6x6x16xbf16> to vector<1x6x16xbf16>
    %442 = vector.shape_cast %441 : vector<1x6x16xbf16> to vector<6x16xbf16>
    %443 = vector.extract_strided_slice %442 {offsets = [0, 0], sizes = [4, 16], strides = [1, 1]} : vector<6x16xbf16> to vector<4x16xbf16>
    %c21_301 = arith.constant 21 : index
    %c0_302 = arith.constant 0 : index
    %c0_303 = arith.constant 0 : index
    %444 = vector.load %arg5[%c21_301, %c0_302, %c0_303] : memref<27x16x16xbf16, #tpu.memory_space<vmem>>, vector<1x16x16xbf16>
    %445 = vector.shape_cast %444 : vector<1x16x16xbf16> to vector<16x16xbf16>
    %cst_304 = arith.constant dense<0.000000e+00> : vector<4x16xf32>
    %446 = tpu.matmul %443, %445, %cst_304 {dimension_numbers = #tpu.dot_dimension_numbers<[1], [0], [0], [1], [0, 0, 1, 1], [], []>} : vector<4x16xbf16>, vector<16x16xbf16>, vector<4x16xf32> -> vector<4x16xf32>
    %447 = arith.addf %440, %446 : vector<4x16xf32>
    %448 = vector.extract_strided_slice %442 {offsets = [1, 0], sizes = [4, 16], strides = [1, 1]} : vector<6x16xbf16> to vector<4x16xbf16>
    %c22_305 = arith.constant 22 : index
    %c0_306 = arith.constant 0 : index
    %c0_307 = arith.constant 0 : index
    %449 = vector.load %arg5[%c22_305, %c0_306, %c0_307] : memref<27x16x16xbf16, #tpu.memory_space<vmem>>, vector<1x16x16xbf16>
    %450 = vector.shape_cast %449 : vector<1x16x16xbf16> to vector<16x16xbf16>
    %cst_308 = arith.constant dense<0.000000e+00> : vector<4x16xf32>
    %451 = tpu.matmul %448, %450, %cst_308 {dimension_numbers = #tpu.dot_dimension_numbers<[1], [0], [0], [1], [0, 0, 1, 1], [], []>} : vector<4x16xbf16>, vector<16x16xbf16>, vector<4x16xf32> -> vector<4x16xf32>
    %452 = arith.addf %447, %451 : vector<4x16xf32>
    %453 = vector.extract_strided_slice %442 {offsets = [2, 0], sizes = [4, 16], strides = [1, 1]} : vector<6x16xbf16> to vector<4x16xbf16>
    %c23_309 = arith.constant 23 : index
    %c0_310 = arith.constant 0 : index
    %c0_311 = arith.constant 0 : index
    %454 = vector.load %arg5[%c23_309, %c0_310, %c0_311] : memref<27x16x16xbf16, #tpu.memory_space<vmem>>, vector<1x16x16xbf16>
    %455 = vector.shape_cast %454 : vector<1x16x16xbf16> to vector<16x16xbf16>
    %cst_312 = arith.constant dense<0.000000e+00> : vector<4x16xf32>
    %456 = tpu.matmul %453, %455, %cst_312 {dimension_numbers = #tpu.dot_dimension_numbers<[1], [0], [0], [1], [0, 0, 1, 1], [], []>} : vector<4x16xbf16>, vector<16x16xbf16>, vector<4x16xf32> -> vector<4x16xf32>
    %457 = arith.addf %452, %456 : vector<4x16xf32>
    %458 = vector.extract_strided_slice %5 {offsets = [4, 0, 0], sizes = [1, 6, 16], strides = [1, 1, 1]} : vector<6x6x16xbf16> to vector<1x6x16xbf16>
    %459 = vector.shape_cast %458 : vector<1x6x16xbf16> to vector<6x16xbf16>
    %460 = vector.extract_strided_slice %459 {offsets = [0, 0], sizes = [4, 16], strides = [1, 1]} : vector<6x16xbf16> to vector<4x16xbf16>
    %c24_313 = arith.constant 24 : index
    %c0_314 = arith.constant 0 : index
    %c0_315 = arith.constant 0 : index
    %461 = vector.load %arg5[%c24_313, %c0_314, %c0_315] : memref<27x16x16xbf16, #tpu.memory_space<vmem>>, vector<1x16x16xbf16>
    %462 = vector.shape_cast %461 : vector<1x16x16xbf16> to vector<16x16xbf16>
    %cst_316 = arith.constant dense<0.000000e+00> : vector<4x16xf32>
    %463 = tpu.matmul %460, %462, %cst_316 {dimension_numbers = #tpu.dot_dimension_numbers<[1], [0], [0], [1], [0, 0, 1, 1], [], []>} : vector<4x16xbf16>, vector<16x16xbf16>, vector<4x16xf32> -> vector<4x16xf32>
    %464 = arith.addf %457, %463 : vector<4x16xf32>
    %465 = vector.extract_strided_slice %459 {offsets = [1, 0], sizes = [4, 16], strides = [1, 1]} : vector<6x16xbf16> to vector<4x16xbf16>
    %c25_317 = arith.constant 25 : index
    %c0_318 = arith.constant 0 : index
    %c0_319 = arith.constant 0 : index
    %466 = vector.load %arg5[%c25_317, %c0_318, %c0_319] : memref<27x16x16xbf16, #tpu.memory_space<vmem>>, vector<1x16x16xbf16>
    %467 = vector.shape_cast %466 : vector<1x16x16xbf16> to vector<16x16xbf16>
    %cst_320 = arith.constant dense<0.000000e+00> : vector<4x16xf32>
    %468 = tpu.matmul %465, %467, %cst_320 {dimension_numbers = #tpu.dot_dimension_numbers<[1], [0], [0], [1], [0, 0, 1, 1], [], []>} : vector<4x16xbf16>, vector<16x16xbf16>, vector<4x16xf32> -> vector<4x16xf32>
    %469 = arith.addf %464, %468 : vector<4x16xf32>
    %470 = vector.extract_strided_slice %459 {offsets = [2, 0], sizes = [4, 16], strides = [1, 1]} : vector<6x16xbf16> to vector<4x16xbf16>
    %c26_321 = arith.constant 26 : index
    %c0_322 = arith.constant 0 : index
    %c0_323 = arith.constant 0 : index
    %471 = vector.load %arg5[%c26_321, %c0_322, %c0_323] : memref<27x16x16xbf16, #tpu.memory_space<vmem>>, vector<1x16x16xbf16>
    %472 = vector.shape_cast %471 : vector<1x16x16xbf16> to vector<16x16xbf16>
    %cst_324 = arith.constant dense<0.000000e+00> : vector<4x16xf32>
    %473 = tpu.matmul %470, %472, %cst_324 {dimension_numbers = #tpu.dot_dimension_numbers<[1], [0], [0], [1], [0, 0, 1, 1], [], []>} : vector<4x16xbf16>, vector<16x16xbf16>, vector<4x16xf32> -> vector<4x16xf32>
    %474 = arith.addf %469, %473 : vector<4x16xf32>
    %475 = vector.broadcast %6 : vector<1x16xf32> to vector<4x16xf32>
    %476 = arith.addf %474, %475 : vector<4x16xf32>
    %477 = vector.shape_cast %476 : vector<4x16xf32> to vector<1x4x16xf32>
    %c0_325 = arith.constant 0 : index
    %c8_326 = arith.constant 8 : index
    %c0_327 = arith.constant 0 : index
    %478 = vector.load %arg7[%c0_325, %c8_326, %c0_327] : memref<1x16x16xf32, #tpu.memory_space<vmem>>, vector<1x4x16xf32>
    %479 = arith.addf %477, %478 : vector<1x4x16xf32>
    %c0_328 = arith.constant 0 : index
    %c8_329 = arith.constant 8 : index
    %c0_330 = arith.constant 0 : index
    %480 = vector.load %arg8[%c0_328, %c8_329, %c0_330] : memref<1x16x16xf32, #tpu.memory_space<vmem>>, vector<1x4x16xf32>
    tpu.vector_store %arg8[%c0_328, %c8_329, %c0_330], %479 {strides = array<i32>} : memref<1x16x16xf32, #tpu.memory_space<vmem>>, vector<1x4x16xf32>,
    %481 = vector.extract_strided_slice %1 {offsets = [3, 0, 0], sizes = [1, 6, 16], strides = [1, 1, 1]} : vector<6x6x16xbf16> to vector<1x6x16xbf16>
    %482 = vector.shape_cast %481 : vector<1x6x16xbf16> to vector<6x16xbf16>
    %483 = vector.extract_strided_slice %482 {offsets = [0, 0], sizes = [4, 16], strides = [1, 1]} : vector<6x16xbf16> to vector<4x16xbf16>
    %c0_331 = arith.constant 0 : index
    %c0_332 = arith.constant 0 : index
    %c0_333 = arith.constant 0 : index
    %484 = vector.load %arg5[%c0_331, %c0_332, %c0_333] : memref<27x16x16xbf16, #tpu.memory_space<vmem>>, vector<1x16x16xbf16>
    %485 = vector.shape_cast %484 : vector<1x16x16xbf16> to vector<16x16xbf16>
    %cst_334 = arith.constant dense<0.000000e+00> : vector<4x16xf32>
    %486 = tpu.matmul %483, %485, %cst_334 {dimension_numbers = #tpu.dot_dimension_numbers<[1], [0], [0], [1], [0, 0, 1, 1], [], []>} : vector<4x16xbf16>, vector<16x16xbf16>, vector<4x16xf32> -> vector<4x16xf32>
    %487 = vector.extract_strided_slice %482 {offsets = [1, 0], sizes = [4, 16], strides = [1, 1]} : vector<6x16xbf16> to vector<4x16xbf16>
    %c1_335 = arith.constant 1 : index
    %c0_336 = arith.constant 0 : index
    %c0_337 = arith.constant 0 : index
    %488 = vector.load %arg5[%c1_335, %c0_336, %c0_337] : memref<27x16x16xbf16, #tpu.memory_space<vmem>>, vector<1x16x16xbf16>
    %489 = vector.shape_cast %488 : vector<1x16x16xbf16> to vector<16x16xbf16>
    %cst_338 = arith.constant dense<0.000000e+00> : vector<4x16xf32>
    %490 = tpu.matmul %487, %489, %cst_338 {dimension_numbers = #tpu.dot_dimension_numbers<[1], [0], [0], [1], [0, 0, 1, 1], [], []>} : vector<4x16xbf16>, vector<16x16xbf16>, vector<4x16xf32> -> vector<4x16xf32>
    %491 = arith.addf %486, %490 : vector<4x16xf32>
    %492 = vector.extract_strided_slice %482 {offsets = [2, 0], sizes = [4, 16], strides = [1, 1]} : vector<6x16xbf16> to vector<4x16xbf16>
    %c2_339 = arith.constant 2 : index
    %c0_340 = arith.constant 0 : index
    %c0_341 = arith.constant 0 : index
    %493 = vector.load %arg5[%c2_339, %c0_340, %c0_341] : memref<27x16x16xbf16, #tpu.memory_space<vmem>>, vector<1x16x16xbf16>
    %494 = vector.shape_cast %493 : vector<1x16x16xbf16> to vector<16x16xbf16>
    %cst_342 = arith.constant dense<0.000000e+00> : vector<4x16xf32>
    %495 = tpu.matmul %492, %494, %cst_342 {dimension_numbers = #tpu.dot_dimension_numbers<[1], [0], [0], [1], [0, 0, 1, 1], [], []>} : vector<4x16xbf16>, vector<16x16xbf16>, vector<4x16xf32> -> vector<4x16xf32>
    %496 = arith.addf %491, %495 : vector<4x16xf32>
    %497 = vector.extract_strided_slice %1 {offsets = [4, 0, 0], sizes = [1, 6, 16], strides = [1, 1, 1]} : vector<6x6x16xbf16> to vector<1x6x16xbf16>
    %498 = vector.shape_cast %497 : vector<1x6x16xbf16> to vector<6x16xbf16>
    %499 = vector.extract_strided_slice %498 {offsets = [0, 0], sizes = [4, 16], strides = [1, 1]} : vector<6x16xbf16> to vector<4x16xbf16>
    %c3_343 = arith.constant 3 : index
    %c0_344 = arith.constant 0 : index
    %c0_345 = arith.constant 0 : index
    %500 = vector.load %arg5[%c3_343, %c0_344, %c0_345] : memref<27x16x16xbf16, #tpu.memory_space<vmem>>, vector<1x16x16xbf16>
    %501 = vector.shape_cast %500 : vector<1x16x16xbf16> to vector<16x16xbf16>
    %cst_346 = arith.constant dense<0.000000e+00> : vector<4x16xf32>
    %502 = tpu.matmul %499, %501, %cst_346 {dimension_numbers = #tpu.dot_dimension_numbers<[1], [0], [0], [1], [0, 0, 1, 1], [], []>} : vector<4x16xbf16>, vector<16x16xbf16>, vector<4x16xf32> -> vector<4x16xf32>
    %503 = arith.addf %496, %502 : vector<4x16xf32>
    %504 = vector.extract_strided_slice %498 {offsets = [1, 0], sizes = [4, 16], strides = [1, 1]} : vector<6x16xbf16> to vector<4x16xbf16>
    %c4_347 = arith.constant 4 : index
    %c0_348 = arith.constant 0 : index
    %c0_349 = arith.constant 0 : index
    %505 = vector.load %arg5[%c4_347, %c0_348, %c0_349] : memref<27x16x16xbf16, #tpu.memory_space<vmem>>, vector<1x16x16xbf16>
    %506 = vector.shape_cast %505 : vector<1x16x16xbf16> to vector<16x16xbf16>
    %cst_350 = arith.constant dense<0.000000e+00> : vector<4x16xf32>
    %507 = tpu.matmul %504, %506, %cst_350 {dimension_numbers = #tpu.dot_dimension_numbers<[1], [0], [0], [1], [0, 0, 1, 1], [], []>} : vector<4x16xbf16>, vector<16x16xbf16>, vector<4x16xf32> -> vector<4x16xf32>
    %508 = arith.addf %503, %507 : vector<4x16xf32>
    %509 = vector.extract_strided_slice %498 {offsets = [2, 0], sizes = [4, 16], strides = [1, 1]} : vector<6x16xbf16> to vector<4x16xbf16>
    %c5_351 = arith.constant 5 : index
    %c0_352 = arith.constant 0 : index
    %c0_353 = arith.constant 0 : index
    %510 = vector.load %arg5[%c5_351, %c0_352, %c0_353] : memref<27x16x16xbf16, #tpu.memory_space<vmem>>, vector<1x16x16xbf16>
    %511 = vector.shape_cast %510 : vector<1x16x16xbf16> to vector<16x16xbf16>
    %cst_354 = arith.constant dense<0.000000e+00> : vector<4x16xf32>
    %512 = tpu.matmul %509, %511, %cst_354 {dimension_numbers = #tpu.dot_dimension_numbers<[1], [0], [0], [1], [0, 0, 1, 1], [], []>} : vector<4x16xbf16>, vector<16x16xbf16>, vector<4x16xf32> -> vector<4x16xf32>
    %513 = arith.addf %508, %512 : vector<4x16xf32>
    %514 = vector.extract_strided_slice %1 {offsets = [5, 0, 0], sizes = [1, 6, 16], strides = [1, 1, 1]} : vector<6x6x16xbf16> to vector<1x6x16xbf16>
    %515 = vector.shape_cast %514 : vector<1x6x16xbf16> to vector<6x16xbf16>
    %516 = vector.extract_strided_slice %515 {offsets = [0, 0], sizes = [4, 16], strides = [1, 1]} : vector<6x16xbf16> to vector<4x16xbf16>
    %c6_355 = arith.constant 6 : index
    %c0_356 = arith.constant 0 : index
    %c0_357 = arith.constant 0 : index
    %517 = vector.load %arg5[%c6_355, %c0_356, %c0_357] : memref<27x16x16xbf16, #tpu.memory_space<vmem>>, vector<1x16x16xbf16>
    %518 = vector.shape_cast %517 : vector<1x16x16xbf16> to vector<16x16xbf16>
    %cst_358 = arith.constant dense<0.000000e+00> : vector<4x16xf32>
    %519 = tpu.matmul %516, %518, %cst_358 {dimension_numbers = #tpu.dot_dimension_numbers<[1], [0], [0], [1], [0, 0, 1, 1], [], []>} : vector<4x16xbf16>, vector<16x16xbf16>, vector<4x16xf32> -> vector<4x16xf32>
    %520 = arith.addf %513, %519 : vector<4x16xf32>
    %521 = vector.extract_strided_slice %515 {offsets = [1, 0], sizes = [4, 16], strides = [1, 1]} : vector<6x16xbf16> to vector<4x16xbf16>
    %c7_359 = arith.constant 7 : index
    %c0_360 = arith.constant 0 : index
    %c0_361 = arith.constant 0 : index
    %522 = vector.load %arg5[%c7_359, %c0_360, %c0_361] : memref<27x16x16xbf16, #tpu.memory_space<vmem>>, vector<1x16x16xbf16>
    %523 = vector.shape_cast %522 : vector<1x16x16xbf16> to vector<16x16xbf16>
    %cst_362 = arith.constant dense<0.000000e+00> : vector<4x16xf32>
    %524 = tpu.matmul %521, %523, %cst_362 {dimension_numbers = #tpu.dot_dimension_numbers<[1], [0], [0], [1], [0, 0, 1, 1], [], []>} : vector<4x16xbf16>, vector<16x16xbf16>, vector<4x16xf32> -> vector<4x16xf32>
    %525 = arith.addf %520, %524 : vector<4x16xf32>
    %526 = vector.extract_strided_slice %515 {offsets = [2, 0], sizes = [4, 16], strides = [1, 1]} : vector<6x16xbf16> to vector<4x16xbf16>
    %c8_363 = arith.constant 8 : index
    %c0_364 = arith.constant 0 : index
    %c0_365 = arith.constant 0 : index
    %527 = vector.load %arg5[%c8_363, %c0_364, %c0_365] : memref<27x16x16xbf16, #tpu.memory_space<vmem>>, vector<1x16x16xbf16>
    %528 = vector.shape_cast %527 : vector<1x16x16xbf16> to vector<16x16xbf16>
    %cst_366 = arith.constant dense<0.000000e+00> : vector<4x16xf32>
    %529 = tpu.matmul %526, %528, %cst_366 {dimension_numbers = #tpu.dot_dimension_numbers<[1], [0], [0], [1], [0, 0, 1, 1], [], []>} : vector<4x16xbf16>, vector<16x16xbf16>, vector<4x16xf32> -> vector<4x16xf32>
    %530 = arith.addf %525, %529 : vector<4x16xf32>
    %531 = vector.extract_strided_slice %3 {offsets = [3, 0, 0], sizes = [1, 6, 16], strides = [1, 1, 1]} : vector<6x6x16xbf16> to vector<1x6x16xbf16>
    %532 = vector.shape_cast %531 : vector<1x6x16xbf16> to vector<6x16xbf16>
    %533 = vector.extract_strided_slice %532 {offsets = [0, 0], sizes = [4, 16], strides = [1, 1]} : vector<6x16xbf16> to vector<4x16xbf16>
    %c9_367 = arith.constant 9 : index
    %c0_368 = arith.constant 0 : index
    %c0_369 = arith.constant 0 : index
    %534 = vector.load %arg5[%c9_367, %c0_368, %c0_369] : memref<27x16x16xbf16, #tpu.memory_space<vmem>>, vector<1x16x16xbf16>
    %535 = vector.shape_cast %534 : vector<1x16x16xbf16> to vector<16x16xbf16>
    %cst_370 = arith.constant dense<0.000000e+00> : vector<4x16xf32>
    %536 = tpu.matmul %533, %535, %cst_370 {dimension_numbers = #tpu.dot_dimension_numbers<[1], [0], [0], [1], [0, 0, 1, 1], [], []>} : vector<4x16xbf16>, vector<16x16xbf16>, vector<4x16xf32> -> vector<4x16xf32>
    %537 = arith.addf %530, %536 : vector<4x16xf32>
    %538 = vector.extract_strided_slice %532 {offsets = [1, 0], sizes = [4, 16], strides = [1, 1]} : vector<6x16xbf16> to vector<4x16xbf16>
    %c10_371 = arith.constant 10 : index
    %c0_372 = arith.constant 0 : index
    %c0_373 = arith.constant 0 : index
    %539 = vector.load %arg5[%c10_371, %c0_372, %c0_373] : memref<27x16x16xbf16, #tpu.memory_space<vmem>>, vector<1x16x16xbf16>
    %540 = vector.shape_cast %539 : vector<1x16x16xbf16> to vector<16x16xbf16>
    %cst_374 = arith.constant dense<0.000000e+00> : vector<4x16xf32>
    %541 = tpu.matmul %538, %540, %cst_374 {dimension_numbers = #tpu.dot_dimension_numbers<[1], [0], [0], [1], [0, 0, 1, 1], [], []>} : vector<4x16xbf16>, vector<16x16xbf16>, vector<4x16xf32> -> vector<4x16xf32>
    %542 = arith.addf %537, %541 : vector<4x16xf32>
    %543 = vector.extract_strided_slice %532 {offsets = [2, 0], sizes = [4, 16], strides = [1, 1]} : vector<6x16xbf16> to vector<4x16xbf16>
    %c11_375 = arith.constant 11 : index
    %c0_376 = arith.constant 0 : index
    %c0_377 = arith.constant 0 : index
    %544 = vector.load %arg5[%c11_375, %c0_376, %c0_377] : memref<27x16x16xbf16, #tpu.memory_space<vmem>>, vector<1x16x16xbf16>
    %545 = vector.shape_cast %544 : vector<1x16x16xbf16> to vector<16x16xbf16>
    %cst_378 = arith.constant dense<0.000000e+00> : vector<4x16xf32>
    %546 = tpu.matmul %543, %545, %cst_378 {dimension_numbers = #tpu.dot_dimension_numbers<[1], [0], [0], [1], [0, 0, 1, 1], [], []>} : vector<4x16xbf16>, vector<16x16xbf16>, vector<4x16xf32> -> vector<4x16xf32>
    %547 = arith.addf %542, %546 : vector<4x16xf32>
    %548 = vector.extract_strided_slice %3 {offsets = [4, 0, 0], sizes = [1, 6, 16], strides = [1, 1, 1]} : vector<6x6x16xbf16> to vector<1x6x16xbf16>
    %549 = vector.shape_cast %548 : vector<1x6x16xbf16> to vector<6x16xbf16>
    %550 = vector.extract_strided_slice %549 {offsets = [0, 0], sizes = [4, 16], strides = [1, 1]} : vector<6x16xbf16> to vector<4x16xbf16>
    %c12_379 = arith.constant 12 : index
    %c0_380 = arith.constant 0 : index
    %c0_381 = arith.constant 0 : index
    %551 = vector.load %arg5[%c12_379, %c0_380, %c0_381] : memref<27x16x16xbf16, #tpu.memory_space<vmem>>, vector<1x16x16xbf16>
    %552 = vector.shape_cast %551 : vector<1x16x16xbf16> to vector<16x16xbf16>
    %cst_382 = arith.constant dense<0.000000e+00> : vector<4x16xf32>
    %553 = tpu.matmul %550, %552, %cst_382 {dimension_numbers = #tpu.dot_dimension_numbers<[1], [0], [0], [1], [0, 0, 1, 1], [], []>} : vector<4x16xbf16>, vector<16x16xbf16>, vector<4x16xf32> -> vector<4x16xf32>
    %554 = arith.addf %547, %553 : vector<4x16xf32>
    %555 = vector.extract_strided_slice %549 {offsets = [1, 0], sizes = [4, 16], strides = [1, 1]} : vector<6x16xbf16> to vector<4x16xbf16>
    %c13_383 = arith.constant 13 : index
    %c0_384 = arith.constant 0 : index
    %c0_385 = arith.constant 0 : index
    %556 = vector.load %arg5[%c13_383, %c0_384, %c0_385] : memref<27x16x16xbf16, #tpu.memory_space<vmem>>, vector<1x16x16xbf16>
    %557 = vector.shape_cast %556 : vector<1x16x16xbf16> to vector<16x16xbf16>
    %cst_386 = arith.constant dense<0.000000e+00> : vector<4x16xf32>
    %558 = tpu.matmul %555, %557, %cst_386 {dimension_numbers = #tpu.dot_dimension_numbers<[1], [0], [0], [1], [0, 0, 1, 1], [], []>} : vector<4x16xbf16>, vector<16x16xbf16>, vector<4x16xf32> -> vector<4x16xf32>
    %559 = arith.addf %554, %558 : vector<4x16xf32>
    %560 = vector.extract_strided_slice %549 {offsets = [2, 0], sizes = [4, 16], strides = [1, 1]} : vector<6x16xbf16> to vector<4x16xbf16>
    %c14_387 = arith.constant 14 : index
    %c0_388 = arith.constant 0 : index
    %c0_389 = arith.constant 0 : index
    %561 = vector.load %arg5[%c14_387, %c0_388, %c0_389] : memref<27x16x16xbf16, #tpu.memory_space<vmem>>, vector<1x16x16xbf16>
    %562 = vector.shape_cast %561 : vector<1x16x16xbf16> to vector<16x16xbf16>
    %cst_390 = arith.constant dense<0.000000e+00> : vector<4x16xf32>
    %563 = tpu.matmul %560, %562, %cst_390 {dimension_numbers = #tpu.dot_dimension_numbers<[1], [0], [0], [1], [0, 0, 1, 1], [], []>} : vector<4x16xbf16>, vector<16x16xbf16>, vector<4x16xf32> -> vector<4x16xf32>
    %564 = arith.addf %559, %563 : vector<4x16xf32>
    %565 = vector.extract_strided_slice %3 {offsets = [5, 0, 0], sizes = [1, 6, 16], strides = [1, 1, 1]} : vector<6x6x16xbf16> to vector<1x6x16xbf16>
    %566 = vector.shape_cast %565 : vector<1x6x16xbf16> to vector<6x16xbf16>
    %567 = vector.extract_strided_slice %566 {offsets = [0, 0], sizes = [4, 16], strides = [1, 1]} : vector<6x16xbf16> to vector<4x16xbf16>
    %c15_391 = arith.constant 15 : index
    %c0_392 = arith.constant 0 : index
    %c0_393 = arith.constant 0 : index
    %568 = vector.load %arg5[%c15_391, %c0_392, %c0_393] : memref<27x16x16xbf16, #tpu.memory_space<vmem>>, vector<1x16x16xbf16>
    %569 = vector.shape_cast %568 : vector<1x16x16xbf16> to vector<16x16xbf16>
    %cst_394 = arith.constant dense<0.000000e+00> : vector<4x16xf32>
    %570 = tpu.matmul %567, %569, %cst_394 {dimension_numbers = #tpu.dot_dimension_numbers<[1], [0], [0], [1], [0, 0, 1, 1], [], []>} : vector<4x16xbf16>, vector<16x16xbf16>, vector<4x16xf32> -> vector<4x16xf32>
    %571 = arith.addf %564, %570 : vector<4x16xf32>
    %572 = vector.extract_strided_slice %566 {offsets = [1, 0], sizes = [4, 16], strides = [1, 1]} : vector<6x16xbf16> to vector<4x16xbf16>
    %c16_395 = arith.constant 16 : index
    %c0_396 = arith.constant 0 : index
    %c0_397 = arith.constant 0 : index
    %573 = vector.load %arg5[%c16_395, %c0_396, %c0_397] : memref<27x16x16xbf16, #tpu.memory_space<vmem>>, vector<1x16x16xbf16>
    %574 = vector.shape_cast %573 : vector<1x16x16xbf16> to vector<16x16xbf16>
    %cst_398 = arith.constant dense<0.000000e+00> : vector<4x16xf32>
    %575 = tpu.matmul %572, %574, %cst_398 {dimension_numbers = #tpu.dot_dimension_numbers<[1], [0], [0], [1], [0, 0, 1, 1], [], []>} : vector<4x16xbf16>, vector<16x16xbf16>, vector<4x16xf32> -> vector<4x16xf32>
    %576 = arith.addf %571, %575 : vector<4x16xf32>
    %577 = vector.extract_strided_slice %566 {offsets = [2, 0], sizes = [4, 16], strides = [1, 1]} : vector<6x16xbf16> to vector<4x16xbf16>
    %c17_399 = arith.constant 17 : index
    %c0_400 = arith.constant 0 : index
    %c0_401 = arith.constant 0 : index
    %578 = vector.load %arg5[%c17_399, %c0_400, %c0_401] : memref<27x16x16xbf16, #tpu.memory_space<vmem>>, vector<1x16x16xbf16>
    %579 = vector.shape_cast %578 : vector<1x16x16xbf16> to vector<16x16xbf16>
    %cst_402 = arith.constant dense<0.000000e+00> : vector<4x16xf32>
    %580 = tpu.matmul %577, %579, %cst_402 {dimension_numbers = #tpu.dot_dimension_numbers<[1], [0], [0], [1], [0, 0, 1, 1], [], []>} : vector<4x16xbf16>, vector<16x16xbf16>, vector<4x16xf32> -> vector<4x16xf32>
    %581 = arith.addf %576, %580 : vector<4x16xf32>
    %582 = vector.extract_strided_slice %5 {offsets = [3, 0, 0], sizes = [1, 6, 16], strides = [1, 1, 1]} : vector<6x6x16xbf16> to vector<1x6x16xbf16>
    %583 = vector.shape_cast %582 : vector<1x6x16xbf16> to vector<6x16xbf16>
    %584 = vector.extract_strided_slice %583 {offsets = [0, 0], sizes = [4, 16], strides = [1, 1]} : vector<6x16xbf16> to vector<4x16xbf16>
    %c18_403 = arith.constant 18 : index
    %c0_404 = arith.constant 0 : index
    %c0_405 = arith.constant 0 : index
    %585 = vector.load %arg5[%c18_403, %c0_404, %c0_405] : memref<27x16x16xbf16, #tpu.memory_space<vmem>>, vector<1x16x16xbf16>
    %586 = vector.shape_cast %585 : vector<1x16x16xbf16> to vector<16x16xbf16>
    %cst_406 = arith.constant dense<0.000000e+00> : vector<4x16xf32>
    %587 = tpu.matmul %584, %586, %cst_406 {dimension_numbers = #tpu.dot_dimension_numbers<[1], [0], [0], [1], [0, 0, 1, 1], [], []>} : vector<4x16xbf16>, vector<16x16xbf16>, vector<4x16xf32> -> vector<4x16xf32>
    %588 = arith.addf %581, %587 : vector<4x16xf32>
    %589 = vector.extract_strided_slice %583 {offsets = [1, 0], sizes = [4, 16], strides = [1, 1]} : vector<6x16xbf16> to vector<4x16xbf16>
    %c19_407 = arith.constant 19 : index
    %c0_408 = arith.constant 0 : index
    %c0_409 = arith.constant 0 : index
    %590 = vector.load %arg5[%c19_407, %c0_408, %c0_409] : memref<27x16x16xbf16, #tpu.memory_space<vmem>>, vector<1x16x16xbf16>
    %591 = vector.shape_cast %590 : vector<1x16x16xbf16> to vector<16x16xbf16>
    %cst_410 = arith.constant dense<0.000000e+00> : vector<4x16xf32>
    %592 = tpu.matmul %589, %591, %cst_410 {dimension_numbers = #tpu.dot_dimension_numbers<[1], [0], [0], [1], [0, 0, 1, 1], [], []>} : vector<4x16xbf16>, vector<16x16xbf16>, vector<4x16xf32> -> vector<4x16xf32>
    %593 = arith.addf %588, %592 : vector<4x16xf32>
    %594 = vector.extract_strided_slice %583 {offsets = [2, 0], sizes = [4, 16], strides = [1, 1]} : vector<6x16xbf16> to vector<4x16xbf16>
    %c20_411 = arith.constant 20 : index
    %c0_412 = arith.constant 0 : index
    %c0_413 = arith.constant 0 : index
    %595 = vector.load %arg5[%c20_411, %c0_412, %c0_413] : memref<27x16x16xbf16, #tpu.memory_space<vmem>>, vector<1x16x16xbf16>
    %596 = vector.shape_cast %595 : vector<1x16x16xbf16> to vector<16x16xbf16>
    %cst_414 = arith.constant dense<0.000000e+00> : vector<4x16xf32>
    %597 = tpu.matmul %594, %596, %cst_414 {dimension_numbers = #tpu.dot_dimension_numbers<[1], [0], [0], [1], [0, 0, 1, 1], [], []>} : vector<4x16xbf16>, vector<16x16xbf16>, vector<4x16xf32> -> vector<4x16xf32>
    %598 = arith.addf %593, %597 : vector<4x16xf32>
    %599 = vector.extract_strided_slice %5 {offsets = [4, 0, 0], sizes = [1, 6, 16], strides = [1, 1, 1]} : vector<6x6x16xbf16> to vector<1x6x16xbf16>
    %600 = vector.shape_cast %599 : vector<1x6x16xbf16> to vector<6x16xbf16>
    %601 = vector.extract_strided_slice %600 {offsets = [0, 0], sizes = [4, 16], strides = [1, 1]} : vector<6x16xbf16> to vector<4x16xbf16>
    %c21_415 = arith.constant 21 : index
    %c0_416 = arith.constant 0 : index
    %c0_417 = arith.constant 0 : index
    %602 = vector.load %arg5[%c21_415, %c0_416, %c0_417] : memref<27x16x16xbf16, #tpu.memory_space<vmem>>, vector<1x16x16xbf16>
    %603 = vector.shape_cast %602 : vector<1x16x16xbf16> to vector<16x16xbf16>
    %cst_418 = arith.constant dense<0.000000e+00> : vector<4x16xf32>
    %604 = tpu.matmul %601, %603, %cst_418 {dimension_numbers = #tpu.dot_dimension_numbers<[1], [0], [0], [1], [0, 0, 1, 1], [], []>} : vector<4x16xbf16>, vector<16x16xbf16>, vector<4x16xf32> -> vector<4x16xf32>
    %605 = arith.addf %598, %604 : vector<4x16xf32>
    %606 = vector.extract_strided_slice %600 {offsets = [1, 0], sizes = [4, 16], strides = [1, 1]} : vector<6x16xbf16> to vector<4x16xbf16>
    %c22_419 = arith.constant 22 : index
    %c0_420 = arith.constant 0 : index
    %c0_421 = arith.constant 0 : index
    %607 = vector.load %arg5[%c22_419, %c0_420, %c0_421] : memref<27x16x16xbf16, #tpu.memory_space<vmem>>, vector<1x16x16xbf16>
    %608 = vector.shape_cast %607 : vector<1x16x16xbf16> to vector<16x16xbf16>
    %cst_422 = arith.constant dense<0.000000e+00> : vector<4x16xf32>
    %609 = tpu.matmul %606, %608, %cst_422 {dimension_numbers = #tpu.dot_dimension_numbers<[1], [0], [0], [1], [0, 0, 1, 1], [], []>} : vector<4x16xbf16>, vector<16x16xbf16>, vector<4x16xf32> -> vector<4x16xf32>
    %610 = arith.addf %605, %609 : vector<4x16xf32>
    %611 = vector.extract_strided_slice %600 {offsets = [2, 0], sizes = [4, 16], strides = [1, 1]} : vector<6x16xbf16> to vector<4x16xbf16>
    %c23_423 = arith.constant 23 : index
    %c0_424 = arith.constant 0 : index
    %c0_425 = arith.constant 0 : index
    %612 = vector.load %arg5[%c23_423, %c0_424, %c0_425] : memref<27x16x16xbf16, #tpu.memory_space<vmem>>, vector<1x16x16xbf16>
    %613 = vector.shape_cast %612 : vector<1x16x16xbf16> to vector<16x16xbf16>
    %cst_426 = arith.constant dense<0.000000e+00> : vector<4x16xf32>
    %614 = tpu.matmul %611, %613, %cst_426 {dimension_numbers = #tpu.dot_dimension_numbers<[1], [0], [0], [1], [0, 0, 1, 1], [], []>} : vector<4x16xbf16>, vector<16x16xbf16>, vector<4x16xf32> -> vector<4x16xf32>
    %615 = arith.addf %610, %614 : vector<4x16xf32>
    %616 = vector.extract_strided_slice %5 {offsets = [5, 0, 0], sizes = [1, 6, 16], strides = [1, 1, 1]} : vector<6x6x16xbf16> to vector<1x6x16xbf16>
    %617 = vector.shape_cast %616 : vector<1x6x16xbf16> to vector<6x16xbf16>
    %618 = vector.extract_strided_slice %617 {offsets = [0, 0], sizes = [4, 16], strides = [1, 1]} : vector<6x16xbf16> to vector<4x16xbf16>
    %c24_427 = arith.constant 24 : index
    %c0_428 = arith.constant 0 : index
    %c0_429 = arith.constant 0 : index
    %619 = vector.load %arg5[%c24_427, %c0_428, %c0_429] : memref<27x16x16xbf16, #tpu.memory_space<vmem>>, vector<1x16x16xbf16>
    %620 = vector.shape_cast %619 : vector<1x16x16xbf16> to vector<16x16xbf16>
    %cst_430 = arith.constant dense<0.000000e+00> : vector<4x16xf32>
    %621 = tpu.matmul %618, %620, %cst_430 {dimension_numbers = #tpu.dot_dimension_numbers<[1], [0], [0], [1], [0, 0, 1, 1], [], []>} : vector<4x16xbf16>, vector<16x16xbf16>, vector<4x16xf32> -> vector<4x16xf32>
    %622 = arith.addf %615, %621 : vector<4x16xf32>
    %623 = vector.extract_strided_slice %617 {offsets = [1, 0], sizes = [4, 16], strides = [1, 1]} : vector<6x16xbf16> to vector<4x16xbf16>
    %c25_431 = arith.constant 25 : index
    %c0_432 = arith.constant 0 : index
    %c0_433 = arith.constant 0 : index
    %624 = vector.load %arg5[%c25_431, %c0_432, %c0_433] : memref<27x16x16xbf16, #tpu.memory_space<vmem>>, vector<1x16x16xbf16>
    %625 = vector.shape_cast %624 : vector<1x16x16xbf16> to vector<16x16xbf16>
    %cst_434 = arith.constant dense<0.000000e+00> : vector<4x16xf32>
    %626 = tpu.matmul %623, %625, %cst_434 {dimension_numbers = #tpu.dot_dimension_numbers<[1], [0], [0], [1], [0, 0, 1, 1], [], []>} : vector<4x16xbf16>, vector<16x16xbf16>, vector<4x16xf32> -> vector<4x16xf32>
    %627 = arith.addf %622, %626 : vector<4x16xf32>
    %628 = vector.extract_strided_slice %617 {offsets = [2, 0], sizes = [4, 16], strides = [1, 1]} : vector<6x16xbf16> to vector<4x16xbf16>
    %c26_435 = arith.constant 26 : index
    %c0_436 = arith.constant 0 : index
    %c0_437 = arith.constant 0 : index
    %629 = vector.load %arg5[%c26_435, %c0_436, %c0_437] : memref<27x16x16xbf16, #tpu.memory_space<vmem>>, vector<1x16x16xbf16>
    %630 = vector.shape_cast %629 : vector<1x16x16xbf16> to vector<16x16xbf16>
    %cst_438 = arith.constant dense<0.000000e+00> : vector<4x16xf32>
    %631 = tpu.matmul %628, %630, %cst_438 {dimension_numbers = #tpu.dot_dimension_numbers<[1], [0], [0], [1], [0, 0, 1, 1], [], []>} : vector<4x16xbf16>, vector<16x16xbf16>, vector<4x16xf32> -> vector<4x16xf32>
    %632 = arith.addf %627, %631 : vector<4x16xf32>
    %633 = vector.broadcast %6 : vector<1x16xf32> to vector<4x16xf32>
    %634 = arith.addf %632, %633 : vector<4x16xf32>
    %635 = vector.shape_cast %634 : vector<4x16xf32> to vector<1x4x16xf32>
    %c0_439 = arith.constant 0 : index
    %c12_440 = arith.constant 12 : index
    %c0_441 = arith.constant 0 : index
    %636 = vector.load %arg7[%c0_439, %c12_440, %c0_441] : memref<1x16x16xf32, #tpu.memory_space<vmem>>, vector<1x4x16xf32>
    %637 = arith.addf %635, %636 : vector<1x4x16xf32>
    %c0_442 = arith.constant 0 : index
    %c12_443 = arith.constant 12 : index
    %c0_444 = arith.constant 0 : index
    %638 = vector.load %arg8[%c0_442, %c12_443, %c0_444] : memref<1x16x16xf32, #tpu.memory_space<vmem>>, vector<1x4x16xf32>
    tpu.vector_store %arg8[%c0_442, %c12_443, %c0_444], %637 {strides = array<i32>} : memref<1x16x16xf32, #tpu.memory_space<vmem>>, vector<1x4x16xf32>,
    return
  }
  func.func @transform_0(%arg0: i32, %arg1: i32) -> (i32, i32, i32, i32, i32) {
    %c0_i32 = arith.constant 0 : i32
    %0 = arith.addi %arg1, %c0_i32 : i32
    %c0_i32_0 = arith.constant 0 : i32
    %c0_i32_1 = arith.constant 0 : i32
    %c0_i32_2 = arith.constant 0 : i32
    %c0_i32_3 = arith.constant 0 : i32
    return %arg0, %0, %c0_i32_0, %c0_i32_1, %c0_i32_2 : i32, i32, i32, i32, i32
  }
  func.func @transform_1(%arg0: i32, %arg1: i32) -> (i32, i32, i32, i32, i32) {
    %c1_i32 = arith.constant 1 : i32
    %0 = arith.addi %arg1, %c1_i32 : i32
    %c0_i32 = arith.constant 0 : i32
    %c0_i32_0 = arith.constant 0 : i32
    %c0_i32_1 = arith.constant 0 : i32
    %c0_i32_2 = arith.constant 0 : i32
    return %arg0, %0, %c0_i32, %c0_i32_0, %c0_i32_1 : i32, i32, i32, i32, i32
  }
  func.func @transform_2(%arg0: i32, %arg1: i32) -> (i32, i32, i32, i32, i32) {
    %c2_i32 = arith.constant 2 : i32
    %0 = arith.addi %arg1, %c2_i32 : i32
    %c0_i32 = arith.constant 0 : i32
    %c0_i32_0 = arith.constant 0 : i32
    %c0_i32_1 = arith.constant 0 : i32
    %c0_i32_2 = arith.constant 0 : i32
    return %arg0, %0, %c0_i32, %c0_i32_0, %c0_i32_1 : i32, i32, i32, i32, i32
  }
  func.func @transform_3(%arg0: i32, %arg1: i32) -> (i32, i32, i32) {
    %c0_i32 = arith.constant 0 : i32
    %c0_i32_0 = arith.constant 0 : i32
    %c0_i32_1 = arith.constant 0 : i32
    %c0_i32_2 = arith.constant 0 : i32
    return %c0_i32, %c0_i32_0, %c0_i32_1 : i32, i32, i32
  }
  func.func @transform_4(%arg0: i32, %arg1: i32) -> (i32, i32) {
    %c0_i32 = arith.constant 0 : i32
    %c0_i32_0 = arith.constant 0 : i32
    %c0_i32_1 = arith.constant 0 : i32
    return %c0_i32, %c0_i32_0 : i32, i32
  }
  func.func @transform_5(%arg0: i32, %arg1: i32) -> (i32, i32, i32) {
    %c0_i32 = arith.constant 0 : i32
    %c0_i32_0 = arith.constant 0 : i32
    return %arg0, %arg1, %c0_i32 : i32, i32, i32
  }
  func.func @transform_6(%arg0: i32, %arg1: i32) -> (i32, i32, i32) {
    %c0_i32 = arith.constant 0 : i32
    %c0_i32_0 = arith.constant 0 : i32
    return %arg0, %arg1, %c0_i32 : i32, i32, i32
  }
}

module attributes {stable_mosaic.version = 11 : i64} {
  func.func @_conv3x3_stats_kernel(%arg0: i32, %arg1: i32, %arg2: memref<1x1x6x6x16xbf16, #tpu.memory_space<vmem>>, %arg3: memref<1x1x6x6x16xbf16, #tpu.memory_space<vmem>>, %arg4: memref<1x1x6x6x16xbf16, #tpu.memory_space<vmem>>, %arg5: memref<27x16x16xbf16, #tpu.memory_space<vmem>>, %arg6: memref<1x16xf32, #tpu.memory_space<vmem>>, %arg7: memref<1x16x16xf32, #tpu.memory_space<vmem>>, %arg8: memref<1x1x16xf32, #tpu.memory_space<vmem>>, %arg9: memref<1x1x16xf32, #tpu.memory_space<vmem>>) attributes {dimension_semantics = [#tpu.dimension_semantics<parallel>, #tpu.dimension_semantics<arbitrary>], iteration_bounds = array<i64: 2, 4>, scalar_prefetch = 0 : i64, scratch_operands = 0 : i64, tpu.core_type = #tpu.core_type<tc>, window_params = [{transform_indices = @transform_0, window_bounds = array<i64: 1, 1, 6, 6, 16>}, {transform_indices = @transform_1, window_bounds = array<i64: 1, 1, 6, 6, 16>}, {transform_indices = @transform_2, window_bounds = array<i64: 1, 1, 6, 6, 16>}, {pipeline_mode = #tpu.pipeline_mode<synchronous>, transform_indices = @transform_3, window_bounds = array<i64: 27, 16, 16>}, {pipeline_mode = #tpu.pipeline_mode<synchronous>, transform_indices = @transform_4, window_bounds = array<i64: 1, 16>}, {transform_indices = @transform_5, window_bounds = array<i64: 1, 16, 16>}, {transform_indices = @transform_6, window_bounds = array<i64: 1, 1, 16>}, {transform_indices = @transform_7, window_bounds = array<i64: 1, 1, 16>}]} {
    %c0_i32 = arith.constant 0 : i32
    %0 = arith.cmpi eq, %arg1, %c0_i32 : i32
    %1 = arith.extui %0 : i1 to i32
    %c0_i32_0 = arith.constant 0 : i32
    %2 = arith.cmpi ne, %1, %c0_i32_0 : i32
    scf.if %2 {
      %cst_456 = arith.constant 0.000000e+00 : f32
      %672 = vector.broadcast %cst_456 : f32 to vector<1x1x16xf32>
      %c0_457 = arith.constant 0 : index
      %c0_458 = arith.constant 0 : index
      %c0_459 = arith.constant 0 : index
      %673 = vector.load %arg8[%c0_457, %c0_458, %c0_459] : memref<1x1x16xf32, #tpu.memory_space<vmem>>, vector<1x1x16xf32>
      tpu.vector_store %arg8[%c0_457, %c0_458, %c0_459], %672 {strides = array<i32>} : memref<1x1x16xf32, #tpu.memory_space<vmem>>, vector<1x1x16xf32>,
      %cst_460 = arith.constant 0.000000e+00 : f32
      %674 = vector.broadcast %cst_460 : f32 to vector<1x1x16xf32>
      %c0_461 = arith.constant 0 : index
      %c0_462 = arith.constant 0 : index
      %c0_463 = arith.constant 0 : index
      %675 = vector.load %arg9[%c0_461, %c0_462, %c0_463] : memref<1x1x16xf32, #tpu.memory_space<vmem>>, vector<1x1x16xf32>
      tpu.vector_store %arg9[%c0_461, %c0_462, %c0_463], %674 {strides = array<i32>} : memref<1x1x16xf32, #tpu.memory_space<vmem>>, vector<1x1x16xf32>,
    } else {
    }
    %c0 = arith.constant 0 : index
    %c0_1 = arith.constant 0 : index
    %c0_2 = arith.constant 0 : index
    %c0_3 = arith.constant 0 : index
    %c0_4 = arith.constant 0 : index
    %3 = vector.load %arg2[%c0, %c0_1, %c0_2, %c0_3, %c0_4] : memref<1x1x6x6x16xbf16, #tpu.memory_space<vmem>>, vector<1x1x6x6x16xbf16>
    %4 = vector.shape_cast %3 : vector<1x1x6x6x16xbf16> to vector<6x6x16xbf16>
    %c0_5 = arith.constant 0 : index
    %c0_6 = arith.constant 0 : index
    %c0_7 = arith.constant 0 : index
    %c0_8 = arith.constant 0 : index
    %c0_9 = arith.constant 0 : index
    %5 = vector.load %arg3[%c0_5, %c0_6, %c0_7, %c0_8, %c0_9] : memref<1x1x6x6x16xbf16, #tpu.memory_space<vmem>>, vector<1x1x6x6x16xbf16>
    %6 = vector.shape_cast %5 : vector<1x1x6x6x16xbf16> to vector<6x6x16xbf16>
    %c0_10 = arith.constant 0 : index
    %c0_11 = arith.constant 0 : index
    %c0_12 = arith.constant 0 : index
    %c0_13 = arith.constant 0 : index
    %c0_14 = arith.constant 0 : index
    %7 = vector.load %arg4[%c0_10, %c0_11, %c0_12, %c0_13, %c0_14] : memref<1x1x6x6x16xbf16, #tpu.memory_space<vmem>>, vector<1x1x6x6x16xbf16>
    %8 = vector.shape_cast %7 : vector<1x1x6x6x16xbf16> to vector<6x6x16xbf16>
    %c0_15 = arith.constant 0 : index
    %c0_16 = arith.constant 0 : index
    %9 = vector.load %arg6[%c0_15, %c0_16] : memref<1x16xf32, #tpu.memory_space<vmem>>, vector<1x16xf32>
    %cst = arith.constant 0.000000e+00 : f32
    %10 = vector.broadcast %cst : f32 to vector<1x16xf32>
    %cst_17 = arith.constant 0.000000e+00 : f32
    %11 = vector.broadcast %cst_17 : f32 to vector<1x16xf32>
    %12 = vector.extract_strided_slice %4 {offsets = [0, 0, 0], sizes = [1, 6, 16], strides = [1, 1, 1]} : vector<6x6x16xbf16> to vector<1x6x16xbf16>
    %13 = vector.shape_cast %12 : vector<1x6x16xbf16> to vector<6x16xbf16>
    %14 = vector.extract_strided_slice %13 {offsets = [0, 0], sizes = [4, 16], strides = [1, 1]} : vector<6x16xbf16> to vector<4x16xbf16>
    %c0_18 = arith.constant 0 : index
    %c0_19 = arith.constant 0 : index
    %c0_20 = arith.constant 0 : index
    %15 = vector.load %arg5[%c0_18, %c0_19, %c0_20] : memref<27x16x16xbf16, #tpu.memory_space<vmem>>, vector<1x16x16xbf16>
    %16 = vector.shape_cast %15 : vector<1x16x16xbf16> to vector<16x16xbf16>
    %cst_21 = arith.constant dense<0.000000e+00> : vector<4x16xf32>
    %17 = tpu.matmul %14, %16, %cst_21 {dimension_numbers = #tpu.dot_dimension_numbers<[1], [0], [0], [1], [0, 0, 1, 1], [], []>} : vector<4x16xbf16>, vector<16x16xbf16>, vector<4x16xf32> -> vector<4x16xf32>
    %18 = vector.extract_strided_slice %13 {offsets = [1, 0], sizes = [4, 16], strides = [1, 1]} : vector<6x16xbf16> to vector<4x16xbf16>
    %c1 = arith.constant 1 : index
    %c0_22 = arith.constant 0 : index
    %c0_23 = arith.constant 0 : index
    %19 = vector.load %arg5[%c1, %c0_22, %c0_23] : memref<27x16x16xbf16, #tpu.memory_space<vmem>>, vector<1x16x16xbf16>
    %20 = vector.shape_cast %19 : vector<1x16x16xbf16> to vector<16x16xbf16>
    %cst_24 = arith.constant dense<0.000000e+00> : vector<4x16xf32>
    %21 = tpu.matmul %18, %20, %cst_24 {dimension_numbers = #tpu.dot_dimension_numbers<[1], [0], [0], [1], [0, 0, 1, 1], [], []>} : vector<4x16xbf16>, vector<16x16xbf16>, vector<4x16xf32> -> vector<4x16xf32>
    %22 = arith.addf %17, %21 : vector<4x16xf32>
    %23 = vector.extract_strided_slice %13 {offsets = [2, 0], sizes = [4, 16], strides = [1, 1]} : vector<6x16xbf16> to vector<4x16xbf16>
    %c2 = arith.constant 2 : index
    %c0_25 = arith.constant 0 : index
    %c0_26 = arith.constant 0 : index
    %24 = vector.load %arg5[%c2, %c0_25, %c0_26] : memref<27x16x16xbf16, #tpu.memory_space<vmem>>, vector<1x16x16xbf16>
    %25 = vector.shape_cast %24 : vector<1x16x16xbf16> to vector<16x16xbf16>
    %cst_27 = arith.constant dense<0.000000e+00> : vector<4x16xf32>
    %26 = tpu.matmul %23, %25, %cst_27 {dimension_numbers = #tpu.dot_dimension_numbers<[1], [0], [0], [1], [0, 0, 1, 1], [], []>} : vector<4x16xbf16>, vector<16x16xbf16>, vector<4x16xf32> -> vector<4x16xf32>
    %27 = arith.addf %22, %26 : vector<4x16xf32>
    %28 = vector.extract_strided_slice %4 {offsets = [1, 0, 0], sizes = [1, 6, 16], strides = [1, 1, 1]} : vector<6x6x16xbf16> to vector<1x6x16xbf16>
    %29 = vector.shape_cast %28 : vector<1x6x16xbf16> to vector<6x16xbf16>
    %30 = vector.extract_strided_slice %29 {offsets = [0, 0], sizes = [4, 16], strides = [1, 1]} : vector<6x16xbf16> to vector<4x16xbf16>
    %c3 = arith.constant 3 : index
    %c0_28 = arith.constant 0 : index
    %c0_29 = arith.constant 0 : index
    %31 = vector.load %arg5[%c3, %c0_28, %c0_29] : memref<27x16x16xbf16, #tpu.memory_space<vmem>>, vector<1x16x16xbf16>
    %32 = vector.shape_cast %31 : vector<1x16x16xbf16> to vector<16x16xbf16>
    %cst_30 = arith.constant dense<0.000000e+00> : vector<4x16xf32>
    %33 = tpu.matmul %30, %32, %cst_30 {dimension_numbers = #tpu.dot_dimension_numbers<[1], [0], [0], [1], [0, 0, 1, 1], [], []>} : vector<4x16xbf16>, vector<16x16xbf16>, vector<4x16xf32> -> vector<4x16xf32>
    %34 = arith.addf %27, %33 : vector<4x16xf32>
    %35 = vector.extract_strided_slice %29 {offsets = [1, 0], sizes = [4, 16], strides = [1, 1]} : vector<6x16xbf16> to vector<4x16xbf16>
    %c4 = arith.constant 4 : index
    %c0_31 = arith.constant 0 : index
    %c0_32 = arith.constant 0 : index
    %36 = vector.load %arg5[%c4, %c0_31, %c0_32] : memref<27x16x16xbf16, #tpu.memory_space<vmem>>, vector<1x16x16xbf16>
    %37 = vector.shape_cast %36 : vector<1x16x16xbf16> to vector<16x16xbf16>
    %cst_33 = arith.constant dense<0.000000e+00> : vector<4x16xf32>
    %38 = tpu.matmul %35, %37, %cst_33 {dimension_numbers = #tpu.dot_dimension_numbers<[1], [0], [0], [1], [0, 0, 1, 1], [], []>} : vector<4x16xbf16>, vector<16x16xbf16>, vector<4x16xf32> -> vector<4x16xf32>
    %39 = arith.addf %34, %38 : vector<4x16xf32>
    %40 = vector.extract_strided_slice %29 {offsets = [2, 0], sizes = [4, 16], strides = [1, 1]} : vector<6x16xbf16> to vector<4x16xbf16>
    %c5 = arith.constant 5 : index
    %c0_34 = arith.constant 0 : index
    %c0_35 = arith.constant 0 : index
    %41 = vector.load %arg5[%c5, %c0_34, %c0_35] : memref<27x16x16xbf16, #tpu.memory_space<vmem>>, vector<1x16x16xbf16>
    %42 = vector.shape_cast %41 : vector<1x16x16xbf16> to vector<16x16xbf16>
    %cst_36 = arith.constant dense<0.000000e+00> : vector<4x16xf32>
    %43 = tpu.matmul %40, %42, %cst_36 {dimension_numbers = #tpu.dot_dimension_numbers<[1], [0], [0], [1], [0, 0, 1, 1], [], []>} : vector<4x16xbf16>, vector<16x16xbf16>, vector<4x16xf32> -> vector<4x16xf32>
    %44 = arith.addf %39, %43 : vector<4x16xf32>
    %45 = vector.extract_strided_slice %4 {offsets = [2, 0, 0], sizes = [1, 6, 16], strides = [1, 1, 1]} : vector<6x6x16xbf16> to vector<1x6x16xbf16>
    %46 = vector.shape_cast %45 : vector<1x6x16xbf16> to vector<6x16xbf16>
    %47 = vector.extract_strided_slice %46 {offsets = [0, 0], sizes = [4, 16], strides = [1, 1]} : vector<6x16xbf16> to vector<4x16xbf16>
    %c6 = arith.constant 6 : index
    %c0_37 = arith.constant 0 : index
    %c0_38 = arith.constant 0 : index
    %48 = vector.load %arg5[%c6, %c0_37, %c0_38] : memref<27x16x16xbf16, #tpu.memory_space<vmem>>, vector<1x16x16xbf16>
    %49 = vector.shape_cast %48 : vector<1x16x16xbf16> to vector<16x16xbf16>
    %cst_39 = arith.constant dense<0.000000e+00> : vector<4x16xf32>
    %50 = tpu.matmul %47, %49, %cst_39 {dimension_numbers = #tpu.dot_dimension_numbers<[1], [0], [0], [1], [0, 0, 1, 1], [], []>} : vector<4x16xbf16>, vector<16x16xbf16>, vector<4x16xf32> -> vector<4x16xf32>
    %51 = arith.addf %44, %50 : vector<4x16xf32>
    %52 = vector.extract_strided_slice %46 {offsets = [1, 0], sizes = [4, 16], strides = [1, 1]} : vector<6x16xbf16> to vector<4x16xbf16>
    %c7 = arith.constant 7 : index
    %c0_40 = arith.constant 0 : index
    %c0_41 = arith.constant 0 : index
    %53 = vector.load %arg5[%c7, %c0_40, %c0_41] : memref<27x16x16xbf16, #tpu.memory_space<vmem>>, vector<1x16x16xbf16>
    %54 = vector.shape_cast %53 : vector<1x16x16xbf16> to vector<16x16xbf16>
    %cst_42 = arith.constant dense<0.000000e+00> : vector<4x16xf32>
    %55 = tpu.matmul %52, %54, %cst_42 {dimension_numbers = #tpu.dot_dimension_numbers<[1], [0], [0], [1], [0, 0, 1, 1], [], []>} : vector<4x16xbf16>, vector<16x16xbf16>, vector<4x16xf32> -> vector<4x16xf32>
    %56 = arith.addf %51, %55 : vector<4x16xf32>
    %57 = vector.extract_strided_slice %46 {offsets = [2, 0], sizes = [4, 16], strides = [1, 1]} : vector<6x16xbf16> to vector<4x16xbf16>
    %c8 = arith.constant 8 : index
    %c0_43 = arith.constant 0 : index
    %c0_44 = arith.constant 0 : index
    %58 = vector.load %arg5[%c8, %c0_43, %c0_44] : memref<27x16x16xbf16, #tpu.memory_space<vmem>>, vector<1x16x16xbf16>
    %59 = vector.shape_cast %58 : vector<1x16x16xbf16> to vector<16x16xbf16>
    %cst_45 = arith.constant dense<0.000000e+00> : vector<4x16xf32>
    %60 = tpu.matmul %57, %59, %cst_45 {dimension_numbers = #tpu.dot_dimension_numbers<[1], [0], [0], [1], [0, 0, 1, 1], [], []>} : vector<4x16xbf16>, vector<16x16xbf16>, vector<4x16xf32> -> vector<4x16xf32>
    %61 = arith.addf %56, %60 : vector<4x16xf32>
    %62 = vector.extract_strided_slice %6 {offsets = [0, 0, 0], sizes = [1, 6, 16], strides = [1, 1, 1]} : vector<6x6x16xbf16> to vector<1x6x16xbf16>
    %63 = vector.shape_cast %62 : vector<1x6x16xbf16> to vector<6x16xbf16>
    %64 = vector.extract_strided_slice %63 {offsets = [0, 0], sizes = [4, 16], strides = [1, 1]} : vector<6x16xbf16> to vector<4x16xbf16>
    %c9 = arith.constant 9 : index
    %c0_46 = arith.constant 0 : index
    %c0_47 = arith.constant 0 : index
    %65 = vector.load %arg5[%c9, %c0_46, %c0_47] : memref<27x16x16xbf16, #tpu.memory_space<vmem>>, vector<1x16x16xbf16>
    %66 = vector.shape_cast %65 : vector<1x16x16xbf16> to vector<16x16xbf16>
    %cst_48 = arith.constant dense<0.000000e+00> : vector<4x16xf32>
    %67 = tpu.matmul %64, %66, %cst_48 {dimension_numbers = #tpu.dot_dimension_numbers<[1], [0], [0], [1], [0, 0, 1, 1], [], []>} : vector<4x16xbf16>, vector<16x16xbf16>, vector<4x16xf32> -> vector<4x16xf32>
    %68 = arith.addf %61, %67 : vector<4x16xf32>
    %69 = vector.extract_strided_slice %63 {offsets = [1, 0], sizes = [4, 16], strides = [1, 1]} : vector<6x16xbf16> to vector<4x16xbf16>
    %c10 = arith.constant 10 : index
    %c0_49 = arith.constant 0 : index
    %c0_50 = arith.constant 0 : index
    %70 = vector.load %arg5[%c10, %c0_49, %c0_50] : memref<27x16x16xbf16, #tpu.memory_space<vmem>>, vector<1x16x16xbf16>
    %71 = vector.shape_cast %70 : vector<1x16x16xbf16> to vector<16x16xbf16>
    %cst_51 = arith.constant dense<0.000000e+00> : vector<4x16xf32>
    %72 = tpu.matmul %69, %71, %cst_51 {dimension_numbers = #tpu.dot_dimension_numbers<[1], [0], [0], [1], [0, 0, 1, 1], [], []>} : vector<4x16xbf16>, vector<16x16xbf16>, vector<4x16xf32> -> vector<4x16xf32>
    %73 = arith.addf %68, %72 : vector<4x16xf32>
    %74 = vector.extract_strided_slice %63 {offsets = [2, 0], sizes = [4, 16], strides = [1, 1]} : vector<6x16xbf16> to vector<4x16xbf16>
    %c11 = arith.constant 11 : index
    %c0_52 = arith.constant 0 : index
    %c0_53 = arith.constant 0 : index
    %75 = vector.load %arg5[%c11, %c0_52, %c0_53] : memref<27x16x16xbf16, #tpu.memory_space<vmem>>, vector<1x16x16xbf16>
    %76 = vector.shape_cast %75 : vector<1x16x16xbf16> to vector<16x16xbf16>
    %cst_54 = arith.constant dense<0.000000e+00> : vector<4x16xf32>
    %77 = tpu.matmul %74, %76, %cst_54 {dimension_numbers = #tpu.dot_dimension_numbers<[1], [0], [0], [1], [0, 0, 1, 1], [], []>} : vector<4x16xbf16>, vector<16x16xbf16>, vector<4x16xf32> -> vector<4x16xf32>
    %78 = arith.addf %73, %77 : vector<4x16xf32>
    %79 = vector.extract_strided_slice %6 {offsets = [1, 0, 0], sizes = [1, 6, 16], strides = [1, 1, 1]} : vector<6x6x16xbf16> to vector<1x6x16xbf16>
    %80 = vector.shape_cast %79 : vector<1x6x16xbf16> to vector<6x16xbf16>
    %81 = vector.extract_strided_slice %80 {offsets = [0, 0], sizes = [4, 16], strides = [1, 1]} : vector<6x16xbf16> to vector<4x16xbf16>
    %c12 = arith.constant 12 : index
    %c0_55 = arith.constant 0 : index
    %c0_56 = arith.constant 0 : index
    %82 = vector.load %arg5[%c12, %c0_55, %c0_56] : memref<27x16x16xbf16, #tpu.memory_space<vmem>>, vector<1x16x16xbf16>
    %83 = vector.shape_cast %82 : vector<1x16x16xbf16> to vector<16x16xbf16>
    %cst_57 = arith.constant dense<0.000000e+00> : vector<4x16xf32>
    %84 = tpu.matmul %81, %83, %cst_57 {dimension_numbers = #tpu.dot_dimension_numbers<[1], [0], [0], [1], [0, 0, 1, 1], [], []>} : vector<4x16xbf16>, vector<16x16xbf16>, vector<4x16xf32> -> vector<4x16xf32>
    %85 = arith.addf %78, %84 : vector<4x16xf32>
    %86 = vector.extract_strided_slice %80 {offsets = [1, 0], sizes = [4, 16], strides = [1, 1]} : vector<6x16xbf16> to vector<4x16xbf16>
    %c13 = arith.constant 13 : index
    %c0_58 = arith.constant 0 : index
    %c0_59 = arith.constant 0 : index
    %87 = vector.load %arg5[%c13, %c0_58, %c0_59] : memref<27x16x16xbf16, #tpu.memory_space<vmem>>, vector<1x16x16xbf16>
    %88 = vector.shape_cast %87 : vector<1x16x16xbf16> to vector<16x16xbf16>
    %cst_60 = arith.constant dense<0.000000e+00> : vector<4x16xf32>
    %89 = tpu.matmul %86, %88, %cst_60 {dimension_numbers = #tpu.dot_dimension_numbers<[1], [0], [0], [1], [0, 0, 1, 1], [], []>} : vector<4x16xbf16>, vector<16x16xbf16>, vector<4x16xf32> -> vector<4x16xf32>
    %90 = arith.addf %85, %89 : vector<4x16xf32>
    %91 = vector.extract_strided_slice %80 {offsets = [2, 0], sizes = [4, 16], strides = [1, 1]} : vector<6x16xbf16> to vector<4x16xbf16>
    %c14 = arith.constant 14 : index
    %c0_61 = arith.constant 0 : index
    %c0_62 = arith.constant 0 : index
    %92 = vector.load %arg5[%c14, %c0_61, %c0_62] : memref<27x16x16xbf16, #tpu.memory_space<vmem>>, vector<1x16x16xbf16>
    %93 = vector.shape_cast %92 : vector<1x16x16xbf16> to vector<16x16xbf16>
    %cst_63 = arith.constant dense<0.000000e+00> : vector<4x16xf32>
    %94 = tpu.matmul %91, %93, %cst_63 {dimension_numbers = #tpu.dot_dimension_numbers<[1], [0], [0], [1], [0, 0, 1, 1], [], []>} : vector<4x16xbf16>, vector<16x16xbf16>, vector<4x16xf32> -> vector<4x16xf32>
    %95 = arith.addf %90, %94 : vector<4x16xf32>
    %96 = vector.extract_strided_slice %6 {offsets = [2, 0, 0], sizes = [1, 6, 16], strides = [1, 1, 1]} : vector<6x6x16xbf16> to vector<1x6x16xbf16>
    %97 = vector.shape_cast %96 : vector<1x6x16xbf16> to vector<6x16xbf16>
    %98 = vector.extract_strided_slice %97 {offsets = [0, 0], sizes = [4, 16], strides = [1, 1]} : vector<6x16xbf16> to vector<4x16xbf16>
    %c15 = arith.constant 15 : index
    %c0_64 = arith.constant 0 : index
    %c0_65 = arith.constant 0 : index
    %99 = vector.load %arg5[%c15, %c0_64, %c0_65] : memref<27x16x16xbf16, #tpu.memory_space<vmem>>, vector<1x16x16xbf16>
    %100 = vector.shape_cast %99 : vector<1x16x16xbf16> to vector<16x16xbf16>
    %cst_66 = arith.constant dense<0.000000e+00> : vector<4x16xf32>
    %101 = tpu.matmul %98, %100, %cst_66 {dimension_numbers = #tpu.dot_dimension_numbers<[1], [0], [0], [1], [0, 0, 1, 1], [], []>} : vector<4x16xbf16>, vector<16x16xbf16>, vector<4x16xf32> -> vector<4x16xf32>
    %102 = arith.addf %95, %101 : vector<4x16xf32>
    %103 = vector.extract_strided_slice %97 {offsets = [1, 0], sizes = [4, 16], strides = [1, 1]} : vector<6x16xbf16> to vector<4x16xbf16>
    %c16 = arith.constant 16 : index
    %c0_67 = arith.constant 0 : index
    %c0_68 = arith.constant 0 : index
    %104 = vector.load %arg5[%c16, %c0_67, %c0_68] : memref<27x16x16xbf16, #tpu.memory_space<vmem>>, vector<1x16x16xbf16>
    %105 = vector.shape_cast %104 : vector<1x16x16xbf16> to vector<16x16xbf16>
    %cst_69 = arith.constant dense<0.000000e+00> : vector<4x16xf32>
    %106 = tpu.matmul %103, %105, %cst_69 {dimension_numbers = #tpu.dot_dimension_numbers<[1], [0], [0], [1], [0, 0, 1, 1], [], []>} : vector<4x16xbf16>, vector<16x16xbf16>, vector<4x16xf32> -> vector<4x16xf32>
    %107 = arith.addf %102, %106 : vector<4x16xf32>
    %108 = vector.extract_strided_slice %97 {offsets = [2, 0], sizes = [4, 16], strides = [1, 1]} : vector<6x16xbf16> to vector<4x16xbf16>
    %c17 = arith.constant 17 : index
    %c0_70 = arith.constant 0 : index
    %c0_71 = arith.constant 0 : index
    %109 = vector.load %arg5[%c17, %c0_70, %c0_71] : memref<27x16x16xbf16, #tpu.memory_space<vmem>>, vector<1x16x16xbf16>
    %110 = vector.shape_cast %109 : vector<1x16x16xbf16> to vector<16x16xbf16>
    %cst_72 = arith.constant dense<0.000000e+00> : vector<4x16xf32>
    %111 = tpu.matmul %108, %110, %cst_72 {dimension_numbers = #tpu.dot_dimension_numbers<[1], [0], [0], [1], [0, 0, 1, 1], [], []>} : vector<4x16xbf16>, vector<16x16xbf16>, vector<4x16xf32> -> vector<4x16xf32>
    %112 = arith.addf %107, %111 : vector<4x16xf32>
    %113 = vector.extract_strided_slice %8 {offsets = [0, 0, 0], sizes = [1, 6, 16], strides = [1, 1, 1]} : vector<6x6x16xbf16> to vector<1x6x16xbf16>
    %114 = vector.shape_cast %113 : vector<1x6x16xbf16> to vector<6x16xbf16>
    %115 = vector.extract_strided_slice %114 {offsets = [0, 0], sizes = [4, 16], strides = [1, 1]} : vector<6x16xbf16> to vector<4x16xbf16>
    %c18 = arith.constant 18 : index
    %c0_73 = arith.constant 0 : index
    %c0_74 = arith.constant 0 : index
    %116 = vector.load %arg5[%c18, %c0_73, %c0_74] : memref<27x16x16xbf16, #tpu.memory_space<vmem>>, vector<1x16x16xbf16>
    %117 = vector.shape_cast %116 : vector<1x16x16xbf16> to vector<16x16xbf16>
    %cst_75 = arith.constant dense<0.000000e+00> : vector<4x16xf32>
    %118 = tpu.matmul %115, %117, %cst_75 {dimension_numbers = #tpu.dot_dimension_numbers<[1], [0], [0], [1], [0, 0, 1, 1], [], []>} : vector<4x16xbf16>, vector<16x16xbf16>, vector<4x16xf32> -> vector<4x16xf32>
    %119 = arith.addf %112, %118 : vector<4x16xf32>
    %120 = vector.extract_strided_slice %114 {offsets = [1, 0], sizes = [4, 16], strides = [1, 1]} : vector<6x16xbf16> to vector<4x16xbf16>
    %c19 = arith.constant 19 : index
    %c0_76 = arith.constant 0 : index
    %c0_77 = arith.constant 0 : index
    %121 = vector.load %arg5[%c19, %c0_76, %c0_77] : memref<27x16x16xbf16, #tpu.memory_space<vmem>>, vector<1x16x16xbf16>
    %122 = vector.shape_cast %121 : vector<1x16x16xbf16> to vector<16x16xbf16>
    %cst_78 = arith.constant dense<0.000000e+00> : vector<4x16xf32>
    %123 = tpu.matmul %120, %122, %cst_78 {dimension_numbers = #tpu.dot_dimension_numbers<[1], [0], [0], [1], [0, 0, 1, 1], [], []>} : vector<4x16xbf16>, vector<16x16xbf16>, vector<4x16xf32> -> vector<4x16xf32>
    %124 = arith.addf %119, %123 : vector<4x16xf32>
    %125 = vector.extract_strided_slice %114 {offsets = [2, 0], sizes = [4, 16], strides = [1, 1]} : vector<6x16xbf16> to vector<4x16xbf16>
    %c20 = arith.constant 20 : index
    %c0_79 = arith.constant 0 : index
    %c0_80 = arith.constant 0 : index
    %126 = vector.load %arg5[%c20, %c0_79, %c0_80] : memref<27x16x16xbf16, #tpu.memory_space<vmem>>, vector<1x16x16xbf16>
    %127 = vector.shape_cast %126 : vector<1x16x16xbf16> to vector<16x16xbf16>
    %cst_81 = arith.constant dense<0.000000e+00> : vector<4x16xf32>
    %128 = tpu.matmul %125, %127, %cst_81 {dimension_numbers = #tpu.dot_dimension_numbers<[1], [0], [0], [1], [0, 0, 1, 1], [], []>} : vector<4x16xbf16>, vector<16x16xbf16>, vector<4x16xf32> -> vector<4x16xf32>
    %129 = arith.addf %124, %128 : vector<4x16xf32>
    %130 = vector.extract_strided_slice %8 {offsets = [1, 0, 0], sizes = [1, 6, 16], strides = [1, 1, 1]} : vector<6x6x16xbf16> to vector<1x6x16xbf16>
    %131 = vector.shape_cast %130 : vector<1x6x16xbf16> to vector<6x16xbf16>
    %132 = vector.extract_strided_slice %131 {offsets = [0, 0], sizes = [4, 16], strides = [1, 1]} : vector<6x16xbf16> to vector<4x16xbf16>
    %c21 = arith.constant 21 : index
    %c0_82 = arith.constant 0 : index
    %c0_83 = arith.constant 0 : index
    %133 = vector.load %arg5[%c21, %c0_82, %c0_83] : memref<27x16x16xbf16, #tpu.memory_space<vmem>>, vector<1x16x16xbf16>
    %134 = vector.shape_cast %133 : vector<1x16x16xbf16> to vector<16x16xbf16>
    %cst_84 = arith.constant dense<0.000000e+00> : vector<4x16xf32>
    %135 = tpu.matmul %132, %134, %cst_84 {dimension_numbers = #tpu.dot_dimension_numbers<[1], [0], [0], [1], [0, 0, 1, 1], [], []>} : vector<4x16xbf16>, vector<16x16xbf16>, vector<4x16xf32> -> vector<4x16xf32>
    %136 = arith.addf %129, %135 : vector<4x16xf32>
    %137 = vector.extract_strided_slice %131 {offsets = [1, 0], sizes = [4, 16], strides = [1, 1]} : vector<6x16xbf16> to vector<4x16xbf16>
    %c22 = arith.constant 22 : index
    %c0_85 = arith.constant 0 : index
    %c0_86 = arith.constant 0 : index
    %138 = vector.load %arg5[%c22, %c0_85, %c0_86] : memref<27x16x16xbf16, #tpu.memory_space<vmem>>, vector<1x16x16xbf16>
    %139 = vector.shape_cast %138 : vector<1x16x16xbf16> to vector<16x16xbf16>
    %cst_87 = arith.constant dense<0.000000e+00> : vector<4x16xf32>
    %140 = tpu.matmul %137, %139, %cst_87 {dimension_numbers = #tpu.dot_dimension_numbers<[1], [0], [0], [1], [0, 0, 1, 1], [], []>} : vector<4x16xbf16>, vector<16x16xbf16>, vector<4x16xf32> -> vector<4x16xf32>
    %141 = arith.addf %136, %140 : vector<4x16xf32>
    %142 = vector.extract_strided_slice %131 {offsets = [2, 0], sizes = [4, 16], strides = [1, 1]} : vector<6x16xbf16> to vector<4x16xbf16>
    %c23 = arith.constant 23 : index
    %c0_88 = arith.constant 0 : index
    %c0_89 = arith.constant 0 : index
    %143 = vector.load %arg5[%c23, %c0_88, %c0_89] : memref<27x16x16xbf16, #tpu.memory_space<vmem>>, vector<1x16x16xbf16>
    %144 = vector.shape_cast %143 : vector<1x16x16xbf16> to vector<16x16xbf16>
    %cst_90 = arith.constant dense<0.000000e+00> : vector<4x16xf32>
    %145 = tpu.matmul %142, %144, %cst_90 {dimension_numbers = #tpu.dot_dimension_numbers<[1], [0], [0], [1], [0, 0, 1, 1], [], []>} : vector<4x16xbf16>, vector<16x16xbf16>, vector<4x16xf32> -> vector<4x16xf32>
    %146 = arith.addf %141, %145 : vector<4x16xf32>
    %147 = vector.extract_strided_slice %8 {offsets = [2, 0, 0], sizes = [1, 6, 16], strides = [1, 1, 1]} : vector<6x6x16xbf16> to vector<1x6x16xbf16>
    %148 = vector.shape_cast %147 : vector<1x6x16xbf16> to vector<6x16xbf16>
    %149 = vector.extract_strided_slice %148 {offsets = [0, 0], sizes = [4, 16], strides = [1, 1]} : vector<6x16xbf16> to vector<4x16xbf16>
    %c24 = arith.constant 24 : index
    %c0_91 = arith.constant 0 : index
    %c0_92 = arith.constant 0 : index
    %150 = vector.load %arg5[%c24, %c0_91, %c0_92] : memref<27x16x16xbf16, #tpu.memory_space<vmem>>, vector<1x16x16xbf16>
    %151 = vector.shape_cast %150 : vector<1x16x16xbf16> to vector<16x16xbf16>
    %cst_93 = arith.constant dense<0.000000e+00> : vector<4x16xf32>
    %152 = tpu.matmul %149, %151, %cst_93 {dimension_numbers = #tpu.dot_dimension_numbers<[1], [0], [0], [1], [0, 0, 1, 1], [], []>} : vector<4x16xbf16>, vector<16x16xbf16>, vector<4x16xf32> -> vector<4x16xf32>
    %153 = arith.addf %146, %152 : vector<4x16xf32>
    %154 = vector.extract_strided_slice %148 {offsets = [1, 0], sizes = [4, 16], strides = [1, 1]} : vector<6x16xbf16> to vector<4x16xbf16>
    %c25 = arith.constant 25 : index
    %c0_94 = arith.constant 0 : index
    %c0_95 = arith.constant 0 : index
    %155 = vector.load %arg5[%c25, %c0_94, %c0_95] : memref<27x16x16xbf16, #tpu.memory_space<vmem>>, vector<1x16x16xbf16>
    %156 = vector.shape_cast %155 : vector<1x16x16xbf16> to vector<16x16xbf16>
    %cst_96 = arith.constant dense<0.000000e+00> : vector<4x16xf32>
    %157 = tpu.matmul %154, %156, %cst_96 {dimension_numbers = #tpu.dot_dimension_numbers<[1], [0], [0], [1], [0, 0, 1, 1], [], []>} : vector<4x16xbf16>, vector<16x16xbf16>, vector<4x16xf32> -> vector<4x16xf32>
    %158 = arith.addf %153, %157 : vector<4x16xf32>
    %159 = vector.extract_strided_slice %148 {offsets = [2, 0], sizes = [4, 16], strides = [1, 1]} : vector<6x16xbf16> to vector<4x16xbf16>
    %c26 = arith.constant 26 : index
    %c0_97 = arith.constant 0 : index
    %c0_98 = arith.constant 0 : index
    %160 = vector.load %arg5[%c26, %c0_97, %c0_98] : memref<27x16x16xbf16, #tpu.memory_space<vmem>>, vector<1x16x16xbf16>
    %161 = vector.shape_cast %160 : vector<1x16x16xbf16> to vector<16x16xbf16>
    %cst_99 = arith.constant dense<0.000000e+00> : vector<4x16xf32>
    %162 = tpu.matmul %159, %161, %cst_99 {dimension_numbers = #tpu.dot_dimension_numbers<[1], [0], [0], [1], [0, 0, 1, 1], [], []>} : vector<4x16xbf16>, vector<16x16xbf16>, vector<4x16xf32> -> vector<4x16xf32>
    %163 = arith.addf %158, %162 : vector<4x16xf32>
    %164 = vector.broadcast %9 : vector<1x16xf32> to vector<4x16xf32>
    %165 = arith.addf %163, %164 : vector<4x16xf32>
    %166 = vector.shape_cast %165 : vector<4x16xf32> to vector<1x4x16xf32>
    %c0_100 = arith.constant 0 : index
    %c0_101 = arith.constant 0 : index
    %c0_102 = arith.constant 0 : index
    %167 = vector.load %arg7[%c0_100, %c0_101, %c0_102] : memref<1x16x16xf32, #tpu.memory_space<vmem>>, vector<1x4x16xf32>
    tpu.vector_store %arg7[%c0_100, %c0_101, %c0_102], %166 {strides = array<i32>} : memref<1x16x16xf32, #tpu.memory_space<vmem>>, vector<1x4x16xf32>,
    %cst_103 = arith.constant dense<0.000000e+00> : vector<16xf32>
    %168 = vector.multi_reduction <add>, %165, %cst_103 [0] : vector<4x16xf32> to vector<16xf32>
    %169 = vector.shape_cast %168 : vector<16xf32> to vector<1x16xf32>
    %170 = arith.addf %10, %169 : vector<1x16xf32>
    %171 = arith.mulf %165, %165 : vector<4x16xf32>
    %cst_104 = arith.constant dense<0.000000e+00> : vector<16xf32>
    %172 = vector.multi_reduction <add>, %171, %cst_104 [0] : vector<4x16xf32> to vector<16xf32>
    %173 = vector.shape_cast %172 : vector<16xf32> to vector<1x16xf32>
    %174 = arith.addf %11, %173 : vector<1x16xf32>
    %175 = vector.extract_strided_slice %4 {offsets = [1, 0, 0], sizes = [1, 6, 16], strides = [1, 1, 1]} : vector<6x6x16xbf16> to vector<1x6x16xbf16>
    %176 = vector.shape_cast %175 : vector<1x6x16xbf16> to vector<6x16xbf16>
    %177 = vector.extract_strided_slice %176 {offsets = [0, 0], sizes = [4, 16], strides = [1, 1]} : vector<6x16xbf16> to vector<4x16xbf16>
    %c0_105 = arith.constant 0 : index
    %c0_106 = arith.constant 0 : index
    %c0_107 = arith.constant 0 : index
    %178 = vector.load %arg5[%c0_105, %c0_106, %c0_107] : memref<27x16x16xbf16, #tpu.memory_space<vmem>>, vector<1x16x16xbf16>
    %179 = vector.shape_cast %178 : vector<1x16x16xbf16> to vector<16x16xbf16>
    %cst_108 = arith.constant dense<0.000000e+00> : vector<4x16xf32>
    %180 = tpu.matmul %177, %179, %cst_108 {dimension_numbers = #tpu.dot_dimension_numbers<[1], [0], [0], [1], [0, 0, 1, 1], [], []>} : vector<4x16xbf16>, vector<16x16xbf16>, vector<4x16xf32> -> vector<4x16xf32>
    %181 = vector.extract_strided_slice %176 {offsets = [1, 0], sizes = [4, 16], strides = [1, 1]} : vector<6x16xbf16> to vector<4x16xbf16>
    %c1_109 = arith.constant 1 : index
    %c0_110 = arith.constant 0 : index
    %c0_111 = arith.constant 0 : index
    %182 = vector.load %arg5[%c1_109, %c0_110, %c0_111] : memref<27x16x16xbf16, #tpu.memory_space<vmem>>, vector<1x16x16xbf16>
    %183 = vector.shape_cast %182 : vector<1x16x16xbf16> to vector<16x16xbf16>
    %cst_112 = arith.constant dense<0.000000e+00> : vector<4x16xf32>
    %184 = tpu.matmul %181, %183, %cst_112 {dimension_numbers = #tpu.dot_dimension_numbers<[1], [0], [0], [1], [0, 0, 1, 1], [], []>} : vector<4x16xbf16>, vector<16x16xbf16>, vector<4x16xf32> -> vector<4x16xf32>
    %185 = arith.addf %180, %184 : vector<4x16xf32>
    %186 = vector.extract_strided_slice %176 {offsets = [2, 0], sizes = [4, 16], strides = [1, 1]} : vector<6x16xbf16> to vector<4x16xbf16>
    %c2_113 = arith.constant 2 : index
    %c0_114 = arith.constant 0 : index
    %c0_115 = arith.constant 0 : index
    %187 = vector.load %arg5[%c2_113, %c0_114, %c0_115] : memref<27x16x16xbf16, #tpu.memory_space<vmem>>, vector<1x16x16xbf16>
    %188 = vector.shape_cast %187 : vector<1x16x16xbf16> to vector<16x16xbf16>
    %cst_116 = arith.constant dense<0.000000e+00> : vector<4x16xf32>
    %189 = tpu.matmul %186, %188, %cst_116 {dimension_numbers = #tpu.dot_dimension_numbers<[1], [0], [0], [1], [0, 0, 1, 1], [], []>} : vector<4x16xbf16>, vector<16x16xbf16>, vector<4x16xf32> -> vector<4x16xf32>
    %190 = arith.addf %185, %189 : vector<4x16xf32>
    %191 = vector.extract_strided_slice %4 {offsets = [2, 0, 0], sizes = [1, 6, 16], strides = [1, 1, 1]} : vector<6x6x16xbf16> to vector<1x6x16xbf16>
    %192 = vector.shape_cast %191 : vector<1x6x16xbf16> to vector<6x16xbf16>
    %193 = vector.extract_strided_slice %192 {offsets = [0, 0], sizes = [4, 16], strides = [1, 1]} : vector<6x16xbf16> to vector<4x16xbf16>
    %c3_117 = arith.constant 3 : index
    %c0_118 = arith.constant 0 : index
    %c0_119 = arith.constant 0 : index
    %194 = vector.load %arg5[%c3_117, %c0_118, %c0_119] : memref<27x16x16xbf16, #tpu.memory_space<vmem>>, vector<1x16x16xbf16>
    %195 = vector.shape_cast %194 : vector<1x16x16xbf16> to vector<16x16xbf16>
    %cst_120 = arith.constant dense<0.000000e+00> : vector<4x16xf32>
    %196 = tpu.matmul %193, %195, %cst_120 {dimension_numbers = #tpu.dot_dimension_numbers<[1], [0], [0], [1], [0, 0, 1, 1], [], []>} : vector<4x16xbf16>, vector<16x16xbf16>, vector<4x16xf32> -> vector<4x16xf32>
    %197 = arith.addf %190, %196 : vector<4x16xf32>
    %198 = vector.extract_strided_slice %192 {offsets = [1, 0], sizes = [4, 16], strides = [1, 1]} : vector<6x16xbf16> to vector<4x16xbf16>
    %c4_121 = arith.constant 4 : index
    %c0_122 = arith.constant 0 : index
    %c0_123 = arith.constant 0 : index
    %199 = vector.load %arg5[%c4_121, %c0_122, %c0_123] : memref<27x16x16xbf16, #tpu.memory_space<vmem>>, vector<1x16x16xbf16>
    %200 = vector.shape_cast %199 : vector<1x16x16xbf16> to vector<16x16xbf16>
    %cst_124 = arith.constant dense<0.000000e+00> : vector<4x16xf32>
    %201 = tpu.matmul %198, %200, %cst_124 {dimension_numbers = #tpu.dot_dimension_numbers<[1], [0], [0], [1], [0, 0, 1, 1], [], []>} : vector<4x16xbf16>, vector<16x16xbf16>, vector<4x16xf32> -> vector<4x16xf32>
    %202 = arith.addf %197, %201 : vector<4x16xf32>
    %203 = vector.extract_strided_slice %192 {offsets = [2, 0], sizes = [4, 16], strides = [1, 1]} : vector<6x16xbf16> to vector<4x16xbf16>
    %c5_125 = arith.constant 5 : index
    %c0_126 = arith.constant 0 : index
    %c0_127 = arith.constant 0 : index
    %204 = vector.load %arg5[%c5_125, %c0_126, %c0_127] : memref<27x16x16xbf16, #tpu.memory_space<vmem>>, vector<1x16x16xbf16>
    %205 = vector.shape_cast %204 : vector<1x16x16xbf16> to vector<16x16xbf16>
    %cst_128 = arith.constant dense<0.000000e+00> : vector<4x16xf32>
    %206 = tpu.matmul %203, %205, %cst_128 {dimension_numbers = #tpu.dot_dimension_numbers<[1], [0], [0], [1], [0, 0, 1, 1], [], []>} : vector<4x16xbf16>, vector<16x16xbf16>, vector<4x16xf32> -> vector<4x16xf32>
    %207 = arith.addf %202, %206 : vector<4x16xf32>
    %208 = vector.extract_strided_slice %4 {offsets = [3, 0, 0], sizes = [1, 6, 16], strides = [1, 1, 1]} : vector<6x6x16xbf16> to vector<1x6x16xbf16>
    %209 = vector.shape_cast %208 : vector<1x6x16xbf16> to vector<6x16xbf16>
    %210 = vector.extract_strided_slice %209 {offsets = [0, 0], sizes = [4, 16], strides = [1, 1]} : vector<6x16xbf16> to vector<4x16xbf16>
    %c6_129 = arith.constant 6 : index
    %c0_130 = arith.constant 0 : index
    %c0_131 = arith.constant 0 : index
    %211 = vector.load %arg5[%c6_129, %c0_130, %c0_131] : memref<27x16x16xbf16, #tpu.memory_space<vmem>>, vector<1x16x16xbf16>
    %212 = vector.shape_cast %211 : vector<1x16x16xbf16> to vector<16x16xbf16>
    %cst_132 = arith.constant dense<0.000000e+00> : vector<4x16xf32>
    %213 = tpu.matmul %210, %212, %cst_132 {dimension_numbers = #tpu.dot_dimension_numbers<[1], [0], [0], [1], [0, 0, 1, 1], [], []>} : vector<4x16xbf16>, vector<16x16xbf16>, vector<4x16xf32> -> vector<4x16xf32>
    %214 = arith.addf %207, %213 : vector<4x16xf32>
    %215 = vector.extract_strided_slice %209 {offsets = [1, 0], sizes = [4, 16], strides = [1, 1]} : vector<6x16xbf16> to vector<4x16xbf16>
    %c7_133 = arith.constant 7 : index
    %c0_134 = arith.constant 0 : index
    %c0_135 = arith.constant 0 : index
    %216 = vector.load %arg5[%c7_133, %c0_134, %c0_135] : memref<27x16x16xbf16, #tpu.memory_space<vmem>>, vector<1x16x16xbf16>
    %217 = vector.shape_cast %216 : vector<1x16x16xbf16> to vector<16x16xbf16>
    %cst_136 = arith.constant dense<0.000000e+00> : vector<4x16xf32>
    %218 = tpu.matmul %215, %217, %cst_136 {dimension_numbers = #tpu.dot_dimension_numbers<[1], [0], [0], [1], [0, 0, 1, 1], [], []>} : vector<4x16xbf16>, vector<16x16xbf16>, vector<4x16xf32> -> vector<4x16xf32>
    %219 = arith.addf %214, %218 : vector<4x16xf32>
    %220 = vector.extract_strided_slice %209 {offsets = [2, 0], sizes = [4, 16], strides = [1, 1]} : vector<6x16xbf16> to vector<4x16xbf16>
    %c8_137 = arith.constant 8 : index
    %c0_138 = arith.constant 0 : index
    %c0_139 = arith.constant 0 : index
    %221 = vector.load %arg5[%c8_137, %c0_138, %c0_139] : memref<27x16x16xbf16, #tpu.memory_space<vmem>>, vector<1x16x16xbf16>
    %222 = vector.shape_cast %221 : vector<1x16x16xbf16> to vector<16x16xbf16>
    %cst_140 = arith.constant dense<0.000000e+00> : vector<4x16xf32>
    %223 = tpu.matmul %220, %222, %cst_140 {dimension_numbers = #tpu.dot_dimension_numbers<[1], [0], [0], [1], [0, 0, 1, 1], [], []>} : vector<4x16xbf16>, vector<16x16xbf16>, vector<4x16xf32> -> vector<4x16xf32>
    %224 = arith.addf %219, %223 : vector<4x16xf32>
    %225 = vector.extract_strided_slice %6 {offsets = [1, 0, 0], sizes = [1, 6, 16], strides = [1, 1, 1]} : vector<6x6x16xbf16> to vector<1x6x16xbf16>
    %226 = vector.shape_cast %225 : vector<1x6x16xbf16> to vector<6x16xbf16>
    %227 = vector.extract_strided_slice %226 {offsets = [0, 0], sizes = [4, 16], strides = [1, 1]} : vector<6x16xbf16> to vector<4x16xbf16>
    %c9_141 = arith.constant 9 : index
    %c0_142 = arith.constant 0 : index
    %c0_143 = arith.constant 0 : index
    %228 = vector.load %arg5[%c9_141, %c0_142, %c0_143] : memref<27x16x16xbf16, #tpu.memory_space<vmem>>, vector<1x16x16xbf16>
    %229 = vector.shape_cast %228 : vector<1x16x16xbf16> to vector<16x16xbf16>
    %cst_144 = arith.constant dense<0.000000e+00> : vector<4x16xf32>
    %230 = tpu.matmul %227, %229, %cst_144 {dimension_numbers = #tpu.dot_dimension_numbers<[1], [0], [0], [1], [0, 0, 1, 1], [], []>} : vector<4x16xbf16>, vector<16x16xbf16>, vector<4x16xf32> -> vector<4x16xf32>
    %231 = arith.addf %224, %230 : vector<4x16xf32>
    %232 = vector.extract_strided_slice %226 {offsets = [1, 0], sizes = [4, 16], strides = [1, 1]} : vector<6x16xbf16> to vector<4x16xbf16>
    %c10_145 = arith.constant 10 : index
    %c0_146 = arith.constant 0 : index
    %c0_147 = arith.constant 0 : index
    %233 = vector.load %arg5[%c10_145, %c0_146, %c0_147] : memref<27x16x16xbf16, #tpu.memory_space<vmem>>, vector<1x16x16xbf16>
    %234 = vector.shape_cast %233 : vector<1x16x16xbf16> to vector<16x16xbf16>
    %cst_148 = arith.constant dense<0.000000e+00> : vector<4x16xf32>
    %235 = tpu.matmul %232, %234, %cst_148 {dimension_numbers = #tpu.dot_dimension_numbers<[1], [0], [0], [1], [0, 0, 1, 1], [], []>} : vector<4x16xbf16>, vector<16x16xbf16>, vector<4x16xf32> -> vector<4x16xf32>
    %236 = arith.addf %231, %235 : vector<4x16xf32>
    %237 = vector.extract_strided_slice %226 {offsets = [2, 0], sizes = [4, 16], strides = [1, 1]} : vector<6x16xbf16> to vector<4x16xbf16>
    %c11_149 = arith.constant 11 : index
    %c0_150 = arith.constant 0 : index
    %c0_151 = arith.constant 0 : index
    %238 = vector.load %arg5[%c11_149, %c0_150, %c0_151] : memref<27x16x16xbf16, #tpu.memory_space<vmem>>, vector<1x16x16xbf16>
    %239 = vector.shape_cast %238 : vector<1x16x16xbf16> to vector<16x16xbf16>
    %cst_152 = arith.constant dense<0.000000e+00> : vector<4x16xf32>
    %240 = tpu.matmul %237, %239, %cst_152 {dimension_numbers = #tpu.dot_dimension_numbers<[1], [0], [0], [1], [0, 0, 1, 1], [], []>} : vector<4x16xbf16>, vector<16x16xbf16>, vector<4x16xf32> -> vector<4x16xf32>
    %241 = arith.addf %236, %240 : vector<4x16xf32>
    %242 = vector.extract_strided_slice %6 {offsets = [2, 0, 0], sizes = [1, 6, 16], strides = [1, 1, 1]} : vector<6x6x16xbf16> to vector<1x6x16xbf16>
    %243 = vector.shape_cast %242 : vector<1x6x16xbf16> to vector<6x16xbf16>
    %244 = vector.extract_strided_slice %243 {offsets = [0, 0], sizes = [4, 16], strides = [1, 1]} : vector<6x16xbf16> to vector<4x16xbf16>
    %c12_153 = arith.constant 12 : index
    %c0_154 = arith.constant 0 : index
    %c0_155 = arith.constant 0 : index
    %245 = vector.load %arg5[%c12_153, %c0_154, %c0_155] : memref<27x16x16xbf16, #tpu.memory_space<vmem>>, vector<1x16x16xbf16>
    %246 = vector.shape_cast %245 : vector<1x16x16xbf16> to vector<16x16xbf16>
    %cst_156 = arith.constant dense<0.000000e+00> : vector<4x16xf32>
    %247 = tpu.matmul %244, %246, %cst_156 {dimension_numbers = #tpu.dot_dimension_numbers<[1], [0], [0], [1], [0, 0, 1, 1], [], []>} : vector<4x16xbf16>, vector<16x16xbf16>, vector<4x16xf32> -> vector<4x16xf32>
    %248 = arith.addf %241, %247 : vector<4x16xf32>
    %249 = vector.extract_strided_slice %243 {offsets = [1, 0], sizes = [4, 16], strides = [1, 1]} : vector<6x16xbf16> to vector<4x16xbf16>
    %c13_157 = arith.constant 13 : index
    %c0_158 = arith.constant 0 : index
    %c0_159 = arith.constant 0 : index
    %250 = vector.load %arg5[%c13_157, %c0_158, %c0_159] : memref<27x16x16xbf16, #tpu.memory_space<vmem>>, vector<1x16x16xbf16>
    %251 = vector.shape_cast %250 : vector<1x16x16xbf16> to vector<16x16xbf16>
    %cst_160 = arith.constant dense<0.000000e+00> : vector<4x16xf32>
    %252 = tpu.matmul %249, %251, %cst_160 {dimension_numbers = #tpu.dot_dimension_numbers<[1], [0], [0], [1], [0, 0, 1, 1], [], []>} : vector<4x16xbf16>, vector<16x16xbf16>, vector<4x16xf32> -> vector<4x16xf32>
    %253 = arith.addf %248, %252 : vector<4x16xf32>
    %254 = vector.extract_strided_slice %243 {offsets = [2, 0], sizes = [4, 16], strides = [1, 1]} : vector<6x16xbf16> to vector<4x16xbf16>
    %c14_161 = arith.constant 14 : index
    %c0_162 = arith.constant 0 : index
    %c0_163 = arith.constant 0 : index
    %255 = vector.load %arg5[%c14_161, %c0_162, %c0_163] : memref<27x16x16xbf16, #tpu.memory_space<vmem>>, vector<1x16x16xbf16>
    %256 = vector.shape_cast %255 : vector<1x16x16xbf16> to vector<16x16xbf16>
    %cst_164 = arith.constant dense<0.000000e+00> : vector<4x16xf32>
    %257 = tpu.matmul %254, %256, %cst_164 {dimension_numbers = #tpu.dot_dimension_numbers<[1], [0], [0], [1], [0, 0, 1, 1], [], []>} : vector<4x16xbf16>, vector<16x16xbf16>, vector<4x16xf32> -> vector<4x16xf32>
    %258 = arith.addf %253, %257 : vector<4x16xf32>
    %259 = vector.extract_strided_slice %6 {offsets = [3, 0, 0], sizes = [1, 6, 16], strides = [1, 1, 1]} : vector<6x6x16xbf16> to vector<1x6x16xbf16>
    %260 = vector.shape_cast %259 : vector<1x6x16xbf16> to vector<6x16xbf16>
    %261 = vector.extract_strided_slice %260 {offsets = [0, 0], sizes = [4, 16], strides = [1, 1]} : vector<6x16xbf16> to vector<4x16xbf16>
    %c15_165 = arith.constant 15 : index
    %c0_166 = arith.constant 0 : index
    %c0_167 = arith.constant 0 : index
    %262 = vector.load %arg5[%c15_165, %c0_166, %c0_167] : memref<27x16x16xbf16, #tpu.memory_space<vmem>>, vector<1x16x16xbf16>
    %263 = vector.shape_cast %262 : vector<1x16x16xbf16> to vector<16x16xbf16>
    %cst_168 = arith.constant dense<0.000000e+00> : vector<4x16xf32>
    %264 = tpu.matmul %261, %263, %cst_168 {dimension_numbers = #tpu.dot_dimension_numbers<[1], [0], [0], [1], [0, 0, 1, 1], [], []>} : vector<4x16xbf16>, vector<16x16xbf16>, vector<4x16xf32> -> vector<4x16xf32>
    %265 = arith.addf %258, %264 : vector<4x16xf32>
    %266 = vector.extract_strided_slice %260 {offsets = [1, 0], sizes = [4, 16], strides = [1, 1]} : vector<6x16xbf16> to vector<4x16xbf16>
    %c16_169 = arith.constant 16 : index
    %c0_170 = arith.constant 0 : index
    %c0_171 = arith.constant 0 : index
    %267 = vector.load %arg5[%c16_169, %c0_170, %c0_171] : memref<27x16x16xbf16, #tpu.memory_space<vmem>>, vector<1x16x16xbf16>
    %268 = vector.shape_cast %267 : vector<1x16x16xbf16> to vector<16x16xbf16>
    %cst_172 = arith.constant dense<0.000000e+00> : vector<4x16xf32>
    %269 = tpu.matmul %266, %268, %cst_172 {dimension_numbers = #tpu.dot_dimension_numbers<[1], [0], [0], [1], [0, 0, 1, 1], [], []>} : vector<4x16xbf16>, vector<16x16xbf16>, vector<4x16xf32> -> vector<4x16xf32>
    %270 = arith.addf %265, %269 : vector<4x16xf32>
    %271 = vector.extract_strided_slice %260 {offsets = [2, 0], sizes = [4, 16], strides = [1, 1]} : vector<6x16xbf16> to vector<4x16xbf16>
    %c17_173 = arith.constant 17 : index
    %c0_174 = arith.constant 0 : index
    %c0_175 = arith.constant 0 : index
    %272 = vector.load %arg5[%c17_173, %c0_174, %c0_175] : memref<27x16x16xbf16, #tpu.memory_space<vmem>>, vector<1x16x16xbf16>
    %273 = vector.shape_cast %272 : vector<1x16x16xbf16> to vector<16x16xbf16>
    %cst_176 = arith.constant dense<0.000000e+00> : vector<4x16xf32>
    %274 = tpu.matmul %271, %273, %cst_176 {dimension_numbers = #tpu.dot_dimension_numbers<[1], [0], [0], [1], [0, 0, 1, 1], [], []>} : vector<4x16xbf16>, vector<16x16xbf16>, vector<4x16xf32> -> vector<4x16xf32>
    %275 = arith.addf %270, %274 : vector<4x16xf32>
    %276 = vector.extract_strided_slice %8 {offsets = [1, 0, 0], sizes = [1, 6, 16], strides = [1, 1, 1]} : vector<6x6x16xbf16> to vector<1x6x16xbf16>
    %277 = vector.shape_cast %276 : vector<1x6x16xbf16> to vector<6x16xbf16>
    %278 = vector.extract_strided_slice %277 {offsets = [0, 0], sizes = [4, 16], strides = [1, 1]} : vector<6x16xbf16> to vector<4x16xbf16>
    %c18_177 = arith.constant 18 : index
    %c0_178 = arith.constant 0 : index
    %c0_179 = arith.constant 0 : index
    %279 = vector.load %arg5[%c18_177, %c0_178, %c0_179] : memref<27x16x16xbf16, #tpu.memory_space<vmem>>, vector<1x16x16xbf16>
    %280 = vector.shape_cast %279 : vector<1x16x16xbf16> to vector<16x16xbf16>
    %cst_180 = arith.constant dense<0.000000e+00> : vector<4x16xf32>
    %281 = tpu.matmul %278, %280, %cst_180 {dimension_numbers = #tpu.dot_dimension_numbers<[1], [0], [0], [1], [0, 0, 1, 1], [], []>} : vector<4x16xbf16>, vector<16x16xbf16>, vector<4x16xf32> -> vector<4x16xf32>
    %282 = arith.addf %275, %281 : vector<4x16xf32>
    %283 = vector.extract_strided_slice %277 {offsets = [1, 0], sizes = [4, 16], strides = [1, 1]} : vector<6x16xbf16> to vector<4x16xbf16>
    %c19_181 = arith.constant 19 : index
    %c0_182 = arith.constant 0 : index
    %c0_183 = arith.constant 0 : index
    %284 = vector.load %arg5[%c19_181, %c0_182, %c0_183] : memref<27x16x16xbf16, #tpu.memory_space<vmem>>, vector<1x16x16xbf16>
    %285 = vector.shape_cast %284 : vector<1x16x16xbf16> to vector<16x16xbf16>
    %cst_184 = arith.constant dense<0.000000e+00> : vector<4x16xf32>
    %286 = tpu.matmul %283, %285, %cst_184 {dimension_numbers = #tpu.dot_dimension_numbers<[1], [0], [0], [1], [0, 0, 1, 1], [], []>} : vector<4x16xbf16>, vector<16x16xbf16>, vector<4x16xf32> -> vector<4x16xf32>
    %287 = arith.addf %282, %286 : vector<4x16xf32>
    %288 = vector.extract_strided_slice %277 {offsets = [2, 0], sizes = [4, 16], strides = [1, 1]} : vector<6x16xbf16> to vector<4x16xbf16>
    %c20_185 = arith.constant 20 : index
    %c0_186 = arith.constant 0 : index
    %c0_187 = arith.constant 0 : index
    %289 = vector.load %arg5[%c20_185, %c0_186, %c0_187] : memref<27x16x16xbf16, #tpu.memory_space<vmem>>, vector<1x16x16xbf16>
    %290 = vector.shape_cast %289 : vector<1x16x16xbf16> to vector<16x16xbf16>
    %cst_188 = arith.constant dense<0.000000e+00> : vector<4x16xf32>
    %291 = tpu.matmul %288, %290, %cst_188 {dimension_numbers = #tpu.dot_dimension_numbers<[1], [0], [0], [1], [0, 0, 1, 1], [], []>} : vector<4x16xbf16>, vector<16x16xbf16>, vector<4x16xf32> -> vector<4x16xf32>
    %292 = arith.addf %287, %291 : vector<4x16xf32>
    %293 = vector.extract_strided_slice %8 {offsets = [2, 0, 0], sizes = [1, 6, 16], strides = [1, 1, 1]} : vector<6x6x16xbf16> to vector<1x6x16xbf16>
    %294 = vector.shape_cast %293 : vector<1x6x16xbf16> to vector<6x16xbf16>
    %295 = vector.extract_strided_slice %294 {offsets = [0, 0], sizes = [4, 16], strides = [1, 1]} : vector<6x16xbf16> to vector<4x16xbf16>
    %c21_189 = arith.constant 21 : index
    %c0_190 = arith.constant 0 : index
    %c0_191 = arith.constant 0 : index
    %296 = vector.load %arg5[%c21_189, %c0_190, %c0_191] : memref<27x16x16xbf16, #tpu.memory_space<vmem>>, vector<1x16x16xbf16>
    %297 = vector.shape_cast %296 : vector<1x16x16xbf16> to vector<16x16xbf16>
    %cst_192 = arith.constant dense<0.000000e+00> : vector<4x16xf32>
    %298 = tpu.matmul %295, %297, %cst_192 {dimension_numbers = #tpu.dot_dimension_numbers<[1], [0], [0], [1], [0, 0, 1, 1], [], []>} : vector<4x16xbf16>, vector<16x16xbf16>, vector<4x16xf32> -> vector<4x16xf32>
    %299 = arith.addf %292, %298 : vector<4x16xf32>
    %300 = vector.extract_strided_slice %294 {offsets = [1, 0], sizes = [4, 16], strides = [1, 1]} : vector<6x16xbf16> to vector<4x16xbf16>
    %c22_193 = arith.constant 22 : index
    %c0_194 = arith.constant 0 : index
    %c0_195 = arith.constant 0 : index
    %301 = vector.load %arg5[%c22_193, %c0_194, %c0_195] : memref<27x16x16xbf16, #tpu.memory_space<vmem>>, vector<1x16x16xbf16>
    %302 = vector.shape_cast %301 : vector<1x16x16xbf16> to vector<16x16xbf16>
    %cst_196 = arith.constant dense<0.000000e+00> : vector<4x16xf32>
    %303 = tpu.matmul %300, %302, %cst_196 {dimension_numbers = #tpu.dot_dimension_numbers<[1], [0], [0], [1], [0, 0, 1, 1], [], []>} : vector<4x16xbf16>, vector<16x16xbf16>, vector<4x16xf32> -> vector<4x16xf32>
    %304 = arith.addf %299, %303 : vector<4x16xf32>
    %305 = vector.extract_strided_slice %294 {offsets = [2, 0], sizes = [4, 16], strides = [1, 1]} : vector<6x16xbf16> to vector<4x16xbf16>
    %c23_197 = arith.constant 23 : index
    %c0_198 = arith.constant 0 : index
    %c0_199 = arith.constant 0 : index
    %306 = vector.load %arg5[%c23_197, %c0_198, %c0_199] : memref<27x16x16xbf16, #tpu.memory_space<vmem>>, vector<1x16x16xbf16>
    %307 = vector.shape_cast %306 : vector<1x16x16xbf16> to vector<16x16xbf16>
    %cst_200 = arith.constant dense<0.000000e+00> : vector<4x16xf32>
    %308 = tpu.matmul %305, %307, %cst_200 {dimension_numbers = #tpu.dot_dimension_numbers<[1], [0], [0], [1], [0, 0, 1, 1], [], []>} : vector<4x16xbf16>, vector<16x16xbf16>, vector<4x16xf32> -> vector<4x16xf32>
    %309 = arith.addf %304, %308 : vector<4x16xf32>
    %310 = vector.extract_strided_slice %8 {offsets = [3, 0, 0], sizes = [1, 6, 16], strides = [1, 1, 1]} : vector<6x6x16xbf16> to vector<1x6x16xbf16>
    %311 = vector.shape_cast %310 : vector<1x6x16xbf16> to vector<6x16xbf16>
    %312 = vector.extract_strided_slice %311 {offsets = [0, 0], sizes = [4, 16], strides = [1, 1]} : vector<6x16xbf16> to vector<4x16xbf16>
    %c24_201 = arith.constant 24 : index
    %c0_202 = arith.constant 0 : index
    %c0_203 = arith.constant 0 : index
    %313 = vector.load %arg5[%c24_201, %c0_202, %c0_203] : memref<27x16x16xbf16, #tpu.memory_space<vmem>>, vector<1x16x16xbf16>
    %314 = vector.shape_cast %313 : vector<1x16x16xbf16> to vector<16x16xbf16>
    %cst_204 = arith.constant dense<0.000000e+00> : vector<4x16xf32>
    %315 = tpu.matmul %312, %314, %cst_204 {dimension_numbers = #tpu.dot_dimension_numbers<[1], [0], [0], [1], [0, 0, 1, 1], [], []>} : vector<4x16xbf16>, vector<16x16xbf16>, vector<4x16xf32> -> vector<4x16xf32>
    %316 = arith.addf %309, %315 : vector<4x16xf32>
    %317 = vector.extract_strided_slice %311 {offsets = [1, 0], sizes = [4, 16], strides = [1, 1]} : vector<6x16xbf16> to vector<4x16xbf16>
    %c25_205 = arith.constant 25 : index
    %c0_206 = arith.constant 0 : index
    %c0_207 = arith.constant 0 : index
    %318 = vector.load %arg5[%c25_205, %c0_206, %c0_207] : memref<27x16x16xbf16, #tpu.memory_space<vmem>>, vector<1x16x16xbf16>
    %319 = vector.shape_cast %318 : vector<1x16x16xbf16> to vector<16x16xbf16>
    %cst_208 = arith.constant dense<0.000000e+00> : vector<4x16xf32>
    %320 = tpu.matmul %317, %319, %cst_208 {dimension_numbers = #tpu.dot_dimension_numbers<[1], [0], [0], [1], [0, 0, 1, 1], [], []>} : vector<4x16xbf16>, vector<16x16xbf16>, vector<4x16xf32> -> vector<4x16xf32>
    %321 = arith.addf %316, %320 : vector<4x16xf32>
    %322 = vector.extract_strided_slice %311 {offsets = [2, 0], sizes = [4, 16], strides = [1, 1]} : vector<6x16xbf16> to vector<4x16xbf16>
    %c26_209 = arith.constant 26 : index
    %c0_210 = arith.constant 0 : index
    %c0_211 = arith.constant 0 : index
    %323 = vector.load %arg5[%c26_209, %c0_210, %c0_211] : memref<27x16x16xbf16, #tpu.memory_space<vmem>>, vector<1x16x16xbf16>
    %324 = vector.shape_cast %323 : vector<1x16x16xbf16> to vector<16x16xbf16>
    %cst_212 = arith.constant dense<0.000000e+00> : vector<4x16xf32>
    %325 = tpu.matmul %322, %324, %cst_212 {dimension_numbers = #tpu.dot_dimension_numbers<[1], [0], [0], [1], [0, 0, 1, 1], [], []>} : vector<4x16xbf16>, vector<16x16xbf16>, vector<4x16xf32> -> vector<4x16xf32>
    %326 = arith.addf %321, %325 : vector<4x16xf32>
    %327 = vector.broadcast %9 : vector<1x16xf32> to vector<4x16xf32>
    %328 = arith.addf %326, %327 : vector<4x16xf32>
    %329 = vector.shape_cast %328 : vector<4x16xf32> to vector<1x4x16xf32>
    %c0_213 = arith.constant 0 : index
    %c4_214 = arith.constant 4 : index
    %c0_215 = arith.constant 0 : index
    %330 = vector.load %arg7[%c0_213, %c4_214, %c0_215] : memref<1x16x16xf32, #tpu.memory_space<vmem>>, vector<1x4x16xf32>
    tpu.vector_store %arg7[%c0_213, %c4_214, %c0_215], %329 {strides = array<i32>} : memref<1x16x16xf32, #tpu.memory_space<vmem>>, vector<1x4x16xf32>,
    %cst_216 = arith.constant dense<0.000000e+00> : vector<16xf32>
    %331 = vector.multi_reduction <add>, %328, %cst_216 [0] : vector<4x16xf32> to vector<16xf32>
    %332 = vector.shape_cast %331 : vector<16xf32> to vector<1x16xf32>
    %333 = arith.addf %170, %332 : vector<1x16xf32>
    %334 = arith.mulf %328, %328 : vector<4x16xf32>
    %cst_217 = arith.constant dense<0.000000e+00> : vector<16xf32>
    %335 = vector.multi_reduction <add>, %334, %cst_217 [0] : vector<4x16xf32> to vector<16xf32>
    %336 = vector.shape_cast %335 : vector<16xf32> to vector<1x16xf32>
    %337 = arith.addf %174, %336 : vector<1x16xf32>
    %338 = vector.extract_strided_slice %4 {offsets = [2, 0, 0], sizes = [1, 6, 16], strides = [1, 1, 1]} : vector<6x6x16xbf16> to vector<1x6x16xbf16>
    %339 = vector.shape_cast %338 : vector<1x6x16xbf16> to vector<6x16xbf16>
    %340 = vector.extract_strided_slice %339 {offsets = [0, 0], sizes = [4, 16], strides = [1, 1]} : vector<6x16xbf16> to vector<4x16xbf16>
    %c0_218 = arith.constant 0 : index
    %c0_219 = arith.constant 0 : index
    %c0_220 = arith.constant 0 : index
    %341 = vector.load %arg5[%c0_218, %c0_219, %c0_220] : memref<27x16x16xbf16, #tpu.memory_space<vmem>>, vector<1x16x16xbf16>
    %342 = vector.shape_cast %341 : vector<1x16x16xbf16> to vector<16x16xbf16>
    %cst_221 = arith.constant dense<0.000000e+00> : vector<4x16xf32>
    %343 = tpu.matmul %340, %342, %cst_221 {dimension_numbers = #tpu.dot_dimension_numbers<[1], [0], [0], [1], [0, 0, 1, 1], [], []>} : vector<4x16xbf16>, vector<16x16xbf16>, vector<4x16xf32> -> vector<4x16xf32>
    %344 = vector.extract_strided_slice %339 {offsets = [1, 0], sizes = [4, 16], strides = [1, 1]} : vector<6x16xbf16> to vector<4x16xbf16>
    %c1_222 = arith.constant 1 : index
    %c0_223 = arith.constant 0 : index
    %c0_224 = arith.constant 0 : index
    %345 = vector.load %arg5[%c1_222, %c0_223, %c0_224] : memref<27x16x16xbf16, #tpu.memory_space<vmem>>, vector<1x16x16xbf16>
    %346 = vector.shape_cast %345 : vector<1x16x16xbf16> to vector<16x16xbf16>
    %cst_225 = arith.constant dense<0.000000e+00> : vector<4x16xf32>
    %347 = tpu.matmul %344, %346, %cst_225 {dimension_numbers = #tpu.dot_dimension_numbers<[1], [0], [0], [1], [0, 0, 1, 1], [], []>} : vector<4x16xbf16>, vector<16x16xbf16>, vector<4x16xf32> -> vector<4x16xf32>
    %348 = arith.addf %343, %347 : vector<4x16xf32>
    %349 = vector.extract_strided_slice %339 {offsets = [2, 0], sizes = [4, 16], strides = [1, 1]} : vector<6x16xbf16> to vector<4x16xbf16>
    %c2_226 = arith.constant 2 : index
    %c0_227 = arith.constant 0 : index
    %c0_228 = arith.constant 0 : index
    %350 = vector.load %arg5[%c2_226, %c0_227, %c0_228] : memref<27x16x16xbf16, #tpu.memory_space<vmem>>, vector<1x16x16xbf16>
    %351 = vector.shape_cast %350 : vector<1x16x16xbf16> to vector<16x16xbf16>
    %cst_229 = arith.constant dense<0.000000e+00> : vector<4x16xf32>
    %352 = tpu.matmul %349, %351, %cst_229 {dimension_numbers = #tpu.dot_dimension_numbers<[1], [0], [0], [1], [0, 0, 1, 1], [], []>} : vector<4x16xbf16>, vector<16x16xbf16>, vector<4x16xf32> -> vector<4x16xf32>
    %353 = arith.addf %348, %352 : vector<4x16xf32>
    %354 = vector.extract_strided_slice %4 {offsets = [3, 0, 0], sizes = [1, 6, 16], strides = [1, 1, 1]} : vector<6x6x16xbf16> to vector<1x6x16xbf16>
    %355 = vector.shape_cast %354 : vector<1x6x16xbf16> to vector<6x16xbf16>
    %356 = vector.extract_strided_slice %355 {offsets = [0, 0], sizes = [4, 16], strides = [1, 1]} : vector<6x16xbf16> to vector<4x16xbf16>
    %c3_230 = arith.constant 3 : index
    %c0_231 = arith.constant 0 : index
    %c0_232 = arith.constant 0 : index
    %357 = vector.load %arg5[%c3_230, %c0_231, %c0_232] : memref<27x16x16xbf16, #tpu.memory_space<vmem>>, vector<1x16x16xbf16>
    %358 = vector.shape_cast %357 : vector<1x16x16xbf16> to vector<16x16xbf16>
    %cst_233 = arith.constant dense<0.000000e+00> : vector<4x16xf32>
    %359 = tpu.matmul %356, %358, %cst_233 {dimension_numbers = #tpu.dot_dimension_numbers<[1], [0], [0], [1], [0, 0, 1, 1], [], []>} : vector<4x16xbf16>, vector<16x16xbf16>, vector<4x16xf32> -> vector<4x16xf32>
    %360 = arith.addf %353, %359 : vector<4x16xf32>
    %361 = vector.extract_strided_slice %355 {offsets = [1, 0], sizes = [4, 16], strides = [1, 1]} : vector<6x16xbf16> to vector<4x16xbf16>
    %c4_234 = arith.constant 4 : index
    %c0_235 = arith.constant 0 : index
    %c0_236 = arith.constant 0 : index
    %362 = vector.load %arg5[%c4_234, %c0_235, %c0_236] : memref<27x16x16xbf16, #tpu.memory_space<vmem>>, vector<1x16x16xbf16>
    %363 = vector.shape_cast %362 : vector<1x16x16xbf16> to vector<16x16xbf16>
    %cst_237 = arith.constant dense<0.000000e+00> : vector<4x16xf32>
    %364 = tpu.matmul %361, %363, %cst_237 {dimension_numbers = #tpu.dot_dimension_numbers<[1], [0], [0], [1], [0, 0, 1, 1], [], []>} : vector<4x16xbf16>, vector<16x16xbf16>, vector<4x16xf32> -> vector<4x16xf32>
    %365 = arith.addf %360, %364 : vector<4x16xf32>
    %366 = vector.extract_strided_slice %355 {offsets = [2, 0], sizes = [4, 16], strides = [1, 1]} : vector<6x16xbf16> to vector<4x16xbf16>
    %c5_238 = arith.constant 5 : index
    %c0_239 = arith.constant 0 : index
    %c0_240 = arith.constant 0 : index
    %367 = vector.load %arg5[%c5_238, %c0_239, %c0_240] : memref<27x16x16xbf16, #tpu.memory_space<vmem>>, vector<1x16x16xbf16>
    %368 = vector.shape_cast %367 : vector<1x16x16xbf16> to vector<16x16xbf16>
    %cst_241 = arith.constant dense<0.000000e+00> : vector<4x16xf32>
    %369 = tpu.matmul %366, %368, %cst_241 {dimension_numbers = #tpu.dot_dimension_numbers<[1], [0], [0], [1], [0, 0, 1, 1], [], []>} : vector<4x16xbf16>, vector<16x16xbf16>, vector<4x16xf32> -> vector<4x16xf32>
    %370 = arith.addf %365, %369 : vector<4x16xf32>
    %371 = vector.extract_strided_slice %4 {offsets = [4, 0, 0], sizes = [1, 6, 16], strides = [1, 1, 1]} : vector<6x6x16xbf16> to vector<1x6x16xbf16>
    %372 = vector.shape_cast %371 : vector<1x6x16xbf16> to vector<6x16xbf16>
    %373 = vector.extract_strided_slice %372 {offsets = [0, 0], sizes = [4, 16], strides = [1, 1]} : vector<6x16xbf16> to vector<4x16xbf16>
    %c6_242 = arith.constant 6 : index
    %c0_243 = arith.constant 0 : index
    %c0_244 = arith.constant 0 : index
    %374 = vector.load %arg5[%c6_242, %c0_243, %c0_244] : memref<27x16x16xbf16, #tpu.memory_space<vmem>>, vector<1x16x16xbf16>
    %375 = vector.shape_cast %374 : vector<1x16x16xbf16> to vector<16x16xbf16>
    %cst_245 = arith.constant dense<0.000000e+00> : vector<4x16xf32>
    %376 = tpu.matmul %373, %375, %cst_245 {dimension_numbers = #tpu.dot_dimension_numbers<[1], [0], [0], [1], [0, 0, 1, 1], [], []>} : vector<4x16xbf16>, vector<16x16xbf16>, vector<4x16xf32> -> vector<4x16xf32>
    %377 = arith.addf %370, %376 : vector<4x16xf32>
    %378 = vector.extract_strided_slice %372 {offsets = [1, 0], sizes = [4, 16], strides = [1, 1]} : vector<6x16xbf16> to vector<4x16xbf16>
    %c7_246 = arith.constant 7 : index
    %c0_247 = arith.constant 0 : index
    %c0_248 = arith.constant 0 : index
    %379 = vector.load %arg5[%c7_246, %c0_247, %c0_248] : memref<27x16x16xbf16, #tpu.memory_space<vmem>>, vector<1x16x16xbf16>
    %380 = vector.shape_cast %379 : vector<1x16x16xbf16> to vector<16x16xbf16>
    %cst_249 = arith.constant dense<0.000000e+00> : vector<4x16xf32>
    %381 = tpu.matmul %378, %380, %cst_249 {dimension_numbers = #tpu.dot_dimension_numbers<[1], [0], [0], [1], [0, 0, 1, 1], [], []>} : vector<4x16xbf16>, vector<16x16xbf16>, vector<4x16xf32> -> vector<4x16xf32>
    %382 = arith.addf %377, %381 : vector<4x16xf32>
    %383 = vector.extract_strided_slice %372 {offsets = [2, 0], sizes = [4, 16], strides = [1, 1]} : vector<6x16xbf16> to vector<4x16xbf16>
    %c8_250 = arith.constant 8 : index
    %c0_251 = arith.constant 0 : index
    %c0_252 = arith.constant 0 : index
    %384 = vector.load %arg5[%c8_250, %c0_251, %c0_252] : memref<27x16x16xbf16, #tpu.memory_space<vmem>>, vector<1x16x16xbf16>
    %385 = vector.shape_cast %384 : vector<1x16x16xbf16> to vector<16x16xbf16>
    %cst_253 = arith.constant dense<0.000000e+00> : vector<4x16xf32>
    %386 = tpu.matmul %383, %385, %cst_253 {dimension_numbers = #tpu.dot_dimension_numbers<[1], [0], [0], [1], [0, 0, 1, 1], [], []>} : vector<4x16xbf16>, vector<16x16xbf16>, vector<4x16xf32> -> vector<4x16xf32>
    %387 = arith.addf %382, %386 : vector<4x16xf32>
    %388 = vector.extract_strided_slice %6 {offsets = [2, 0, 0], sizes = [1, 6, 16], strides = [1, 1, 1]} : vector<6x6x16xbf16> to vector<1x6x16xbf16>
    %389 = vector.shape_cast %388 : vector<1x6x16xbf16> to vector<6x16xbf16>
    %390 = vector.extract_strided_slice %389 {offsets = [0, 0], sizes = [4, 16], strides = [1, 1]} : vector<6x16xbf16> to vector<4x16xbf16>
    %c9_254 = arith.constant 9 : index
    %c0_255 = arith.constant 0 : index
    %c0_256 = arith.constant 0 : index
    %391 = vector.load %arg5[%c9_254, %c0_255, %c0_256] : memref<27x16x16xbf16, #tpu.memory_space<vmem>>, vector<1x16x16xbf16>
    %392 = vector.shape_cast %391 : vector<1x16x16xbf16> to vector<16x16xbf16>
    %cst_257 = arith.constant dense<0.000000e+00> : vector<4x16xf32>
    %393 = tpu.matmul %390, %392, %cst_257 {dimension_numbers = #tpu.dot_dimension_numbers<[1], [0], [0], [1], [0, 0, 1, 1], [], []>} : vector<4x16xbf16>, vector<16x16xbf16>, vector<4x16xf32> -> vector<4x16xf32>
    %394 = arith.addf %387, %393 : vector<4x16xf32>
    %395 = vector.extract_strided_slice %389 {offsets = [1, 0], sizes = [4, 16], strides = [1, 1]} : vector<6x16xbf16> to vector<4x16xbf16>
    %c10_258 = arith.constant 10 : index
    %c0_259 = arith.constant 0 : index
    %c0_260 = arith.constant 0 : index
    %396 = vector.load %arg5[%c10_258, %c0_259, %c0_260] : memref<27x16x16xbf16, #tpu.memory_space<vmem>>, vector<1x16x16xbf16>
    %397 = vector.shape_cast %396 : vector<1x16x16xbf16> to vector<16x16xbf16>
    %cst_261 = arith.constant dense<0.000000e+00> : vector<4x16xf32>
    %398 = tpu.matmul %395, %397, %cst_261 {dimension_numbers = #tpu.dot_dimension_numbers<[1], [0], [0], [1], [0, 0, 1, 1], [], []>} : vector<4x16xbf16>, vector<16x16xbf16>, vector<4x16xf32> -> vector<4x16xf32>
    %399 = arith.addf %394, %398 : vector<4x16xf32>
    %400 = vector.extract_strided_slice %389 {offsets = [2, 0], sizes = [4, 16], strides = [1, 1]} : vector<6x16xbf16> to vector<4x16xbf16>
    %c11_262 = arith.constant 11 : index
    %c0_263 = arith.constant 0 : index
    %c0_264 = arith.constant 0 : index
    %401 = vector.load %arg5[%c11_262, %c0_263, %c0_264] : memref<27x16x16xbf16, #tpu.memory_space<vmem>>, vector<1x16x16xbf16>
    %402 = vector.shape_cast %401 : vector<1x16x16xbf16> to vector<16x16xbf16>
    %cst_265 = arith.constant dense<0.000000e+00> : vector<4x16xf32>
    %403 = tpu.matmul %400, %402, %cst_265 {dimension_numbers = #tpu.dot_dimension_numbers<[1], [0], [0], [1], [0, 0, 1, 1], [], []>} : vector<4x16xbf16>, vector<16x16xbf16>, vector<4x16xf32> -> vector<4x16xf32>
    %404 = arith.addf %399, %403 : vector<4x16xf32>
    %405 = vector.extract_strided_slice %6 {offsets = [3, 0, 0], sizes = [1, 6, 16], strides = [1, 1, 1]} : vector<6x6x16xbf16> to vector<1x6x16xbf16>
    %406 = vector.shape_cast %405 : vector<1x6x16xbf16> to vector<6x16xbf16>
    %407 = vector.extract_strided_slice %406 {offsets = [0, 0], sizes = [4, 16], strides = [1, 1]} : vector<6x16xbf16> to vector<4x16xbf16>
    %c12_266 = arith.constant 12 : index
    %c0_267 = arith.constant 0 : index
    %c0_268 = arith.constant 0 : index
    %408 = vector.load %arg5[%c12_266, %c0_267, %c0_268] : memref<27x16x16xbf16, #tpu.memory_space<vmem>>, vector<1x16x16xbf16>
    %409 = vector.shape_cast %408 : vector<1x16x16xbf16> to vector<16x16xbf16>
    %cst_269 = arith.constant dense<0.000000e+00> : vector<4x16xf32>
    %410 = tpu.matmul %407, %409, %cst_269 {dimension_numbers = #tpu.dot_dimension_numbers<[1], [0], [0], [1], [0, 0, 1, 1], [], []>} : vector<4x16xbf16>, vector<16x16xbf16>, vector<4x16xf32> -> vector<4x16xf32>
    %411 = arith.addf %404, %410 : vector<4x16xf32>
    %412 = vector.extract_strided_slice %406 {offsets = [1, 0], sizes = [4, 16], strides = [1, 1]} : vector<6x16xbf16> to vector<4x16xbf16>
    %c13_270 = arith.constant 13 : index
    %c0_271 = arith.constant 0 : index
    %c0_272 = arith.constant 0 : index
    %413 = vector.load %arg5[%c13_270, %c0_271, %c0_272] : memref<27x16x16xbf16, #tpu.memory_space<vmem>>, vector<1x16x16xbf16>
    %414 = vector.shape_cast %413 : vector<1x16x16xbf16> to vector<16x16xbf16>
    %cst_273 = arith.constant dense<0.000000e+00> : vector<4x16xf32>
    %415 = tpu.matmul %412, %414, %cst_273 {dimension_numbers = #tpu.dot_dimension_numbers<[1], [0], [0], [1], [0, 0, 1, 1], [], []>} : vector<4x16xbf16>, vector<16x16xbf16>, vector<4x16xf32> -> vector<4x16xf32>
    %416 = arith.addf %411, %415 : vector<4x16xf32>
    %417 = vector.extract_strided_slice %406 {offsets = [2, 0], sizes = [4, 16], strides = [1, 1]} : vector<6x16xbf16> to vector<4x16xbf16>
    %c14_274 = arith.constant 14 : index
    %c0_275 = arith.constant 0 : index
    %c0_276 = arith.constant 0 : index
    %418 = vector.load %arg5[%c14_274, %c0_275, %c0_276] : memref<27x16x16xbf16, #tpu.memory_space<vmem>>, vector<1x16x16xbf16>
    %419 = vector.shape_cast %418 : vector<1x16x16xbf16> to vector<16x16xbf16>
    %cst_277 = arith.constant dense<0.000000e+00> : vector<4x16xf32>
    %420 = tpu.matmul %417, %419, %cst_277 {dimension_numbers = #tpu.dot_dimension_numbers<[1], [0], [0], [1], [0, 0, 1, 1], [], []>} : vector<4x16xbf16>, vector<16x16xbf16>, vector<4x16xf32> -> vector<4x16xf32>
    %421 = arith.addf %416, %420 : vector<4x16xf32>
    %422 = vector.extract_strided_slice %6 {offsets = [4, 0, 0], sizes = [1, 6, 16], strides = [1, 1, 1]} : vector<6x6x16xbf16> to vector<1x6x16xbf16>
    %423 = vector.shape_cast %422 : vector<1x6x16xbf16> to vector<6x16xbf16>
    %424 = vector.extract_strided_slice %423 {offsets = [0, 0], sizes = [4, 16], strides = [1, 1]} : vector<6x16xbf16> to vector<4x16xbf16>
    %c15_278 = arith.constant 15 : index
    %c0_279 = arith.constant 0 : index
    %c0_280 = arith.constant 0 : index
    %425 = vector.load %arg5[%c15_278, %c0_279, %c0_280] : memref<27x16x16xbf16, #tpu.memory_space<vmem>>, vector<1x16x16xbf16>
    %426 = vector.shape_cast %425 : vector<1x16x16xbf16> to vector<16x16xbf16>
    %cst_281 = arith.constant dense<0.000000e+00> : vector<4x16xf32>
    %427 = tpu.matmul %424, %426, %cst_281 {dimension_numbers = #tpu.dot_dimension_numbers<[1], [0], [0], [1], [0, 0, 1, 1], [], []>} : vector<4x16xbf16>, vector<16x16xbf16>, vector<4x16xf32> -> vector<4x16xf32>
    %428 = arith.addf %421, %427 : vector<4x16xf32>
    %429 = vector.extract_strided_slice %423 {offsets = [1, 0], sizes = [4, 16], strides = [1, 1]} : vector<6x16xbf16> to vector<4x16xbf16>
    %c16_282 = arith.constant 16 : index
    %c0_283 = arith.constant 0 : index
    %c0_284 = arith.constant 0 : index
    %430 = vector.load %arg5[%c16_282, %c0_283, %c0_284] : memref<27x16x16xbf16, #tpu.memory_space<vmem>>, vector<1x16x16xbf16>
    %431 = vector.shape_cast %430 : vector<1x16x16xbf16> to vector<16x16xbf16>
    %cst_285 = arith.constant dense<0.000000e+00> : vector<4x16xf32>
    %432 = tpu.matmul %429, %431, %cst_285 {dimension_numbers = #tpu.dot_dimension_numbers<[1], [0], [0], [1], [0, 0, 1, 1], [], []>} : vector<4x16xbf16>, vector<16x16xbf16>, vector<4x16xf32> -> vector<4x16xf32>
    %433 = arith.addf %428, %432 : vector<4x16xf32>
    %434 = vector.extract_strided_slice %423 {offsets = [2, 0], sizes = [4, 16], strides = [1, 1]} : vector<6x16xbf16> to vector<4x16xbf16>
    %c17_286 = arith.constant 17 : index
    %c0_287 = arith.constant 0 : index
    %c0_288 = arith.constant 0 : index
    %435 = vector.load %arg5[%c17_286, %c0_287, %c0_288] : memref<27x16x16xbf16, #tpu.memory_space<vmem>>, vector<1x16x16xbf16>
    %436 = vector.shape_cast %435 : vector<1x16x16xbf16> to vector<16x16xbf16>
    %cst_289 = arith.constant dense<0.000000e+00> : vector<4x16xf32>
    %437 = tpu.matmul %434, %436, %cst_289 {dimension_numbers = #tpu.dot_dimension_numbers<[1], [0], [0], [1], [0, 0, 1, 1], [], []>} : vector<4x16xbf16>, vector<16x16xbf16>, vector<4x16xf32> -> vector<4x16xf32>
    %438 = arith.addf %433, %437 : vector<4x16xf32>
    %439 = vector.extract_strided_slice %8 {offsets = [2, 0, 0], sizes = [1, 6, 16], strides = [1, 1, 1]} : vector<6x6x16xbf16> to vector<1x6x16xbf16>
    %440 = vector.shape_cast %439 : vector<1x6x16xbf16> to vector<6x16xbf16>
    %441 = vector.extract_strided_slice %440 {offsets = [0, 0], sizes = [4, 16], strides = [1, 1]} : vector<6x16xbf16> to vector<4x16xbf16>
    %c18_290 = arith.constant 18 : index
    %c0_291 = arith.constant 0 : index
    %c0_292 = arith.constant 0 : index
    %442 = vector.load %arg5[%c18_290, %c0_291, %c0_292] : memref<27x16x16xbf16, #tpu.memory_space<vmem>>, vector<1x16x16xbf16>
    %443 = vector.shape_cast %442 : vector<1x16x16xbf16> to vector<16x16xbf16>
    %cst_293 = arith.constant dense<0.000000e+00> : vector<4x16xf32>
    %444 = tpu.matmul %441, %443, %cst_293 {dimension_numbers = #tpu.dot_dimension_numbers<[1], [0], [0], [1], [0, 0, 1, 1], [], []>} : vector<4x16xbf16>, vector<16x16xbf16>, vector<4x16xf32> -> vector<4x16xf32>
    %445 = arith.addf %438, %444 : vector<4x16xf32>
    %446 = vector.extract_strided_slice %440 {offsets = [1, 0], sizes = [4, 16], strides = [1, 1]} : vector<6x16xbf16> to vector<4x16xbf16>
    %c19_294 = arith.constant 19 : index
    %c0_295 = arith.constant 0 : index
    %c0_296 = arith.constant 0 : index
    %447 = vector.load %arg5[%c19_294, %c0_295, %c0_296] : memref<27x16x16xbf16, #tpu.memory_space<vmem>>, vector<1x16x16xbf16>
    %448 = vector.shape_cast %447 : vector<1x16x16xbf16> to vector<16x16xbf16>
    %cst_297 = arith.constant dense<0.000000e+00> : vector<4x16xf32>
    %449 = tpu.matmul %446, %448, %cst_297 {dimension_numbers = #tpu.dot_dimension_numbers<[1], [0], [0], [1], [0, 0, 1, 1], [], []>} : vector<4x16xbf16>, vector<16x16xbf16>, vector<4x16xf32> -> vector<4x16xf32>
    %450 = arith.addf %445, %449 : vector<4x16xf32>
    %451 = vector.extract_strided_slice %440 {offsets = [2, 0], sizes = [4, 16], strides = [1, 1]} : vector<6x16xbf16> to vector<4x16xbf16>
    %c20_298 = arith.constant 20 : index
    %c0_299 = arith.constant 0 : index
    %c0_300 = arith.constant 0 : index
    %452 = vector.load %arg5[%c20_298, %c0_299, %c0_300] : memref<27x16x16xbf16, #tpu.memory_space<vmem>>, vector<1x16x16xbf16>
    %453 = vector.shape_cast %452 : vector<1x16x16xbf16> to vector<16x16xbf16>
    %cst_301 = arith.constant dense<0.000000e+00> : vector<4x16xf32>
    %454 = tpu.matmul %451, %453, %cst_301 {dimension_numbers = #tpu.dot_dimension_numbers<[1], [0], [0], [1], [0, 0, 1, 1], [], []>} : vector<4x16xbf16>, vector<16x16xbf16>, vector<4x16xf32> -> vector<4x16xf32>
    %455 = arith.addf %450, %454 : vector<4x16xf32>
    %456 = vector.extract_strided_slice %8 {offsets = [3, 0, 0], sizes = [1, 6, 16], strides = [1, 1, 1]} : vector<6x6x16xbf16> to vector<1x6x16xbf16>
    %457 = vector.shape_cast %456 : vector<1x6x16xbf16> to vector<6x16xbf16>
    %458 = vector.extract_strided_slice %457 {offsets = [0, 0], sizes = [4, 16], strides = [1, 1]} : vector<6x16xbf16> to vector<4x16xbf16>
    %c21_302 = arith.constant 21 : index
    %c0_303 = arith.constant 0 : index
    %c0_304 = arith.constant 0 : index
    %459 = vector.load %arg5[%c21_302, %c0_303, %c0_304] : memref<27x16x16xbf16, #tpu.memory_space<vmem>>, vector<1x16x16xbf16>
    %460 = vector.shape_cast %459 : vector<1x16x16xbf16> to vector<16x16xbf16>
    %cst_305 = arith.constant dense<0.000000e+00> : vector<4x16xf32>
    %461 = tpu.matmul %458, %460, %cst_305 {dimension_numbers = #tpu.dot_dimension_numbers<[1], [0], [0], [1], [0, 0, 1, 1], [], []>} : vector<4x16xbf16>, vector<16x16xbf16>, vector<4x16xf32> -> vector<4x16xf32>
    %462 = arith.addf %455, %461 : vector<4x16xf32>
    %463 = vector.extract_strided_slice %457 {offsets = [1, 0], sizes = [4, 16], strides = [1, 1]} : vector<6x16xbf16> to vector<4x16xbf16>
    %c22_306 = arith.constant 22 : index
    %c0_307 = arith.constant 0 : index
    %c0_308 = arith.constant 0 : index
    %464 = vector.load %arg5[%c22_306, %c0_307, %c0_308] : memref<27x16x16xbf16, #tpu.memory_space<vmem>>, vector<1x16x16xbf16>
    %465 = vector.shape_cast %464 : vector<1x16x16xbf16> to vector<16x16xbf16>
    %cst_309 = arith.constant dense<0.000000e+00> : vector<4x16xf32>
    %466 = tpu.matmul %463, %465, %cst_309 {dimension_numbers = #tpu.dot_dimension_numbers<[1], [0], [0], [1], [0, 0, 1, 1], [], []>} : vector<4x16xbf16>, vector<16x16xbf16>, vector<4x16xf32> -> vector<4x16xf32>
    %467 = arith.addf %462, %466 : vector<4x16xf32>
    %468 = vector.extract_strided_slice %457 {offsets = [2, 0], sizes = [4, 16], strides = [1, 1]} : vector<6x16xbf16> to vector<4x16xbf16>
    %c23_310 = arith.constant 23 : index
    %c0_311 = arith.constant 0 : index
    %c0_312 = arith.constant 0 : index
    %469 = vector.load %arg5[%c23_310, %c0_311, %c0_312] : memref<27x16x16xbf16, #tpu.memory_space<vmem>>, vector<1x16x16xbf16>
    %470 = vector.shape_cast %469 : vector<1x16x16xbf16> to vector<16x16xbf16>
    %cst_313 = arith.constant dense<0.000000e+00> : vector<4x16xf32>
    %471 = tpu.matmul %468, %470, %cst_313 {dimension_numbers = #tpu.dot_dimension_numbers<[1], [0], [0], [1], [0, 0, 1, 1], [], []>} : vector<4x16xbf16>, vector<16x16xbf16>, vector<4x16xf32> -> vector<4x16xf32>
    %472 = arith.addf %467, %471 : vector<4x16xf32>
    %473 = vector.extract_strided_slice %8 {offsets = [4, 0, 0], sizes = [1, 6, 16], strides = [1, 1, 1]} : vector<6x6x16xbf16> to vector<1x6x16xbf16>
    %474 = vector.shape_cast %473 : vector<1x6x16xbf16> to vector<6x16xbf16>
    %475 = vector.extract_strided_slice %474 {offsets = [0, 0], sizes = [4, 16], strides = [1, 1]} : vector<6x16xbf16> to vector<4x16xbf16>
    %c24_314 = arith.constant 24 : index
    %c0_315 = arith.constant 0 : index
    %c0_316 = arith.constant 0 : index
    %476 = vector.load %arg5[%c24_314, %c0_315, %c0_316] : memref<27x16x16xbf16, #tpu.memory_space<vmem>>, vector<1x16x16xbf16>
    %477 = vector.shape_cast %476 : vector<1x16x16xbf16> to vector<16x16xbf16>
    %cst_317 = arith.constant dense<0.000000e+00> : vector<4x16xf32>
    %478 = tpu.matmul %475, %477, %cst_317 {dimension_numbers = #tpu.dot_dimension_numbers<[1], [0], [0], [1], [0, 0, 1, 1], [], []>} : vector<4x16xbf16>, vector<16x16xbf16>, vector<4x16xf32> -> vector<4x16xf32>
    %479 = arith.addf %472, %478 : vector<4x16xf32>
    %480 = vector.extract_strided_slice %474 {offsets = [1, 0], sizes = [4, 16], strides = [1, 1]} : vector<6x16xbf16> to vector<4x16xbf16>
    %c25_318 = arith.constant 25 : index
    %c0_319 = arith.constant 0 : index
    %c0_320 = arith.constant 0 : index
    %481 = vector.load %arg5[%c25_318, %c0_319, %c0_320] : memref<27x16x16xbf16, #tpu.memory_space<vmem>>, vector<1x16x16xbf16>
    %482 = vector.shape_cast %481 : vector<1x16x16xbf16> to vector<16x16xbf16>
    %cst_321 = arith.constant dense<0.000000e+00> : vector<4x16xf32>
    %483 = tpu.matmul %480, %482, %cst_321 {dimension_numbers = #tpu.dot_dimension_numbers<[1], [0], [0], [1], [0, 0, 1, 1], [], []>} : vector<4x16xbf16>, vector<16x16xbf16>, vector<4x16xf32> -> vector<4x16xf32>
    %484 = arith.addf %479, %483 : vector<4x16xf32>
    %485 = vector.extract_strided_slice %474 {offsets = [2, 0], sizes = [4, 16], strides = [1, 1]} : vector<6x16xbf16> to vector<4x16xbf16>
    %c26_322 = arith.constant 26 : index
    %c0_323 = arith.constant 0 : index
    %c0_324 = arith.constant 0 : index
    %486 = vector.load %arg5[%c26_322, %c0_323, %c0_324] : memref<27x16x16xbf16, #tpu.memory_space<vmem>>, vector<1x16x16xbf16>
    %487 = vector.shape_cast %486 : vector<1x16x16xbf16> to vector<16x16xbf16>
    %cst_325 = arith.constant dense<0.000000e+00> : vector<4x16xf32>
    %488 = tpu.matmul %485, %487, %cst_325 {dimension_numbers = #tpu.dot_dimension_numbers<[1], [0], [0], [1], [0, 0, 1, 1], [], []>} : vector<4x16xbf16>, vector<16x16xbf16>, vector<4x16xf32> -> vector<4x16xf32>
    %489 = arith.addf %484, %488 : vector<4x16xf32>
    %490 = vector.broadcast %9 : vector<1x16xf32> to vector<4x16xf32>
    %491 = arith.addf %489, %490 : vector<4x16xf32>
    %492 = vector.shape_cast %491 : vector<4x16xf32> to vector<1x4x16xf32>
    %c0_326 = arith.constant 0 : index
    %c8_327 = arith.constant 8 : index
    %c0_328 = arith.constant 0 : index
    %493 = vector.load %arg7[%c0_326, %c8_327, %c0_328] : memref<1x16x16xf32, #tpu.memory_space<vmem>>, vector<1x4x16xf32>
    tpu.vector_store %arg7[%c0_326, %c8_327, %c0_328], %492 {strides = array<i32>} : memref<1x16x16xf32, #tpu.memory_space<vmem>>, vector<1x4x16xf32>,
    %cst_329 = arith.constant dense<0.000000e+00> : vector<16xf32>
    %494 = vector.multi_reduction <add>, %491, %cst_329 [0] : vector<4x16xf32> to vector<16xf32>
    %495 = vector.shape_cast %494 : vector<16xf32> to vector<1x16xf32>
    %496 = arith.addf %333, %495 : vector<1x16xf32>
    %497 = arith.mulf %491, %491 : vector<4x16xf32>
    %cst_330 = arith.constant dense<0.000000e+00> : vector<16xf32>
    %498 = vector.multi_reduction <add>, %497, %cst_330 [0] : vector<4x16xf32> to vector<16xf32>
    %499 = vector.shape_cast %498 : vector<16xf32> to vector<1x16xf32>
    %500 = arith.addf %337, %499 : vector<1x16xf32>
    %501 = vector.extract_strided_slice %4 {offsets = [3, 0, 0], sizes = [1, 6, 16], strides = [1, 1, 1]} : vector<6x6x16xbf16> to vector<1x6x16xbf16>
    %502 = vector.shape_cast %501 : vector<1x6x16xbf16> to vector<6x16xbf16>
    %503 = vector.extract_strided_slice %502 {offsets = [0, 0], sizes = [4, 16], strides = [1, 1]} : vector<6x16xbf16> to vector<4x16xbf16>
    %c0_331 = arith.constant 0 : index
    %c0_332 = arith.constant 0 : index
    %c0_333 = arith.constant 0 : index
    %504 = vector.load %arg5[%c0_331, %c0_332, %c0_333] : memref<27x16x16xbf16, #tpu.memory_space<vmem>>, vector<1x16x16xbf16>
    %505 = vector.shape_cast %504 : vector<1x16x16xbf16> to vector<16x16xbf16>
    %cst_334 = arith.constant dense<0.000000e+00> : vector<4x16xf32>
    %506 = tpu.matmul %503, %505, %cst_334 {dimension_numbers = #tpu.dot_dimension_numbers<[1], [0], [0], [1], [0, 0, 1, 1], [], []>} : vector<4x16xbf16>, vector<16x16xbf16>, vector<4x16xf32> -> vector<4x16xf32>
    %507 = vector.extract_strided_slice %502 {offsets = [1, 0], sizes = [4, 16], strides = [1, 1]} : vector<6x16xbf16> to vector<4x16xbf16>
    %c1_335 = arith.constant 1 : index
    %c0_336 = arith.constant 0 : index
    %c0_337 = arith.constant 0 : index
    %508 = vector.load %arg5[%c1_335, %c0_336, %c0_337] : memref<27x16x16xbf16, #tpu.memory_space<vmem>>, vector<1x16x16xbf16>
    %509 = vector.shape_cast %508 : vector<1x16x16xbf16> to vector<16x16xbf16>
    %cst_338 = arith.constant dense<0.000000e+00> : vector<4x16xf32>
    %510 = tpu.matmul %507, %509, %cst_338 {dimension_numbers = #tpu.dot_dimension_numbers<[1], [0], [0], [1], [0, 0, 1, 1], [], []>} : vector<4x16xbf16>, vector<16x16xbf16>, vector<4x16xf32> -> vector<4x16xf32>
    %511 = arith.addf %506, %510 : vector<4x16xf32>
    %512 = vector.extract_strided_slice %502 {offsets = [2, 0], sizes = [4, 16], strides = [1, 1]} : vector<6x16xbf16> to vector<4x16xbf16>
    %c2_339 = arith.constant 2 : index
    %c0_340 = arith.constant 0 : index
    %c0_341 = arith.constant 0 : index
    %513 = vector.load %arg5[%c2_339, %c0_340, %c0_341] : memref<27x16x16xbf16, #tpu.memory_space<vmem>>, vector<1x16x16xbf16>
    %514 = vector.shape_cast %513 : vector<1x16x16xbf16> to vector<16x16xbf16>
    %cst_342 = arith.constant dense<0.000000e+00> : vector<4x16xf32>
    %515 = tpu.matmul %512, %514, %cst_342 {dimension_numbers = #tpu.dot_dimension_numbers<[1], [0], [0], [1], [0, 0, 1, 1], [], []>} : vector<4x16xbf16>, vector<16x16xbf16>, vector<4x16xf32> -> vector<4x16xf32>
    %516 = arith.addf %511, %515 : vector<4x16xf32>
    %517 = vector.extract_strided_slice %4 {offsets = [4, 0, 0], sizes = [1, 6, 16], strides = [1, 1, 1]} : vector<6x6x16xbf16> to vector<1x6x16xbf16>
    %518 = vector.shape_cast %517 : vector<1x6x16xbf16> to vector<6x16xbf16>
    %519 = vector.extract_strided_slice %518 {offsets = [0, 0], sizes = [4, 16], strides = [1, 1]} : vector<6x16xbf16> to vector<4x16xbf16>
    %c3_343 = arith.constant 3 : index
    %c0_344 = arith.constant 0 : index
    %c0_345 = arith.constant 0 : index
    %520 = vector.load %arg5[%c3_343, %c0_344, %c0_345] : memref<27x16x16xbf16, #tpu.memory_space<vmem>>, vector<1x16x16xbf16>
    %521 = vector.shape_cast %520 : vector<1x16x16xbf16> to vector<16x16xbf16>
    %cst_346 = arith.constant dense<0.000000e+00> : vector<4x16xf32>
    %522 = tpu.matmul %519, %521, %cst_346 {dimension_numbers = #tpu.dot_dimension_numbers<[1], [0], [0], [1], [0, 0, 1, 1], [], []>} : vector<4x16xbf16>, vector<16x16xbf16>, vector<4x16xf32> -> vector<4x16xf32>
    %523 = arith.addf %516, %522 : vector<4x16xf32>
    %524 = vector.extract_strided_slice %518 {offsets = [1, 0], sizes = [4, 16], strides = [1, 1]} : vector<6x16xbf16> to vector<4x16xbf16>
    %c4_347 = arith.constant 4 : index
    %c0_348 = arith.constant 0 : index
    %c0_349 = arith.constant 0 : index
    %525 = vector.load %arg5[%c4_347, %c0_348, %c0_349] : memref<27x16x16xbf16, #tpu.memory_space<vmem>>, vector<1x16x16xbf16>
    %526 = vector.shape_cast %525 : vector<1x16x16xbf16> to vector<16x16xbf16>
    %cst_350 = arith.constant dense<0.000000e+00> : vector<4x16xf32>
    %527 = tpu.matmul %524, %526, %cst_350 {dimension_numbers = #tpu.dot_dimension_numbers<[1], [0], [0], [1], [0, 0, 1, 1], [], []>} : vector<4x16xbf16>, vector<16x16xbf16>, vector<4x16xf32> -> vector<4x16xf32>
    %528 = arith.addf %523, %527 : vector<4x16xf32>
    %529 = vector.extract_strided_slice %518 {offsets = [2, 0], sizes = [4, 16], strides = [1, 1]} : vector<6x16xbf16> to vector<4x16xbf16>
    %c5_351 = arith.constant 5 : index
    %c0_352 = arith.constant 0 : index
    %c0_353 = arith.constant 0 : index
    %530 = vector.load %arg5[%c5_351, %c0_352, %c0_353] : memref<27x16x16xbf16, #tpu.memory_space<vmem>>, vector<1x16x16xbf16>
    %531 = vector.shape_cast %530 : vector<1x16x16xbf16> to vector<16x16xbf16>
    %cst_354 = arith.constant dense<0.000000e+00> : vector<4x16xf32>
    %532 = tpu.matmul %529, %531, %cst_354 {dimension_numbers = #tpu.dot_dimension_numbers<[1], [0], [0], [1], [0, 0, 1, 1], [], []>} : vector<4x16xbf16>, vector<16x16xbf16>, vector<4x16xf32> -> vector<4x16xf32>
    %533 = arith.addf %528, %532 : vector<4x16xf32>
    %534 = vector.extract_strided_slice %4 {offsets = [5, 0, 0], sizes = [1, 6, 16], strides = [1, 1, 1]} : vector<6x6x16xbf16> to vector<1x6x16xbf16>
    %535 = vector.shape_cast %534 : vector<1x6x16xbf16> to vector<6x16xbf16>
    %536 = vector.extract_strided_slice %535 {offsets = [0, 0], sizes = [4, 16], strides = [1, 1]} : vector<6x16xbf16> to vector<4x16xbf16>
    %c6_355 = arith.constant 6 : index
    %c0_356 = arith.constant 0 : index
    %c0_357 = arith.constant 0 : index
    %537 = vector.load %arg5[%c6_355, %c0_356, %c0_357] : memref<27x16x16xbf16, #tpu.memory_space<vmem>>, vector<1x16x16xbf16>
    %538 = vector.shape_cast %537 : vector<1x16x16xbf16> to vector<16x16xbf16>
    %cst_358 = arith.constant dense<0.000000e+00> : vector<4x16xf32>
    %539 = tpu.matmul %536, %538, %cst_358 {dimension_numbers = #tpu.dot_dimension_numbers<[1], [0], [0], [1], [0, 0, 1, 1], [], []>} : vector<4x16xbf16>, vector<16x16xbf16>, vector<4x16xf32> -> vector<4x16xf32>
    %540 = arith.addf %533, %539 : vector<4x16xf32>
    %541 = vector.extract_strided_slice %535 {offsets = [1, 0], sizes = [4, 16], strides = [1, 1]} : vector<6x16xbf16> to vector<4x16xbf16>
    %c7_359 = arith.constant 7 : index
    %c0_360 = arith.constant 0 : index
    %c0_361 = arith.constant 0 : index
    %542 = vector.load %arg5[%c7_359, %c0_360, %c0_361] : memref<27x16x16xbf16, #tpu.memory_space<vmem>>, vector<1x16x16xbf16>
    %543 = vector.shape_cast %542 : vector<1x16x16xbf16> to vector<16x16xbf16>
    %cst_362 = arith.constant dense<0.000000e+00> : vector<4x16xf32>
    %544 = tpu.matmul %541, %543, %cst_362 {dimension_numbers = #tpu.dot_dimension_numbers<[1], [0], [0], [1], [0, 0, 1, 1], [], []>} : vector<4x16xbf16>, vector<16x16xbf16>, vector<4x16xf32> -> vector<4x16xf32>
    %545 = arith.addf %540, %544 : vector<4x16xf32>
    %546 = vector.extract_strided_slice %535 {offsets = [2, 0], sizes = [4, 16], strides = [1, 1]} : vector<6x16xbf16> to vector<4x16xbf16>
    %c8_363 = arith.constant 8 : index
    %c0_364 = arith.constant 0 : index
    %c0_365 = arith.constant 0 : index
    %547 = vector.load %arg5[%c8_363, %c0_364, %c0_365] : memref<27x16x16xbf16, #tpu.memory_space<vmem>>, vector<1x16x16xbf16>
    %548 = vector.shape_cast %547 : vector<1x16x16xbf16> to vector<16x16xbf16>
    %cst_366 = arith.constant dense<0.000000e+00> : vector<4x16xf32>
    %549 = tpu.matmul %546, %548, %cst_366 {dimension_numbers = #tpu.dot_dimension_numbers<[1], [0], [0], [1], [0, 0, 1, 1], [], []>} : vector<4x16xbf16>, vector<16x16xbf16>, vector<4x16xf32> -> vector<4x16xf32>
    %550 = arith.addf %545, %549 : vector<4x16xf32>
    %551 = vector.extract_strided_slice %6 {offsets = [3, 0, 0], sizes = [1, 6, 16], strides = [1, 1, 1]} : vector<6x6x16xbf16> to vector<1x6x16xbf16>
    %552 = vector.shape_cast %551 : vector<1x6x16xbf16> to vector<6x16xbf16>
    %553 = vector.extract_strided_slice %552 {offsets = [0, 0], sizes = [4, 16], strides = [1, 1]} : vector<6x16xbf16> to vector<4x16xbf16>
    %c9_367 = arith.constant 9 : index
    %c0_368 = arith.constant 0 : index
    %c0_369 = arith.constant 0 : index
    %554 = vector.load %arg5[%c9_367, %c0_368, %c0_369] : memref<27x16x16xbf16, #tpu.memory_space<vmem>>, vector<1x16x16xbf16>
    %555 = vector.shape_cast %554 : vector<1x16x16xbf16> to vector<16x16xbf16>
    %cst_370 = arith.constant dense<0.000000e+00> : vector<4x16xf32>
    %556 = tpu.matmul %553, %555, %cst_370 {dimension_numbers = #tpu.dot_dimension_numbers<[1], [0], [0], [1], [0, 0, 1, 1], [], []>} : vector<4x16xbf16>, vector<16x16xbf16>, vector<4x16xf32> -> vector<4x16xf32>
    %557 = arith.addf %550, %556 : vector<4x16xf32>
    %558 = vector.extract_strided_slice %552 {offsets = [1, 0], sizes = [4, 16], strides = [1, 1]} : vector<6x16xbf16> to vector<4x16xbf16>
    %c10_371 = arith.constant 10 : index
    %c0_372 = arith.constant 0 : index
    %c0_373 = arith.constant 0 : index
    %559 = vector.load %arg5[%c10_371, %c0_372, %c0_373] : memref<27x16x16xbf16, #tpu.memory_space<vmem>>, vector<1x16x16xbf16>
    %560 = vector.shape_cast %559 : vector<1x16x16xbf16> to vector<16x16xbf16>
    %cst_374 = arith.constant dense<0.000000e+00> : vector<4x16xf32>
    %561 = tpu.matmul %558, %560, %cst_374 {dimension_numbers = #tpu.dot_dimension_numbers<[1], [0], [0], [1], [0, 0, 1, 1], [], []>} : vector<4x16xbf16>, vector<16x16xbf16>, vector<4x16xf32> -> vector<4x16xf32>
    %562 = arith.addf %557, %561 : vector<4x16xf32>
    %563 = vector.extract_strided_slice %552 {offsets = [2, 0], sizes = [4, 16], strides = [1, 1]} : vector<6x16xbf16> to vector<4x16xbf16>
    %c11_375 = arith.constant 11 : index
    %c0_376 = arith.constant 0 : index
    %c0_377 = arith.constant 0 : index
    %564 = vector.load %arg5[%c11_375, %c0_376, %c0_377] : memref<27x16x16xbf16, #tpu.memory_space<vmem>>, vector<1x16x16xbf16>
    %565 = vector.shape_cast %564 : vector<1x16x16xbf16> to vector<16x16xbf16>
    %cst_378 = arith.constant dense<0.000000e+00> : vector<4x16xf32>
    %566 = tpu.matmul %563, %565, %cst_378 {dimension_numbers = #tpu.dot_dimension_numbers<[1], [0], [0], [1], [0, 0, 1, 1], [], []>} : vector<4x16xbf16>, vector<16x16xbf16>, vector<4x16xf32> -> vector<4x16xf32>
    %567 = arith.addf %562, %566 : vector<4x16xf32>
    %568 = vector.extract_strided_slice %6 {offsets = [4, 0, 0], sizes = [1, 6, 16], strides = [1, 1, 1]} : vector<6x6x16xbf16> to vector<1x6x16xbf16>
    %569 = vector.shape_cast %568 : vector<1x6x16xbf16> to vector<6x16xbf16>
    %570 = vector.extract_strided_slice %569 {offsets = [0, 0], sizes = [4, 16], strides = [1, 1]} : vector<6x16xbf16> to vector<4x16xbf16>
    %c12_379 = arith.constant 12 : index
    %c0_380 = arith.constant 0 : index
    %c0_381 = arith.constant 0 : index
    %571 = vector.load %arg5[%c12_379, %c0_380, %c0_381] : memref<27x16x16xbf16, #tpu.memory_space<vmem>>, vector<1x16x16xbf16>
    %572 = vector.shape_cast %571 : vector<1x16x16xbf16> to vector<16x16xbf16>
    %cst_382 = arith.constant dense<0.000000e+00> : vector<4x16xf32>
    %573 = tpu.matmul %570, %572, %cst_382 {dimension_numbers = #tpu.dot_dimension_numbers<[1], [0], [0], [1], [0, 0, 1, 1], [], []>} : vector<4x16xbf16>, vector<16x16xbf16>, vector<4x16xf32> -> vector<4x16xf32>
    %574 = arith.addf %567, %573 : vector<4x16xf32>
    %575 = vector.extract_strided_slice %569 {offsets = [1, 0], sizes = [4, 16], strides = [1, 1]} : vector<6x16xbf16> to vector<4x16xbf16>
    %c13_383 = arith.constant 13 : index
    %c0_384 = arith.constant 0 : index
    %c0_385 = arith.constant 0 : index
    %576 = vector.load %arg5[%c13_383, %c0_384, %c0_385] : memref<27x16x16xbf16, #tpu.memory_space<vmem>>, vector<1x16x16xbf16>
    %577 = vector.shape_cast %576 : vector<1x16x16xbf16> to vector<16x16xbf16>
    %cst_386 = arith.constant dense<0.000000e+00> : vector<4x16xf32>
    %578 = tpu.matmul %575, %577, %cst_386 {dimension_numbers = #tpu.dot_dimension_numbers<[1], [0], [0], [1], [0, 0, 1, 1], [], []>} : vector<4x16xbf16>, vector<16x16xbf16>, vector<4x16xf32> -> vector<4x16xf32>
    %579 = arith.addf %574, %578 : vector<4x16xf32>
    %580 = vector.extract_strided_slice %569 {offsets = [2, 0], sizes = [4, 16], strides = [1, 1]} : vector<6x16xbf16> to vector<4x16xbf16>
    %c14_387 = arith.constant 14 : index
    %c0_388 = arith.constant 0 : index
    %c0_389 = arith.constant 0 : index
    %581 = vector.load %arg5[%c14_387, %c0_388, %c0_389] : memref<27x16x16xbf16, #tpu.memory_space<vmem>>, vector<1x16x16xbf16>
    %582 = vector.shape_cast %581 : vector<1x16x16xbf16> to vector<16x16xbf16>
    %cst_390 = arith.constant dense<0.000000e+00> : vector<4x16xf32>
    %583 = tpu.matmul %580, %582, %cst_390 {dimension_numbers = #tpu.dot_dimension_numbers<[1], [0], [0], [1], [0, 0, 1, 1], [], []>} : vector<4x16xbf16>, vector<16x16xbf16>, vector<4x16xf32> -> vector<4x16xf32>
    %584 = arith.addf %579, %583 : vector<4x16xf32>
    %585 = vector.extract_strided_slice %6 {offsets = [5, 0, 0], sizes = [1, 6, 16], strides = [1, 1, 1]} : vector<6x6x16xbf16> to vector<1x6x16xbf16>
    %586 = vector.shape_cast %585 : vector<1x6x16xbf16> to vector<6x16xbf16>
    %587 = vector.extract_strided_slice %586 {offsets = [0, 0], sizes = [4, 16], strides = [1, 1]} : vector<6x16xbf16> to vector<4x16xbf16>
    %c15_391 = arith.constant 15 : index
    %c0_392 = arith.constant 0 : index
    %c0_393 = arith.constant 0 : index
    %588 = vector.load %arg5[%c15_391, %c0_392, %c0_393] : memref<27x16x16xbf16, #tpu.memory_space<vmem>>, vector<1x16x16xbf16>
    %589 = vector.shape_cast %588 : vector<1x16x16xbf16> to vector<16x16xbf16>
    %cst_394 = arith.constant dense<0.000000e+00> : vector<4x16xf32>
    %590 = tpu.matmul %587, %589, %cst_394 {dimension_numbers = #tpu.dot_dimension_numbers<[1], [0], [0], [1], [0, 0, 1, 1], [], []>} : vector<4x16xbf16>, vector<16x16xbf16>, vector<4x16xf32> -> vector<4x16xf32>
    %591 = arith.addf %584, %590 : vector<4x16xf32>
    %592 = vector.extract_strided_slice %586 {offsets = [1, 0], sizes = [4, 16], strides = [1, 1]} : vector<6x16xbf16> to vector<4x16xbf16>
    %c16_395 = arith.constant 16 : index
    %c0_396 = arith.constant 0 : index
    %c0_397 = arith.constant 0 : index
    %593 = vector.load %arg5[%c16_395, %c0_396, %c0_397] : memref<27x16x16xbf16, #tpu.memory_space<vmem>>, vector<1x16x16xbf16>
    %594 = vector.shape_cast %593 : vector<1x16x16xbf16> to vector<16x16xbf16>
    %cst_398 = arith.constant dense<0.000000e+00> : vector<4x16xf32>
    %595 = tpu.matmul %592, %594, %cst_398 {dimension_numbers = #tpu.dot_dimension_numbers<[1], [0], [0], [1], [0, 0, 1, 1], [], []>} : vector<4x16xbf16>, vector<16x16xbf16>, vector<4x16xf32> -> vector<4x16xf32>
    %596 = arith.addf %591, %595 : vector<4x16xf32>
    %597 = vector.extract_strided_slice %586 {offsets = [2, 0], sizes = [4, 16], strides = [1, 1]} : vector<6x16xbf16> to vector<4x16xbf16>
    %c17_399 = arith.constant 17 : index
    %c0_400 = arith.constant 0 : index
    %c0_401 = arith.constant 0 : index
    %598 = vector.load %arg5[%c17_399, %c0_400, %c0_401] : memref<27x16x16xbf16, #tpu.memory_space<vmem>>, vector<1x16x16xbf16>
    %599 = vector.shape_cast %598 : vector<1x16x16xbf16> to vector<16x16xbf16>
    %cst_402 = arith.constant dense<0.000000e+00> : vector<4x16xf32>
    %600 = tpu.matmul %597, %599, %cst_402 {dimension_numbers = #tpu.dot_dimension_numbers<[1], [0], [0], [1], [0, 0, 1, 1], [], []>} : vector<4x16xbf16>, vector<16x16xbf16>, vector<4x16xf32> -> vector<4x16xf32>
    %601 = arith.addf %596, %600 : vector<4x16xf32>
    %602 = vector.extract_strided_slice %8 {offsets = [3, 0, 0], sizes = [1, 6, 16], strides = [1, 1, 1]} : vector<6x6x16xbf16> to vector<1x6x16xbf16>
    %603 = vector.shape_cast %602 : vector<1x6x16xbf16> to vector<6x16xbf16>
    %604 = vector.extract_strided_slice %603 {offsets = [0, 0], sizes = [4, 16], strides = [1, 1]} : vector<6x16xbf16> to vector<4x16xbf16>
    %c18_403 = arith.constant 18 : index
    %c0_404 = arith.constant 0 : index
    %c0_405 = arith.constant 0 : index
    %605 = vector.load %arg5[%c18_403, %c0_404, %c0_405] : memref<27x16x16xbf16, #tpu.memory_space<vmem>>, vector<1x16x16xbf16>
    %606 = vector.shape_cast %605 : vector<1x16x16xbf16> to vector<16x16xbf16>
    %cst_406 = arith.constant dense<0.000000e+00> : vector<4x16xf32>
    %607 = tpu.matmul %604, %606, %cst_406 {dimension_numbers = #tpu.dot_dimension_numbers<[1], [0], [0], [1], [0, 0, 1, 1], [], []>} : vector<4x16xbf16>, vector<16x16xbf16>, vector<4x16xf32> -> vector<4x16xf32>
    %608 = arith.addf %601, %607 : vector<4x16xf32>
    %609 = vector.extract_strided_slice %603 {offsets = [1, 0], sizes = [4, 16], strides = [1, 1]} : vector<6x16xbf16> to vector<4x16xbf16>
    %c19_407 = arith.constant 19 : index
    %c0_408 = arith.constant 0 : index
    %c0_409 = arith.constant 0 : index
    %610 = vector.load %arg5[%c19_407, %c0_408, %c0_409] : memref<27x16x16xbf16, #tpu.memory_space<vmem>>, vector<1x16x16xbf16>
    %611 = vector.shape_cast %610 : vector<1x16x16xbf16> to vector<16x16xbf16>
    %cst_410 = arith.constant dense<0.000000e+00> : vector<4x16xf32>
    %612 = tpu.matmul %609, %611, %cst_410 {dimension_numbers = #tpu.dot_dimension_numbers<[1], [0], [0], [1], [0, 0, 1, 1], [], []>} : vector<4x16xbf16>, vector<16x16xbf16>, vector<4x16xf32> -> vector<4x16xf32>
    %613 = arith.addf %608, %612 : vector<4x16xf32>
    %614 = vector.extract_strided_slice %603 {offsets = [2, 0], sizes = [4, 16], strides = [1, 1]} : vector<6x16xbf16> to vector<4x16xbf16>
    %c20_411 = arith.constant 20 : index
    %c0_412 = arith.constant 0 : index
    %c0_413 = arith.constant 0 : index
    %615 = vector.load %arg5[%c20_411, %c0_412, %c0_413] : memref<27x16x16xbf16, #tpu.memory_space<vmem>>, vector<1x16x16xbf16>
    %616 = vector.shape_cast %615 : vector<1x16x16xbf16> to vector<16x16xbf16>
    %cst_414 = arith.constant dense<0.000000e+00> : vector<4x16xf32>
    %617 = tpu.matmul %614, %616, %cst_414 {dimension_numbers = #tpu.dot_dimension_numbers<[1], [0], [0], [1], [0, 0, 1, 1], [], []>} : vector<4x16xbf16>, vector<16x16xbf16>, vector<4x16xf32> -> vector<4x16xf32>
    %618 = arith.addf %613, %617 : vector<4x16xf32>
    %619 = vector.extract_strided_slice %8 {offsets = [4, 0, 0], sizes = [1, 6, 16], strides = [1, 1, 1]} : vector<6x6x16xbf16> to vector<1x6x16xbf16>
    %620 = vector.shape_cast %619 : vector<1x6x16xbf16> to vector<6x16xbf16>
    %621 = vector.extract_strided_slice %620 {offsets = [0, 0], sizes = [4, 16], strides = [1, 1]} : vector<6x16xbf16> to vector<4x16xbf16>
    %c21_415 = arith.constant 21 : index
    %c0_416 = arith.constant 0 : index
    %c0_417 = arith.constant 0 : index
    %622 = vector.load %arg5[%c21_415, %c0_416, %c0_417] : memref<27x16x16xbf16, #tpu.memory_space<vmem>>, vector<1x16x16xbf16>
    %623 = vector.shape_cast %622 : vector<1x16x16xbf16> to vector<16x16xbf16>
    %cst_418 = arith.constant dense<0.000000e+00> : vector<4x16xf32>
    %624 = tpu.matmul %621, %623, %cst_418 {dimension_numbers = #tpu.dot_dimension_numbers<[1], [0], [0], [1], [0, 0, 1, 1], [], []>} : vector<4x16xbf16>, vector<16x16xbf16>, vector<4x16xf32> -> vector<4x16xf32>
    %625 = arith.addf %618, %624 : vector<4x16xf32>
    %626 = vector.extract_strided_slice %620 {offsets = [1, 0], sizes = [4, 16], strides = [1, 1]} : vector<6x16xbf16> to vector<4x16xbf16>
    %c22_419 = arith.constant 22 : index
    %c0_420 = arith.constant 0 : index
    %c0_421 = arith.constant 0 : index
    %627 = vector.load %arg5[%c22_419, %c0_420, %c0_421] : memref<27x16x16xbf16, #tpu.memory_space<vmem>>, vector<1x16x16xbf16>
    %628 = vector.shape_cast %627 : vector<1x16x16xbf16> to vector<16x16xbf16>
    %cst_422 = arith.constant dense<0.000000e+00> : vector<4x16xf32>
    %629 = tpu.matmul %626, %628, %cst_422 {dimension_numbers = #tpu.dot_dimension_numbers<[1], [0], [0], [1], [0, 0, 1, 1], [], []>} : vector<4x16xbf16>, vector<16x16xbf16>, vector<4x16xf32> -> vector<4x16xf32>
    %630 = arith.addf %625, %629 : vector<4x16xf32>
    %631 = vector.extract_strided_slice %620 {offsets = [2, 0], sizes = [4, 16], strides = [1, 1]} : vector<6x16xbf16> to vector<4x16xbf16>
    %c23_423 = arith.constant 23 : index
    %c0_424 = arith.constant 0 : index
    %c0_425 = arith.constant 0 : index
    %632 = vector.load %arg5[%c23_423, %c0_424, %c0_425] : memref<27x16x16xbf16, #tpu.memory_space<vmem>>, vector<1x16x16xbf16>
    %633 = vector.shape_cast %632 : vector<1x16x16xbf16> to vector<16x16xbf16>
    %cst_426 = arith.constant dense<0.000000e+00> : vector<4x16xf32>
    %634 = tpu.matmul %631, %633, %cst_426 {dimension_numbers = #tpu.dot_dimension_numbers<[1], [0], [0], [1], [0, 0, 1, 1], [], []>} : vector<4x16xbf16>, vector<16x16xbf16>, vector<4x16xf32> -> vector<4x16xf32>
    %635 = arith.addf %630, %634 : vector<4x16xf32>
    %636 = vector.extract_strided_slice %8 {offsets = [5, 0, 0], sizes = [1, 6, 16], strides = [1, 1, 1]} : vector<6x6x16xbf16> to vector<1x6x16xbf16>
    %637 = vector.shape_cast %636 : vector<1x6x16xbf16> to vector<6x16xbf16>
    %638 = vector.extract_strided_slice %637 {offsets = [0, 0], sizes = [4, 16], strides = [1, 1]} : vector<6x16xbf16> to vector<4x16xbf16>
    %c24_427 = arith.constant 24 : index
    %c0_428 = arith.constant 0 : index
    %c0_429 = arith.constant 0 : index
    %639 = vector.load %arg5[%c24_427, %c0_428, %c0_429] : memref<27x16x16xbf16, #tpu.memory_space<vmem>>, vector<1x16x16xbf16>
    %640 = vector.shape_cast %639 : vector<1x16x16xbf16> to vector<16x16xbf16>
    %cst_430 = arith.constant dense<0.000000e+00> : vector<4x16xf32>
    %641 = tpu.matmul %638, %640, %cst_430 {dimension_numbers = #tpu.dot_dimension_numbers<[1], [0], [0], [1], [0, 0, 1, 1], [], []>} : vector<4x16xbf16>, vector<16x16xbf16>, vector<4x16xf32> -> vector<4x16xf32>
    %642 = arith.addf %635, %641 : vector<4x16xf32>
    %643 = vector.extract_strided_slice %637 {offsets = [1, 0], sizes = [4, 16], strides = [1, 1]} : vector<6x16xbf16> to vector<4x16xbf16>
    %c25_431 = arith.constant 25 : index
    %c0_432 = arith.constant 0 : index
    %c0_433 = arith.constant 0 : index
    %644 = vector.load %arg5[%c25_431, %c0_432, %c0_433] : memref<27x16x16xbf16, #tpu.memory_space<vmem>>, vector<1x16x16xbf16>
    %645 = vector.shape_cast %644 : vector<1x16x16xbf16> to vector<16x16xbf16>
    %cst_434 = arith.constant dense<0.000000e+00> : vector<4x16xf32>
    %646 = tpu.matmul %643, %645, %cst_434 {dimension_numbers = #tpu.dot_dimension_numbers<[1], [0], [0], [1], [0, 0, 1, 1], [], []>} : vector<4x16xbf16>, vector<16x16xbf16>, vector<4x16xf32> -> vector<4x16xf32>
    %647 = arith.addf %642, %646 : vector<4x16xf32>
    %648 = vector.extract_strided_slice %637 {offsets = [2, 0], sizes = [4, 16], strides = [1, 1]} : vector<6x16xbf16> to vector<4x16xbf16>
    %c26_435 = arith.constant 26 : index
    %c0_436 = arith.constant 0 : index
    %c0_437 = arith.constant 0 : index
    %649 = vector.load %arg5[%c26_435, %c0_436, %c0_437] : memref<27x16x16xbf16, #tpu.memory_space<vmem>>, vector<1x16x16xbf16>
    %650 = vector.shape_cast %649 : vector<1x16x16xbf16> to vector<16x16xbf16>
    %cst_438 = arith.constant dense<0.000000e+00> : vector<4x16xf32>
    %651 = tpu.matmul %648, %650, %cst_438 {dimension_numbers = #tpu.dot_dimension_numbers<[1], [0], [0], [1], [0, 0, 1, 1], [], []>} : vector<4x16xbf16>, vector<16x16xbf16>, vector<4x16xf32> -> vector<4x16xf32>
    %652 = arith.addf %647, %651 : vector<4x16xf32>
    %653 = vector.broadcast %9 : vector<1x16xf32> to vector<4x16xf32>
    %654 = arith.addf %652, %653 : vector<4x16xf32>
    %655 = vector.shape_cast %654 : vector<4x16xf32> to vector<1x4x16xf32>
    %c0_439 = arith.constant 0 : index
    %c12_440 = arith.constant 12 : index
    %c0_441 = arith.constant 0 : index
    %656 = vector.load %arg7[%c0_439, %c12_440, %c0_441] : memref<1x16x16xf32, #tpu.memory_space<vmem>>, vector<1x4x16xf32>
    tpu.vector_store %arg7[%c0_439, %c12_440, %c0_441], %655 {strides = array<i32>} : memref<1x16x16xf32, #tpu.memory_space<vmem>>, vector<1x4x16xf32>,
    %cst_442 = arith.constant dense<0.000000e+00> : vector<16xf32>
    %657 = vector.multi_reduction <add>, %654, %cst_442 [0] : vector<4x16xf32> to vector<16xf32>
    %658 = vector.shape_cast %657 : vector<16xf32> to vector<1x16xf32>
    %659 = arith.addf %496, %658 : vector<1x16xf32>
    %660 = arith.mulf %654, %654 : vector<4x16xf32>
    %cst_443 = arith.constant dense<0.000000e+00> : vector<16xf32>
    %661 = vector.multi_reduction <add>, %660, %cst_443 [0] : vector<4x16xf32> to vector<16xf32>
    %662 = vector.shape_cast %661 : vector<16xf32> to vector<1x16xf32>
    %663 = arith.addf %500, %662 : vector<1x16xf32>
    %c0_444 = arith.constant 0 : index
    %c0_445 = arith.constant 0 : index
    %c0_446 = arith.constant 0 : index
    %664 = vector.load %arg8[%c0_444, %c0_445, %c0_446] : memref<1x1x16xf32, #tpu.memory_space<vmem>>, vector<1x1x16xf32>
    %665 = vector.shape_cast %659 : vector<1x16xf32> to vector<1x1x16xf32>
    %666 = arith.addf %664, %665 : vector<1x1x16xf32>
    %c0_447 = arith.constant 0 : index
    %c0_448 = arith.constant 0 : index
    %c0_449 = arith.constant 0 : index
    %667 = vector.load %arg8[%c0_447, %c0_448, %c0_449] : memref<1x1x16xf32, #tpu.memory_space<vmem>>, vector<1x1x16xf32>
    tpu.vector_store %arg8[%c0_447, %c0_448, %c0_449], %666 {strides = array<i32>} : memref<1x1x16xf32, #tpu.memory_space<vmem>>, vector<1x1x16xf32>,
    %c0_450 = arith.constant 0 : index
    %c0_451 = arith.constant 0 : index
    %c0_452 = arith.constant 0 : index
    %668 = vector.load %arg9[%c0_450, %c0_451, %c0_452] : memref<1x1x16xf32, #tpu.memory_space<vmem>>, vector<1x1x16xf32>
    %669 = vector.shape_cast %663 : vector<1x16xf32> to vector<1x1x16xf32>
    %670 = arith.addf %668, %669 : vector<1x1x16xf32>
    %c0_453 = arith.constant 0 : index
    %c0_454 = arith.constant 0 : index
    %c0_455 = arith.constant 0 : index
    %671 = vector.load %arg9[%c0_453, %c0_454, %c0_455] : memref<1x1x16xf32, #tpu.memory_space<vmem>>, vector<1x1x16xf32>
    tpu.vector_store %arg9[%c0_453, %c0_454, %c0_455], %670 {strides = array<i32>} : memref<1x1x16xf32, #tpu.memory_space<vmem>>, vector<1x1x16xf32>,
    return
  }
  func.func @transform_0(%arg0: i32, %arg1: i32) -> (i32, i32, i32, i32, i32) {
    %c0_i32 = arith.constant 0 : i32
    %0 = arith.addi %arg1, %c0_i32 : i32
    %c0_i32_0 = arith.constant 0 : i32
    %c0_i32_1 = arith.constant 0 : i32
    %c0_i32_2 = arith.constant 0 : i32
    %c0_i32_3 = arith.constant 0 : i32
    return %arg0, %0, %c0_i32_0, %c0_i32_1, %c0_i32_2 : i32, i32, i32, i32, i32
  }
  func.func @transform_1(%arg0: i32, %arg1: i32) -> (i32, i32, i32, i32, i32) {
    %c1_i32 = arith.constant 1 : i32
    %0 = arith.addi %arg1, %c1_i32 : i32
    %c0_i32 = arith.constant 0 : i32
    %c0_i32_0 = arith.constant 0 : i32
    %c0_i32_1 = arith.constant 0 : i32
    %c0_i32_2 = arith.constant 0 : i32
    return %arg0, %0, %c0_i32, %c0_i32_0, %c0_i32_1 : i32, i32, i32, i32, i32
  }
  func.func @transform_2(%arg0: i32, %arg1: i32) -> (i32, i32, i32, i32, i32) {
    %c2_i32 = arith.constant 2 : i32
    %0 = arith.addi %arg1, %c2_i32 : i32
    %c0_i32 = arith.constant 0 : i32
    %c0_i32_0 = arith.constant 0 : i32
    %c0_i32_1 = arith.constant 0 : i32
    %c0_i32_2 = arith.constant 0 : i32
    return %arg0, %0, %c0_i32, %c0_i32_0, %c0_i32_1 : i32, i32, i32, i32, i32
  }
  func.func @transform_3(%arg0: i32, %arg1: i32) -> (i32, i32, i32) {
    %c0_i32 = arith.constant 0 : i32
    %c0_i32_0 = arith.constant 0 : i32
    %c0_i32_1 = arith.constant 0 : i32
    %c0_i32_2 = arith.constant 0 : i32
    return %c0_i32, %c0_i32_0, %c0_i32_1 : i32, i32, i32
  }
  func.func @transform_4(%arg0: i32, %arg1: i32) -> (i32, i32) {
    %c0_i32 = arith.constant 0 : i32
    %c0_i32_0 = arith.constant 0 : i32
    %c0_i32_1 = arith.constant 0 : i32
    return %c0_i32, %c0_i32_0 : i32, i32
  }
  func.func @transform_5(%arg0: i32, %arg1: i32) -> (i32, i32, i32) {
    %c0_i32 = arith.constant 0 : i32
    %c0_i32_0 = arith.constant 0 : i32
    return %arg0, %arg1, %c0_i32 : i32, i32, i32
  }
  func.func @transform_6(%arg0: i32, %arg1: i32) -> (i32, i32, i32) {
    %c0_i32 = arith.constant 0 : i32
    %c0_i32_0 = arith.constant 0 : i32
    %c0_i32_1 = arith.constant 0 : i32
    return %arg0, %c0_i32, %c0_i32_0 : i32, i32, i32
  }
  func.func @transform_7(%arg0: i32, %arg1: i32) -> (i32, i32, i32) {
    %c0_i32 = arith.constant 0 : i32
    %c0_i32_0 = arith.constant 0 : i32
    %c0_i32_1 = arith.constant 0 : i32
    return %arg0, %c0_i32, %c0_i32_0 : i32, i32, i32
  }
}

</mosaic_0001>

<bundles_post_ra>
// kernel: unet_encoder_block.5
= control target key start
LH: loop header
LB: loop body
LE: loop exit
PB: predicated region body
PF: predicated region fallthrough
CT: control target
= control target key end

     0   :  { %s753_s18 = smov 0   ;;  %s755_s19 = smov 0   ;;  %s849_s0 = inlined_call_operand.vmem [shape: bf16[2,64,32], index: 0, kind: input, shape index: {}]   ;;  %s850_s1 = inlined_call_operand.vmem [shape: bf16[32,16], index: 1, kind: input, shape index: {}]   ;;  %s851_s2 = inlined_call_operand.vmem [shape: f32[1,16], index: 2, kind: input, shape index: {}]   ;;  %s852_s3 = inlined_call_operand.vmem [shape: f32[2,64,16], index: 3, kind: output, shape index: {0}]   ;;  %s853_s4 = inlined_call_operand.vmem [shape: f32[2,1,16], index: 4, kind: output, shape index: {1}]   ;;  %s854_s5 = inlined_call_operand.vmem [shape: f32[2,1,16], index: 5, kind: output, shape index: {2}]  }
   0x1   :  { %s757_s20 = smov 0  }
   0x2 LB: > { %s28_s21 = sadd.s32 1, %s716_s19  ;;  %p625_p0 = scmp.ge.s32.totalorder %s720_s20, 1  ;;  %s720_s20 = sphi %s757_s20, %s16_s20   ;;  %s716_s19 = sphi %s755_s19, %s856_s19   ;;  %s712_s18 = sphi %s753_s18, %s855_s18  }
   0x3   : > { %p30_p1 = scmp.ge.s32.totalorder %s28_s21, 2  ;;  %p213_p2 = scmp.lt.s32.totalorder %s720_s20, 3 }
   0x5   : > { %s858_s21 = smov (%p30_p1, %s28_s21), 0  ;;  %p214_p3 = pnand %p625_p0, %p213_p2 }
   0x6   : > { %v692_v0 = vld [vmem:[%s850_s1] sm:$0xff] (!%p214_p3)   ;;  %p256_p4 = scmp.lt.s32.totalorder (!%p214_p3), %s712_s18, 1  ;;  %v693_v1 = vld [vmem:[%s850_s1 + $0x8] sm:$0xff] (!%p214_p3)   ;;  %vm340_vm0 = vcmask (!%p214_p3), 261120   ;;  %vm286_vm1 = vcmask (!%p214_p3), 122880   ;;  %v722_v6 = vmov (!%p214_p3), 0.0  }
   0x7   : > { %217 = sbr.rel (%p214_p3) target bundleno = 268 (0x10c), region = 32  ;;  %651 = vmatprep.subr.bf16.mxu0 (!%p214_p3), %v692_v0  ;;  %663 = vmatprep.subr.bf16.mxu1 (!%p214_p3), %v692_v0  ;;  %v630_v7 = vld [vmem:[%s851_s2] ss:$0 sm:$0xff] (!%p214_p3)  ;;  %vm418_vm2 = vcmask (!%p214_p3), 130048  }
   0x8   : > { %652 = vmatpush3.bf16.msra.mxu0 (!%p214_p3), %v692_v0  ;;  %665 = vmatpush3.bf16.msra.mxu1 (!%p214_p3), %v692_v0 }
   0x9   : > { %653 = vmatprep.subr.bf16.mxu0 (!%p214_p3), %v693_v1  ;;  %664 = vmatprep.subr.bf16.mxu1 (!%p214_p3), %v693_v1 }
   0xc   : > { %654 = vmatpush3.bf16.msra.mxu0 (!%p214_p3), %v693_v1  ;;  %666 = vmatpush3.bf16.msra.mxu1 (!%p214_p3), %v693_v1 }
   0xe   : > { %s860_s18 = smov (!%p256_p4, %s712_s18), 1 }
   0xf   : > { %s643_s26 = sshll.u32 %s860_s18, 5  ;;  %s783_s7 = scalar_lea.vmem %s853_s4, %s860_s18 }
  0x10   : > { %s263_s29 = scalar_lea.vmem %s849_s0, %s643_s26  ;;  %s788_s10 = scalar_lea.vmem %s854_s5, %s860_s18  ;;  %287 = vst.msk [vmem:[%s783_s7] sm:$0x1] %vm286_vm1, %v722_v6 }
  0x11   : > { %v694_v2 = vld [vmem:[%s263_s29] sm:$0xff]   ;;  %v695_v3 = vld [vmem:[%s263_s29 + $0x8] sm:$0xff]   ;;  %v696_v4 = vld [vmem:[%s263_s29 + $0x10] sm:$0xff]   ;;  %288 = vst.msk [vmem:[%s788_s10] sm:$0x1] %vm286_vm1, %v722_v6  ;;  %s644_s11 = sshll.u32 %s860_s18, 6 }
  0x12   : > { %655 = vmatprep.mubr.msk.bf16.mxu0 %vm340_vm0, %v694_v2  ;;  %v697_v5 = vld [vmem:[%s263_s29 + $0x18] sm:$0xff]   ;;  %659 = vmatprep.mubr.msk.bf16.mxu1 %vm340_vm0, %v696_v4  ;;  %s800_s16 = scalar_lea.vmem %s852_s3, %s644_s11 }
  0x13   : > { %656 = vmatmul.mubr.msk.bf16.vlgmr.msra.gmra.mrb[0].mxu0 %vm340_vm0, %v695_v3  ;;  %660 = vmatmul.mubr.msk.bf16.vlgmr.msra.gmra.mrb[0].mxu1 %vm340_vm0, %v697_v5 }
  0xe6   : > { %v657_v8 = vpop.f32.mrb[0].mxu0  ;;  %v661_v11 = vpop.f32.mrb[0].mxu1 }
  0xe7   : > { %v396_v9 = vadd.f32 %v657_v8, %v630_v7  ;;  %v387_v10 = vpop.f32.mrb[1].mxu0  ;;  %v412_v14 = vadd.f32 %v661_v11, %v630_v7  ;;  %v403_v15 = vpop.f32.mrb[1].mxu1 }
  0xe8   : > { %v388_v12 = vadd.f32 %v630_v7, %v387_v10  ;;  %v658_v13 = vpop.f32.mrb[2].mxu0  ;;  %v404_v18 = vadd.f32 %v630_v7, %v403_v15  ;;  %v662_v19 = vpop.f32.mrb[2].mxu1  ;;  %v452_v10 = vld [vmem:[%s788_s10] sm:$0x1] }
  0xe9   : > { %421 = vst.msk [vmem:[%s800_s16 + $0x10] sm:$0xff] %vm418_vm2, %v396_v9  ;;  %v399_v16 = vadd.f32 %v658_v13, %v630_v7  ;;  %v390_v17 = vpop.f32.mrb[3].mxu0  ;;  %425 = vst.msk [vmem:[%s800_s16 + $0x30] sm:$0xff] %vm418_vm2, %v412_v14  ;;  %v406_v22 = vpop.f32.mrb[3].mxu1  ;;  %v455_v23 = vmul.f32 %v396_v9, %v396_v9  ;;  %v431_v27 = vsel %vm418_vm2, %v396_v9, 0.0  ;;  %v415_v33 = vadd.f32 %v662_v19, %v630_v7 }
  0xea   : > { %419 = vst.msk [vmem:[%s800_s16] sm:$0xff] %vm418_vm2, %v388_v12  ;;  %v453_v20 = vmul.f32 %v388_v12, %v388_v12  ;;  %v391_v21 = vadd.f32 %v630_v7, %v390_v17  ;;  %423 = vst.msk [vmem:[%s800_s16 + $0x20] sm:$0xff] %vm418_vm2, %v404_v18  ;;  %v428_v24 = vsel %vm418_vm2, %v388_v12, 0.0  ;;  %v457_v32 = vmul.f32 %v404_v18, %v404_v18 }
  0xeb   : > { %422 = vst.msk [vmem:[%s800_s16 + $0x18] sm:$0xff] %vm418_vm2, %v399_v16  ;;  %v456_v29 = vmul.f32 %v399_v16, %v399_v16  ;;  %v407_v34 = vadd.f32 %v630_v7, %v406_v22  ;;  %v464_v37 = vsel %vm418_vm2, %v455_v23, 0.0  ;;  %v433_v38 = vsel %vm418_vm2, %v399_v16, 0.0  ;;  %426 = vst.msk [vmem:[%s800_s16 + $0x38] sm:$0xff] %vm418_vm2, %v415_v33  ;;  %v427_v7 = vld [vmem:[%s783_s7] sm:$0x1] }
  0xec   : > { %420 = vst.msk [vmem:[%s800_s16 + $0x8] sm:$0xff] %vm418_vm2, %v391_v21  ;;  %v429_v25 = vsel %vm418_vm2, %v391_v21, 0.0  ;;  %v454_v26 = vmul.f32 %v391_v21, %v391_v21  ;;  %v461_v28 = vsel %vm418_vm2, %v453_v20, 0.0  ;;  %v435_v39 = vsel %vm418_vm2, %v404_v18, 0.0 }
  0xed   : > { %v430_v30 = vadd.f32 %v429_v25, %v428_v24  ;;  %424 = vst.msk [vmem:[%s800_s16 + $0x28] sm:$0xff] %vm418_vm2, %v407_v34  ;;  %v466_v42 = vsel %vm418_vm2, %v456_v29, 0.0  ;;  %v468_v43 = vsel %vm418_vm2, %v457_v32, 0.0  ;;  %v458_v44 = vmul.f32 %v407_v34, %v407_v34 }
  0xee   : > { %v462_v31 = vsel %vm418_vm2, %v454_v26, 0.0  ;;  %v459_v47 = vmul.f32 %v412_v14, %v412_v14  ;;  %v437_v48 = vsel %vm418_vm2, %v407_v34, 0.0  ;;  %v439_v51 = vsel %vm418_vm2, %v412_v14, 0.0 }
  0xef   : > { %v432_v35 = vadd.f32 %v431_v27, %v430_v30  ;;  %v463_v36 = vadd.f32 %v462_v31, %v461_v28  ;;  %v460_v52 = vmul.f32 %v415_v33, %v415_v33  ;;  %v470_v53 = vsel %vm418_vm2, %v458_v44, 0.0 }
  0xf0   : > { %v472_v56 = vsel %vm418_vm2, %v459_v47, 0.0  ;;  %v441_v57 = vsel %vm418_vm2, %v415_v33, 0.0 }
  0xf1   : > { %v465_v40 = vadd.f32 %v464_v37, %v463_v36  ;;  %v434_v41 = vadd.f32 %v433_v38, %v432_v35  ;;  %v474_v60 = vsel %vm418_vm2, %v460_v52, 0.0 }
  0xf3   : > { %v436_v45 = vadd.f32 %v435_v39, %v434_v41  ;;  %v467_v46 = vadd.f32 %v466_v42, %v465_v40 }
  0xf5   : > { %v469_v49 = vadd.f32 %v468_v43, %v467_v46  ;;  %v438_v50 = vadd.f32 %v437_v48, %v436_v45 }
  0xf7   : > { %v440_v54 = vadd.f32 %v439_v51, %v438_v50  ;;  %v471_v55 = vadd.f32 %v470_v53, %v469_v49 }
  0xf9   : > { %v442_v58 = vadd.f32 %v441_v57, %v440_v54  ;;  %v473_v59 = vadd.f32 %v472_v56, %v471_v55 }
  0xfb   : > { %v443_v61 = vrot.slane %v442_v58, 4  ;;  %v475_v62 = vadd.f32 %v474_v60, %v473_v59 }
  0xfd   : > { %v444_v63 = vadd.f32 %v443_v61, %v442_v58  ;;  %v476_v0 = vrot.slane %v475_v62, 4 }
  0xff   : > { %v445_v1 = vrot.slane %v444_v63, 2  ;;  %v477_v2 = vadd.f32 %v476_v0, %v475_v62 }
 0x101   : > { %v446_v3 = vadd.f32 %v445_v1, %v444_v63  ;;  %v478_v4 = vrot.slane %v477_v2, 2 }
 0x103   : > { %v447_v5 = vrot.slane %v446_v3, 1  ;;  %v479_v6 = vadd.f32 %v478_v4, %v477_v2 }
 0x105   : > { %v448_v8 = vadd.f32 %v447_v5, %v446_v3  ;;  %v480_v9 = vrot.slane %v479_v6, 1 }
 0x107   : > { %v449_v11 = vadd.f32 %v448_v8, %v427_v7  ;;  %v481_v12 = vadd.f32 %v480_v9, %v479_v6 }
 0x109   : > { %451 = vst.msk [vmem:[%s783_s7] sm:$0x1] %vm286_vm1, %v449_v11  ;;  %v482_v13 = vadd.f32 %v481_v12, %v452_v10 }
 0x10b   : > { %483 = vst.msk [vmem:[%s788_s10] sm:$0x1] %vm286_vm1, %v482_v13 }
 0x10c PF: > { %s16_s20 = sadd.s32 1, %s720_s20   ;;  %s855_s18 = smov %s716_s19 }
 0x10d   : > { %p13_p5 = scmp.ge.s32.totalorder %s16_s20, 4   ;;  %s856_s19 = smov %s858_s21 }
 0x10f   :  { %15 = sbr.rel (!%p13_p5) target bundleno = 2 (0x2), region = 90 }

// kernel: squeeze.5
= control target key start
LH: loop header
LB: loop body
LE: loop exit
PB: predicated region body
PF: predicated region fallthrough
CT: control target
= control target key end

     0   :  { %s66_s8 = smov 122   ;;  %vm7_vm0 = vcmask 15360   ;;  %s67_s11 = smov 124   ;;  %s117_s0 = inlined_call_operand.vmem [shape: f32[2,16], index: 0, kind: input, shape index: {}]   ;;  %s118_s1 = inlined_call_operand.vmem [shape: f32[2,8,2], index: 1, kind: output, shape index: {}]  }
   0x1   :  { %v4_v0 = vld [vmem:[%s117_s0] sm:$0x3]  ;;  %s65_s0 = smov 126   ;;  %s68_s12 = smov 120  }
   0x2   :  { %5 = vst [vmem:[#allocation0] sm:$0x3] %v4_v0  ;;  %s69_s13 = smov 118   ;;  %s70_s14 = smov 116  }
   0x3   :  { %s71_s15 = smov 114  }
   0x9   :  { %v9_v1 = vld [vmem:[#allocation0] sm:$0x3]  }
   0xa   :  { %v21_v2 = vld [vmem:[#allocation0] sm:$0x3]   ;;  %10 = vrot.lane.b32.xlu0 %v9_v1, %s65_s0 }
   0xb   :  { %22 = vrot.lane.b32.xlu1 %v21_v2, %s66_s8  ;;  %v15_v3 = vld [vmem:[#allocation0] sm:$0x3]  }
   0xc   :  { %v27_v4 = vld [vmem:[#allocation0] sm:$0x3]  }
   0xd   :  { %v6_v5 = vld [vmem:[#allocation0] sm:$0x3]  }
   0xe   :  { %8 = vst.msk [vmem:[%s118_s1] ss:$8 sm:$0x3] %vm7_vm0, %v6_v5   ;;  %16 = vrot.lane.b32.xlu0 %v15_v3, %s67_s11  ;;  %v33_v6 = vld [vmem:[#allocation0] sm:$0x3]  }
   0xf   :  { %28 = vrot.lane.b32.xlu1 %v27_v4, %s68_s12  ;;  %v39_v7 = vld [vmem:[#allocation0] sm:$0x3]  }
  0x10   :  { %v45_v8 = vld [vmem:[#allocation0] sm:$0x3]  }
  0x12   :  { %34 = vrot.lane.b32.xlu0 %v33_v6, %s69_s13 }
  0x13   :  { %40 = vrot.lane.b32.xlu1 %v39_v7, %s70_s14 }
  0x16   :  { %46 = vrot.lane.b32.xlu0 %v45_v8, %s71_s15 }
  0x7c   :  { %v11_v9 = vpop.permute.xlu0 %10  }
  0x7d   :  { %v23_v10 = vpop.permute.xlu1 %22   ;;  %51 = vst.msk [vmem:[%s118_s1 + $0x1] ss:$8 sm:$0x3] %vm7_vm0, %v11_v9  }
  0x7e   :  { %53 = vst.msk [vmem:[%s118_s1 + $0x3] ss:$8 sm:$0x3] %vm7_vm0, %v23_v10  }
  0x80   :  { %v17_v11 = vpop.permute.xlu0 %16  }
  0x81   :  { %v29_v12 = vpop.permute.xlu1 %28   ;;  %52 = vst.msk [vmem:[%s118_s1 + $0x2] ss:$8 sm:$0x3] %vm7_vm0, %v17_v11  }
  0x82   :  { %54 = vst.msk [vmem:[%s118_s1 + $0x4] ss:$8 sm:$0x3] %vm7_vm0, %v29_v12  }
  0x84   :  { %v35_v13 = vpop.permute.xlu0 %34  }
  0x85   :  { %v41_v14 = vpop.permute.xlu1 %40   ;;  %55 = vst.msk [vmem:[%s118_s1 + $0x5] ss:$8 sm:$0x3] %vm7_vm0, %v35_v13  }
  0x86   :  { %56 = vst.msk [vmem:[%s118_s1 + $0x6] ss:$8 sm:$0x3] %vm7_vm0, %v41_v14  }
  0x88   :  { %v47_v15 = vpop.permute.xlu0 %46  }
  0x89   :  { %57 = vst.msk [vmem:[%s118_s1 + $0x7] ss:$8 sm:$0x3] %vm7_vm0, %v47_v15  }

// kernel: unet_encoder_block.6
= control target key start
LH: loop header
LB: loop body
LE: loop exit
PB: predicated region body
PF: predicated region fallthrough
CT: control target
= control target key end

     0   :  { %s418_s12 = smov 0   ;;  %s420_s13 = smov 0   ;;  %s454_s0 = inlined_call_operand.vmem [shape: f32[2,8,128], index: 0, kind: input, shape index: {}]   ;;  %s455_s1 = inlined_call_operand.vmem [shape: f32[2,1,128], index: 1, kind: input, shape index: {}]   ;;  %s456_s2 = inlined_call_operand.vmem [shape: f32[2,1,128], index: 2, kind: input, shape index: {}]   ;;  %s457_s3 = inlined_call_operand.vmem [shape: bf16[2,8,128], index: 3, kind: output, shape index: {}]  }
   0x1   :  { %s422_s14 = smov 0  }
   0x2 LB: > { %s25_s15 = sadd.s32 1, %s392_s13  ;;  %p343_p0 = scmp.ge.s32.totalorder %s396_s14, 1  ;;  %s396_s14 = sphi %s422_s14, %s13_s14   ;;  %s392_s13 = sphi %s420_s13, %s459_s13   ;;  %s388_s12 = sphi %s418_s12, %s458_s12  }
   0x3   : > { %p27_p1 = scmp.ge.s32.totalorder %s25_s15, 2  ;;  %p171_p2 = scmp.lt.s32.totalorder %s396_s14, 3 }
   0x5   : > { %s461_s15 = smov (%p27_p1, %s25_s15), 0  ;;  %p172_p3 = pnand %p343_p0, %p171_p2 }
   0x6   : > { %p205_p4 = scmp.lt.s32.totalorder (!%p172_p3), %s388_s12, 1 }
   0x7   : > { %175 = sbr.rel (%p172_p3) target bundleno = 28 (0x1c), region = 32 }
   0xe   : > { %s463_s12 = smov (!%p205_p4, %s388_s12), 1 }
   0xf   : > { %s344_s16 = sshll.u32 %s463_s12, 3  ;;  %s214_s19 = scalar_lea.vmem %s455_s1, %s463_s12 }
  0x10   : > { %s211_s22 = scalar_lea.vmem %s454_s0, %s344_s16  ;;  %s217_s25 = scalar_lea.vmem %s456_s2, %s463_s12  ;;  %v346_v0 = vld [vmem:[%s214_s19] ss:$0 sm:$0xff] }
  0x11   : > { %v225_v1 = vld [vmem:[%s211_s22] sm:$0xff]  ;;  %s345_s26 = sshll.u32 %s463_s12, 2 }
  0x12   : > { %v347_v2 = vld [vmem:[%s217_s25] ss:$0 sm:$0xff]  ;;  %v233_v3 = vmul.f32 %v346_v0, %v225_v1  ;;  %s224_s29 = scalar_lea.vmem %s457_s3, %s345_s26 }
  0x14   : > { %v241_v4 = vadd.f32 %v347_v2, %v233_v3 }
  0x16   : > { %vm242_vm0 = vcmp.ge.f32.partialorder %v241_v4, 0.0  ;;  %v243_v5 = vmul.f32 0.01, %v241_v4 }
  0x18   : > { %v244_v6 = vsel %vm242_vm0, %v241_v4, %v243_v5 }
  0x19   : > { %v245_v7 = vpack.c.bf16 %v244_v6, %v244_v6 }
  0x1b   : > { %246 = vst [vmem:[%s224_s29] sm:$0xf] %v245_v7 }
  0x1c PF: > { %s13_s14 = sadd.s32 1, %s396_s14   ;;  %s458_s12 = smov %s392_s13 }
  0x1d   : > { %p10_p5 = scmp.ge.s32.totalorder %s13_s14, 4   ;;  %s459_s13 = smov %s461_s15 }
  0x1f   :  { %12 = sbr.rel (!%p10_p5) target bundleno = 2 (0x2), region = 68 }

// kernel: unet_encoder_block.9
= control target key start
LH: loop header
LB: loop body
LE: loop exit
PB: predicated region body
PF: predicated region fallthrough
CT: control target
= control target key end

     0   :  { %s9145_s0 = inlined_call_operand.vmem [shape: bf16[2,6,6,6,16], index: 0, kind: input, shape index: {}, may-alias: {0,1,2}]   ;;  %s9146_s1 = inlined_call_operand.vmem [shape: bf16[2,6,6,6,16], index: 1, kind: input, shape index: {}, may-alias: {0,1,2}]   ;;  %s9147_s2 = inlined_call_operand.vmem [shape: bf16[2,6,6,6,16], index: 2, kind: input, shape index: {}, may-alias: {0,1,2}]   ;;  %s9148_s3 = inlined_call_operand.vmem [shape: bf16[27,16,16], index: 3, kind: input, shape index: {}]   ;;  %s9149_s4 = inlined_call_operand.vmem [shape: f32[1,16], index: 4, kind: input, shape index: {}]   ;;  %s9150_s5 = inlined_call_operand.vmem [shape: f32[2,64,16], index: 5, kind: input, shape index: {}]   ;;  %s9151_s6 = inlined_call_operand.hbm [shape: f32[2,64,16], index: 6, kind: output, shape index: {}]  }
   0x1   :  { %9152 = sst [smem:[#allocation5_spill]] %s9145_s0 }
   0x2   :  { %11 = vsyncpa [#allocation3], 0 }
   0x3   :  { %13 = vsyncpa [#allocation3 + $0x1], 0  ;;  %s7942_s21 = smov 0   ;;  %s7944_s22 = smov 0  }
   0x4   :  { %s7946_s23 = smov 0   ;;  %s7948_s24 = smov 0  }
   0x5   :  { %s7950_s25 = smov 0   ;;  %s7952_s26 = smov 0  }
   0x6   :  { %s7954_s27 = smov 0   ;;  %s7956_s28 = smov 0  }
   0x7 LB: > { %s6272_s29 = sadd.s32 4294967295, %s7900_s28   ;;  %s6273_s30 = sadd.s32 4294967294, %s7900_s28   ;;  %s7900_s28 = sphi %s7956_s28, %s19_s28   ;;  %s7896_s27 = sphi %s7954_s27, %s9162_s27   ;;  %s7892_s26 = sphi %s7952_s26, %s9161_s26   ;;  %s7888_s25 = sphi %s7950_s25, %s9160_s25   ;;  %s7884_s24 = sphi %s7948_s24, %s9159_s24   ;;  %s7880_s23 = sphi %s7946_s23, %s9158_s23   ;;  %s7876_s22 = sphi %s7944_s22, %s9157_s22   ;;  %s7872_s21 = sphi %s7942_s21, %s9156_s21  }
   0x8   : > { %s28_s7 = sadd.s32 1, %s7892_s26  ;;  %s31_s8 = sadd.s32 1, %s7896_s27 }
   0x9   : > { %p29_p0 = scmp.ge.s32.totalorder %s28_s7, 4  ;;  %p208_p1 = scmp.ne.s32.totalorder %s7880_s23, %s7876_s22 }
   0xa   : > { %p209_p2 = scmp.eq.s32.totalorder %s6272_s29, 7  ;;  %p214_p5 = scmp.ne.s32.totalorder %s7876_s22, %s7872_s21 }
   0xb   : > { %s9164_s7 = smov (%p29_p0, %s28_s7), 0  ;;  %s9166_s8 = smov (!%p29_p0, %s31_s8), %s7896_s27 }
   0xc   : > { %s194_s9 = ssub.s32 %s7892_s26, %s9164_s7  ;;  %p7993_p3 = por %p209_p2, %p208_p1 }
   0xd   : > { %p33_p4 = scmp.ge.s32.totalorder %s9166_s8, 2  ;;  %p215_p6 = scmp.eq.s32.totalorder %s6273_s30, 7 }
   0xe   : > { %p6276_p7 = scmp.ge.s32.totalorder %s7900_s28, 1  ;;  %p292_p9 = scmp.lt.s32.totalorder %s7900_s28, 9 }
   0xf   : > { %s9168_s8 = smov (%p33_p4, %s9166_s8), 0  ;;  %p8002_p8 = por %p215_p6, %p214_p5 }
  0x10   : > { %s193_s12 = ssub.s32 %s7896_s27, %s9168_s8  ;;  %s198_s13 = sadd.s32 1, %s7880_s23 }
  0x11   : > { %s195_s14 = sor.u32 %s194_s9, %s193_s12  ;;  %p293_p10 = pnand %p6276_p7, %p292_p9 }
  0x12   : > { %p196_p11 = scmp.eq.s32.totalorder %s195_s14, 0  ;;  %v7676_v0 = vld [vmem:[%s9148_s3 + $0x8] sm:$0xff] (!%p293_p10)   ;;  %v7902_v1 = vmov (!%p293_p10), 0.0   ;;  %v7677_v2 = vld [vmem:[%s9148_s3] sm:$0xff] (!%p293_p10)   ;;  %vm7903_vm0 = vmmov (!%p293_p10), 0   ;;  %p355_p12 = scmp.lt.s32.totalorder (!%p293_p10), %s7888_s25, 1 }
  0x13   : > { %296 = sbr.rel (%p293_p10) target bundleno = 702 (0x2be), region = 44  ;;  %6949 = vmatprep.subr.bf16.mxu0 (!%p293_p10), %v7902_v1  ;;  %6955 = vmatprep.subr.bf16.mxu1 (!%p293_p10), %v7902_v1  ;;  %p357_p13 = scmp.lt.s32.totalorder (!%p293_p10), %s7884_s24, 5  ;;  %vm438_vm1 = vcmask (!%p293_p10), 130048   ;;  %v7680_v3 = vld [vmem:[%s9148_s3 + $0x18] sm:$0xff] (!%p293_p10)   ;;  %v7679_v8 = vld [vmem:[%s9148_s3 + $0x10] sm:$0xff] (!%p293_p10)   ;;  %v7683_v13 = vld [vmem:[%s9148_s3 + $0x28] sm:$0xff] (!%p293_p10)  }
  0x14   : > { %s8011_s15 = scalar_select %p196_p11, %s7880_s23, %s198_s13  }
  0x15   : > { %6950 = vmatpush3.bf16.msra.mxu0 (!%p293_p10), %v7676_v0  ;;  %6957 = vmatprep.mubr.msk.bf16.mxu1 (!%p293_p10), %vm7903_vm0, %v7902_v1  ;;  %s9155_s0 = sld [smem:[#allocation5_spill]] (!%p293_p10)  ;;  %v7682_v20 = vld [vmem:[%s9148_s3 + $0x20] sm:$0xff] (!%p293_p10)   ;;  %v7685_v21 = vld [vmem:[%s9148_s3 + $0x38] sm:$0xff] (!%p293_p10)   ;;  %v7684_v28 = vld [vmem:[%s9148_s3 + $0x30] sm:$0xff] (!%p293_p10)   ;;  %s352_s16 = sand.u32 (!%p293_p10), 1, %s7876_s22   ;;  %vm1954_vm2 = vcmask (!%p293_p10), 125952  }
  0x16   : > { %6956 = vmatpush3.bf16.msra.mxu1 (!%p293_p10), %v7677_v2  ;;  %6951 = vmatprep.mubr.msk.bf16.mxu0 (!%p293_p10), %vm7903_vm0, %v7902_v1  ;;  %v7688_v29 = vld [vmem:[%s9148_s3 + $0x48] sm:$0xff] (!%p293_p10)   ;;  %v7687_v31 = vld [vmem:[%s9148_s3 + $0x40] sm:$0xff] (!%p293_p10)   ;;  %v7691_v33 = vld [vmem:[%s9148_s3 + $0x58] sm:$0xff] (!%p293_p10)  }
  0x17   : > { %6961 = vmatprep.subr.bf16.mxu0 (!%p293_p10), %v7902_v1  ;;  %6967 = vmatprep.subr.bf16.mxu1 (!%p293_p10), %v7902_v1  ;;  %v7690_v38 = vld [vmem:[%s9148_s3 + $0x50] sm:$0xff] (!%p293_p10)   ;;  %v7693_v41 = vld [vmem:[%s9148_s3 + $0x68] sm:$0xff] (!%p293_p10)   ;;  %v7692_v47 = vld [vmem:[%s9148_s3 + $0x60] sm:$0xff] (!%p293_p10)  }
  0x18   : > { %v7696_v50 = vld [vmem:[%s9148_s3 + $0x78] sm:$0xff] (!%p293_p10)   ;;  %v7695_v55 = vld [vmem:[%s9148_s3 + $0x70] sm:$0xff] (!%p293_p10)   ;;  %v7699_v56 = vld [vmem:[%s9148_s3 + $0x88] sm:$0xff] (!%p293_p10)  }
  0x19   : > { %v7698_v62 = vld [vmem:[%s9148_s3 + $0x80] sm:$0xff] (!%p293_p10)   ;;  %v7701_v63 = vld [vmem:[%s9148_s3 + $0x98] sm:$0xff] (!%p293_p10)  }
  0x1a   : > { %s8028_s20 = scalar_select %p355_p12, %s7888_s25, 1 }
  0x1b   : > { %s358_s29 = scalar_select %p357_p13, %s7884_s24, 5 }
  0x1c   : > { %s8034_s30 = smul.u32 36, %s8028_s20 }
  0x1d   : > { %s7597_s9 = smul.u32 6, %s358_s29  ;;  %s375_s29 = sadd.s32 2, %s7884_s24 }
  0x1e   : > { %p378_p1 = scmp.lt.s32.totalorder %s375_s29, 5 }
  0x1f   : > { %s361_s12 = sadd.s32 %s8034_s30, %s7597_s9 }
  0x20   : > { %s6278_s13 = sshll.u32 %s361_s12, 2  ;;  %s364_s12 = sadd.s32 1, %s7884_s24 }
  0x21   : > { %s8043_s19 = scalar_lea.vmem %s9155_s0, %s6278_s13  ;;  %p367_p0 = scmp.lt.s32.totalorder %s364_s12, 5 }
  0x22   : > { %v398_v4 = vld [vmem:[%s8043_s19] sm:$0x7]  ;;  %v8054_v9 = vld [vmem:[%s8043_s19 + $0x8] sm:$0x7]  ;;  %v8058_v11 = vld [vmem:[%s8043_s19 + $0x4] sm:$0x7] }
  0x23   : > { %v6286_v5 = vcombine.low %v398_v4, %v398_v4  ;;  %6958 = vmatmul.mubr.msk.bf16.vlgmr.msra.gmra.mrb[0].mxu1 %vm438_vm1, %v398_v4  ;;  %v8068_v14 = vcombine.low %v8058_v11, %v8058_v11  ;;  %v6314_v15 = vcombine.low %v8054_v9, %v8054_v9  ;;  %s9170_s12 = smov (!%p367_p0, %s364_s12), 5  ;;  %s9172_s29 = smov (!%p378_p1, %s375_s29), 5 }
  0x24   : > { %6968 = vmatpush3.bf16.msra.mxu1 %v7680_v3  ;;  %6969 = vmatprep.mubr.msk.bf16.mxu1 %vm7903_vm0, %v7902_v1  ;;  %s7599_s9 = smul.u32 6, %s9170_s12  ;;  %v7700_v3 = vld [vmem:[%s9148_s3 + $0x90] sm:$0xff]  }
  0x25   : > { %v426_v6 = vshrl.u32 %v6286_v5, 16  ;;  %v428_v7 = vshll.u32 %v6286_v5, 16  ;;  %6979 = vmatprep.subr.bf16.mxu1 %v7902_v1  ;;  %v534_v16 = vrot.slane %v6286_v5, 1  ;;  %v647_v17 = vshll.u32 %v8068_v14, 16  ;;  %s7600_s17 = smul.u32 6, %s9172_s29 }
  0x26   : > { %v704_v18 = vrot.slane %v8068_v14, 1  ;;  %v817_v19 = vshll.u32 %v6314_v15, 16  ;;  %v645_v22 = vshrl.u32 %v8068_v14, 16  ;;  %v815_v23 = vshrl.u32 %v6314_v15, 16  ;;  %s371_s12 = sadd.s32 %s7599_s9, %s8034_s30  ;;  %v7718_v14 = vld [vmem:[%s9148_s3 + $0x30] sm:$0xff]  }
  0x27   : > { %v430_v10 = vrot.slane %v428_v7, 1  ;;  %v649_v24 = vrot.slane %v647_v17, 1  ;;  %s6279_s18 = sshll.u32 %s371_s12, 2  ;;  %v8144_v37 = vrot.slane %v6314_v15, 1  ;;  %s382_s14 = sadd.s32 %s7600_s17, %s8034_s30 }
  0x28   : > { %v819_v25 = vrot.slane %v817_v19, 1  ;;  %s8118_s13 = scalar_lea.vmem %s9146_s1, %s6279_s18  ;;  %s6280_s0 = sshll.u32 %s382_s14, 2 }
  0x29   : > { %v431_v12 = vor.u32 %v430_v10, %v426_v6  ;;  %v8098_v26 = vor.u32 %v649_v24, %v645_v22  ;;  %v404_v30 = vld [vmem:[%s8118_s13] sm:$0x7]  ;;  %v8129_v32 = vld [vmem:[%s8118_s13 + $0x4] sm:$0x7]  ;;  %v8165_v46 = vld [vmem:[%s8118_s13 + $0x8] sm:$0x7]  ;;  %s8181_s12 = scalar_lea.vmem %s9147_s2, %s6280_s0 }
  0x2a   : > { %v8100_v27 = vor.u32 %v819_v25, %v815_v23  ;;  %v6327_v34 = vcombine.low %v404_v30, %v404_v30  ;;  %v8139_v35 = vcombine.low %v8129_v32, %v8129_v32  ;;  %v6353_v51 = vcombine.low %v8165_v46, %v8165_v46  ;;  %v410_v52 = vld [vmem:[%s8181_s12] sm:$0x7]  ;;  %v7704_v6 = vld [vmem:[%s9148_s3 + $0xa8] sm:$0xff]   ;;  %v8245_v7 = vld [vmem:[%s8181_s12 + $0x4] sm:$0x7]  ;;  %s8794_s14 = sshll.u32 %s7884_s24, 1 }
  0x2b   : > { %6952 = vmatmul.mubr.msk.bf16.vlgmr.msra.gmra.mrb[0].mxu0 %vm438_vm1, %v431_v12  ;;  %6970 = vmatmul.mubr.msk.bf16.vlgmr.msra.gmra.mrb[4].mxu1 %vm438_vm1, %v8058_v11  ;;  %v6366_v57 = vcombine.low %v410_v52, %v410_v52  ;;  %v7703_v10 = vld [vmem:[%s9148_s3 + $0xa0] sm:$0xff]   ;;  %v7707_v12 = vld [vmem:[%s9148_s3 + $0xb8] sm:$0xff]   ;;  %v7709_v22 = vld [vmem:[%s9148_s3 + $0xc8] sm:$0xff]   ;;  %p389_p2 = scmp.lt.s32.totalorder %s8794_s14, 7  ;;  %s6282_s18 = sshll.u32 %s8028_s20, 3 }
  0x2c   : > { %6962 = vmatpush3.bf16.msra.mxu0 %v7679_v8  ;;  %6963 = vmatprep.mubr.msk.bf16.mxu0 %vm7903_vm0, %v7902_v1  ;;  %v987_v36 = vshll.u32 %v6327_v34, 16  ;;  %v1044_v39 = vrot.slane %v6327_v34, 1  ;;  %v1157_v40 = vshll.u32 %v8139_v35, 16  ;;  %v985_v42 = vshrl.u32 %v6327_v34, 16  ;;  %v8248_v8 = vld [vmem:[%s8181_s12 + $0x8] sm:$0x7] }
  0x2d   : > { %6973 = vmatprep.subr.bf16.mxu0 %v7902_v1  ;;  %6980 = vmatpush3.bf16.msra.mxu1 %v7683_v13  ;;  %v1155_v43 = vshrl.u32 %v8139_v35, 16  ;;  %v1327_v53 = vshll.u32 %v6353_v51, 16  ;;  %v1214_v54 = vrot.slane %v8139_v35, 1  ;;  %v8206_v58 = vrot.slane %v6353_v51, 1  ;;  %v7711_v34 = vld [vmem:[%s9148_s3 + $0xd0] sm:$0xff]   ;;  %s390_s17 = scalar_select %p389_p2, %s8794_s14, 7 }
  0x2e   : > { %6981 = vmatprep.mubr.msk.bf16.mxu1 %vm7903_vm0, %v7902_v1  ;;  %6991 = vmatprep.subr.bf16.mxu1 %v7902_v1  ;;  %v989_v44 = vrot.slane %v987_v36, 1  ;;  %v1159_v45 = vrot.slane %v1157_v40, 1  ;;  %v1325_v59 = vshrl.u32 %v6353_v51, 16  ;;  %v1497_v61 = vshll.u32 %v6366_v57, 16  ;;  %v7714_v36 = vld [vmem:[%s9148_s3 + $0x10] sm:$0xff]   ;;  %v7715_v40 = vld [vmem:[%s9148_s3 + $0x18] sm:$0xff]  }
  0x2f   : > { %v1329_v60 = vrot.slane %v1327_v53, 1  ;;  %v1495_v0 = vshrl.u32 %v6366_v57, 16  ;;  %v8262_v13 = vcombine.low %v8245_v7, %v8245_v7  ;;  %v6392_v15 = vcombine.low %v8248_v8, %v8248_v8  ;;  %v7722_v51 = vld [vmem:[%s9148_s3 + $0x48] sm:$0xff]   ;;  %v7724_v53 = vld [vmem:[%s9148_s3 + $0x58] sm:$0xff]   ;;  %s392_s9 = sadd.s32 %s6282_s18, %s390_s17  ;;  %s6277_s20 = sshll.u32 %s352_s16, 4 }
  0x30   : > { %v990_v48 = vor.u32 %v989_v44, %v985_v42  ;;  %v8173_v49 = vor.u32 %v1159_v45, %v1155_v43  ;;  %v1499_v2 = vrot.slane %v1497_v61, 1  ;;  %v1554_v17 = vrot.slane %v6366_v57, 1  ;;  %v7720_v44 = vld [vmem:[%s9148_s3 + $0x38] sm:$0xff]   ;;  %v7723_v45 = vld [vmem:[%s9148_s3 + $0x50] sm:$0xff]   ;;  %s6283_s30 = sshll.u32 %s392_s9, 3  ;;  %s8866_s9 = scalar_lea.vmem [#allocation2], %s6277_s20 }
  0x31   : > { %v8234_v4 = vor.u32 %v1329_v60, %v1325_v59  ;;  %v1724_v19 = vrot.slane %v8262_v13, 1  ;;  %v1665_v23 = vshrl.u32 %v8262_v13, 16  ;;  %v1835_v25 = vshrl.u32 %v6392_v15, 16  ;;  %v7729_v59 = vld [vmem:[%s9148_s3 + $0x80] sm:$0xff]   ;;  %s8837_s29 = scalar_lea.vmem %s9150_s5, %s6283_s30  ;;  %s6729_s24 = sshll.u32 %s7888_s25, 3 }
  0x32   : > { %v1500_v5 = vor.u32 %v1499_v2, %v1495_v0  ;;  %v7734_v0 = vld [vmem:[%s9148_s3 + $0xa0] sm:$0xff]   ;;  %s6124_s20 = sadd.s32 %s6729_s24, %s8794_s14  ;;  %s6127_s0 = sshll.u32 %s8866_s9, 4  ;;  %s9087_s0 = int_to_ptr.vmem [resolvable:$true] %s6127_s0 }
  0x33   : > { %6964 = vmatmul.mubr.msk.bf16.vlgmr.msra.gmra.mrb[4].mxu0 %vm438_vm1, %v534_v16  ;;  %6982 = vmatmul.mubr.msk.bf16.vlgmr.msra.gmra.mrb[8].mxu1 %vm438_vm1, %v704_v18  ;;  %v1667_v16 = vshll.u32 %v8262_v13, 16  ;;  %v7741_v13 = vld [vmem:[%s9148_s3 + $0xd0] sm:$0xff]  }
  0x34   : > { %6974 = vmatpush3.bf16.msra.mxu0 %v7682_v20  ;;  %6975 = vmatprep.mubr.msk.bf16.mxu0 %vm7903_vm0, %v7902_v1  ;;  %v1837_v20 = vshll.u32 %v6392_v15, 16 }
  0x35   : > { %6985 = vmatprep.subr.bf16.mxu0 %v7902_v1  ;;  %6992 = vmatpush3.bf16.msra.mxu1 %v7685_v21  ;;  %v7706_v21 = vld [vmem:[%s9148_s3 + $0xb0] sm:$0xff]   ;;  %v1669_v24 = vrot.slane %v1667_v16, 1 }
  0x36   : > { %6993 = vmatprep.mubr.msk.bf16.mxu1 %vm7903_vm0, %v7902_v1  ;;  %7003 = vmatprep.subr.bf16.mxu1 %v7902_v1 }
  0x3b   : > { %6976 = vmatmul.mubr.msk.bf16.vlgmr.msra.gmra.mrb[8].mxu0 %vm438_vm1, %v8098_v26  ;;  %6994 = vmatmul.mubr.msk.bf16.vlgmr.msra.gmra.mrb[12].mxu1 %vm438_vm1, %v8100_v27 }
  0x3c   : > { %6986 = vmatpush3.bf16.msra.mxu0 %v7684_v28  ;;  %6987 = vmatprep.mubr.msk.bf16.mxu0 %vm7903_vm0, %v7902_v1  ;;  %v1839_v28 = vrot.slane %v1837_v20, 1  ;;  %v7743_v20 = vld [vmem:[%s9148_s3] sm:$0xff]  }
  0x3d   : > { %6997 = vmatprep.subr.bf16.mxu0 %v7902_v1  ;;  %7004 = vmatpush3.bf16.msra.mxu1 %v7688_v29  ;;  %v8294_v29 = vor.u32 %v1669_v24, %v1665_v23 }
  0x3e   : > { %7005 = vmatprep.mubr.msk.bf16.mxu1 %vm7903_vm0, %v7902_v1  ;;  %7015 = vmatprep.subr.bf16.mxu1 %v7902_v1 }
  0x43   : > { %6988 = vmatmul.mubr.msk.bf16.vlgmr.msra.gmra.mrb[12].mxu0 %vm438_vm1, %v8054_v9  ;;  %7006 = vmatmul.mubr.msk.bf16.vlgmr.msra.gmra.mrb[16].mxu1 %vm438_vm1, %v404_v30  ;;  %v8296_v30 = vor.u32 %v1839_v28, %v1835_v25  ;;  %v7742_v28 = vld [vmem:[%s9148_s3 + $0x8] sm:$0xff]  }
  0x44   : > { %6998 = vmatpush3.bf16.msra.mxu0 %v7687_v31  ;;  %6999 = vmatprep.mubr.msk.bf16.mxu0 %vm7903_vm0, %v7902_v1  ;;  %v7708_v31 = vld [vmem:[%s9148_s3 + $0xc0] sm:$0xff]  }
  0x45   : > { %7009 = vmatprep.subr.bf16.mxu0 %v7902_v1  ;;  %7016 = vmatpush3.bf16.msra.mxu1 %v7691_v33  ;;  %v7712_v33 = vld [vmem:[%s9148_s3 + $0x8] sm:$0xff]  }
  0x46   : > { %7017 = vmatprep.mubr.msk.bf16.mxu1 %vm7903_vm0, %v7902_v1  ;;  %7027 = vmatprep.subr.bf16.mxu1 %v7902_v1 }
  0x4b   : > { %7000 = vmatmul.mubr.msk.bf16.vlgmr.msra.gmra.mrb[16].mxu0 %vm438_vm1, %v8144_v37  ;;  %7018 = vmatmul.mubr.msk.bf16.vlgmr.msra.gmra.mrb[20].mxu1 %vm438_vm1, %v1044_v39  ;;  %v7713_v39 = vld [vmem:[%s9148_s3] sm:$0xff]  }
  0x4c   : > { %7010 = vmatpush3.bf16.msra.mxu0 %v7690_v38  ;;  %7011 = vmatprep.mubr.msk.bf16.mxu0 %vm7903_vm0, %v7902_v1  ;;  %v8330_v38 = vrot.slane %v6392_v15, 1 }
  0x4d   : > { %7021 = vmatprep.subr.bf16.mxu0 %v7902_v1  ;;  %7028 = vmatpush3.bf16.msra.mxu1 %v7693_v41  ;;  %v7721_v41 = vld [vmem:[%s9148_s3 + $0x40] sm:$0xff]  }
  0x4e   : > { %7029 = vmatprep.mubr.msk.bf16.mxu1 %vm7903_vm0, %v7902_v1  ;;  %7039 = vmatprep.subr.bf16.mxu1 %v7902_v1 }
  0x53   : > { %7012 = vmatmul.mubr.msk.bf16.vlgmr.msra.gmra.mrb[20].mxu0 %vm438_vm1, %v990_v48  ;;  %7030 = vmatmul.mubr.msk.bf16.vlgmr.msra.gmra.mrb[24].mxu1 %vm438_vm1, %v8173_v49 }
  0x54   : > { %7022 = vmatpush3.bf16.msra.mxu0 %v7692_v47  ;;  %7023 = vmatprep.mubr.msk.bf16.mxu0 %vm7903_vm0, %v7902_v1 }
  0x55   : > { %7033 = vmatprep.subr.bf16.mxu0 %v7902_v1  ;;  %7040 = vmatpush3.bf16.msra.mxu1 %v7696_v50 }
  0x56   : > { %7041 = vmatprep.mubr.msk.bf16.mxu1 %vm7903_vm0, %v7902_v1  ;;  %7051 = vmatprep.subr.bf16.mxu1 %v7902_v1 }
  0x5b   : > { %7024 = vmatmul.mubr.msk.bf16.vlgmr.msra.gmra.mrb[24].mxu0 %vm438_vm1, %v8129_v32  ;;  %7042 = vmatmul.mubr.msk.bf16.vlgmr.msra.gmra.mrb[28].mxu1 %vm438_vm1, %v8165_v46 }
  0x5c   : > { %7034 = vmatpush3.bf16.msra.mxu0 %v7695_v55  ;;  %7035 = vmatprep.mubr.msk.bf16.mxu0 %vm7903_vm0, %v7902_v1  ;;  %v8426_v55 = vld [vmem:[%s8118_s13 + $0xc] sm:$0x7] }
  0x5d   : > { %7045 = vmatprep.subr.bf16.mxu0 %v7902_v1  ;;  %7052 = vmatpush3.bf16.msra.mxu1 %v7699_v56  ;;  %v6465_v56 = vcombine.low %v8426_v55, %v8426_v55 }
  0x5e   : > { %7053 = vmatprep.mubr.msk.bf16.mxu1 %vm7903_vm0, %v7902_v1  ;;  %7063 = vmatprep.subr.bf16.mxu1 %v7902_v1 }
  0x5f   : > { %v2769_v57 = vshll.u32 %v6465_v56, 16  ;;  %v2767_v60 = vshrl.u32 %v6465_v56, 16  ;;  %v8494_v2 = vrot.slane %v6465_v56, 1 }
  0x61   : > { %v2771_v61 = vrot.slane %v2769_v57, 1 }
  0x63   : > { %7036 = vmatmul.mubr.msk.bf16.vlgmr.msra.gmra.mrb[28].mxu0 %vm438_vm1, %v1214_v54  ;;  %7054 = vmatmul.mubr.msk.bf16.vlgmr.msra.gmra.mrb[32].mxu1 %vm438_vm1, %v8206_v58  ;;  %v8460_v35 = vor.u32 %v2771_v61, %v2767_v60 }
  0x64   : > { %7046 = vmatpush3.bf16.msra.mxu0 %v7698_v62  ;;  %7047 = vmatprep.mubr.msk.bf16.mxu0 %vm7903_vm0, %v7902_v1  ;;  %v7732_v62 = vld [vmem:[%s9148_s3 + $0x90] sm:$0xff]  }
  0x65   : > { %7057 = vmatprep.subr.bf16.mxu0 %v7902_v1  ;;  %7064 = vmatpush3.bf16.msra.mxu1 %v7701_v63  ;;  %v7731_v63 = vld [vmem:[%s9148_s3 + $0x88] sm:$0xff]  }
  0x66   : > { %7065 = vmatprep.mubr.msk.bf16.mxu1 %vm7903_vm0, %v7902_v1  ;;  %7075 = vmatprep.subr.bf16.mxu1 %v7902_v1 }
  0x6b   : > { %7048 = vmatmul.mubr.msk.bf16.vlgmr.msra.gmra.mrb[32].mxu0 %vm438_vm1, %v8234_v4  ;;  %7066 = vmatmul.mubr.msk.bf16.vlgmr.msra.gmra.mrb[36].mxu1 %vm438_vm1, %v1500_v5  ;;  %v7736_v5 = vld [vmem:[%s9148_s3 + $0xb0] sm:$0xff]  }
  0x6c   : > { %7058 = vmatpush3.bf16.msra.mxu0 %v7700_v3  ;;  %7059 = vmatprep.mubr.msk.bf16.mxu0 %vm7903_vm0, %v7902_v1  ;;  %v7733_v3 = vld [vmem:[%s9148_s3 + $0x98] sm:$0xff]  }
  0x6d   : > { %7069 = vmatprep.subr.bf16.mxu0 %v7902_v1  ;;  %7076 = vmatpush3.bf16.msra.mxu1 %v7704_v6  ;;  %v7735_v6 = vld [vmem:[%s9148_s3 + $0xa8] sm:$0xff]  }
  0x6e   : > { %7077 = vmatprep.mubr.msk.bf16.mxu1 %vm7903_vm0, %v7902_v1  ;;  %7087 = vmatprep.subr.bf16.mxu1 %v7902_v1 }
  0x73   : > { %7060 = vmatmul.mubr.msk.bf16.vlgmr.msra.gmra.mrb[36].mxu0 %vm438_vm1, %v410_v52  ;;  %7078 = vmatmul.mubr.msk.bf16.vlgmr.msra.gmra.mrb[40].mxu1 %vm438_vm1, %v8245_v7  ;;  %v7725_v52 = vld [vmem:[%s9148_s3 + $0x60] sm:$0xff]  }
  0x74   : > { %7070 = vmatpush3.bf16.msra.mxu0 %v7703_v10  ;;  %7071 = vmatprep.mubr.msk.bf16.mxu0 %vm7903_vm0, %v7902_v1  ;;  %v7737_v10 = vld [vmem:[%s9148_s3 + $0xb8] sm:$0xff]  }
  0x75   : > { %7081 = vmatprep.subr.bf16.mxu0 %v7902_v1  ;;  %7088 = vmatpush3.bf16.msra.mxu1 %v7707_v12  ;;  %v8533_v12 = vld [vmem:[%s8181_s12 + $0xc] sm:$0x7] }
  0x76   : > { %7089 = vmatprep.mubr.msk.bf16.mxu1 %vm7903_vm0, %v7902_v1  ;;  %7099 = vmatprep.subr.bf16.mxu1 %v7902_v1  ;;  %v6502_v15 = vcombine.low %v8533_v12, %v8533_v12 }
  0x78   : > { %v3230_v16 = vshll.u32 %v6502_v15, 16 }
  0x7b   : > { %7072 = vmatmul.mubr.msk.bf16.vlgmr.msra.gmra.mrb[40].mxu0 %vm438_vm1, %v1554_v17  ;;  %7090 = vmatmul.mubr.msk.bf16.vlgmr.msra.gmra.mrb[44].mxu1 %vm438_vm1, %v1724_v19  ;;  %v8550_v17 = vrot.slane %v6502_v15, 1 }
  0x7c   : > { %7082 = vmatpush3.bf16.msra.mxu0 %v7706_v21  ;;  %7083 = vmatprep.mubr.msk.bf16.mxu0 %vm7903_vm0, %v7902_v1  ;;  %v3228_v21 = vshrl.u32 %v6502_v15, 16  ;;  %v7748_v15 = vld [vmem:[%s9148_s3 + $0x30] sm:$0xff]  }
  0x7d   : > { %7093 = vmatprep.subr.bf16.mxu0 %v7902_v1  ;;  %7100 = vmatpush3.bf16.msra.mxu1 %v7709_v22  ;;  %v3232_v22 = vrot.slane %v3230_v16, 1 }
  0x7e   : > { %7101 = vmatprep.mubr.msk.bf16.mxu1 %vm7903_vm0, %v7902_v1  ;;  %7111 = vmatprep.subr.bf16.mxu1 %v7902_v1 }
  0x7f   : > { %v8568_v24 = vor.u32 %v3232_v22, %v3228_v21  ;;  %v7752_v22 = vld [vmem:[%s9148_s3 + $0x48] sm:$0xff]  }
  0x83   : > { %7084 = vmatmul.mubr.msk.bf16.vlgmr.msra.gmra.mrb[44].mxu0 %vm438_vm1, %v8294_v29  ;;  %7102 = vmatmul.mubr.msk.bf16.vlgmr.msra.gmra.mrb[48].mxu1 %vm438_vm1, %v8296_v30 }
  0x84   : > { %7094 = vmatpush3.bf16.msra.mxu0 %v7708_v31  ;;  %7095 = vmatprep.mubr.msk.bf16.mxu0 %vm7903_vm0, %v7902_v1 }
  0x85   : > { %7105 = vmatprep.subr.bf16.mxu0 %v7902_v1  ;;  %7112 = vmatpush3.bf16.msra.mxu1 %v7712_v33  ;;  %v7745_v33 = vld [vmem:[%s9148_s3 + $0x18] sm:$0xff]  }
  0x86   : > { %7113 = vmatprep.mubr.msk.bf16.mxu1 %vm7903_vm0, %v7902_v1  ;;  %7123 = vmatprep.subr.bf16.mxu1 %v7902_v1 }
  0x8b   : > { %7096 = vmatmul.mubr.msk.bf16.vlgmr.msra.gmra.mrb[48].mxu0 %vm438_vm1, %v8248_v8  ;;  %7114 = vmatmul.mubr.msk.bf16.vlgmr.msra.gmra.mrb[52].mxu1 %vm438_vm1, %v8098_v26  ;;  %v7716_v26 = vld [vmem:[%s9148_s3 + $0x20] sm:$0xff]  }
  0x8c   : > { %7106 = vmatpush3.bf16.msra.mxu0 %v7711_v34  ;;  %7107 = vmatprep.mubr.msk.bf16.mxu0 %vm7903_vm0, %v7902_v1  ;;  %v7802_v34 = vld [vmem:[%s8043_s19 + $0x8] sm:$0x7] }
  0x8d   : > { %7117 = vmatprep.subr.bf16.mxu0 %v7902_v1  ;;  %7124 = vmatpush3.bf16.msra.mxu1 %v7714_v36 }
  0x8e   : > { %7125 = vmatprep.mubr.msk.bf16.mxu1 %vm7903_vm0, %v7902_v1  ;;  %7135 = vmatprep.subr.bf16.mxu1 %v7902_v1 }
  0x93   : > { %7108 = vmatmul.mubr.msk.bf16.vlgmr.msra.gmra.mrb[52].mxu0 %vm438_vm1, %v8330_v38  ;;  %7126 = vmatmul.mubr.msk.bf16.vlgmr.msra.gmra.mrb[56].mxu1 %vm438_vm1, %v704_v18  ;;  %v7717_v18 = vld [vmem:[%s9148_s3 + $0x28] sm:$0xff]  }
  0x94   : > { %7118 = vmatpush3.bf16.msra.mxu0 %v7713_v39  ;;  %7119 = vmatprep.mubr.msk.bf16.mxu0 %vm7903_vm0, %v7902_v1 }
  0x95   : > { %7129 = vmatprep.subr.bf16.mxu0 %v7902_v1  ;;  %7136 = vmatpush3.bf16.msra.mxu1 %v7716_v26 }
  0x96   : > { %7137 = vmatprep.mubr.msk.bf16.mxu1 %vm7903_vm0, %v7902_v1  ;;  %7147 = vmatprep.subr.bf16.mxu1 %v7902_v1 }
  0x9b   : > { %7120 = vmatmul.mubr.msk.bf16.vlgmr.msra.gmra.mrb[56].mxu0 %vm438_vm1, %v8058_v11  ;;  %7138 = vmatmul.mubr.msk.bf16.vlgmr.msra.gmra.mrb[60].mxu1 %vm438_vm1, %v8100_v27  ;;  %v8369_v11 = vld [vmem:[%s8043_s19 + $0xc] sm:$0x7] }
  0x9c   : > { %7130 = vmatpush3.bf16.msra.mxu0 %v7715_v40  ;;  %7131 = vmatprep.mubr.msk.bf16.mxu0 %vm7903_vm0, %v7902_v1  ;;  %v6428_v42 = vcombine.low %v8369_v11, %v8369_v11 }
  0x9d   : > { %7141 = vmatprep.subr.bf16.mxu0 %v7902_v1  ;;  %7148 = vmatpush3.bf16.msra.mxu1 %v7718_v14 }
  0x9e   : > { %7149 = vmatprep.mubr.msk.bf16.mxu1 %vm7903_vm0, %v7902_v1  ;;  %7159 = vmatprep.subr.bf16.mxu1 %v7902_v1  ;;  %v2308_v43 = vshll.u32 %v6428_v42, 16  ;;  %v2306_v47 = vshrl.u32 %v6428_v42, 16 }
  0xa0   : > { %v2310_v48 = vrot.slane %v2308_v43, 1  ;;  %v8590_v43 = vld [vmem:[%s8043_s19 + $0x10] sm:$0x7] }
  0xa2   : > { %v8404_v50 = vor.u32 %v2310_v48, %v2306_v47  ;;  %v7747_v47 = vld [vmem:[%s9148_s3 + $0x28] sm:$0xff]   ;;  %v8601_v48 = vcombine.low %v8590_v43, %v8590_v43 }
  0xa3   : > { %7132 = vmatmul.mubr.msk.bf16.vlgmr.msra.gmra.mrb[60].mxu0 %vm438_vm1, %v8054_v9  ;;  %7150 = vmatmul.mubr.msk.bf16.vlgmr.msra.gmra.mrb[64].mxu1 %vm438_vm1, %v8369_v11  ;;  %v8386_v9 = vrot.slane %v6428_v42, 1 }
  0xa4   : > { %7142 = vmatpush3.bf16.msra.mxu0 %v7717_v18  ;;  %7143 = vmatprep.mubr.msk.bf16.mxu0 %vm7903_vm0, %v7902_v1  ;;  %v3693_v56 = vshll.u32 %v8601_v48, 16 }
  0xa5   : > { %7153 = vmatprep.subr.bf16.mxu0 %v7902_v1  ;;  %7160 = vmatpush3.bf16.msra.mxu1 %v7721_v41  ;;  %v7744_v41 = vld [vmem:[%s9148_s3 + $0x10] sm:$0xff]  }
  0xa6   : > { %7161 = vmatprep.mubr.msk.bf16.mxu1 %vm7903_vm0, %v7902_v1  ;;  %7171 = vmatprep.subr.bf16.mxu1 %v7902_v1 }
  0xab   : > { %7144 = vmatmul.mubr.msk.bf16.vlgmr.msra.gmra.mrb[64].mxu0 %vm438_vm1, %v8144_v37  ;;  %7162 = vmatmul.mubr.msk.bf16.vlgmr.msra.gmra.mrb[68].mxu1 %vm438_vm1, %v8386_v9 }
  0xac   : > { %7154 = vmatpush3.bf16.msra.mxu0 %v7720_v44  ;;  %7155 = vmatprep.mubr.msk.bf16.mxu0 %vm7903_vm0, %v7902_v1 }
  0xad   : > { %7165 = vmatprep.subr.bf16.mxu0 %v7902_v1  ;;  %7172 = vmatpush3.bf16.msra.mxu1 %v7723_v45 }
  0xae   : > { %7173 = vmatprep.mubr.msk.bf16.mxu1 %vm7903_vm0, %v7902_v1  ;;  %7183 = vmatprep.subr.bf16.mxu1 %v7902_v1 }
  0xb3   : > { %7156 = vmatmul.mubr.msk.bf16.vlgmr.msra.gmra.mrb[68].mxu0 %vm438_vm1, %v8404_v50  ;;  %7174 = vmatmul.mubr.msk.bf16.vlgmr.msra.gmra.mrb[72].mxu1 %vm438_vm1, %v8173_v49  ;;  %v7727_v49 = vld [vmem:[%s9148_s3 + $0x70] sm:$0xff]  }
  0xb4   : > { %7166 = vmatpush3.bf16.msra.mxu0 %v7722_v51  ;;  %7167 = vmatprep.mubr.msk.bf16.mxu0 %vm7903_vm0, %v7902_v1 }
  0xb5   : > { %7177 = vmatprep.subr.bf16.mxu0 %v7902_v1  ;;  %7184 = vmatpush3.bf16.msra.mxu1 %v7725_v52 }
  0xb6   : > { %7185 = vmatprep.mubr.msk.bf16.mxu1 %vm7903_vm0, %v7902_v1  ;;  %7195 = vmatprep.subr.bf16.mxu1 %v7902_v1 }
  0xbb   : > { %7168 = vmatmul.mubr.msk.bf16.vlgmr.msra.gmra.mrb[72].mxu0 %vm438_vm1, %v8129_v32  ;;  %7186 = vmatmul.mubr.msk.bf16.vlgmr.msra.gmra.mrb[76].mxu1 %vm438_vm1, %v8165_v46  ;;  %v7726_v32 = vld [vmem:[%s9148_s3 + $0x68] sm:$0xff]  }
  0xbc   : > { %7178 = vmatpush3.bf16.msra.mxu0 %v7724_v53  ;;  %7179 = vmatprep.mubr.msk.bf16.mxu0 %vm7903_vm0, %v7902_v1 }
  0xbd   : > { %7189 = vmatprep.subr.bf16.mxu0 %v7902_v1  ;;  %7196 = vmatpush3.bf16.msra.mxu1 %v7727_v49 }
  0xbe   : > { %7197 = vmatprep.mubr.msk.bf16.mxu1 %vm7903_vm0, %v7902_v1  ;;  %7207 = vmatprep.subr.bf16.mxu1 %v7902_v1 }
  0xc3   : > { %7180 = vmatmul.mubr.msk.bf16.vlgmr.msra.gmra.mrb[76].mxu0 %vm438_vm1, %v1214_v54  ;;  %7198 = vmatmul.mubr.msk.bf16.vlgmr.msra.gmra.mrb[80].mxu1 %vm438_vm1, %v8206_v58  ;;  %v7728_v54 = vld [vmem:[%s9148_s3 + $0x78] sm:$0xff]  }
  0xc4   : > { %7190 = vmatpush3.bf16.msra.mxu0 %v7726_v32  ;;  %7191 = vmatprep.mubr.msk.bf16.mxu0 %vm7903_vm0, %v7902_v1  ;;  %v7746_v32 = vld [vmem:[%s9148_s3 + $0x20] sm:$0xff]  }
  0xc5   : > { %7201 = vmatprep.subr.bf16.mxu0 %v7902_v1  ;;  %7208 = vmatpush3.bf16.msra.mxu1 %v7729_v59 }
  0xc6   : > { %7209 = vmatprep.mubr.msk.bf16.mxu1 %vm7903_vm0, %v7902_v1  ;;  %7219 = vmatprep.subr.bf16.mxu1 %v7902_v1 }
  0xcb   : > { %7192 = vmatmul.mubr.msk.bf16.vlgmr.msra.gmra.mrb[80].mxu0 %vm438_vm1, %v8234_v4  ;;  %7210 = vmatmul.mubr.msk.bf16.vlgmr.msra.gmra.mrb[84].mxu1 %vm438_vm1, %v8460_v35 }
  0xcc   : > { %7202 = vmatpush3.bf16.msra.mxu0 %v7728_v54  ;;  %7203 = vmatprep.mubr.msk.bf16.mxu0 %vm7903_vm0, %v7902_v1 }
  0xcd   : > { %7213 = vmatprep.subr.bf16.mxu0 %v7902_v1  ;;  %7220 = vmatpush3.bf16.msra.mxu1 %v7732_v62  ;;  %v7749_v62 = vld [vmem:[%s9148_s3 + $0x38] sm:$0xff]  }
  0xce   : > { %7221 = vmatprep.mubr.msk.bf16.mxu1 %vm7903_vm0, %v7902_v1  ;;  %7231 = vmatprep.subr.bf16.mxu1 %v7902_v1 }
  0xd3   : > { %7204 = vmatmul.mubr.msk.bf16.vlgmr.msra.gmra.mrb[84].mxu0 %vm438_vm1, %v8426_v55  ;;  %7222 = vmatmul.mubr.msk.bf16.vlgmr.msra.gmra.mrb[88].mxu1 %vm438_vm1, %v8245_v7  ;;  %v7738_v7 = vld [vmem:[%s9148_s3 + $0xc0] sm:$0xff]  }
  0xd4   : > { %7214 = vmatpush3.bf16.msra.mxu0 %v7731_v63  ;;  %7215 = vmatprep.mubr.msk.bf16.mxu0 %vm7903_vm0, %v7902_v1  ;;  %v3691_v63 = vshrl.u32 %v8601_v48, 16 }
  0xd5   : > { %7225 = vmatprep.subr.bf16.mxu0 %v7902_v1  ;;  %7232 = vmatpush3.bf16.msra.mxu1 %v7734_v0  ;;  %v3695_v0 = vrot.slane %v3693_v56, 1  ;;  %v7756_v56 = vld [vmem:[%s9148_s3 + $0x68] sm:$0xff]  }
  0xd6   : > { %7233 = vmatprep.mubr.msk.bf16.mxu1 %vm7903_vm0, %v7902_v1  ;;  %7243 = vmatprep.subr.bf16.mxu1 %v7902_v1 }
  0xdb   : > { %7216 = vmatmul.mubr.msk.bf16.vlgmr.msra.gmra.mrb[88].mxu0 %vm438_vm1, %v8494_v2  ;;  %7234 = vmatmul.mubr.msk.bf16.vlgmr.msra.gmra.mrb[92].mxu1 %vm438_vm1, %v1724_v19  ;;  %v7740_v19 = vld [vmem:[%s9148_s3 + $0xc8] sm:$0xff]  }
  0xdc   : > { %7226 = vmatpush3.bf16.msra.mxu0 %v7733_v3  ;;  %7227 = vmatprep.mubr.msk.bf16.mxu0 %vm7903_vm0, %v7902_v1 }
  0xdd   : > { %7237 = vmatprep.subr.bf16.mxu0 %v7902_v1  ;;  %7244 = vmatpush3.bf16.msra.mxu1 %v7736_v5 }
  0xde   : > { %7245 = vmatprep.mubr.msk.bf16.mxu1 %vm7903_vm0, %v7902_v1  ;;  %7255 = vmatprep.subr.bf16.mxu1 %v7902_v1 }
  0xe3   : > { %7228 = vmatmul.mubr.msk.bf16.vlgmr.msra.gmra.mrb[92].mxu0 %vm438_vm1, %v8294_v29  ;;  %7246 = vmatmul.mubr.msk.bf16.vlgmr.msra.gmra.mrb[96].mxu1 %vm438_vm1, %v8296_v30 }
  0xe4   : > { %7238 = vmatpush3.bf16.msra.mxu0 %v7735_v6  ;;  %7239 = vmatprep.mubr.msk.bf16.mxu0 %vm7903_vm0, %v7902_v1 }
  0xe5   : > { %7249 = vmatprep.subr.bf16.mxu0 %v7902_v1  ;;  %7256 = vmatpush3.bf16.msra.mxu1 %v7738_v7 }
  0xe6   : > { %7257 = vmatprep.mubr.msk.bf16.mxu1 %vm7903_vm0, %v7902_v1  ;;  %7267 = vmatprep.subr.bf16.mxu1 %v7902_v1 }
  0xeb   : > { %7240 = vmatmul.mubr.msk.bf16.vlgmr.msra.gmra.mrb[96].mxu0 %vm438_vm1, %v8248_v8  ;;  %7258 = vmatmul.mubr.msk.bf16.vlgmr.msra.gmra.mrb[100].mxu1 %vm438_vm1, %v8533_v12 }
  0xec   : > { %7250 = vmatpush3.bf16.msra.mxu0 %v7737_v10  ;;  %7251 = vmatprep.mubr.msk.bf16.mxu0 %vm7903_vm0, %v7902_v1  ;;  %v8627_v10 = vor.u32 %v3695_v0, %v3691_v63 }
  0xed   : > { %7261 = vmatprep.subr.bf16.mxu0 %v7902_v1  ;;  %7268 = vmatpush3.bf16.msra.mxu1 %v7741_v13 }
  0xee   : > { %7269 = vmatprep.mubr.msk.bf16.mxu1 %vm7903_vm0, %v7902_v1  ;;  %7279 = vmatprep.subr.bf16.mxu1 %v7902_v1 }
  0xf3   : > { %7252 = vmatmul.mubr.msk.bf16.vlgmr.msra.gmra.mrb[100].mxu0 %vm438_vm1, %v8330_v38  ;;  %7270 = vmatmul.mubr.msk.bf16.vlgmr.msra.gmra.mrb[104].mxu1 %vm438_vm1, %v8550_v17 }
  0xf4   : > { %7262 = vmatpush3.bf16.msra.mxu0 %v7740_v19  ;;  %7263 = vmatprep.mubr.msk.bf16.mxu0 %vm7903_vm0, %v7902_v1 }
  0xf5   : > { %7273 = vmatprep.subr.bf16.mxu0 %v7902_v1  ;;  %7280 = vmatpush3.bf16.msra.mxu1 %v7743_v20 }
  0xf6   : > { %v525_v23 = vpop.f32.mrb[0].mxu1  ;;  %7281 = vmatprep.mubr.msk.bf16.mxu1 %vm7903_vm0, %v7902_v1  ;;  %7291 = vmatprep.subr.bf16.mxu1 %v7902_v1 }
  0xf7   : > { %v6959_v25 = vpop.f32.mrb[1].mxu1 }
  0xf8   : > { %v528_v29 = vpop.f32.mrb[2].mxu1 }
  0xf9   : > { %v6960_v31 = vpop.f32.mrb[3].mxu1 }
  0xfb   : > { %7264 = vmatmul.mubr.msk.bf16.vlgmr.msra.gmra.mrb[104].mxu0 %vm438_vm1, %v8568_v24  ;;  %7282 = vmatmul.mubr.msk.bf16.vlgmr.msra.gmra.mrb[108].mxu1 %vm438_vm1, %v7802_v34  ;;  %v7751_v34 = vld [vmem:[%s9148_s3 + $0x40] sm:$0xff]  }
  0xfc   : > { %7274 = vmatpush3.bf16.msra.mxu0 %v7742_v28  ;;  %7275 = vmatprep.mubr.msk.bf16.mxu0 %vm7903_vm0, %v7902_v1 }
  0xfd   : > { %7285 = vmatprep.subr.bf16.mxu0 %v7902_v1  ;;  %7292 = vmatpush3.bf16.msra.mxu1 %v7745_v33 }
  0xfe   : > { %v476_v36 = vpop.f32.mrb[0].mxu0  ;;  %v631_v39 = vpop.f32.mrb[4].mxu1  ;;  %7293 = vmatprep.mubr.msk.bf16.mxu1 %vm7903_vm0, %v7902_v1  ;;  %7303 = vmatprep.subr.bf16.mxu1 %v7902_v1 }
  0xff   : > { %v526_v26 = vadd.f32 %v525_v23, %v476_v36  ;;  %v6953_v40 = vpop.f32.mrb[1].mxu0  ;;  %v6971_v14 = vpop.f32.mrb[5].mxu1 }
 0x100   : > { %v479_v18 = vpop.f32.mrb[2].mxu0  ;;  %v634_v42 = vpop.f32.mrb[6].mxu1  ;;  %v7754_v14 = vld [vmem:[%s9148_s3 + $0x58] sm:$0xff]  }
 0x101   : > { %v6954_v44 = vpop.f32.mrb[3].mxu0  ;;  %v6972_v45 = vpop.f32.mrb[7].mxu1 }
 0x102   : > { %v3749_v45 = vrot.slane %v8601_v48, 1 }
 0x103   : > { %7276 = vmatmul.mubr.msk.bf16.vlgmr.msra.gmra.mrb[108].mxu0 %vm438_vm1, %v8100_v27  ;;  %7294 = vmatmul.mubr.msk.bf16.vlgmr.msra.gmra.mrb[112].mxu1 %vm438_vm1, %v8369_v11 }
 0x104   : > { %7286 = vmatpush3.bf16.msra.mxu0 %v7744_v41  ;;  %7287 = vmatprep.mubr.msk.bf16.mxu0 %vm7903_vm0, %v7902_v1 }
 0x105   : > { %7297 = vmatprep.subr.bf16.mxu0 %v7902_v1  ;;  %7304 = vmatpush3.bf16.msra.mxu1 %v7747_v47 }
 0x106   : > { %v578_v51 = vpop.f32.mrb[4].mxu0  ;;  %v748_v52 = vpop.f32.mrb[8].mxu1  ;;  %7305 = vmatprep.mubr.msk.bf16.mxu1 %vm7903_vm0, %v7902_v1  ;;  %7315 = vmatprep.subr.bf16.mxu1 %v7902_v1 }
 0x107   : > { %v584_v27 = vadd.f32 %v578_v51, %v526_v26  ;;  %v6965_v53 = vpop.f32.mrb[5].mxu0  ;;  %v6983_v49 = vpop.f32.mrb[9].mxu1  ;;  %v7753_v51 = vld [vmem:[%s9148_s3 + $0x50] sm:$0xff]  }
 0x108   : > { %v581_v57 = vpop.f32.mrb[6].mxu0  ;;  %v751_v59 = vpop.f32.mrb[10].mxu1 }
 0x109   : > { %v6966_v60 = vpop.f32.mrb[7].mxu0  ;;  %v637_v61 = vadd.f32 %v631_v39, %v584_v27  ;;  %v6984_v54 = vpop.f32.mrb[11].mxu1 }
 0x10b   : > { %7288 = vmatmul.mubr.msk.bf16.vlgmr.msra.gmra.mrb[112].mxu0 %vm438_vm1, %v8144_v37  ;;  %7306 = vmatmul.mubr.msk.bf16.vlgmr.msra.gmra.mrb[116].mxu1 %vm438_vm1, %v8386_v9 }
 0x10c   : > { %7298 = vmatpush3.bf16.msra.mxu0 %v7746_v32  ;;  %7299 = vmatprep.mubr.msk.bf16.mxu0 %vm7903_vm0, %v7902_v1 }
 0x10d   : > { %7309 = vmatprep.subr.bf16.mxu0 %v7902_v1  ;;  %7316 = vmatpush3.bf16.msra.mxu1 %v7749_v62 }
 0x10e   : > { %v694_v3 = vpop.f32.mrb[8].mxu0  ;;  %v864_v5 = vpop.f32.mrb[12].mxu1  ;;  %7317 = vmatprep.mubr.msk.bf16.mxu1 %vm7903_vm0, %v7902_v1  ;;  %7327 = vmatprep.subr.bf16.mxu1 %v7902_v1 }
 0x10f   : > { %v700_v37 = vadd.f32 %v694_v3, %v637_v61  ;;  %v6977_v6 = vpop.f32.mrb[9].mxu0  ;;  %v6995_v7 = vpop.f32.mrb[13].mxu1 }
 0x110   : > { %v697_v13 = vpop.f32.mrb[10].mxu0  ;;  %v867_v16 = vpop.f32.mrb[14].mxu1 }
 0x111   : > { %v6978_v19 = vpop.f32.mrb[11].mxu0  ;;  %v754_v20 = vadd.f32 %v748_v52, %v700_v37  ;;  %v6996_v21 = vpop.f32.mrb[15].mxu1  ;;  %v7757_v16 = vld [vmem:[%s9148_s3 + $0x70] sm:$0xff]  }
 0x113   : > { %7300 = vmatmul.mubr.msk.bf16.vlgmr.msra.gmra.mrb[116].mxu0 %vm438_vm1, %v8404_v50  ;;  %7318 = vmatmul.mubr.msk.bf16.vlgmr.msra.gmra.mrb[120].mxu1 %vm438_vm1, %v8627_v10 }
 0x114   : > { %7310 = vmatpush3.bf16.msra.mxu0 %v7748_v15  ;;  %7311 = vmatprep.mubr.msk.bf16.mxu0 %vm7903_vm0, %v7902_v1 }
 0x115   : > { %7321 = vmatprep.subr.bf16.mxu0 %v7902_v1  ;;  %7328 = vmatpush3.bf16.msra.mxu1 %v7752_v22 }
 0x116   : > { %v801_v23 = vpop.f32.mrb[12].mxu0  ;;  %v971_v25 = vpop.f32.mrb[16].mxu1  ;;  %7329 = vmatprep.mubr.msk.bf16.mxu1 %vm7903_vm0, %v7902_v1  ;;  %7339 = vmatprep.subr.bf16.mxu1 %v7902_v1 }
 0x117   : > { %v807_v28 = vadd.f32 %v801_v23, %v754_v20  ;;  %v6989_v29 = vpop.f32.mrb[13].mxu0  ;;  %v7007_v31 = vpop.f32.mrb[17].mxu1  ;;  %v8699_v20 = vld [vmem:[%s8118_s13 + $0x10] sm:$0x7] }
 0x118   : > { %v804_v33 = vpop.f32.mrb[14].mxu0  ;;  %v974_v36 = vpop.f32.mrb[18].mxu1 }
 0x119   : > { %v6990_v39 = vpop.f32.mrb[15].mxu0  ;;  %v870_v26 = vadd.f32 %v864_v5, %v807_v28  ;;  %v7008_v40 = vpop.f32.mrb[19].mxu1  ;;  %v7758_v5 = vld [vmem:[%s9148_s3 + $0x78] sm:$0xff]   ;;  %v8710_v28 = vcombine.low %v8699_v20, %v8699_v20 }
 0x11a   : > { %v7760_v40 = vld [vmem:[%s9148_s3 + $0x80] sm:$0xff]  }
 0x11b   : > { %7312 = vmatmul.mubr.msk.bf16.vlgmr.msra.gmra.mrb[120].mxu0 %vm438_vm1, %v8590_v43  ;;  %7330 = vmatmul.mubr.msk.bf16.vlgmr.msra.gmra.mrb[124].mxu1 %vm438_vm1, %v8165_v46  ;;  %v4210_v39 = vrot.slane %v8710_v28, 1 }
 0x11c   : > { %7322 = vmatpush3.bf16.msra.mxu0 %v7751_v34  ;;  %7323 = vmatprep.mubr.msk.bf16.mxu0 %vm7903_vm0, %v7902_v1  ;;  %v4154_v34 = vshll.u32 %v8710_v28, 16 }
 0x11d   : > { %7333 = vmatprep.subr.bf16.mxu0 %v7902_v1  ;;  %7340 = vmatpush3.bf16.msra.mxu1 %v7754_v14 }
 0x11e   : > { %v918_v18 = vpop.f32.mrb[16].mxu0  ;;  %v1088_v41 = vpop.f32.mrb[20].mxu1  ;;  %7341 = vmatprep.mubr.msk.bf16.mxu1 %vm7903_vm0, %v7902_v1  ;;  %7351 = vmatprep.subr.bf16.mxu1 %v7902_v1 }
 0x11f   : > { %v924_v42 = vadd.f32 %v918_v18, %v870_v26  ;;  %v7001_v44 = vpop.f32.mrb[17].mxu0  ;;  %v7019_v47 = vpop.f32.mrb[21].mxu1 }
 0x120   : > { %v921_v46 = vpop.f32.mrb[18].mxu0  ;;  %v1091_v52 = vpop.f32.mrb[22].mxu1  ;;  %v7763_v44 = vld [vmem:[%s9148_s3 + $0x98] sm:$0xff]   ;;  %v4152_v47 = vshrl.u32 %v8710_v28, 16 }
 0x121   : > { %v7002_v27 = vpop.f32.mrb[19].mxu0  ;;  %v977_v53 = vadd.f32 %v971_v25, %v924_v42  ;;  %v7020_v49 = vpop.f32.mrb[23].mxu1  ;;  %v7761_v25 = vld [vmem:[%s9148_s3 + $0x88] sm:$0xff]   ;;  %v4156_v46 = vrot.slane %v4154_v34, 1 }
 0x123   : > { %7324 = vmatmul.mubr.msk.bf16.vlgmr.msra.gmra.mrb[124].mxu0 %vm438_vm1, %v3749_v45  ;;  %7342 = vmatmul.mubr.msk.bf16.vlgmr.msra.gmra.mrb[128].mxu1 %vm438_vm1, %v8206_v58  ;;  %v7755_v58 = vld [vmem:[%s9148_s3 + $0x60] sm:$0xff]   ;;  %v8738_v49 = vor.u32 %v4156_v46, %v4152_v47 }
 0x124   : > { %7334 = vmatpush3.bf16.msra.mxu0 %v7753_v51  ;;  %7335 = vmatprep.mubr.msk.bf16.mxu0 %vm7903_vm0, %v7902_v1 }
 0x125   : > { %7345 = vmatprep.subr.bf16.mxu0 %v7902_v1  ;;  %7352 = vmatpush3.bf16.msra.mxu1 %v7756_v56 }
 0x126   : > { %v1034_v57 = vpop.f32.mrb[20].mxu0  ;;  %v1204_v32 = vpop.f32.mrb[24].mxu1  ;;  %7353 = vmatprep.mubr.msk.bf16.mxu1 %vm7903_vm0, %v7902_v1  ;;  %7363 = vmatprep.subr.bf16.mxu1 %v7902_v1 }
 0x127   : > { %v1040_v59 = vadd.f32 %v1034_v57, %v977_v53  ;;  %v7013_v60 = vpop.f32.mrb[21].mxu0  ;;  %v7031_v61 = vpop.f32.mrb[25].mxu1 }
 0x128   : > { %v1037_v54 = vpop.f32.mrb[22].mxu0  ;;  %v1207_v62 = vpop.f32.mrb[26].mxu1 }
 0x129   : > { %v7014_v63 = vpop.f32.mrb[23].mxu0  ;;  %v1094_v0 = vadd.f32 %v1088_v41, %v1040_v59  ;;  %v7032_v3 = vpop.f32.mrb[27].mxu1 }
 0x12b   : > { %7336 = vmatmul.mubr.msk.bf16.vlgmr.msra.gmra.mrb[128].mxu0 %vm438_vm1, %v8234_v4  ;;  %7354 = vmatmul.mubr.msk.bf16.vlgmr.msra.gmra.mrb[132].mxu1 %vm438_vm1, %v8460_v35 }
 0x12c   : > { %7346 = vmatpush3.bf16.msra.mxu0 %v7755_v58  ;;  %7347 = vmatprep.mubr.msk.bf16.mxu0 %vm7903_vm0, %v7902_v1  ;;  %v7765_v58 = vld [vmem:[%s9148_s3 + $0xa8] sm:$0xff]  }
 0x12d   : > { %7357 = vmatprep.subr.bf16.mxu0 %v7902_v1  ;;  %7364 = vmatpush3.bf16.msra.mxu1 %v7758_v5 }
 0x12e   : > { %v1141_v37 = vpop.f32.mrb[24].mxu0  ;;  %v1311_v6 = vpop.f32.mrb[28].mxu1  ;;  %7365 = vmatprep.mubr.msk.bf16.mxu1 %vm7903_vm0, %v7902_v1  ;;  %7375 = vmatprep.subr.bf16.mxu1 %v7902_v1 }
 0x12f   : > { %v1147_v7 = vadd.f32 %v1141_v37, %v1094_v0  ;;  %v7025_v4 = vpop.f32.mrb[25].mxu0  ;;  %v7043_v13 = vpop.f32.mrb[29].mxu1 }
 0x130   : > { %v1144_v15 = vpop.f32.mrb[26].mxu0  ;;  %v1314_v19 = vpop.f32.mrb[30].mxu1 }
 0x131   : > { %v7026_v21 = vpop.f32.mrb[27].mxu0  ;;  %v1210_v22 = vadd.f32 %v1204_v32, %v1147_v7  ;;  %v7044_v23 = vpop.f32.mrb[31].mxu1  ;;  %v7762_v32 = vld [vmem:[%s9148_s3 + $0x90] sm:$0xff]  }
 0x132   : > { %v8760_v7 = vld [vmem:[%s8181_s12 + $0x10] sm:$0x7] }
 0x133   : > { %7348 = vmatmul.mubr.msk.bf16.vlgmr.msra.gmra.mrb[132].mxu0 %vm438_vm1, %v8426_v55  ;;  %7366 = vmatmul.mubr.msk.bf16.vlgmr.msra.gmra.mrb[136].mxu1 %vm438_vm1, %v8699_v20  ;;  %v8771_v19 = vcombine.low %v8760_v7, %v8760_v7 }
 0x134   : > { %7358 = vmatpush3.bf16.msra.mxu0 %v7757_v16  ;;  %7359 = vmatprep.mubr.msk.bf16.mxu0 %vm7903_vm0, %v7902_v1  ;;  %v7767_v16 = vld [vmem:[%s9148_s3 + $0xb8] sm:$0xff]  }
 0x135   : > { %7369 = vmatprep.subr.bf16.mxu0 %v7902_v1  ;;  %7376 = vmatpush3.bf16.msra.mxu1 %v7761_v25  ;;  %v4615_v25 = vshll.u32 %v8771_v19, 16 }
 0x136   : > { %v1258_v29 = vpop.f32.mrb[28].mxu0  ;;  %v1428_v31 = vpop.f32.mrb[32].mxu1  ;;  %7377 = vmatprep.mubr.msk.bf16.mxu1 %vm7903_vm0, %v7902_v1  ;;  %7387 = vmatprep.subr.bf16.mxu1 %v7902_v1 }
 0x137   : > { %v1264_v55 = vadd.f32 %v1258_v29, %v1210_v22  ;;  %v7037_v33 = vpop.f32.mrb[29].mxu0  ;;  %v7055_v36 = vpop.f32.mrb[33].mxu1 }
 0x138   : > { %v1261_v26 = vpop.f32.mrb[30].mxu0  ;;  %v1431_v14 = vpop.f32.mrb[34].mxu1 }
 0x139   : > { %v7038_v18 = vpop.f32.mrb[31].mxu0  ;;  %v1317_v41 = vadd.f32 %v1311_v6, %v1264_v55  ;;  %v7056_v42 = vpop.f32.mrb[35].mxu1  ;;  %v7769_v26 = vld [vmem:[%s9148_s3 + $0xc8] sm:$0xff]   ;;  %v4617_v14 = vrot.slane %v4615_v25, 1 }
 0x13b   : > { %7360 = vmatmul.mubr.msk.bf16.vlgmr.msra.gmra.mrb[136].mxu0 %vm438_vm1, %v8494_v2  ;;  %7378 = vmatmul.mubr.msk.bf16.vlgmr.msra.gmra.mrb[140].mxu1 %vm438_vm1, %v4210_v39 }
 0x13c   : > { %7370 = vmatpush3.bf16.msra.mxu0 %v7760_v40  ;;  %7371 = vmatprep.mubr.msk.bf16.mxu0 %vm7903_vm0, %v7902_v1  ;;  %v4613_v40 = vshrl.u32 %v8771_v19, 16 }
 0x13d   : > { %7381 = vmatprep.subr.bf16.mxu0 %v7902_v1  ;;  %7388 = vmatpush3.bf16.msra.mxu1 %v7763_v44 }
 0x13e   : > { %v1374_v51 = vpop.f32.mrb[32].mxu0  ;;  %v1544_v52 = vpop.f32.mrb[36].mxu1  ;;  %7389 = vmatprep.mubr.msk.bf16.mxu1 %vm7903_vm0, %v7902_v1  ;;  %7399 = vmatprep.subr.bf16.mxu1 %v7902_v1  ;;  %v8800_v47 = vor.u32 %v4617_v14, %v4613_v40  ;;  %v7775_v14 = vld [vmem:[%s9148_s3 + $0x18] sm:$0xff]  }
 0x13f   : > { %v1380_v27 = vadd.f32 %v1374_v51, %v1317_v41  ;;  %v7049_v53 = vpop.f32.mrb[33].mxu0  ;;  %v7067_v56 = vpop.f32.mrb[37].mxu1  ;;  %v7768_v51 = vld [vmem:[%s9148_s3 + $0xc0] sm:$0xff]  }
 0x140   : > { %v1377_v57 = vpop.f32.mrb[34].mxu0  ;;  %v1547_v59 = vpop.f32.mrb[38].mxu1 }
 0x141   : > { %v7050_v60 = vpop.f32.mrb[35].mxu0  ;;  %v1434_v61 = vadd.f32 %v1428_v31, %v1380_v27  ;;  %v7068_v54 = vpop.f32.mrb[39].mxu1  ;;  %v7766_v31 = vld [vmem:[%s9148_s3 + $0xb0] sm:$0xff]   ;;  %v7772_v57 = vld [vmem:[%s9148_s3 + $0x8] sm:$0xff]  }
 0x143   : > { %7372 = vmatmul.mubr.msk.bf16.vlgmr.msra.gmra.mrb[140].mxu0 %vm438_vm1, %v8738_v49  ;;  %7390 = vmatmul.mubr.msk.bf16.vlgmr.msra.gmra.mrb[144].mxu1 %vm438_vm1, %v8296_v30  ;;  %v7764_v30 = vld [vmem:[%s9148_s3 + $0xa0] sm:$0xff]  }
 0x144   : > { %7382 = vmatpush3.bf16.msra.mxu0 %v7762_v32  ;;  %7383 = vmatprep.mubr.msk.bf16.mxu0 %vm7903_vm0, %v7902_v1 }
 0x145   : > { %7393 = vmatprep.subr.bf16.mxu0 %v7902_v1  ;;  %7400 = vmatpush3.bf16.msra.mxu1 %v7765_v58 }
 0x146   : > { %v1481_v62 = vpop.f32.mrb[36].mxu0  ;;  %v1651_v63 = vpop.f32.mrb[40].mxu1  ;;  %7401 = vmatprep.mubr.msk.bf16.mxu1 %vm7903_vm0, %v7902_v1  ;;  %7411 = vmatprep.subr.bf16.mxu1 %v7902_v1 }
 0x147   : > { %v1487_v0 = vadd.f32 %v1481_v62, %v1434_v61  ;;  %v7061_v3 = vpop.f32.mrb[37].mxu0  ;;  %v7079_v5 = vpop.f32.mrb[41].mxu1  ;;  %v7771_v62 = vld [vmem:[%s9148_s3 + $0xd0] sm:$0xff]  }
 0x148   : > { %v1484_v37 = vpop.f32.mrb[38].mxu0  ;;  %v1654_v6 = vpop.f32.mrb[42].mxu1 }
 0x149   : > { %v7062_v4 = vpop.f32.mrb[39].mxu0  ;;  %v1550_v13 = vadd.f32 %v1544_v52, %v1487_v0  ;;  %v7080_v15 = vpop.f32.mrb[43].mxu1  ;;  %v7774_v37 = vld [vmem:[%s9148_s3 + $0x10] sm:$0xff]  }
 0x14a   : > { %v4671_v15 = vrot.slane %v8771_v19, 1 }
 0x14b   : > { %7384 = vmatmul.mubr.msk.bf16.vlgmr.msra.gmra.mrb[144].mxu0 %vm438_vm1, %v8248_v8  ;;  %7402 = vmatmul.mubr.msk.bf16.vlgmr.msra.gmra.mrb[148].mxu1 %vm438_vm1, %v8533_v12 }
 0x14c   : > { %7394 = vmatpush3.bf16.msra.mxu0 %v7764_v30  ;;  %7395 = vmatprep.mubr.msk.bf16.mxu0 %vm7903_vm0, %v7902_v1  ;;  %v8843_v30 = vld [vmem:[%s9149_s4] ss:$0 sm:$0xff] }
 0x14d   : > { %7405 = vmatprep.subr.bf16.mxu0 %v7902_v1  ;;  %7412 = vmatpush3.bf16.msra.mxu1 %v7767_v16 }
 0x14e   : > { %v1598_v21 = vpop.f32.mrb[40].mxu0  ;;  %v1768_v22 = vpop.f32.mrb[44].mxu1  ;;  %7413 = vmatprep.mubr.msk.bf16.mxu1 %vm7903_vm0, %v7902_v1  ;;  %7423 = vmatprep.subr.bf16.mxu1 %v7902_v1 }
 0x14f   : > { %v1604_v8 = vadd.f32 %v1598_v21, %v1550_v13  ;;  %v7073_v12 = vpop.f32.mrb[41].mxu0  ;;  %v7091_v23 = vpop.f32.mrb[45].mxu1  ;;  %v1952_v21 = vld [vmem:[%s8837_s29] sm:$0xf] }
 0x150   : > { %v1601_v29 = vpop.f32.mrb[42].mxu0  ;;  %v1771_v55 = vpop.f32.mrb[46].mxu1 }
 0x151   : > { %v7074_v33 = vpop.f32.mrb[43].mxu0  ;;  %v1657_v34 = vadd.f32 %v1651_v63, %v1604_v8  ;;  %v7092_v36 = vpop.f32.mrb[47].mxu1  ;;  %v7773_v8 = vld [vmem:[%s9148_s3] sm:$0xff]  }
 0x153   : > { %7396 = vmatmul.mubr.msk.bf16.vlgmr.msra.gmra.mrb[148].mxu0 %vm438_vm1, %v8330_v38  ;;  %7414 = vmatmul.mubr.msk.bf16.vlgmr.msra.gmra.mrb[152].mxu1 %vm438_vm1, %v8550_v17 }
 0x154   : > { %7406 = vmatpush3.bf16.msra.mxu0 %v7766_v31  ;;  %7407 = vmatprep.mubr.msk.bf16.mxu0 %vm7903_vm0, %v7902_v1  ;;  %v7776_v31 = vld [vmem:[%s9148_s3 + $0x20] sm:$0xff]  }
 0x155   : > { %7417 = vmatprep.subr.bf16.mxu0 %v7902_v1  ;;  %7424 = vmatpush3.bf16.msra.mxu1 %v7769_v26 }
 0x156   : > { %v1714_v18 = vpop.f32.mrb[44].mxu0  ;;  %v1884_v41 = vpop.f32.mrb[48].mxu1  ;;  %7425 = vmatprep.mubr.msk.bf16.mxu1 %vm7903_vm0, %v7902_v1  ;;  %7435 = vmatprep.subr.bf16.mxu1 %v7902_v1 }
 0x157   : > { %v1720_v38 = vadd.f32 %v1714_v18, %v1657_v34  ;;  %v7085_v42 = vpop.f32.mrb[45].mxu0  ;;  %v7103_v44 = vpop.f32.mrb[49].mxu1 }
 0x158   : > { %v1717_v46 = vpop.f32.mrb[46].mxu0  ;;  %v1887_v52 = vpop.f32.mrb[50].mxu1  ;;  %v7778_v44 = vld [vmem:[%s9148_s3 + $0x30] sm:$0xff]  }
 0x159   : > { %v7086_v27 = vpop.f32.mrb[47].mxu0  ;;  %v1774_v53 = vadd.f32 %v1768_v22, %v1720_v38  ;;  %v7104_v56 = vpop.f32.mrb[51].mxu1 }
 0x15b   : > { %7408 = vmatmul.mubr.msk.bf16.vlgmr.msra.gmra.mrb[152].mxu0 %vm438_vm1, %v8568_v24  ;;  %7426 = vmatmul.mubr.msk.bf16.vlgmr.msra.gmra.mrb[156].mxu1 %vm438_vm1, %v8800_v47 }
 0x15c   : > { %7418 = vmatpush3.bf16.msra.mxu0 %v7768_v51  ;;  %7419 = vmatprep.mubr.msk.bf16.mxu0 %vm7903_vm0, %v7902_v1 }
 0x15d   : > { %7429 = vmatprep.subr.bf16.mxu0 %v7902_v1  ;;  %7436 = vmatpush3.bf16.msra.mxu1 %v7772_v57  ;;  %v403_v57 = vld [vmem:[%s8043_s19 + $0x14] sm:$0x7]  ;;  %s6730_s19 = sshll.u32 %s6124_s20, 7 }
 0x15e   : > { %v1821_v32 = vpop.f32.mrb[48].mxu0  ;;  %v2000_v59 = vpop.f32.mrb[52].mxu1  ;;  %7437 = vmatprep.mubr.msk.bf16.mxu1 %vm7903_vm0, %v7902_v1  ;;  %7447 = vmatprep.subr.bf16.mxu1 %v7902_v1  ;;  %s9085_s14 = scalar_lea.hbm %s9151_s6, %s6730_s19 }
 0x15f   : > { %v1827_v60 = vadd.f32 %v1821_v32, %v1774_v53  ;;  %v7097_v61 = vpop.f32.mrb[49].mxu0  ;;  %v7115_v54 = vpop.f32.mrb[53].mxu1 }
 0x160   : > { %v1824_v58 = vpop.f32.mrb[50].mxu0  ;;  %v2003_v63 = vpop.f32.mrb[54].mxu1  ;;  %v7781_v61 = vld [vmem:[%s9148_s3 + $0x40] sm:$0xff]   ;;  %v6646_v54 = vcombine.low %v403_v57, %v403_v57 }
 0x161   : > { %v7098_v0 = vpop.f32.mrb[51].mxu0  ;;  %v1890_v3 = vadd.f32 %v1884_v41, %v1827_v60  ;;  %v7116_v5 = vpop.f32.mrb[55].mxu1 }
 0x163   : > { %7420 = vmatmul.mubr.msk.bf16.vlgmr.msra.gmra.mrb[156].mxu0 %vm438_vm1, %v8760_v7  ;;  %7438 = vmatmul.mubr.msk.bf16.vlgmr.msra.gmra.mrb[160].mxu1 %vm438_vm1, %v8404_v50 }
 0x164   : > { %7430 = vmatpush3.bf16.msra.mxu0 %v7771_v62  ;;  %7431 = vmatprep.mubr.msk.bf16.mxu0 %vm7903_vm0, %v7902_v1 }
 0x165   : > { %7441 = vmatprep.subr.bf16.mxu0 %v7902_v1  ;;  %7448 = vmatpush3.bf16.msra.mxu1 %v7774_v37 }
 0x166   : > { %v1938_v50 = vpop.f32.mrb[52].mxu0  ;;  %v2094_v6 = vpop.f32.mrb[56].mxu1  ;;  %7449 = vmatprep.mubr.msk.bf16.mxu1 %vm7903_vm0, %v7902_v1  ;;  %7459 = vmatprep.subr.bf16.mxu1 %v7902_v1 }
 0x167   : > { %v1944_v4 = vadd.f32 %v1938_v50, %v1890_v3  ;;  %v7109_v13 = vpop.f32.mrb[53].mxu0  ;;  %v7127_v16 = vpop.f32.mrb[57].mxu1  ;;  %v5134_v3 = vrot.slane %v6646_v54, 1  ;;  %v7780_v50 = vld [vmem:[%s9148_s3 + $0x38] sm:$0xff]  }
 0x168   : > { %v1941_v22 = vpop.f32.mrb[54].mxu0  ;;  %v2097_v12 = vpop.f32.mrb[58].mxu1 }
 0x169   : > { %v1951_v23 = vadd.f32 %v8843_v30, %v1944_v4  ;;  %v7110_v25 = vpop.f32.mrb[55].mxu0  ;;  %v7128_v29 = vpop.f32.mrb[59].mxu1  ;;  %v5076_v22 = vshrl.u32 %v6646_v54, 16 }
 0x16b   : > { %v1953_v55 = vadd.f32 %v1952_v21, %v1951_v23  ;;  %7432 = vmatmul.mubr.msk.bf16.vlgmr.msra.gmra.mrb[160].mxu0 %vm438_vm1, %v4671_v15  ;;  %7450 = vmatmul.mubr.msk.bf16.vlgmr.msra.gmra.mrb[164].mxu1 %vm438_vm1, %v8386_v9  ;;  %v7783_v21 = vld [vmem:[%s9148_s3 + $0x50] sm:$0xff]  }
 0x16c   : > { %7442 = vmatpush3.bf16.msra.mxu0 %v7773_v8  ;;  %7443 = vmatprep.mubr.msk.bf16.mxu0 %vm7903_vm0, %v7902_v1 }
 0x16d   : > { %1955 = vst.msk [vmem:[%s8866_s9] sm:$0xf] %vm1954_vm2, %v1953_v55  ;;  %7453 = vmatprep.subr.bf16.mxu0 %v7902_v1  ;;  %7460 = vmatpush3.bf16.msra.mxu1 %v7776_v31  ;;  %v7782_v55 = vld [vmem:[%s9148_s3 + $0x48] sm:$0xff]  }
 0x16e   : > { %v2046_v33 = vpop.f32.mrb[56].mxu0  ;;  %v2192_v34 = vpop.f32.mrb[60].mxu1  ;;  %7461 = vmatprep.mubr.msk.bf16.mxu1 %vm7903_vm0, %v7902_v1  ;;  %7471 = vmatprep.subr.bf16.mxu1 %v7902_v1 }
 0x16f   : > { %v2047_v9 = vadd.f32 %v2046_v33, %v2000_v59  ;;  %v7121_v36 = vpop.f32.mrb[57].mxu0  ;;  %v7139_v26 = vpop.f32.mrb[61].mxu1 }
 0x170   : > { %v2049_v40 = vpop.f32.mrb[58].mxu0  ;;  %v2195_v18 = vpop.f32.mrb[62].mxu1  ;;  %v7785_v26 = vld [vmem:[%s9148_s3 + $0x60] sm:$0xff]  }
 0x171   : > { %v7122_v41 = vpop.f32.mrb[59].mxu0  ;;  %v2100_v38 = vadd.f32 %v2094_v6, %v2047_v9  ;;  %v7140_v42 = vpop.f32.mrb[63].mxu1 }
 0x173   : > { %7444 = vmatmul.mubr.msk.bf16.vlgmr.msra.gmra.mrb[164].mxu0 %vm438_vm1, %v8369_v11  ;;  %7462 = vmatmul.mubr.msk.bf16.vlgmr.msra.gmra.mrb[168].mxu1 %vm438_vm1, %v8627_v10  ;;  %v7777_v10 = vld [vmem:[%s9148_s3 + $0x28] sm:$0xff]  }
 0x174   : > { %7454 = vmatpush3.bf16.msra.mxu0 %v7775_v14  ;;  %7455 = vmatprep.mubr.msk.bf16.mxu0 %vm7903_vm0, %v7902_v1 }
 0x175   : > { %7465 = vmatprep.subr.bf16.mxu0 %v7902_v1  ;;  %7472 = vmatpush3.bf16.msra.mxu1 %v7778_v44 }
 0x176   : > { %v2143_v46 = vpop.f32.mrb[60].mxu0  ;;  %v2293_v51 = vpop.f32.mrb[64].mxu1  ;;  %7473 = vmatprep.mubr.msk.bf16.mxu1 %vm7903_vm0, %v7902_v1  ;;  %7483 = vmatprep.subr.bf16.mxu1 %v7902_v1 }
 0x177   : > { %v2149_v52 = vadd.f32 %v2143_v46, %v2100_v38  ;;  %v7133_v11 = vpop.f32.mrb[61].mxu0  ;;  %v7151_v27 = vpop.f32.mrb[65].mxu1  ;;  %v8941_v46 = vld [vmem:[%s8118_s13 + $0x14] sm:$0x7] }
 0x178   : > { %v2146_v53 = vpop.f32.mrb[62].mxu0  ;;  %v2296_v56 = vpop.f32.mrb[66].mxu1  ;;  %v7787_v27 = vld [vmem:[%s9148_s3 + $0x70] sm:$0xff]  }
 0x179   : > { %v7134_v32 = vpop.f32.mrb[63].mxu0  ;;  %v2198_v59 = vadd.f32 %v2192_v34, %v2149_v52  ;;  %v7152_v60 = vpop.f32.mrb[67].mxu1  ;;  %v7803_v53 = vld [vmem:[%s8118_s13 + $0xc] sm:$0x7]  ;;  %s7904_s13 = smov [#allocation2]  }
 0x17a   : > { %s7810_s24 = sshll.u32 %s7904_s13, 4  ;;  %s7811_s24 = int_to_ptr.vmem [resolvable:$false] %s7810_s24 }
 0x17b   : > { %7456 = vmatmul.mubr.msk.bf16.vlgmr.msra.gmra.mrb[168].mxu0 %vm438_vm1, %v8590_v43  ;;  %7474 = vmatmul.mubr.msk.bf16.vlgmr.msra.gmra.mrb[172].mxu1 %vm438_vm1, %v403_v57  ;;  %v5078_v43 = vshll.u32 %v6646_v54, 16  ;;  %v7786_v54 = vld [vmem:[%s9148_s3 + $0x68] sm:$0xff]   ;;  %s7812_s20 = scalar_lea.vmem %s7811_s24, 512  ;;  %p7813_p7 = scmp.lt.s32.totalorder %s9087_s0, %s7811_s24 }
 0x17c   : > { %7466 = vmatpush3.bf16.msra.mxu0 %v7777_v10  ;;  %7467 = vmatprep.mubr.msk.bf16.mxu0 %vm7903_vm0, %v7902_v1  ;;  %v8952_v10 = vcombine.low %v8941_v46, %v8941_v46 }
 0x17d   : > { %7477 = vmatprep.subr.bf16.mxu0 %v7902_v1  ;;  %7484 = vmatpush3.bf16.msra.mxu1 %v7781_v61  ;;  %v5080_v8 = vrot.slane %v5078_v43, 1  ;;  %v7789_v43 = vld [vmem:[%s9148_s3 + $0x80] sm:$0xff]  }
 0x17e   : > { %v2241_v58 = vpop.f32.mrb[64].mxu0  ;;  %v2408_v62 = vpop.f32.mrb[68].mxu1  ;;  %7485 = vmatprep.mubr.msk.bf16.mxu1 %vm7903_vm0, %v7902_v1  ;;  %7495 = vmatprep.subr.bf16.mxu1 %v7902_v1  ;;  %v5539_v60 = vshll.u32 %v8952_v10, 16 }
 0x17f   : > { %v2247_v63 = vadd.f32 %v2241_v58, %v2198_v59  ;;  %v7145_v0 = vpop.f32.mrb[65].mxu0  ;;  %v7163_v5 = vpop.f32.mrb[69].mxu1  ;;  %v5081_v29 = vor.u32 %v5080_v8, %v5076_v22 }
 0x180   : > { %v2244_v37 = vpop.f32.mrb[66].mxu0  ;;  %v2411_v6 = vpop.f32.mrb[70].mxu1  ;;  %v5541_v5 = vrot.slane %v5539_v60, 1 }
 0x181   : > { %v7146_v4 = vpop.f32.mrb[67].mxu0  ;;  %v2299_v13 = vadd.f32 %v2293_v51, %v2247_v63  ;;  %v7164_v16 = vpop.f32.mrb[71].mxu1 }
 0x183   : > { %7468 = vmatmul.mubr.msk.bf16.vlgmr.msra.gmra.mrb[172].mxu0 %vm438_vm1, %v3749_v45  ;;  %7486 = vmatmul.mubr.msk.bf16.vlgmr.msra.gmra.mrb[176].mxu1 %vm438_vm1, %v5134_v3  ;;  %v5537_v3 = vshrl.u32 %v8952_v10, 16 }
 0x184   : > { %7478 = vmatpush3.bf16.msra.mxu0 %v7780_v50  ;;  %7479 = vmatprep.mubr.msk.bf16.mxu0 %vm7903_vm0, %v7902_v1 }
 0x185   : > { %7489 = vmatprep.subr.bf16.mxu0 %v7902_v1  ;;  %7496 = vmatpush3.bf16.msra.mxu1 %v7783_v21  ;;  %v5542_v6 = vor.u32 %v5541_v5, %v5537_v3 }
 0x186   : > { %v2355_v12 = vpop.f32.mrb[68].mxu0  ;;  %v2506_v23 = vpop.f32.mrb[72].mxu1  ;;  %7497 = vmatprep.mubr.msk.bf16.mxu1 %vm7903_vm0, %v7902_v1  ;;  %7507 = vmatprep.subr.bf16.mxu1 %v7902_v1 }
 0x187   : > { %v2361_v25 = vadd.f32 %v2355_v12, %v2299_v13  ;;  %v7157_v48 = vpop.f32.mrb[69].mxu0  ;;  %v7175_v45 = vpop.f32.mrb[73].mxu1  ;;  %v7788_v13 = vld [vmem:[%s9148_s3 + $0x78] sm:$0xff]   ;;  %v7792_v12 = vld [vmem:[%s9148_s3 + $0x90] sm:$0xff]  }
 0x188   : > { %v2358_v31 = vpop.f32.mrb[70].mxu0  ;;  %v2509_v33 = vpop.f32.mrb[74].mxu1 }
 0x189   : > { %v7158_v34 = vpop.f32.mrb[71].mxu0  ;;  %v2414_v9 = vadd.f32 %v2408_v62, %v2361_v25  ;;  %v7176_v36 = vpop.f32.mrb[75].mxu1  ;;  %v7791_v31 = vld [vmem:[%s9148_s3 + $0x88] sm:$0xff]  }
 0x18a   : > { %v7794_v36 = vld [vmem:[%s9148_s3 + $0xa0] sm:$0xff]  }
 0x18b   : > { %7480 = vmatmul.mubr.msk.bf16.vlgmr.msra.gmra.mrb[176].mxu0 %vm438_vm1, %v5081_v29  ;;  %7498 = vmatmul.mubr.msk.bf16.vlgmr.msra.gmra.mrb[180].mxu1 %vm438_vm1, %v8460_v35  ;;  %v7784_v35 = vld [vmem:[%s9148_s3 + $0x58] sm:$0xff]  }
 0x18c   : > { %7490 = vmatpush3.bf16.msra.mxu0 %v7782_v55  ;;  %7491 = vmatprep.mubr.msk.bf16.mxu0 %vm7903_vm0, %v7902_v1 }
 0x18d   : > { %7501 = vmatprep.subr.bf16.mxu0 %v7902_v1  ;;  %7508 = vmatpush3.bf16.msra.mxu1 %v7785_v26  ;;  %v7804_v26 = vld [vmem:[%s8181_s12 + $0xc] sm:$0x7] }
 0x18e   : > { %v2457_v40 = vpop.f32.mrb[72].mxu0  ;;  %v2604_v14 = vpop.f32.mrb[76].mxu1  ;;  %7509 = vmatprep.mubr.msk.bf16.mxu1 %vm7903_vm0, %v7902_v1  ;;  %7519 = vmatprep.subr.bf16.mxu1 %v7902_v1 }
 0x18f   : > { %v2463_v18 = vadd.f32 %v2457_v40, %v2414_v9  ;;  %v7169_v41 = vpop.f32.mrb[73].mxu0  ;;  %v7187_v38 = vpop.f32.mrb[77].mxu1 }
 0x190   : > { %v2460_v42 = vpop.f32.mrb[74].mxu0  ;;  %v2607_v44 = vpop.f32.mrb[78].mxu1  ;;  %v5595_v38 = vrot.slane %v8952_v10, 1 }
 0x191   : > { %v7170_v51 = vpop.f32.mrb[75].mxu0  ;;  %v2512_v52 = vadd.f32 %v2506_v23, %v2463_v18  ;;  %v7188_v11 = vpop.f32.mrb[79].mxu1  ;;  %v7793_v44 = vld [vmem:[%s9148_s3 + $0x98] sm:$0xff]  }
 0x193   : > { %7492 = vmatmul.mubr.msk.bf16.vlgmr.msra.gmra.mrb[180].mxu0 %vm438_vm1, %v7803_v53  ;;  %7510 = vmatmul.mubr.msk.bf16.vlgmr.msra.gmra.mrb[184].mxu1 %vm438_vm1, %v8699_v20 }
 0x194   : > { %7502 = vmatpush3.bf16.msra.mxu0 %v7784_v35  ;;  %7503 = vmatprep.mubr.msk.bf16.mxu0 %vm7903_vm0, %v7902_v1 }
 0x195   : > { %7513 = vmatprep.subr.bf16.mxu0 %v7902_v1  ;;  %7520 = vmatpush3.bf16.msra.mxu1 %v7787_v27  ;;  %v7796_v27 = vld [vmem:[%s9148_s3 + $0xb0] sm:$0xff]  }
 0x196   : > { %v2555_v56 = vpop.f32.mrb[76].mxu0  ;;  %v2702_v57 = vpop.f32.mrb[80].mxu1  ;;  %7521 = vmatprep.mubr.msk.bf16.mxu1 %vm7903_vm0, %v7902_v1  ;;  %7531 = vmatprep.subr.bf16.mxu1 %v7902_v1 }
 0x197   : > { %v2561_v32 = vadd.f32 %v2555_v56, %v2512_v52  ;;  %v7181_v20 = vpop.f32.mrb[77].mxu0  ;;  %v7199_v59 = vpop.f32.mrb[81].mxu1 }
 0x198   : > { %v2558_v61 = vpop.f32.mrb[78].mxu0  ;;  %v2705_v58 = vpop.f32.mrb[82].mxu1 }
 0x199   : > { %v7182_v62 = vpop.f32.mrb[79].mxu0  ;;  %v2610_v63 = vadd.f32 %v2604_v14, %v2561_v32  ;;  %v7200_v0 = vpop.f32.mrb[83].mxu1  ;;  %v7798_v58 = vld [vmem:[%s9148_s3 + $0xc0] sm:$0xff]  }
 0x19b   : > { %7504 = vmatmul.mubr.msk.bf16.vlgmr.msra.gmra.mrb[184].mxu0 %vm438_vm1, %v8494_v2  ;;  %7522 = vmatmul.mubr.msk.bf16.vlgmr.msra.gmra.mrb[188].mxu1 %vm438_vm1, %v4210_v39 }
 0x19c   : > { %7514 = vmatpush3.bf16.msra.mxu0 %v7786_v54  ;;  %7515 = vmatprep.mubr.msk.bf16.mxu0 %vm7903_vm0, %v7902_v1 }
 0x19d   : > { %7525 = vmatprep.subr.bf16.mxu0 %v7902_v1  ;;  %7532 = vmatpush3.bf16.msra.mxu1 %v7789_v43 }
 0x19e   : > { %v2653_v37 = vpop.f32.mrb[80].mxu0  ;;  %v2816_v50 = vpop.f32.mrb[84].mxu1  ;;  %7533 = vmatprep.mubr.msk.bf16.mxu1 %vm7903_vm0, %v7902_v1  ;;  %7543 = vmatprep.subr.bf16.mxu1 %v7902_v1 }
 0x19f   : > { %v2659_v2 = vadd.f32 %v2653_v37, %v2610_v63  ;;  %v7193_v28 = vpop.f32.mrb[81].mxu0  ;;  %v7211_v39 = vpop.f32.mrb[85].mxu1  ;;  %v415_v37 = vld [vmem:[%s8181_s12 + $0x14] sm:$0x7]  ;;  %s7806_s12 = scalar_lea.vmem %s9087_s0, 256 }
 0x1a0   : > { %v2656_v4 = vpop.f32.mrb[82].mxu0  ;;  %v2819_v16 = vpop.f32.mrb[86].mxu1  ;;  %v7801_v39 = vld [vmem:[%s9148_s3 + $0xd0] sm:$0xff]   ;;  %p7807_p4 = scmp.ne.s32.totalorder %s9087_s0, %s7806_s12  ;;  %p7814_p9 = scmp.lt.s32.totalorder %s7812_s20, %s7806_s12 }
 0x1a1   : > { %v7194_v21 = vpop.f32.mrb[83].mxu0  ;;  %v2708_v22 = vadd.f32 %v2702_v57, %v2659_v2  ;;  %v7212_v8 = vpop.f32.mrb[87].mxu1 }
 0x1a2   : > { %p7808_p5 = pnand %p7807_p4, %p7993_p3  ;;  %p7815_p10 = por %p7814_p9, %p7813_p7 }
 0x1a3   : > { %7516 = vmatmul.mubr.msk.bf16.vlgmr.msra.gmra.mrb[188].mxu0 %vm438_vm1, %v8738_v49  ;;  %7534 = vmatmul.mubr.msk.bf16.vlgmr.msra.gmra.mrb[192].mxu1 %vm438_vm1, %v5542_v6  ;;  %v6720_v6 = vcombine.low %v415_v37, %v415_v37 }
 0x1a4   : > { %7526 = vmatpush3.bf16.msra.mxu0 %v7788_v13  ;;  %7527 = vmatprep.mubr.msk.bf16.mxu0 %vm7903_vm0, %v7902_v1  ;;  %p7809_p6 = pneg %p7808_p5 }
 0x1a5   : > { %7537 = vmatprep.subr.bf16.mxu0 %v7902_v1  ;;  %7544 = vmatpush3.bf16.msra.mxu1 %v7792_v12  ;;  %v6056_v8 = vrot.slane %v6720_v6, 1 }
 0x1a6   : > { %v2754_v23 = vpop.f32.mrb[84].mxu0  ;;  %v2918_v25 = vpop.f32.mrb[88].mxu1  ;;  %7545 = vmatprep.mubr.msk.bf16.mxu1 %vm7903_vm0, %v7902_v1  ;;  %7555 = vmatprep.subr.bf16.mxu1 %v7902_v1  ;;  %p7816_p11 = pnand %p7815_p10, %p7809_p6 }
 0x1a7   : > { %v2760_v48 = vadd.f32 %v2754_v23, %v2708_v22  ;;  %v7205_v29 = vpop.f32.mrb[85].mxu0  ;;  %v7223_v49 = vpop.f32.mrb[89].mxu1  ;;  %v6000_v22 = vshll.u32 %v6720_v6, 16  ;;  %v7800_v23 = vld [vmem:[%s9148_s3 + $0xc8] sm:$0xff]  }
 0x1a8   : > { %v2757_v45 = vpop.f32.mrb[86].mxu0  ;;  %v2921_v55 = vpop.f32.mrb[90].mxu1 }
 0x1a9   : > { %v7206_v33 = vpop.f32.mrb[87].mxu0  ;;  %v2822_v34 = vadd.f32 %v2816_v50, %v2760_v48  ;;  %v7224_v9 = vpop.f32.mrb[91].mxu1  ;;  %v5998_v45 = vshrl.u32 %v6720_v6, 16 }
 0x1ab   : > { %7528 = vmatmul.mubr.msk.bf16.vlgmr.msra.gmra.mrb[192].mxu0 %vm438_vm1, %v8941_v46  ;;  %7546 = vmatmul.mubr.msk.bf16.vlgmr.msra.gmra.mrb[196].mxu1 %vm438_vm1, %v7804_v26 }
 0x1ac   : > { %7538 = vmatpush3.bf16.msra.mxu0 %v7791_v31  ;;  %7539 = vmatprep.mubr.msk.bf16.mxu0 %vm7903_vm0, %v7902_v1  ;;  %v6002_v31 = vrot.slane %v6000_v22, 1 }
 0x1ad   : > { %7549 = vmatprep.subr.bf16.mxu0 %v7902_v1  ;;  %7556 = vmatpush3.bf16.msra.mxu1 %v7794_v36 }
 0x1ae   : > { %v2869_v40 = vpop.f32.mrb[88].mxu0  ;;  %v3016_v14 = vpop.f32.mrb[92].mxu1  ;;  %7557 = vmatprep.mubr.msk.bf16.mxu1 %vm7903_vm0, %v7902_v1  ;;  %7567 = vmatprep.subr.bf16.mxu1 %v7902_v1  ;;  %v6003_v36 = vor.u32 %v6002_v31, %v5998_v45 }
 0x1af   : > { %v2875_v18 = vadd.f32 %v2869_v40, %v2822_v34  ;;  %v7217_v41 = vpop.f32.mrb[89].mxu0  ;;  %v7235_v42 = vpop.f32.mrb[93].mxu1 }
 0x1b0   : > { %v2872_v35 = vpop.f32.mrb[90].mxu0  ;;  %v3019_v46 = vpop.f32.mrb[94].mxu1 }
 0x1b1   : > { %v7218_v51 = vpop.f32.mrb[91].mxu0  ;;  %v2924_v52 = vadd.f32 %v2918_v25, %v2875_v18  ;;  %v7236_v11 = vpop.f32.mrb[95].mxu1 }
 0x1b3   : > { %7540 = vmatmul.mubr.msk.bf16.vlgmr.msra.gmra.mrb[196].mxu0 %vm438_vm1, %v5595_v38  ;;  %7558 = vmatmul.mubr.msk.bf16.vlgmr.msra.gmra.mrb[200].mxu1 %vm438_vm1, %v8550_v17  ;;  %v7795_v17 = vld [vmem:[%s9148_s3 + $0xa8] sm:$0xff]   ;;  %v3338_v38 = vld [vmem:[%s8837_s29 + $0x4] sm:$0xf] }
 0x1b4   : > { %7550 = vmatpush3.bf16.msra.mxu0 %v7793_v44  ;;  %7551 = vmatprep.mubr.msk.bf16.mxu0 %vm7903_vm0, %v7902_v1 }
 0x1b5   : > { %7561 = vmatprep.subr.bf16.mxu0 %v7902_v1  ;;  %7568 = vmatpush3.bf16.msra.mxu1 %v7796_v27 }
 0x1b6   : > { %v2967_v53 = vpop.f32.mrb[92].mxu0  ;;  %v3114_v10 = vpop.f32.mrb[96].mxu1  ;;  %7569 = vmatprep.mubr.msk.bf16.mxu1 %vm7903_vm0, %v7902_v1  ;;  %7579 = vmatprep.subr.bf16.mxu1 %v7902_v1 }
 0x1b7   : > { %v2973_v56 = vadd.f32 %v2967_v53, %v2924_v52  ;;  %v7229_v57 = vpop.f32.mrb[93].mxu0  ;;  %v7247_v32 = vpop.f32.mrb[97].mxu1 }
 0x1b8   : > { %v2970_v20 = vpop.f32.mrb[94].mxu0  ;;  %v3117_v59 = vpop.f32.mrb[98].mxu1 }
 0x1b9   : > { %v7230_v60 = vpop.f32.mrb[95].mxu0  ;;  %v3022_v61 = vadd.f32 %v3016_v14, %v2973_v56  ;;  %v7248_v54 = vpop.f32.mrb[99].mxu1 }
 0x1bb   : > { %7552 = vmatmul.mubr.msk.bf16.vlgmr.msra.gmra.mrb[200].mxu0 %vm438_vm1, %v8568_v24  ;;  %7570 = vmatmul.mubr.msk.bf16.vlgmr.msra.gmra.mrb[204].mxu1 %vm438_vm1, %v8800_v47  ;;  %v7797_v47 = vld [vmem:[%s9148_s3 + $0xb8] sm:$0xff]  }
 0x1bc   : > { %7562 = vmatpush3.bf16.msra.mxu0 %v7795_v17  ;;  %7563 = vmatprep.mubr.msk.bf16.mxu0 %vm7903_vm0, %v7902_v1 }
 0x1bd   : > { %7573 = vmatprep.subr.bf16.mxu0 %v7902_v1  ;;  %7580 = vmatpush3.bf16.msra.mxu1 %v7798_v58 }
 0x1be   : > { %v3065_v62 = vpop.f32.mrb[96].mxu0  ;;  %v3215_v63 = vpop.f32.mrb[100].mxu1  ;;  %7581 = vmatprep.mubr.msk.bf16.mxu1 %vm7903_vm0, %v7902_v1  ;;  %7591 = vmatprep.subr.bf16.mxu1 %v7902_v1 }
 0x1bf   : > { %v3071_v0 = vadd.f32 %v3065_v62, %v3022_v61  ;;  %v7241_v24 = vpop.f32.mrb[97].mxu0  ;;  %v7259_v43 = vpop.f32.mrb[101].mxu1 }
 0x1c0   : > { %v3068_v3 = vpop.f32.mrb[98].mxu0  ;;  %v3218_v5 = vpop.f32.mrb[102].mxu1 }
 0x1c1   : > { %v7242_v50 = vpop.f32.mrb[99].mxu0  ;;  %v3120_v2 = vadd.f32 %v3114_v10, %v3071_v0  ;;  %v7260_v28 = vpop.f32.mrb[103].mxu1 }
 0x1c3   : > { %7564 = vmatmul.mubr.msk.bf16.vlgmr.msra.gmra.mrb[204].mxu0 %vm438_vm1, %v8760_v7  ;;  %7582 = vmatmul.mubr.msk.bf16.vlgmr.msra.gmra.mrb[208].mxu1 %vm438_vm1, %v415_v37 }
 0x1c4   : > { %7574 = vmatpush3.bf16.msra.mxu0 %v7797_v47  ;;  %7575 = vmatprep.mubr.msk.bf16.mxu0 %vm7903_vm0, %v7902_v1 }
 0x1c5   : > { %7585 = vmatprep.subr.bf16.mxu0 %v7902_v1  ;;  %7592 = vmatpush3.bf16.msra.mxu1 %v7801_v39 }
 0x1c6   : > { %v3163_v4 = vpop.f32.mrb[100].mxu0  ;;  %v3330_v13 = vpop.f32.mrb[104].mxu1  ;;  %7593 = vmatprep.mubr.msk.bf16.mxu1 %vm7903_vm0, %v7902_v1 }
 0x1c7   : > { %v3169_v16 = vadd.f32 %v3163_v4, %v3120_v2  ;;  %v7253_v21 = vpop.f32.mrb[101].mxu0  ;;  %v7271_v7 = vpop.f32.mrb[105].mxu1 }
 0x1c8   : > { %v3166_v12 = vpop.f32.mrb[102].mxu0  ;;  %v3333_v25 = vpop.f32.mrb[106].mxu1 }
 0x1c9   : > { %v7254_v48 = vpop.f32.mrb[103].mxu0  ;;  %v3221_v29 = vadd.f32 %v3215_v63, %v3169_v16  ;;  %v7272_v49 = vpop.f32.mrb[107].mxu1 }
 0x1cb   : > { %7576 = vmatmul.mubr.msk.bf16.vlgmr.msra.gmra.mrb[208].mxu0 %vm438_vm1, %v4671_v15  ;;  %7594 = vmatmul.mubr.msk.bf16.vlgmr.msra.gmra.mrb[212].mxu1 %vm438_vm1, %v6056_v8 }
 0x1cc   : > { %7586 = vmatpush3.bf16.msra.mxu0 %v7800_v23  ;;  %7587 = vmatprep.mubr.msk.bf16.mxu0 %vm7903_vm0, %v7902_v1 }
 0x1ce   : > { %v3277_v55 = vpop.f32.mrb[104].mxu0  ;;  %v3431_v33 = vpop.f32.mrb[108].mxu1 }
 0x1cf   : > { %v3283_v34 = vadd.f32 %v3277_v55, %v3221_v29  ;;  %v7265_v9 = vpop.f32.mrb[105].mxu0  ;;  %v7283_v26 = vpop.f32.mrb[109].mxu1 }
 0x1d0   : > { %v3280_v40 = vpop.f32.mrb[106].mxu0  ;;  %v3434_v14 = vpop.f32.mrb[110].mxu1 }
 0x1d1   : > { %v3336_v18 = vadd.f32 %v3330_v13, %v3283_v34  ;;  %v7266_v19 = vpop.f32.mrb[107].mxu0  ;;  %v7284_v41 = vpop.f32.mrb[111].mxu1 }
 0x1d3   : > { %v3337_v15 = vadd.f32 %v8843_v30, %v3336_v18  ;;  %7588 = vmatmul.mubr.msk.bf16.vlgmr.msra.gmra.mrb[212].mxu0 %vm438_vm1, %v6003_v36 }
 0x1d5   : > { %v3339_v42 = vadd.f32 %v3338_v38, %v3337_v15 }
 0x1d6   : > { %v3385_v35 = vpop.f32.mrb[108].mxu0  ;;  %v3528_v1 = vpop.f32.mrb[112].mxu1 }
 0x1d7   : > { %3340 = vst.msk [vmem:[%s8866_s9 + $0x4] sm:$0xf] %vm1954_vm2, %v3339_v42  ;;  %v3432_v44 = vadd.f32 %v3431_v33, %v3385_v35  ;;  %v7277_v46 = vpop.f32.mrb[109].mxu0  ;;  %v7295_v51 = vpop.f32.mrb[113].mxu1 }
 0x1d8   : > { %v3388_v52 = vpop.f32.mrb[110].mxu0  ;;  %v3531_v11 = vpop.f32.mrb[114].mxu1 }
 0x1d9   : > { %v7278_v27 = vpop.f32.mrb[111].mxu0  ;;  %v7296_v53 = vpop.f32.mrb[115].mxu1 }
 0x1de   : > { %v3479_v10 = vpop.f32.mrb[112].mxu0  ;;  %v3626_v56 = vpop.f32.mrb[116].mxu1 }
 0x1df   : > { %v3485_v57 = vadd.f32 %v3479_v10, %v3432_v44  ;;  %v7289_v32 = vpop.f32.mrb[113].mxu0  ;;  %v7307_v20 = vpop.f32.mrb[117].mxu1 }
 0x1e0   : > { %v3482_v17 = vpop.f32.mrb[114].mxu0  ;;  %v3629_v59 = vpop.f32.mrb[118].mxu1 }
 0x1e1   : > { %v7290_v60 = vpop.f32.mrb[115].mxu0  ;;  %v3534_v61 = vadd.f32 %v3528_v1, %v3485_v57  ;;  %v7308_v54 = vpop.f32.mrb[119].mxu1 }
 0x1e6   : > { %v3577_v58 = vpop.f32.mrb[116].mxu0  ;;  %v3740_v62 = vpop.f32.mrb[120].mxu1 }
 0x1e7   : > { %v3583_v63 = vadd.f32 %v3577_v58, %v3534_v61  ;;  %v7301_v0 = vpop.f32.mrb[117].mxu0  ;;  %v7319_v24 = vpop.f32.mrb[121].mxu1 }
 0x1e8   : > { %v3580_v43 = vpop.f32.mrb[118].mxu0  ;;  %v3743_v3 = vpop.f32.mrb[122].mxu1 }
 0x1e9   : > { %v7302_v47 = vpop.f32.mrb[119].mxu0  ;;  %v3632_v5 = vadd.f32 %v3626_v56, %v3583_v63  ;;  %v7320_v37 = vpop.f32.mrb[123].mxu1 }
 0x1ee   : > { %v3678_v50 = vpop.f32.mrb[120].mxu0  ;;  %v3842_v2 = vpop.f32.mrb[124].mxu1 }
 0x1ef   : > { %v3684_v28 = vadd.f32 %v3678_v50, %v3632_v5  ;;  %v7313_v39 = vpop.f32.mrb[121].mxu0  ;;  %v7331_v6 = vpop.f32.mrb[125].mxu1 }
 0x1f0   : > { %v3681_v4 = vpop.f32.mrb[122].mxu0  ;;  %v3845_v13 = vpop.f32.mrb[126].mxu1 }
 0x1f1   : > { %v7314_v16 = vpop.f32.mrb[123].mxu0  ;;  %v3746_v21 = vadd.f32 %v3740_v62, %v3684_v28  ;;  %v7332_v22 = vpop.f32.mrb[127].mxu1 }
 0x1f6   : > { %v3793_v8 = vpop.f32.mrb[124].mxu0  ;;  %v3940_v7 = vpop.f32.mrb[128].mxu1 }
 0x1f7   : > { %v3799_v12 = vadd.f32 %v3793_v8, %v3746_v21  ;;  %v7325_v23 = vpop.f32.mrb[125].mxu0  ;;  %v7343_v25 = vpop.f32.mrb[129].mxu1 }
 0x1f8   : > { %v3796_v48 = vpop.f32.mrb[126].mxu0  ;;  %v3943_v29 = vpop.f32.mrb[130].mxu1 }
 0x1f9   : > { %v7326_v49 = vpop.f32.mrb[127].mxu0  ;;  %v3848_v45 = vadd.f32 %v3842_v2, %v3799_v12  ;;  %v7344_v31 = vpop.f32.mrb[131].mxu1 }
 0x1fe   : > { %v3891_v55 = vpop.f32.mrb[128].mxu0  ;;  %v4038_v33 = vpop.f32.mrb[132].mxu1 }
 0x1ff   : > { %v3897_v34 = vadd.f32 %v3891_v55, %v3848_v45  ;;  %v7337_v9 = vpop.f32.mrb[129].mxu0  ;;  %v7355_v36 = vpop.f32.mrb[133].mxu1 }
 0x200   : > { %v3894_v26 = vpop.f32.mrb[130].mxu0  ;;  %v4041_v40 = vpop.f32.mrb[134].mxu1 }
 0x201   : > { %v7338_v14 = vpop.f32.mrb[131].mxu0  ;;  %v3946_v18 = vadd.f32 %v3940_v7, %v3897_v34  ;;  %v7356_v19 = vpop.f32.mrb[135].mxu1 }
 0x206   : > { %v3989_v41 = vpop.f32.mrb[132].mxu0  ;;  %v4139_v38 = vpop.f32.mrb[136].mxu1 }
 0x207   : > { %v3995_v15 = vadd.f32 %v3989_v41, %v3946_v18  ;;  %v7349_v42 = vpop.f32.mrb[133].mxu0  ;;  %v7367_v35 = vpop.f32.mrb[137].mxu1 }
 0x208   : > { %v3992_v1 = vpop.f32.mrb[134].mxu0  ;;  %v4142_v44 = vpop.f32.mrb[138].mxu1 }
 0x209   : > { %v7350_v46 = vpop.f32.mrb[135].mxu0  ;;  %v4044_v51 = vadd.f32 %v4038_v33, %v3995_v15  ;;  %v7368_v52 = vpop.f32.mrb[139].mxu1 }
 0x20e   : > { %v4087_v11 = vpop.f32.mrb[136].mxu0  ;;  %v4254_v27 = vpop.f32.mrb[140].mxu1 }
 0x20f   : > { %v4093_v53 = vadd.f32 %v4087_v11, %v4044_v51  ;;  %v7361_v10 = vpop.f32.mrb[137].mxu0  ;;  %v7379_v56 = vpop.f32.mrb[141].mxu1 }
 0x210   : > { %v4090_v57 = vpop.f32.mrb[138].mxu0  ;;  %v4257_v32 = vpop.f32.mrb[142].mxu1 }
 0x211   : > { %v7362_v20 = vpop.f32.mrb[139].mxu0  ;;  %v4145_v17 = vadd.f32 %v4139_v38, %v4093_v53  ;;  %v7380_v59 = vpop.f32.mrb[143].mxu1  ;;  %v4723_v53 = vld [vmem:[%s8837_s29 + $0x8] sm:$0xf] }
 0x216   : > { %v4201_v60 = vpop.f32.mrb[140].mxu0  ;;  %v4352_v61 = vpop.f32.mrb[144].mxu1 }
 0x217   : > { %v4207_v54 = vadd.f32 %v4201_v60, %v4145_v17  ;;  %v7373_v58 = vpop.f32.mrb[141].mxu0  ;;  %v7391_v62 = vpop.f32.mrb[145].mxu1 }
 0x218   : > { %v4204_v63 = vpop.f32.mrb[142].mxu0  ;;  %v4355_v0 = vpop.f32.mrb[146].mxu1 }
 0x219   : > { %v7374_v24 = vpop.f32.mrb[143].mxu0  ;;  %v4260_v43 = vadd.f32 %v4254_v27, %v4207_v54  ;;  %v7392_v3 = vpop.f32.mrb[147].mxu1 }
 0x21e   : > { %v4303_v47 = vpop.f32.mrb[144].mxu0  ;;  %v4450_v5 = vpop.f32.mrb[148].mxu1 }
 0x21f   : > { %v4309_v37 = vadd.f32 %v4303_v47, %v4260_v43  ;;  %v7385_v50 = vpop.f32.mrb[145].mxu0  ;;  %v7403_v2 = vpop.f32.mrb[149].mxu1 }
 0x220   : > { %v4306_v28 = vpop.f32.mrb[146].mxu0  ;;  %v4453_v39 = vpop.f32.mrb[150].mxu1 }
 0x221   : > { %v7386_v6 = vpop.f32.mrb[147].mxu0  ;;  %v4358_v4 = vadd.f32 %v4352_v61, %v4309_v37  ;;  %v7404_v13 = vpop.f32.mrb[151].mxu1 }
 0x226   : > { %v4401_v16 = vpop.f32.mrb[148].mxu0  ;;  %v4548_v21 = vpop.f32.mrb[152].mxu1 }
 0x227   : > { %v4407_v22 = vadd.f32 %v4401_v16, %v4358_v4  ;;  %v7397_v8 = vpop.f32.mrb[149].mxu0  ;;  %v7415_v7 = vpop.f32.mrb[153].mxu1 }
 0x228   : > { %v4404_v12 = vpop.f32.mrb[150].mxu0  ;;  %v4551_v23 = vpop.f32.mrb[154].mxu1 }
 0x229   : > { %v7398_v25 = vpop.f32.mrb[151].mxu0  ;;  %v4456_v48 = vadd.f32 %v4450_v5, %v4407_v22  ;;  %v7416_v29 = vpop.f32.mrb[155].mxu1 }
 0x22e   : > { %v4499_v49 = vpop.f32.mrb[152].mxu0  ;;  %v4662_v45 = vpop.f32.mrb[156].mxu1 }
 0x22f   : > { %v4505_v31 = vadd.f32 %v4499_v49, %v4456_v48  ;;  %v7409_v55 = vpop.f32.mrb[153].mxu0  ;;  %v7427_v33 = vpop.f32.mrb[157].mxu1 }
 0x230   : > { %v4502_v34 = vpop.f32.mrb[154].mxu0  ;;  %v4665_v9 = vpop.f32.mrb[158].mxu1 }
 0x231   : > { %v7410_v36 = vpop.f32.mrb[155].mxu0  ;;  %v4554_v26 = vadd.f32 %v4548_v21, %v4505_v31  ;;  %v7428_v40 = vpop.f32.mrb[159].mxu1 }
 0x236   : > { %v4600_v14 = vpop.f32.mrb[156].mxu0  ;;  %v4770_v18 = vpop.f32.mrb[160].mxu1 }
 0x237   : > { %v4606_v19 = vadd.f32 %v4600_v14, %v4554_v26  ;;  %v7421_v41 = vpop.f32.mrb[157].mxu0  ;;  %v7439_v38 = vpop.f32.mrb[161].mxu1 }
 0x238   : > { %v4603_v15 = vpop.f32.mrb[158].mxu0  ;;  %v4773_v42 = vpop.f32.mrb[162].mxu1 }
 0x239   : > { %v7422_v35 = vpop.f32.mrb[159].mxu0  ;;  %v4668_v1 = vadd.f32 %v4662_v45, %v4606_v19  ;;  %v7440_v44 = vpop.f32.mrb[163].mxu1 }
 0x23e   : > { %v4715_v46 = vpop.f32.mrb[160].mxu0  ;;  %v4864_v51 = vpop.f32.mrb[164].mxu1 }
 0x23f   : > { %v4721_v52 = vadd.f32 %v4715_v46, %v4668_v1  ;;  %v7433_v11 = vpop.f32.mrb[161].mxu0  ;;  %v7451_v27 = vpop.f32.mrb[165].mxu1 }
 0x240   : > { %v4718_v10 = vpop.f32.mrb[162].mxu0  ;;  %v4867_v56 = vpop.f32.mrb[166].mxu1 }
 0x241   : > { %v4722_v57 = vadd.f32 %v8843_v30, %v4721_v52  ;;  %v7434_v32 = vpop.f32.mrb[163].mxu0  ;;  %v7452_v20 = vpop.f32.mrb[167].mxu1 }
 0x243   : > { %v4724_v17 = vadd.f32 %v4723_v53, %v4722_v57 }
 0x245   : > { %4725 = vst.msk [vmem:[%s8866_s9 + $0x8] sm:$0xf] %vm1954_vm2, %v4724_v17 }
 0x246   : > { %v4816_v59 = vpop.f32.mrb[164].mxu0  ;;  %v4962_v60 = vpop.f32.mrb[168].mxu1 }
 0x247   : > { %v4817_v61 = vadd.f32 %v4816_v59, %v4770_v18  ;;  %v7445_v54 = vpop.f32.mrb[165].mxu0  ;;  %v7463_v58 = vpop.f32.mrb[169].mxu1 }
 0x248   : > { %v4819_v62 = vpop.f32.mrb[166].mxu0  ;;  %v4965_v63 = vpop.f32.mrb[170].mxu1 }
 0x249   : > { %v7446_v0 = vpop.f32.mrb[167].mxu0  ;;  %v4870_v24 = vadd.f32 %v4864_v51, %v4817_v61  ;;  %v7464_v43 = vpop.f32.mrb[171].mxu1 }
 0x24e   : > { %v4913_v3 = vpop.f32.mrb[168].mxu0  ;;  %v5063_v47 = vpop.f32.mrb[172].mxu1 }
 0x24f   : > { %v4919_v5 = vadd.f32 %v4913_v3, %v4870_v24  ;;  %v7457_v37 = vpop.f32.mrb[169].mxu0  ;;  %v7475_v30 = vpop.f32.mrb[173].mxu1 }
 0x250   : > { %v4916_v50 = vpop.f32.mrb[170].mxu0  ;;  %v5066_v2 = vpop.f32.mrb[174].mxu1 }
 0x251   : > { %v7458_v28 = vpop.f32.mrb[171].mxu0  ;;  %v4968_v39 = vadd.f32 %v4962_v60, %v4919_v5  ;;  %v7476_v6 = vpop.f32.mrb[175].mxu1 }
 0x256   : > { %v5011_v4 = vpop.f32.mrb[172].mxu0  ;;  %v5178_v13 = vpop.f32.mrb[176].mxu1 }
 0x257   : > { %v5017_v16 = vadd.f32 %v5011_v4, %v4968_v39  ;;  %v7469_v21 = vpop.f32.mrb[173].mxu0  ;;  %v7487_v22 = vpop.f32.mrb[177].mxu1 }
 0x258   : > { %v5014_v8 = vpop.f32.mrb[174].mxu0  ;;  %v5181_v7 = vpop.f32.mrb[178].mxu1 }
 0x259   : > { %v7470_v12 = vpop.f32.mrb[175].mxu0  ;;  %v5069_v23 = vadd.f32 %v5063_v47, %v5017_v16  ;;  %v7488_v25 = vpop.f32.mrb[179].mxu1 }
 0x25e   : > { %v5125_v48 = vpop.f32.mrb[176].mxu0  ;;  %v5276_v29 = vpop.f32.mrb[180].mxu1 }
 0x25f   : > { %v5131_v49 = vadd.f32 %v5125_v48, %v5069_v23  ;;  %v7481_v45 = vpop.f32.mrb[177].mxu0  ;;  %v7499_v31 = vpop.f32.mrb[181].mxu1 }
 0x260   : > { %v5128_v55 = vpop.f32.mrb[178].mxu0  ;;  %v5279_v33 = vpop.f32.mrb[182].mxu1 }
 0x261   : > { %v7482_v34 = vpop.f32.mrb[179].mxu0  ;;  %v5184_v9 = vadd.f32 %v5178_v13, %v5131_v49  ;;  %v7500_v36 = vpop.f32.mrb[183].mxu1 }
 0x266   : > { %v5227_v26 = vpop.f32.mrb[180].mxu0  ;;  %v5374_v40 = vpop.f32.mrb[184].mxu1 }
 0x267   : > { %v5233_v14 = vadd.f32 %v5227_v26, %v5184_v9  ;;  %v7493_v18 = vpop.f32.mrb[181].mxu0  ;;  %v7511_v19 = vpop.f32.mrb[185].mxu1 }
 0x268   : > { %v5230_v41 = vpop.f32.mrb[182].mxu0  ;;  %v5377_v38 = vpop.f32.mrb[186].mxu1 }
 0x269   : > { %v7494_v15 = vpop.f32.mrb[183].mxu0  ;;  %v5282_v42 = vadd.f32 %v5276_v29, %v5233_v14  ;;  %v7512_v35 = vpop.f32.mrb[187].mxu1 }
 0x26e   : > { %v5325_v1 = vpop.f32.mrb[184].mxu0  ;;  %v5472_v44 = vpop.f32.mrb[188].mxu1 }
 0x26f   : > { %v5331_v46 = vadd.f32 %v5325_v1, %v5282_v42  ;;  %v7505_v51 = vpop.f32.mrb[185].mxu0  ;;  %v7523_v52 = vpop.f32.mrb[189].mxu1 }
 0x270   : > { %v5328_v11 = vpop.f32.mrb[186].mxu0  ;;  %v5475_v27 = vpop.f32.mrb[190].mxu1 }
 0x271   : > { %v7506_v53 = vpop.f32.mrb[187].mxu0  ;;  %v5380_v10 = vadd.f32 %v5374_v40, %v5331_v46  ;;  %v7524_v56 = vpop.f32.mrb[191].mxu1 }
 0x276   : > { %v5423_v57 = vpop.f32.mrb[188].mxu0  ;;  %v5586_v32 = vpop.f32.mrb[192].mxu1 }
 0x277   : > { %v5429_v20 = vadd.f32 %v5423_v57, %v5380_v10  ;;  %v7517_v17 = vpop.f32.mrb[189].mxu0  ;;  %v7535_v59 = vpop.f32.mrb[193].mxu1 }
 0x278   : > { %v5426_v60 = vpop.f32.mrb[190].mxu0  ;;  %v5589_v61 = vpop.f32.mrb[194].mxu1  ;;  %v7805_v17 = vld [vmem:[%s9149_s4] ss:$0 sm:$0xff] }
 0x279   : > { %v7518_v54 = vpop.f32.mrb[191].mxu0  ;;  %v5478_v58 = vadd.f32 %v5472_v44, %v5429_v20  ;;  %v7536_v62 = vpop.f32.mrb[195].mxu1  ;;  %v6108_v20 = vld [vmem:[%s8837_s29 + $0xc] sm:$0xf]  ;;  %s9093_s29 = scalar_lea.sflag [#allocation3], %s352_s16 }
 0x27e   : > { %v5524_v63 = vpop.f32.mrb[192].mxu0  ;;  %v5688_v0 = vpop.f32.mrb[196].mxu1 }
 0x27f   : > { %v5530_v24 = vadd.f32 %v5524_v63, %v5478_v58  ;;  %v7529_v43 = vpop.f32.mrb[193].mxu0  ;;  %v7547_v3 = vpop.f32.mrb[197].mxu1 }
 0x280   : > { %v5527_v47 = vpop.f32.mrb[194].mxu0  ;;  %v5691_v5 = vpop.f32.mrb[198].mxu1 }
 0x281   : > { %v7530_v37 = vpop.f32.mrb[195].mxu0  ;;  %v5592_v30 = vadd.f32 %v5586_v32, %v5530_v24  ;;  %v7548_v50 = vpop.f32.mrb[199].mxu1 }
 0x286   : > { %v5639_v2 = vpop.f32.mrb[196].mxu0  ;;  %v5786_v28 = vpop.f32.mrb[200].mxu1 }
 0x287   : > { %v5645_v39 = vadd.f32 %v5639_v2, %v5592_v30  ;;  %v7541_v6 = vpop.f32.mrb[197].mxu0  ;;  %v7559_v4 = vpop.f32.mrb[201].mxu1 }
 0x288   : > { %v5642_v13 = vpop.f32.mrb[198].mxu0  ;;  %v5789_v16 = vpop.f32.mrb[202].mxu1 }
 0x289   : > { %v7542_v21 = vpop.f32.mrb[199].mxu0  ;;  %v5694_v22 = vadd.f32 %v5688_v0, %v5645_v39  ;;  %v7560_v8 = vpop.f32.mrb[203].mxu1 }
 0x28e   : > { %v5737_v7 = vpop.f32.mrb[200].mxu0  ;;  %v5884_v12 = vpop.f32.mrb[204].mxu1 }
 0x28f   : > { %v5743_v23 = vadd.f32 %v5737_v7, %v5694_v22  ;;  %v7553_v25 = vpop.f32.mrb[201].mxu0  ;;  %v7571_v48 = vpop.f32.mrb[205].mxu1 }
 0x290   : > { %v5740_v29 = vpop.f32.mrb[202].mxu0  ;;  %v5887_v49 = vpop.f32.mrb[206].mxu1 }
 0x291   : > { %v7554_v45 = vpop.f32.mrb[203].mxu0  ;;  %v5792_v31 = vadd.f32 %v5786_v28, %v5743_v23  ;;  %v7572_v55 = vpop.f32.mrb[207].mxu1 }
 0x296   : > { %v5835_v33 = vpop.f32.mrb[204].mxu0  ;;  %v5985_v34 = vpop.f32.mrb[208].mxu1 }
 0x297   : > { %v5841_v9 = vadd.f32 %v5835_v33, %v5792_v31  ;;  %v7565_v36 = vpop.f32.mrb[205].mxu0  ;;  %v7583_v26 = vpop.f32.mrb[209].mxu1 }
 0x298   : > { %v5838_v40 = vpop.f32.mrb[206].mxu0  ;;  %v5988_v14 = vpop.f32.mrb[210].mxu1 }
 0x299   : > { %v7566_v18 = vpop.f32.mrb[207].mxu0  ;;  %v5890_v19 = vadd.f32 %v5884_v12, %v5841_v9  ;;  %v7584_v41 = vpop.f32.mrb[211].mxu1 }
 0x29e   : > { %v5933_v38 = vpop.f32.mrb[208].mxu0  ;;  %v6100_v15 = vpop.f32.mrb[212].mxu1 }
 0x29f   : > { %v5939_v42 = vadd.f32 %v5933_v38, %v5890_v19  ;;  %v7577_v35 = vpop.f32.mrb[209].mxu0  ;;  %v7595_v1 = vpop.f32.mrb[213].mxu1 }
 0x2a0   : > { %v5936_v44 = vpop.f32.mrb[210].mxu0  ;;  %v6103_v46 = vpop.f32.mrb[214].mxu1 }
 0x2a1   : > { %v7578_v51 = vpop.f32.mrb[211].mxu0  ;;  %v5991_v52 = vadd.f32 %v5985_v34, %v5939_v42  ;;  %v7596_v11 = vpop.f32.mrb[215].mxu1 }
 0x2a6   : > { %v6047_v27 = vpop.f32.mrb[212].mxu0 }
 0x2a7   : > { %v6053_v53 = vadd.f32 %v6047_v27, %v5991_v52  ;;  %v7589_v10 = vpop.f32.mrb[213].mxu0 }
 0x2a8   : > { %v6050_v56 = vpop.f32.mrb[214].mxu0 }
 0x2a9   : > { %v6106_v57 = vadd.f32 %v6100_v15, %v6053_v53  ;;  %v7590_v32 = vpop.f32.mrb[215].mxu0 }
 0x2ab   : > { %v6107_v59 = vadd.f32 %v7805_v17, %v6106_v57 }
 0x2ad   : > { %v6109_v60 = vadd.f32 %v6108_v20, %v6107_v59 }
 0x2af   : > { %6110 = vst.msk [vmem:[%s8866_s9 + $0xc] sm:$0xf] %vm1954_vm2, %v6109_v60 }
 0x2b0   : > { %7819 = shalt.err (!%p7816_p11)
}
 0x2b1   : > { %s7820_s16 = scalar_lea.hbm %s9085_s14, 256  ;;  %s7824_s30 = scalar_lea.hbm %s9151_s6, 2048 }
 0x2b2   : > { %p7821_p12 = scmp.ne.s32.totalorder %s9085_s14, %s7820_s16  ;;  %p7825_p1 = scmp.lt.u32.totalorder %s9085_s14, %s9151_s6 }
 0x2b3   : > { %p7826_p2 = scmp.lt.u32.totalorder %s7824_s30, %s7820_s16  ;;  %p7828_p5 = scmp.lt.u32.totalorder %s7820_s16, %s9085_s14 }
 0x2b4   : > { %p7822_p13 = pnand %p7821_p12, %p7993_p3 }
 0x2b5   : > { %p7827_p4 = por %p7826_p2, %p7825_p1 }
 0x2b6   : > { %p7823_p0 = pneg %p7822_p13 }
 0x2b7   : > { %p7829_p6 = por %p7828_p5, %p7827_p4 }
 0x2b9   : > { %p7830_p7 = pnand %p7829_p6, %p7823_p0 }
 0x2bb   : > { %7833 = shalt.err (!%p7830_p7)
}
 0x2bc   : > { %s7905_s25 = smov 128   ;;  %s7906_s12 = smov 8  }
 0x2bd   : > { %7601 = dma.vmem_to_hbm [thread:$0]  (%p7993_p3), %s9087_s0, 256, %s9085_s14, %s9093_s29, %s7905_s25, %s7905_s25, %s7906_s12  }
 0x2be PF: > { %p7607_p9 = scmp.ge.s32.totalorder %s7900_s28, 2  ;;  %s6142_s13 = sand.u32 1, %s7872_s21  }
 0x2bf   : > { %s6143_s24 = scalar_lea.sflag [#allocation3], %s6142_s13 }
 0x2c0   : > { %p7604_p10 = pnand %p7607_p9, %p8002_p8 }
 0x2c2   : > { %7867 = dma.done.wait (!%p7604_p10), %s6143_s24, 256  }
 0x2c3   : > { %7869 = vsyncadd (!%p7604_p10), %s6143_s24, 4294967040  ;;  %s19_s28 = sadd.s32 1, %s7900_s28   ;;  %s9156_s21 = smov %s7876_s22 }
 0x2c4   : > { %p16_p11 = scmp.ge.s32.totalorder %s19_s28, 10   ;;  %s9157_s22 = smov %s7880_s23 }
 0x2c5   : > { %s9158_s23 = smov %s8011_s15  ;;  %s9159_s24 = smov %s7892_s26 }
 0x2c6   : > { %s9160_s25 = smov %s7896_s27  ;;  %s9161_s26 = smov %s9164_s7 }
 0x2c7   : > { %s9162_s27 = smov %s9168_s8  ;;  %18 = sbr.rel (!%p16_p11) target bundleno = 7 (0x7), region = 114 }
 0x2ce   :  { %6148 = vsyncpa [#allocation3], 1 }
 0x2cf   :  { %6150 = vsyncpa [#allocation3 + $0x1], 1 }

// kernel: unet_encoder_block.7
= control target key start
LH: loop header
LB: loop body
LE: loop exit
PB: predicated region body
PF: predicated region fallthrough
CT: control target
= control target key end

     0   :  { %s7968_s24 = smov 0   ;;  %s7970_s25 = smov 0   ;;  %s9108_s0 = inlined_call_operand.vmem [shape: bf16[2,6,6,6,16], index: 0, kind: input, shape index: {}, may-alias: {0,1,2}]   ;;  %s9109_s1 = inlined_call_operand.vmem [shape: bf16[2,6,6,6,16], index: 1, kind: input, shape index: {}, may-alias: {0,1,2}]   ;;  %s9110_s2 = inlined_call_operand.vmem [shape: bf16[2,6,6,6,16], index: 2, kind: input, shape index: {}, may-alias: {0,1,2}]   ;;  %s9111_s3 = inlined_call_operand.vmem [shape: bf16[27,16,16], index: 3, kind: input, shape index: {}]   ;;  %s9112_s4 = inlined_call_operand.vmem [shape: f32[1,16], index: 4, kind: input, shape index: {}]   ;;  %s9113_s5 = inlined_call_operand.vmem [shape: f32[2,64,16], index: 5, kind: output, shape index: {0}]   ;;  %s9114_s6 = inlined_call_operand.vmem [shape: f32[2,1,16], index: 6, kind: output, shape index: {1}]   ;;  %s9115_s7 = inlined_call_operand.vmem [shape: f32[2,1,16], index: 7, kind: output, shape index: {2}]  }
   0x1   :  { %9118 = sst [smem:[#allocation6_spill]] %s9108_s0  ;;  %s7972_s26 = smov 0  }
   0x2   :  { %9119 = sst [smem:[#allocation7_spill]] %s9114_s6  ;;  %s7974_s27 = smov 0  }
   0x3   :  { %s7976_s28 = smov 0  }
   0x4 LB: > { %9120 = sst [smem:[#allocation2_spill]] %s7915_s26  ;;  %s27_s29 = sadd.s32 1, %s7915_s26  ;;  %s7923_s28 = sphi %s7976_s28, %s18_s28   ;;  %s7919_s27 = sphi %s7974_s27, %s9130_s27   ;;  %s7915_s26 = sphi %s7972_s26, %s9129_s26   ;;  %s7911_s25 = sphi %s7970_s25, %s9128_s25   ;;  %s7907_s24 = sphi %s7968_s24, %s9127_s24  }
   0x5   : > { %9121 = sst [smem:[#allocation3_spill]] %s7919_s27  ;;  %s30_s30 = sadd.s32 1, %s7919_s27 }
   0x6   : > { %p28_p0 = scmp.ge.s32.totalorder %s27_s29, 4  ;;  %p6392_p1 = scmp.ge.s32.totalorder %s7923_s28, 1 }
   0x7   : > { %p302_p2 = scmp.lt.s32.totalorder %s7923_s28, 9 }
   0x8   : > { %s9132_s29 = smov (%p28_p0, %s27_s29), 0  ;;  %s9134_s30 = smov (!%p28_p0, %s30_s30), %s7919_s27 }
   0x9   : > { %9122 = sst [smem:[#allocation4_spill]] %s9132_s29  ;;  %p303_p3 = pnand %p6392_p1, %p302_p2 }
   0xa   : > { %p32_p4 = scmp.ge.s32.totalorder %s9134_s30, 2  ;;  %p368_p5 = scmp.lt.s32.totalorder (!%p303_p3), %s7911_s25, 1 }
   0xb   : > { %306 = sbr.rel (%p303_p3) target bundleno = 707 (0x2c3), region = 40  ;;  %p370_p6 = scmp.lt.s32.totalorder (!%p303_p3), %s7907_s24, 5 }
   0xc   : > { %s9136_s30 = smov (%p32_p4, %s9134_s30), 0  ;;  %s377_s8 = sadd.s32 (!%p303_p3), 1, %s7907_s24 }
   0xd   : > { %9123 = sst [smem:[#allocation5_spill]] %s9136_s30  ;;  %s388_s9 = sadd.s32 (!%p303_p3), 2, %s7907_s24 }
   0xe   : > { %p380_p7 = scmp.lt.s32.totalorder (!%p303_p3), %s377_s8, 5  ;;  %p8004_p8 = scmp.lt.s32.totalorder (!%p303_p3), %s388_s9, 5 }
   0xf   : > { %s6396_s15 = sshll.u32 (!%p303_p3), %s7907_s24, 1  ;;  %s9125_s0 = sld [smem:[#allocation6_spill]] (!%p303_p3) }
  0x10   : > { %p402_p9 = scmp.lt.s32.totalorder (!%p303_p3), %s6396_s15, 7  ;;  %s9126_s6 = sld [smem:[#allocation7_spill]] (!%p303_p3) }
  0x11   : > { %p6399_p10 = scmp.ne.s32.totalorder (!%p303_p3), %s7907_s24, 0 }
  0x12   : > { %s9138_s25 = smov (!%p368_p5, %s7911_s25), 1  ;;  %s9140_s8 = smov (!%p380_p7, %s377_s8), 5 }
  0x13   : > { %s371_s10 = scalar_select %p370_p6, %s7907_s24, 5 }
  0x14   : > { %s7710_s11 = smul.u32 36, %s9138_s25  ;;  %s6397_s22 = sshll.u32 %s9138_s25, 3  ;;  %vm420_vm0 = vcmask (!%p6399_p10), 122880   ;;  %v7925_v0 = vmov (!%p6399_p10), 0.0  }
  0x15   : > { %s7709_s12 = smul.u32 6, %s371_s10  ;;  %s8027_s18 = scalar_lea.vmem %s9115_s7, %s9138_s25 }
  0x16   : > { %s7711_s17 = smul.u32 6, %s9140_s8  ;;  %s8017_s29 = scalar_lea.vmem %s9126_s6, %s9138_s25  ;;  %422 = vst.msk [vmem:[%s8027_s18] sm:$0x1] (!%p6399_p10), %vm420_vm0, %v7925_v0 }
  0x17   : > { %s374_s14 = sadd.s32 %s7710_s11, %s7709_s12  ;;  %s9142_s9 = smov (!%p8004_p8, %s388_s9), 5  ;;  %421 = vst.msk [vmem:[%s8017_s29] sm:$0x1] (!%p6399_p10), %vm420_vm0, %v7925_v0 }
  0x18   : > { %s6393_s16 = sshll.u32 %s374_s14, 2  ;;  %s384_s21 = sadd.s32 %s7711_s17, %s7710_s11 }
  0x19   : > { %s8012_s20 = scalar_lea.vmem %s9125_s0, %s6393_s16  ;;  %s6394_s23 = sshll.u32 %s384_s21, 2 }
  0x1a   : > { %s8022_s12 = scalar_lea.vmem %s9109_s1, %s6394_s23  ;;  %s9144_s15 = smov (!%p402_p9, %s6396_s15), 7 }
  0x1b   : > { %s7712_s16 = smul.u32 6, %s9142_s9  ;;  %s405_s17 = sadd.s32 %s6397_s22, %s9144_s15 }
  0x1c   : > { %s6398_s21 = sshll.u32 %s405_s17, 3  ;;  %419 = sbr.rel (%p6399_p10) target bundleno = 35 (0x23), region = 44 }
  0x1d   : > { %s395_s19 = sadd.s32 %s7712_s16, %s7710_s11  ;;  %s8034_s6 = scalar_lea.vmem %s9113_s5, %s6398_s21 }
  0x1e   : > { %s6395_s30 = sshll.u32 %s395_s19, 2 }
  0x1f   : > { %s8039_s23 = scalar_lea.vmem %s9110_s2, %s6395_s30 }
  0x23 PF: > { %v7756_v1 = vld [vmem:[%s9111_s3 + $0x8] sm:$0xff]   ;;  %v7926_v2 = vmov 0.0   ;;  %v7757_v3 = vld [vmem:[%s9111_s3] sm:$0xff]   ;;  %vm7927_vm1 = vmmov 0   ;;  %vm463_vm2 = vcmask 130048   ;;  %v7760_v6 = vld [vmem:[%s9111_s3 + $0x18] sm:$0xff]  }
  0x24   : > { %7061 = vmatprep.subr.bf16.mxu0 %v7926_v2  ;;  %7067 = vmatprep.subr.bf16.mxu1 %v7926_v2  ;;  %v423_v4 = vld [vmem:[%s8012_s20] sm:$0x7]  ;;  %v7759_v10 = vld [vmem:[%s9111_s3 + $0x10] sm:$0xff]   ;;  %v8069_v11 = vld [vmem:[%s8012_s20 + $0x4] sm:$0x7]  ;;  %vm1977_vm3 = vcmask 125952  }
  0x25   : > { %7062 = vmatpush3.bf16.msra.mxu0 %v7756_v1  ;;  %7069 = vmatprep.mubr.msk.bf16.mxu1 %vm7927_vm1, %v7926_v2  ;;  %v6402_v5 = vcombine.low %v423_v4, %v423_v4  ;;  %v8073_v13 = vld [vmem:[%s8012_s20 + $0x8] sm:$0x7]  ;;  %v8078_v14 = vcombine.low %v8069_v11, %v8069_v11  ;;  %v7762_v19 = vld [vmem:[%s9111_s3 + $0x20] sm:$0xff]   ;;  %v7765_v24 = vld [vmem:[%s9111_s3 + $0x38] sm:$0xff]   ;;  %vm6198_vm4 = vcmask 122880  }
  0x26   : > { %7068 = vmatpush3.bf16.msra.mxu1 %v7757_v3  ;;  %7063 = vmatprep.mubr.msk.bf16.mxu0 %vm7927_vm1, %v7926_v2  ;;  %v7763_v15 = vld [vmem:[%s9111_s3 + $0x28] sm:$0xff]   ;;  %v6430_v16 = vcombine.low %v8073_v13, %v8073_v13  ;;  %v7764_v28 = vld [vmem:[%s9111_s3 + $0x30] sm:$0xff]   ;;  %v7767_v31 = vld [vmem:[%s9111_s3 + $0x40] sm:$0xff]  }
  0x27   : > { %7073 = vmatprep.subr.bf16.mxu0 %v7926_v2  ;;  %7079 = vmatprep.subr.bf16.mxu1 %v7926_v2  ;;  %v451_v7 = vshrl.u32 %v6402_v5, 16  ;;  %v453_v8 = vshll.u32 %v6402_v5, 16  ;;  %v559_v17 = vrot.slane %v6402_v5, 1  ;;  %v672_v18 = vshll.u32 %v8078_v14, 16  ;;  %v7768_v30 = vld [vmem:[%s9111_s3 + $0x48] sm:$0xff]   ;;  %v7771_v34 = vld [vmem:[%s9111_s3 + $0x58] sm:$0xff]  }
  0x28   : > { %v729_v20 = vrot.slane %v8078_v14, 1  ;;  %v842_v21 = vshll.u32 %v6430_v16, 16  ;;  %v670_v22 = vshrl.u32 %v8078_v14, 16  ;;  %v840_v25 = vshrl.u32 %v6430_v16, 16  ;;  %v429_v32 = vld [vmem:[%s8022_s12] sm:$0x7] }
  0x29   : > { %7070 = vmatmul.mubr.msk.bf16.vlgmr.msra.gmra.mrb[0].mxu1 %vm463_vm2, %v423_v4  ;;  %v455_v9 = vrot.slane %v453_v8, 1  ;;  %v674_v23 = vrot.slane %v672_v18, 1  ;;  %v6443_v33 = vcombine.low %v429_v32, %v429_v32  ;;  %v8142_v35 = vld [vmem:[%s8022_s12 + $0x4] sm:$0x7]  ;;  %v8152_v38 = vrot.slane %v6430_v16, 1  ;;  %v7770_v39 = vld [vmem:[%s9111_s3 + $0x50] sm:$0xff]  }
  0x2a   : > { %7080 = vmatpush3.bf16.msra.mxu1 %v7760_v6  ;;  %7081 = vmatprep.mubr.msk.bf16.mxu1 %vm7927_vm1, %v7926_v2  ;;  %v844_v26 = vrot.slane %v842_v21, 1  ;;  %v8150_v36 = vcombine.low %v8142_v35, %v8142_v35  ;;  %v7773_v44 = vld [vmem:[%s9111_s3 + $0x68] sm:$0xff]   ;;  %v7772_v48 = vld [vmem:[%s9111_s3 + $0x60] sm:$0xff]   ;;  %v7776_v50 = vld [vmem:[%s9111_s3 + $0x78] sm:$0xff]  }
  0x2b   : > { %7091 = vmatprep.subr.bf16.mxu1 %v7926_v2  ;;  %v456_v12 = vor.u32 %v455_v9, %v451_v7  ;;  %v8109_v27 = vor.u32 %v674_v23, %v670_v22  ;;  %v1012_v37 = vshll.u32 %v6443_v33, 16  ;;  %v1069_v40 = vrot.slane %v6443_v33, 1  ;;  %v8186_v51 = vld [vmem:[%s8022_s12 + $0x8] sm:$0x7]  ;;  %v435_v52 = vld [vmem:[%s8039_s23] sm:$0x7] }
  0x2c   : > { %v8117_v29 = vor.u32 %v844_v26, %v840_v25  ;;  %v1182_v41 = vshll.u32 %v8150_v36, 16  ;;  %v1010_v42 = vshrl.u32 %v6443_v33, 16  ;;  %v1180_v45 = vshrl.u32 %v8150_v36, 16  ;;  %v7775_v54 = vld [vmem:[%s9111_s3 + $0x70] sm:$0xff]   ;;  %v7779_v57 = vld [vmem:[%s9111_s3 + $0x88] sm:$0xff]   ;;  %v7778_v62 = vld [vmem:[%s9111_s3 + $0x80] sm:$0xff]  }
  0x2d   : > { %7064 = vmatmul.mubr.msk.bf16.vlgmr.msra.gmra.mrb[0].mxu0 %vm463_vm2, %v456_v12  ;;  %v1014_v43 = vrot.slane %v1012_v37, 1  ;;  %v6469_v53 = vcombine.low %v8186_v51, %v8186_v51  ;;  %v1239_v55 = vrot.slane %v8150_v36, 1  ;;  %v6482_v56 = vcombine.low %v435_v52, %v435_v52  ;;  %v7781_v0 = vld [vmem:[%s9111_s3 + $0x98] sm:$0xff]   ;;  %v7780_v4 = vld [vmem:[%s9111_s3 + $0x90] sm:$0xff]   ;;  %v7784_v7 = vld [vmem:[%s9111_s3 + $0xa8] sm:$0xff]  }
  0x2e   : > { %7074 = vmatpush3.bf16.msra.mxu0 %v7759_v10  ;;  %7075 = vmatprep.mubr.msk.bf16.mxu0 %vm7927_vm1, %v7926_v2  ;;  %v1184_v46 = vrot.slane %v1182_v41, 1  ;;  %v8246_v8 = vld [vmem:[%s8039_s23 + $0x4] sm:$0x7]  ;;  %v8250_v9 = vld [vmem:[%s8039_s23 + $0x8] sm:$0x7]  ;;  %v7786_v21 = vld [vmem:[%s9111_s3 + $0xb0] sm:$0xff]  }
  0x2f   : > { %7085 = vmatprep.subr.bf16.mxu0 %v7926_v2  ;;  %v1015_v47 = vor.u32 %v1014_v43, %v1010_v42  ;;  %v1352_v58 = vshll.u32 %v6469_v53, 16  ;;  %v8206_v59 = vrot.slane %v6469_v53, 1  ;;  %v1350_v60 = vshrl.u32 %v6469_v53, 16  ;;  %v7783_v10 = vld [vmem:[%s9111_s3 + $0xa0] sm:$0xff]   ;;  %v7789_v25 = vld [vmem:[%s9111_s3 + $0xc8] sm:$0xff]   ;;  %v7794_v37 = vld [vmem:[%s9111_s3 + $0x10] sm:$0xff]  }
  0x30   : > { %v8177_v49 = vor.u32 %v1184_v46, %v1180_v45  ;;  %v1522_v61 = vshll.u32 %v6482_v56, 16  ;;  %v1520_v1 = vshrl.u32 %v6482_v56, 16  ;;  %v8260_v12 = vcombine.low %v8246_v8, %v8246_v8  ;;  %v7792_v33 = vld [vmem:[%s9111_s3 + $0x8] sm:$0xff]   ;;  %v7796_v41 = vld [vmem:[%s9111_s3 + $0x20] sm:$0xff]   ;;  %v7798_v42 = vld [vmem:[%s9111_s3 + $0x30] sm:$0xff]  }
  0x31   : > { %7082 = vmatmul.mubr.msk.bf16.vlgmr.msra.gmra.mrb[4].mxu1 %vm463_vm2, %v8069_v11  ;;  %v1354_v63 = vrot.slane %v1352_v58, 1  ;;  %v1579_v16 = vrot.slane %v6482_v56, 1  ;;  %v8370_v14 = vld [vmem:[%s8012_s20 + $0xc] sm:$0x7]  ;;  %v7801_v43 = vld [vmem:[%s9111_s3 + $0x40] sm:$0xff]   ;;  %v7807_v56 = vld [vmem:[%s9111_s3 + $0x70] sm:$0xff]  }
  0x32   : > { %7092 = vmatpush3.bf16.msra.mxu1 %v7763_v15  ;;  %7093 = vmatprep.mubr.msk.bf16.mxu1 %vm7927_vm1, %v7926_v2  ;;  %v1524_v3 = vrot.slane %v1522_v61, 1  ;;  %v6508_v15 = vcombine.low %v8250_v9, %v8250_v9  ;;  %v1690_v18 = vshrl.u32 %v8260_v12, 16  ;;  %v1749_v22 = vrot.slane %v8260_v12, 1  ;;  %v7805_v53 = vld [vmem:[%s9111_s3 + $0x60] sm:$0xff]   ;;  %v7808_v36 = vld [vmem:[%s9111_s3 + $0x78] sm:$0xff]  }
  0x33   : > { %7103 = vmatprep.subr.bf16.mxu1 %v7926_v2  ;;  %v8233_v5 = vor.u32 %v1354_v63, %v1350_v60  ;;  %v7809_v60 = vld [vmem:[%s9111_s3 + $0x80] sm:$0xff]   ;;  %v7812_v63 = vld [vmem:[%s9111_s3 + $0x90] sm:$0xff]  }
  0x34   : > { %v1525_v6 = vor.u32 %v1524_v3, %v1520_v1  ;;  %v1862_v23 = vshll.u32 %v6508_v15, 16  ;;  %v1860_v26 = vshrl.u32 %v6508_v15, 16  ;;  %v7814_v1 = vld [vmem:[%s9111_s3 + $0xa0] sm:$0xff]  }
  0x35   : > { %7076 = vmatmul.mubr.msk.bf16.vlgmr.msra.gmra.mrb[4].mxu0 %vm463_vm2, %v559_v17  ;;  %v7787_v17 = vld [vmem:[%s9111_s3 + $0xb8] sm:$0xff]  }
  0x36   : > { %7086 = vmatpush3.bf16.msra.mxu0 %v7762_v19  ;;  %7087 = vmatprep.mubr.msk.bf16.mxu0 %vm7927_vm1, %v7926_v2  ;;  %v1692_v19 = vshll.u32 %v8260_v12, 16  ;;  %v8534_v12 = vld [vmem:[%s8039_s23 + $0xc] sm:$0x7] }
  0x37   : > { %7097 = vmatprep.subr.bf16.mxu0 %v7926_v2 }
  0x39   : > { %7094 = vmatmul.mubr.msk.bf16.vlgmr.msra.gmra.mrb[8].mxu1 %vm463_vm2, %v729_v20 }
  0x3a   : > { %7104 = vmatpush3.bf16.msra.mxu1 %v7765_v24  ;;  %7105 = vmatprep.mubr.msk.bf16.mxu1 %vm7927_vm1, %v7926_v2  ;;  %v1694_v24 = vrot.slane %v1692_v19, 1 }
  0x3b   : > { %7115 = vmatprep.subr.bf16.mxu1 %v7926_v2 }
  0x3d   : > { %7088 = vmatmul.mubr.msk.bf16.vlgmr.msra.gmra.mrb[8].mxu0 %vm463_vm2, %v8109_v27 }
  0x3e   : > { %7098 = vmatpush3.bf16.msra.mxu0 %v7764_v28  ;;  %7099 = vmatprep.mubr.msk.bf16.mxu0 %vm7927_vm1, %v7926_v2  ;;  %v1864_v28 = vrot.slane %v1862_v23, 1  ;;  %v7823_v23 = vld [vmem:[%s9111_s3] sm:$0xff]  }
  0x3f   : > { %7109 = vmatprep.subr.bf16.mxu0 %v7926_v2 }
  0x41   : > { %7106 = vmatmul.mubr.msk.bf16.vlgmr.msra.gmra.mrb[12].mxu1 %vm463_vm2, %v8117_v29 }
  0x42   : > { %7116 = vmatpush3.bf16.msra.mxu1 %v7768_v30  ;;  %7117 = vmatprep.mubr.msk.bf16.mxu1 %vm7927_vm1, %v7926_v2  ;;  %v7788_v30 = vld [vmem:[%s9111_s3 + $0xc0] sm:$0xff]  }
  0x43   : > { %7127 = vmatprep.subr.bf16.mxu1 %v7926_v2 }
  0x45   : > { %7100 = vmatmul.mubr.msk.bf16.vlgmr.msra.gmra.mrb[12].mxu0 %vm463_vm2, %v8073_v13 }
  0x46   : > { %7110 = vmatpush3.bf16.msra.mxu0 %v7767_v31  ;;  %7111 = vmatprep.mubr.msk.bf16.mxu0 %vm7927_vm1, %v7926_v2  ;;  %v8296_v31 = vor.u32 %v1694_v24, %v1690_v18  ;;  %v7820_v18 = vld [vmem:[%s9111_s3 + $0xc8] sm:$0xff]  }
  0x47   : > { %7121 = vmatprep.subr.bf16.mxu0 %v7926_v2 }
  0x49   : > { %7118 = vmatmul.mubr.msk.bf16.vlgmr.msra.gmra.mrb[16].mxu1 %vm463_vm2, %v429_v32  ;;  %v8301_v32 = vor.u32 %v1864_v28, %v1860_v26 }
  0x4a   : > { %7128 = vmatpush3.bf16.msra.mxu1 %v7771_v34  ;;  %7129 = vmatprep.mubr.msk.bf16.mxu1 %vm7927_vm1, %v7926_v2  ;;  %v7791_v34 = vld [vmem:[%s9111_s3 + $0xd0] sm:$0xff]  }
  0x4b   : > { %7139 = vmatprep.subr.bf16.mxu1 %v7926_v2 }
  0x4d   : > { %7112 = vmatmul.mubr.msk.bf16.vlgmr.msra.gmra.mrb[16].mxu0 %vm463_vm2, %v8152_v38 }
  0x4e   : > { %7122 = vmatpush3.bf16.msra.mxu0 %v7770_v39  ;;  %7123 = vmatprep.mubr.msk.bf16.mxu0 %vm7927_vm1, %v7926_v2  ;;  %v8329_v39 = vrot.slane %v6508_v15, 1  ;;  %v6618_v15 = vcombine.low %v8534_v12, %v8534_v12 }
  0x4f   : > { %7133 = vmatprep.subr.bf16.mxu0 %v7926_v2 }
  0x50   : > { %v8555_v19 = vrot.slane %v6618_v15, 1 }
  0x51   : > { %7130 = vmatmul.mubr.msk.bf16.vlgmr.msra.gmra.mrb[20].mxu1 %vm463_vm2, %v1069_v40  ;;  %v7793_v40 = vld [vmem:[%s9111_s3] sm:$0xff]  }
  0x52   : > { %7140 = vmatpush3.bf16.msra.mxu1 %v7773_v44  ;;  %7141 = vmatprep.mubr.msk.bf16.mxu1 %vm7927_vm1, %v7926_v2 }
  0x53   : > { %7151 = vmatprep.subr.bf16.mxu1 %v7926_v2 }
  0x55   : > { %7124 = vmatmul.mubr.msk.bf16.vlgmr.msra.gmra.mrb[20].mxu0 %vm463_vm2, %v1015_v47 }
  0x56   : > { %7134 = vmatpush3.bf16.msra.mxu0 %v7772_v48  ;;  %7135 = vmatprep.mubr.msk.bf16.mxu0 %vm7927_vm1, %v7926_v2  ;;  %v7803_v48 = vld [vmem:[%s9111_s3 + $0x50] sm:$0xff]  }
  0x57   : > { %7145 = vmatprep.subr.bf16.mxu0 %v7926_v2 }
  0x59   : > { %7142 = vmatmul.mubr.msk.bf16.vlgmr.msra.gmra.mrb[24].mxu1 %vm463_vm2, %v8177_v49 }
  0x5a   : > { %7152 = vmatpush3.bf16.msra.mxu1 %v7776_v50  ;;  %7153 = vmatprep.mubr.msk.bf16.mxu1 %vm7927_vm1, %v7926_v2 }
  0x5b   : > { %7163 = vmatprep.subr.bf16.mxu1 %v7926_v2 }
  0x5d   : > { %7136 = vmatmul.mubr.msk.bf16.vlgmr.msra.gmra.mrb[24].mxu0 %vm463_vm2, %v8142_v35 }
  0x5e   : > { %7146 = vmatpush3.bf16.msra.mxu0 %v7775_v54  ;;  %7147 = vmatprep.mubr.msk.bf16.mxu0 %vm7927_vm1, %v7926_v2  ;;  %v7804_v54 = vld [vmem:[%s9111_s3 + $0x58] sm:$0xff]  }
  0x5f   : > { %7157 = vmatprep.subr.bf16.mxu0 %v7926_v2 }
  0x61   : > { %7154 = vmatmul.mubr.msk.bf16.vlgmr.msra.gmra.mrb[28].mxu1 %vm463_vm2, %v8186_v51 }
  0x62   : > { %7164 = vmatpush3.bf16.msra.mxu1 %v7779_v57  ;;  %7165 = vmatprep.mubr.msk.bf16.mxu1 %vm7927_vm1, %v7926_v2  ;;  %v8433_v57 = vld [vmem:[%s8022_s12 + $0xc] sm:$0x7] }
  0x63   : > { %7175 = vmatprep.subr.bf16.mxu1 %v7926_v2 }
  0x65   : > { %7148 = vmatmul.mubr.msk.bf16.vlgmr.msra.gmra.mrb[28].mxu0 %vm463_vm2, %v1239_v55 }
  0x66   : > { %7158 = vmatpush3.bf16.msra.mxu0 %v7778_v62  ;;  %7159 = vmatprep.mubr.msk.bf16.mxu0 %vm7927_vm1, %v7926_v2 }
  0x67   : > { %7169 = vmatprep.subr.bf16.mxu0 %v7926_v2 }
  0x69   : > { %7166 = vmatmul.mubr.msk.bf16.vlgmr.msra.gmra.mrb[32].mxu1 %vm463_vm2, %v8206_v59 }
  0x6a   : > { %7176 = vmatpush3.bf16.msra.mxu1 %v7781_v0  ;;  %7177 = vmatprep.mubr.msk.bf16.mxu1 %vm7927_vm1, %v7926_v2  ;;  %v7811_v0 = vld [vmem:[%s9111_s3 + $0x88] sm:$0xff]  }
  0x6b   : > { %7187 = vmatprep.subr.bf16.mxu1 %v7926_v2 }
  0x6d   : > { %7160 = vmatmul.mubr.msk.bf16.vlgmr.msra.gmra.mrb[32].mxu0 %vm463_vm2, %v8233_v5 }
  0x6e   : > { %7170 = vmatpush3.bf16.msra.mxu0 %v7780_v4  ;;  %7171 = vmatprep.mubr.msk.bf16.mxu0 %vm7927_vm1, %v7926_v2  ;;  %v7813_v4 = vld [vmem:[%s9111_s3 + $0x98] sm:$0xff]  }
  0x6f   : > { %7181 = vmatprep.subr.bf16.mxu0 %v7926_v2 }
  0x71   : > { %7178 = vmatmul.mubr.msk.bf16.vlgmr.msra.gmra.mrb[36].mxu1 %vm463_vm2, %v1525_v6  ;;  %v7816_v6 = vld [vmem:[%s9111_s3 + $0xb0] sm:$0xff]  }
  0x72   : > { %7188 = vmatpush3.bf16.msra.mxu1 %v7784_v7  ;;  %7189 = vmatprep.mubr.msk.bf16.mxu1 %vm7927_vm1, %v7926_v2  ;;  %v7815_v7 = vld [vmem:[%s9111_s3 + $0xa8] sm:$0xff]  }
  0x73   : > { %7199 = vmatprep.subr.bf16.mxu1 %v7926_v2 }
  0x75   : > { %7172 = vmatmul.mubr.msk.bf16.vlgmr.msra.gmra.mrb[36].mxu0 %vm463_vm2, %v435_v52  ;;  %v7802_v52 = vld [vmem:[%s9111_s3 + $0x48] sm:$0xff]  }
  0x76   : > { %7182 = vmatpush3.bf16.msra.mxu0 %v7783_v10  ;;  %7183 = vmatprep.mubr.msk.bf16.mxu0 %vm7927_vm1, %v7926_v2  ;;  %v7817_v10 = vld [vmem:[%s9111_s3 + $0xb8] sm:$0xff]  }
  0x77   : > { %7193 = vmatprep.subr.bf16.mxu0 %v7926_v2 }
  0x79   : > { %7190 = vmatmul.mubr.msk.bf16.vlgmr.msra.gmra.mrb[40].mxu1 %vm463_vm2, %v8246_v8 }
  0x7a   : > { %7200 = vmatpush3.bf16.msra.mxu1 %v7787_v17  ;;  %7201 = vmatprep.mubr.msk.bf16.mxu1 %vm7927_vm1, %v7926_v2  ;;  %v3270_v17 = vshll.u32 %v6618_v15, 16 }
  0x7b   : > { %7211 = vmatprep.subr.bf16.mxu1 %v7926_v2 }
  0x7d   : > { %7184 = vmatmul.mubr.msk.bf16.vlgmr.msra.gmra.mrb[40].mxu0 %vm463_vm2, %v1579_v16  ;;  %v7821_v16 = vld [vmem:[%s9111_s3 + $0xd0] sm:$0xff]  }
  0x7e   : > { %7194 = vmatpush3.bf16.msra.mxu0 %v7786_v21  ;;  %7195 = vmatprep.mubr.msk.bf16.mxu0 %vm7927_vm1, %v7926_v2  ;;  %v3268_v21 = vshrl.u32 %v6618_v15, 16 }
  0x7f   : > { %7205 = vmatprep.subr.bf16.mxu0 %v7926_v2 }
  0x81   : > { %7202 = vmatmul.mubr.msk.bf16.vlgmr.msra.gmra.mrb[44].mxu1 %vm463_vm2, %v1749_v22 }
  0x82   : > { %7212 = vmatpush3.bf16.msra.mxu1 %v7789_v25  ;;  %7213 = vmatprep.mubr.msk.bf16.mxu1 %vm7927_vm1, %v7926_v2  ;;  %v7822_v25 = vld [vmem:[%s9111_s3 + $0x8] sm:$0xff]  }
  0x83   : > { %7223 = vmatprep.subr.bf16.mxu1 %v7926_v2 }
  0x85   : > { %7196 = vmatmul.mubr.msk.bf16.vlgmr.msra.gmra.mrb[44].mxu0 %vm463_vm2, %v8296_v31 }
  0x86   : > { %7206 = vmatpush3.bf16.msra.mxu0 %v7788_v30  ;;  %7207 = vmatprep.mubr.msk.bf16.mxu0 %vm7927_vm1, %v7926_v2 }
  0x87   : > { %7217 = vmatprep.subr.bf16.mxu0 %v7926_v2 }
  0x89   : > { %7214 = vmatmul.mubr.msk.bf16.vlgmr.msra.gmra.mrb[48].mxu1 %vm463_vm2, %v8301_v32 }
  0x8a   : > { %7224 = vmatpush3.bf16.msra.mxu1 %v7792_v33  ;;  %7225 = vmatprep.mubr.msk.bf16.mxu1 %vm7927_vm1, %v7926_v2 }
  0x8b   : > { %7235 = vmatprep.subr.bf16.mxu1 %v7926_v2 }
  0x8d   : > { %7208 = vmatmul.mubr.msk.bf16.vlgmr.msra.gmra.mrb[48].mxu0 %vm463_vm2, %v8250_v9 }
  0x8e   : > { %7218 = vmatpush3.bf16.msra.mxu0 %v7791_v34  ;;  %7219 = vmatprep.mubr.msk.bf16.mxu0 %vm7927_vm1, %v7926_v2 }
  0x8f   : > { %7229 = vmatprep.subr.bf16.mxu0 %v7926_v2 }
  0x91   : > { %7226 = vmatmul.mubr.msk.bf16.vlgmr.msra.gmra.mrb[52].mxu1 %vm463_vm2, %v8109_v27  ;;  %v7795_v27 = vld [vmem:[%s9111_s3 + $0x18] sm:$0xff]  }
  0x92   : > { %7236 = vmatpush3.bf16.msra.mxu1 %v7794_v37  ;;  %7237 = vmatprep.mubr.msk.bf16.mxu1 %vm7927_vm1, %v7926_v2  ;;  %v7882_v37 = vld [vmem:[%s8012_s20 + $0x8] sm:$0x7] }
  0x93   : > { %7247 = vmatprep.subr.bf16.mxu1 %v7926_v2 }
  0x95   : > { %7220 = vmatmul.mubr.msk.bf16.vlgmr.msra.gmra.mrb[52].mxu0 %vm463_vm2, %v8329_v39 }
  0x96   : > { %7230 = vmatpush3.bf16.msra.mxu0 %v7793_v40  ;;  %7231 = vmatprep.mubr.msk.bf16.mxu0 %vm7927_vm1, %v7926_v2 }
  0x97   : > { %7241 = vmatprep.subr.bf16.mxu0 %v7926_v2 }
  0x99   : > { %7238 = vmatmul.mubr.msk.bf16.vlgmr.msra.gmra.mrb[56].mxu1 %vm463_vm2, %v729_v20  ;;  %v6544_v20 = vcombine.low %v8370_v14, %v8370_v14 }
  0x9a   : > { %7248 = vmatpush3.bf16.msra.mxu1 %v7796_v41  ;;  %7249 = vmatprep.mubr.msk.bf16.mxu1 %vm7927_vm1, %v7926_v2 }
  0x9b   : > { %7259 = vmatprep.subr.bf16.mxu1 %v7926_v2  ;;  %v2348_v44 = vshll.u32 %v6544_v20, 16  ;;  %v8391_v45 = vrot.slane %v6544_v20, 1  ;;  %v2346_v46 = vshrl.u32 %v6544_v20, 16 }
  0x9d   : > { %7232 = vmatmul.mubr.msk.bf16.vlgmr.msra.gmra.mrb[56].mxu0 %vm463_vm2, %v8069_v11  ;;  %v7797_v11 = vld [vmem:[%s9111_s3 + $0x28] sm:$0xff]   ;;  %v2350_v47 = vrot.slane %v2348_v44, 1 }
  0x9e   : > { %7242 = vmatpush3.bf16.msra.mxu0 %v7795_v27  ;;  %7243 = vmatprep.mubr.msk.bf16.mxu0 %vm7927_vm1, %v7926_v2 }
  0x9f   : > { %7253 = vmatprep.subr.bf16.mxu0 %v7926_v2  ;;  %v8403_v50 = vor.u32 %v2350_v47, %v2346_v46  ;;  %v8597_v46 = vld [vmem:[%s8012_s20 + $0x10] sm:$0x7] }
  0xa1   : > { %7250 = vmatmul.mubr.msk.bf16.vlgmr.msra.gmra.mrb[60].mxu1 %vm463_vm2, %v8117_v29 }
  0xa2   : > { %7260 = vmatpush3.bf16.msra.mxu1 %v7798_v42  ;;  %7261 = vmatprep.mubr.msk.bf16.mxu1 %vm7927_vm1, %v7926_v2  ;;  %v7824_v42 = vld [vmem:[%s9111_s3 + $0x10] sm:$0xff]  }
  0xa3   : > { %7271 = vmatprep.subr.bf16.mxu1 %v7926_v2 }
  0xa5   : > { %7244 = vmatmul.mubr.msk.bf16.vlgmr.msra.gmra.mrb[60].mxu0 %vm463_vm2, %v8073_v13  ;;  %v7800_v13 = vld [vmem:[%s9111_s3 + $0x38] sm:$0xff]  }
  0xa6   : > { %7254 = vmatpush3.bf16.msra.mxu0 %v7797_v11  ;;  %7255 = vmatprep.mubr.msk.bf16.mxu0 %vm7927_vm1, %v7926_v2 }
  0xa7   : > { %7265 = vmatprep.subr.bf16.mxu0 %v7926_v2 }
  0xa9   : > { %7262 = vmatmul.mubr.msk.bf16.vlgmr.msra.gmra.mrb[64].mxu1 %vm463_vm2, %v8370_v14 }
  0xaa   : > { %7272 = vmatpush3.bf16.msra.mxu1 %v7801_v43  ;;  %7273 = vmatprep.mubr.msk.bf16.mxu1 %vm7927_vm1, %v7926_v2 }
  0xab   : > { %7283 = vmatprep.subr.bf16.mxu1 %v7926_v2 }
  0xad   : > { %7256 = vmatmul.mubr.msk.bf16.vlgmr.msra.gmra.mrb[64].mxu0 %vm463_vm2, %v8152_v38 }
  0xae   : > { %7266 = vmatpush3.bf16.msra.mxu0 %v7800_v13  ;;  %7267 = vmatprep.mubr.msk.bf16.mxu0 %vm7927_vm1, %v7926_v2  ;;  %v7827_v13 = vld [vmem:[%s9111_s3 + $0x28] sm:$0xff]  }
  0xaf   : > { %7277 = vmatprep.subr.bf16.mxu0 %v7926_v2 }
  0xb1   : > { %7274 = vmatmul.mubr.msk.bf16.vlgmr.msra.gmra.mrb[68].mxu1 %vm463_vm2, %v8391_v45 }
  0xb2   : > { %7284 = vmatpush3.bf16.msra.mxu1 %v7803_v48  ;;  %7285 = vmatprep.mubr.msk.bf16.mxu1 %vm7927_vm1, %v7926_v2 }
  0xb3   : > { %7295 = vmatprep.subr.bf16.mxu1 %v7926_v2 }
  0xb5   : > { %7268 = vmatmul.mubr.msk.bf16.vlgmr.msra.gmra.mrb[68].mxu0 %vm463_vm2, %v8403_v50 }
  0xb6   : > { %7278 = vmatpush3.bf16.msra.mxu0 %v7802_v52  ;;  %7279 = vmatprep.mubr.msk.bf16.mxu0 %vm7927_vm1, %v7926_v2 }
  0xb7   : > { %7289 = vmatprep.subr.bf16.mxu0 %v7926_v2 }
  0xb9   : > { %7286 = vmatmul.mubr.msk.bf16.vlgmr.msra.gmra.mrb[72].mxu1 %vm463_vm2, %v8177_v49  ;;  %v6581_v49 = vcombine.low %v8433_v57, %v8433_v57 }
  0xba   : > { %7296 = vmatpush3.bf16.msra.mxu1 %v7805_v53  ;;  %7297 = vmatprep.mubr.msk.bf16.mxu1 %vm7927_vm1, %v7926_v2 }
  0xbb   : > { %7307 = vmatprep.subr.bf16.mxu1 %v7926_v2  ;;  %v2809_v58 = vshll.u32 %v6581_v49, 16  ;;  %v2807_v61 = vshrl.u32 %v6581_v49, 16  ;;  %v8493_v3 = vrot.slane %v6581_v49, 1 }
  0xbd   : > { %7280 = vmatmul.mubr.msk.bf16.vlgmr.msra.gmra.mrb[72].mxu0 %vm463_vm2, %v8142_v35  ;;  %v7806_v35 = vld [vmem:[%s9111_s3 + $0x68] sm:$0xff]   ;;  %v2811_v62 = vrot.slane %v2809_v58, 1 }
  0xbe   : > { %7290 = vmatpush3.bf16.msra.mxu0 %v7804_v54  ;;  %7291 = vmatprep.mubr.msk.bf16.mxu0 %vm7927_vm1, %v7926_v2 }
  0xbf   : > { %7301 = vmatprep.subr.bf16.mxu0 %v7926_v2 }
  0xc1   : > { %7298 = vmatmul.mubr.msk.bf16.vlgmr.msra.gmra.mrb[76].mxu1 %vm463_vm2, %v8186_v51 }
  0xc2   : > { %7308 = vmatpush3.bf16.msra.mxu1 %v7807_v56  ;;  %7309 = vmatprep.mubr.msk.bf16.mxu1 %vm7927_vm1, %v7926_v2  ;;  %v7826_v56 = vld [vmem:[%s9111_s3 + $0x20] sm:$0xff]  }
  0xc3   : > { %7319 = vmatprep.subr.bf16.mxu1 %v7926_v2 }
  0xc5   : > { %7292 = vmatmul.mubr.msk.bf16.vlgmr.msra.gmra.mrb[76].mxu0 %vm463_vm2, %v1239_v55  ;;  %v8465_v55 = vor.u32 %v2811_v62, %v2807_v61 }
  0xc6   : > { %7302 = vmatpush3.bf16.msra.mxu0 %v7806_v35  ;;  %7303 = vmatprep.mubr.msk.bf16.mxu0 %vm7927_vm1, %v7926_v2 }
  0xc7   : > { %7313 = vmatprep.subr.bf16.mxu0 %v7926_v2 }
  0xc9   : > { %7310 = vmatmul.mubr.msk.bf16.vlgmr.msra.gmra.mrb[80].mxu1 %vm463_vm2, %v8206_v59 }
  0xca   : > { %7320 = vmatpush3.bf16.msra.mxu1 %v7809_v60  ;;  %7321 = vmatprep.mubr.msk.bf16.mxu1 %vm7927_vm1, %v7926_v2 }
  0xcb   : > { %7331 = vmatprep.subr.bf16.mxu1 %v7926_v2 }
  0xcd   : > { %7304 = vmatmul.mubr.msk.bf16.vlgmr.msra.gmra.mrb[80].mxu0 %vm463_vm2, %v8233_v5 }
  0xce   : > { %7314 = vmatpush3.bf16.msra.mxu0 %v7808_v36  ;;  %7315 = vmatprep.mubr.msk.bf16.mxu0 %vm7927_vm1, %v7926_v2  ;;  %v7829_v36 = vld [vmem:[%s9111_s3 + $0x38] sm:$0xff]  }
  0xcf   : > { %7325 = vmatprep.subr.bf16.mxu0 %v7926_v2 }
  0xd1   : > { %7322 = vmatmul.mubr.msk.bf16.vlgmr.msra.gmra.mrb[84].mxu1 %vm463_vm2, %v8465_v55 }
  0xd2   : > { %7332 = vmatpush3.bf16.msra.mxu1 %v7812_v63  ;;  %7333 = vmatprep.mubr.msk.bf16.mxu1 %vm7927_vm1, %v7926_v2 }
  0xd3   : > { %7343 = vmatprep.subr.bf16.mxu1 %v7926_v2 }
  0xd5   : > { %7316 = vmatmul.mubr.msk.bf16.vlgmr.msra.gmra.mrb[84].mxu0 %vm463_vm2, %v8433_v57 }
  0xd6   : > { %7326 = vmatpush3.bf16.msra.mxu0 %v7811_v0  ;;  %7327 = vmatprep.mubr.msk.bf16.mxu0 %vm7927_vm1, %v7926_v2 }
  0xd7   : > { %7337 = vmatprep.subr.bf16.mxu0 %v7926_v2 }
  0xd9   : > { %7334 = vmatmul.mubr.msk.bf16.vlgmr.msra.gmra.mrb[88].mxu1 %vm463_vm2, %v8246_v8  ;;  %v7818_v8 = vld [vmem:[%s9111_s3 + $0xc0] sm:$0xff]  }
  0xda   : > { %7344 = vmatpush3.bf16.msra.mxu1 %v7814_v1  ;;  %7345 = vmatprep.mubr.msk.bf16.mxu1 %vm7927_vm1, %v7926_v2 }
  0xdb   : > { %7355 = vmatprep.subr.bf16.mxu1 %v7926_v2 }
  0xdd   : > { %7328 = vmatmul.mubr.msk.bf16.vlgmr.msra.gmra.mrb[88].mxu0 %vm463_vm2, %v8493_v3 }
  0xde   : > { %7338 = vmatpush3.bf16.msra.mxu0 %v7813_v4  ;;  %7339 = vmatprep.mubr.msk.bf16.mxu0 %vm7927_vm1, %v7926_v2 }
  0xdf   : > { %7349 = vmatprep.subr.bf16.mxu0 %v7926_v2 }
  0xe1   : > { %7346 = vmatmul.mubr.msk.bf16.vlgmr.msra.gmra.mrb[92].mxu1 %vm463_vm2, %v1749_v22  ;;  %v3272_v22 = vrot.slane %v3270_v17, 1 }
  0xe2   : > { %7356 = vmatpush3.bf16.msra.mxu1 %v7816_v6  ;;  %7357 = vmatprep.mubr.msk.bf16.mxu1 %vm7927_vm1, %v7926_v2 }
  0xe3   : > { %7367 = vmatprep.subr.bf16.mxu1 %v7926_v2  ;;  %v8567_v24 = vor.u32 %v3272_v22, %v3268_v21  ;;  %v7832_v22 = vld [vmem:[%s9111_s3 + $0x48] sm:$0xff]  }
  0xe5   : > { %7340 = vmatmul.mubr.msk.bf16.vlgmr.msra.gmra.mrb[92].mxu0 %vm463_vm2, %v8296_v31  ;;  %v7825_v31 = vld [vmem:[%s9111_s3 + $0x18] sm:$0xff]  }
  0xe6   : > { %7350 = vmatpush3.bf16.msra.mxu0 %v7815_v7  ;;  %7351 = vmatprep.mubr.msk.bf16.mxu0 %vm7927_vm1, %v7926_v2 }
  0xe7   : > { %7361 = vmatprep.subr.bf16.mxu0 %v7926_v2 }
  0xe9   : > { %7358 = vmatmul.mubr.msk.bf16.vlgmr.msra.gmra.mrb[96].mxu1 %vm463_vm2, %v8301_v32 }
  0xea   : > { %7368 = vmatpush3.bf16.msra.mxu1 %v7818_v8  ;;  %7369 = vmatprep.mubr.msk.bf16.mxu1 %vm7927_vm1, %v7926_v2  ;;  %v7828_v8 = vld [vmem:[%s9111_s3 + $0x30] sm:$0xff]  }
  0xeb   : > { %7379 = vmatprep.subr.bf16.mxu1 %v7926_v2 }
  0xed   : > { %7352 = vmatmul.mubr.msk.bf16.vlgmr.msra.gmra.mrb[96].mxu0 %vm463_vm2, %v8250_v9 }
  0xee   : > { %7362 = vmatpush3.bf16.msra.mxu0 %v7817_v10  ;;  %7363 = vmatprep.mubr.msk.bf16.mxu0 %vm7927_vm1, %v7926_v2 }
  0xef   : > { %7373 = vmatprep.subr.bf16.mxu0 %v7926_v2 }
  0xf1   : > { %7370 = vmatmul.mubr.msk.bf16.vlgmr.msra.gmra.mrb[100].mxu1 %vm463_vm2, %v8534_v12 }
  0xf2   : > { %7380 = vmatpush3.bf16.msra.mxu1 %v7821_v16  ;;  %7381 = vmatprep.mubr.msk.bf16.mxu1 %vm7927_vm1, %v7926_v2 }
  0xf3   : > { %7391 = vmatprep.subr.bf16.mxu1 %v7926_v2 }
  0xf5   : > { %7364 = vmatmul.mubr.msk.bf16.vlgmr.msra.gmra.mrb[100].mxu0 %vm463_vm2, %v8329_v39 }
  0xf6   : > { %7374 = vmatpush3.bf16.msra.mxu0 %v7820_v18  ;;  %7375 = vmatprep.mubr.msk.bf16.mxu0 %vm7927_vm1, %v7926_v2 }
  0xf7   : > { %7385 = vmatprep.subr.bf16.mxu0 %v7926_v2 }
  0xf9   : > { %7382 = vmatmul.mubr.msk.bf16.vlgmr.msra.gmra.mrb[104].mxu1 %vm463_vm2, %v8555_v19 }
  0xfa   : > { %7392 = vmatpush3.bf16.msra.mxu1 %v7823_v23  ;;  %7393 = vmatprep.mubr.msk.bf16.mxu1 %vm7927_vm1, %v7926_v2 }
  0xfb   : > { %7403 = vmatprep.subr.bf16.mxu1 %v7926_v2 }
  0xfc   : > { %v550_v26 = vpop.f32.mrb[0].mxu1 }
  0xfd   : > { %v7071_v28 = vpop.f32.mrb[1].mxu1  ;;  %7376 = vmatmul.mubr.msk.bf16.vlgmr.msra.gmra.mrb[104].mxu0 %vm463_vm2, %v8567_v24 }
  0xfe   : > { %v553_v30 = vpop.f32.mrb[2].mxu1  ;;  %7386 = vmatpush3.bf16.msra.mxu0 %v7822_v25  ;;  %7387 = vmatprep.mubr.msk.bf16.mxu0 %vm7927_vm1, %v7926_v2 }
  0xff   : > { %v7072_v33 = vpop.f32.mrb[3].mxu1  ;;  %7397 = vmatprep.subr.bf16.mxu0 %v7926_v2 }
 0x100   : > { %v501_v34 = vpop.f32.mrb[0].mxu0 }
 0x101   : > { %7394 = vmatmul.mubr.msk.bf16.vlgmr.msra.gmra.mrb[108].mxu1 %vm463_vm2, %v7882_v37  ;;  %v551_v40 = vadd.f32 %v550_v26, %v501_v34  ;;  %v7065_v41 = vpop.f32.mrb[1].mxu0 }
 0x102   : > { %7404 = vmatpush3.bf16.msra.mxu1 %v7825_v31  ;;  %7405 = vmatprep.mubr.msk.bf16.mxu1 %vm7927_vm1, %v7926_v2  ;;  %v504_v27 = vpop.f32.mrb[2].mxu0  ;;  %v7831_v31 = vld [vmem:[%s9111_s3 + $0x40] sm:$0xff]  }
 0x103   : > { %7415 = vmatprep.subr.bf16.mxu1 %v7926_v2  ;;  %v7066_v11 = vpop.f32.mrb[3].mxu0  ;;  %v7834_v27 = vld [vmem:[%s9111_s3 + $0x58] sm:$0xff]  }
 0x104   : > { %v656_v20 = vpop.f32.mrb[4].mxu1 }
 0x105   : > { %v7083_v43 = vpop.f32.mrb[5].mxu1  ;;  %7388 = vmatmul.mubr.msk.bf16.vlgmr.msra.gmra.mrb[108].mxu0 %vm463_vm2, %v8117_v29  ;;  %v8606_v29 = vcombine.low %v8597_v46, %v8597_v46 }
 0x106   : > { %v659_v44 = vpop.f32.mrb[6].mxu1  ;;  %7398 = vmatpush3.bf16.msra.mxu0 %v7824_v42  ;;  %7399 = vmatprep.mubr.msk.bf16.mxu0 %vm7927_vm1, %v7926_v2 }
 0x107   : > { %v7084_v47 = vpop.f32.mrb[7].mxu1  ;;  %7409 = vmatprep.subr.bf16.mxu0 %v7926_v2  ;;  %v3748_v61 = vshll.u32 %v8606_v29, 16  ;;  %v3746_v1 = vshrl.u32 %v8606_v29, 16  ;;  %v3804_v44 = vrot.slane %v8606_v29, 1 }
 0x108   : > { %v603_v48 = vpop.f32.mrb[4].mxu0  ;;  %v7833_v47 = vld [vmem:[%s9111_s3 + $0x50] sm:$0xff]  }
 0x109   : > { %7406 = vmatmul.mubr.msk.bf16.vlgmr.msra.gmra.mrb[112].mxu1 %vm463_vm2, %v8370_v14  ;;  %v609_v52 = vadd.f32 %v603_v48, %v551_v40  ;;  %v7077_v53 = vpop.f32.mrb[5].mxu0  ;;  %v3750_v4 = vrot.slane %v3748_v61, 1 }
 0x10a   : > { %7416 = vmatpush3.bf16.msra.mxu1 %v7827_v13  ;;  %7417 = vmatprep.mubr.msk.bf16.mxu1 %vm7927_vm1, %v7926_v2  ;;  %v606_v54 = vpop.f32.mrb[6].mxu0 }
 0x10b   : > { %7427 = vmatprep.subr.bf16.mxu1 %v7926_v2  ;;  %v7078_v49 = vpop.f32.mrb[7].mxu0  ;;  %v662_v58 = vadd.f32 %v656_v20, %v609_v52  ;;  %v8632_v18 = vor.u32 %v3750_v4, %v3746_v1  ;;  %v7838_v4 = vld [vmem:[%s9111_s3 + $0x78] sm:$0xff]  }
 0x10c   : > { %v773_v35 = vpop.f32.mrb[8].mxu1 }
 0x10d   : > { %v7095_v60 = vpop.f32.mrb[9].mxu1  ;;  %7400 = vmatmul.mubr.msk.bf16.vlgmr.msra.gmra.mrb[112].mxu0 %vm463_vm2, %v8152_v38 }
 0x10e   : > { %v776_v62 = vpop.f32.mrb[10].mxu1  ;;  %7410 = vmatpush3.bf16.msra.mxu0 %v7826_v56  ;;  %7411 = vmatprep.mubr.msk.bf16.mxu0 %vm7927_vm1, %v7926_v2  ;;  %v7836_v56 = vld [vmem:[%s9111_s3 + $0x68] sm:$0xff]  }
 0x10f   : > { %v7096_v63 = vpop.f32.mrb[11].mxu1  ;;  %7421 = vmatprep.subr.bf16.mxu0 %v7926_v2  ;;  %v7835_v62 = vld [vmem:[%s9111_s3 + $0x60] sm:$0xff]  }
 0x110   : > { %v719_v0 = vpop.f32.mrb[8].mxu0 }
 0x111   : > { %7418 = vmatmul.mubr.msk.bf16.vlgmr.msra.gmra.mrb[116].mxu1 %vm463_vm2, %v8391_v45  ;;  %v725_v38 = vadd.f32 %v719_v0, %v662_v58  ;;  %v7089_v6 = vpop.f32.mrb[9].mxu0 }
 0x112   : > { %7428 = vmatpush3.bf16.msra.mxu1 %v7829_v36  ;;  %7429 = vmatprep.mubr.msk.bf16.mxu1 %vm7927_vm1, %v7926_v2  ;;  %v722_v7 = vpop.f32.mrb[10].mxu0 }
 0x113   : > { %7439 = vmatprep.subr.bf16.mxu1 %v7926_v2  ;;  %v7090_v10 = vpop.f32.mrb[11].mxu0  ;;  %v779_v16 = vadd.f32 %v773_v35, %v725_v38 }
 0x114   : > { %v889_v15 = vpop.f32.mrb[12].mxu1  ;;  %v7837_v10 = vld [vmem:[%s9111_s3 + $0x70] sm:$0xff]  }
 0x115   : > { %v7107_v17 = vpop.f32.mrb[13].mxu1  ;;  %7412 = vmatmul.mubr.msk.bf16.vlgmr.msra.gmra.mrb[116].mxu0 %vm463_vm2, %v8403_v50 }
 0x116   : > { %v892_v21 = vpop.f32.mrb[14].mxu1  ;;  %7422 = vmatpush3.bf16.msra.mxu0 %v7828_v8  ;;  %7423 = vmatprep.mubr.msk.bf16.mxu0 %vm7927_vm1, %v7926_v2 }
 0x117   : > { %v7108_v23 = vpop.f32.mrb[15].mxu1  ;;  %7433 = vmatprep.subr.bf16.mxu0 %v7926_v2 }
 0x118   : > { %v826_v25 = vpop.f32.mrb[12].mxu0 }
 0x119   : > { %7430 = vmatmul.mubr.msk.bf16.vlgmr.msra.gmra.mrb[120].mxu1 %vm463_vm2, %v8632_v18  ;;  %v832_v26 = vadd.f32 %v826_v25, %v779_v16  ;;  %v7101_v28 = vpop.f32.mrb[13].mxu0 }
 0x11a   : > { %7440 = vmatpush3.bf16.msra.mxu1 %v7832_v22  ;;  %7441 = vmatprep.mubr.msk.bf16.mxu1 %vm7927_vm1, %v7926_v2  ;;  %v829_v30 = vpop.f32.mrb[14].mxu0 }
 0x11b   : > { %7451 = vmatprep.subr.bf16.mxu1 %v7926_v2  ;;  %v7102_v33 = vpop.f32.mrb[15].mxu0  ;;  %v895_v37 = vadd.f32 %v889_v15, %v832_v26  ;;  %v8700_v15 = vld [vmem:[%s8022_s12 + $0x10] sm:$0x7]  ;;  %v7841_v26 = vld [vmem:[%s9111_s3 + $0x88] sm:$0xff]  }
 0x11c   : > { %v996_v34 = vpop.f32.mrb[16].mxu1  ;;  %v8707_v25 = vcombine.low %v8700_v15, %v8700_v15 }
 0x11d   : > { %v7119_v40 = vpop.f32.mrb[17].mxu1  ;;  %7424 = vmatmul.mubr.msk.bf16.vlgmr.msra.gmra.mrb[120].mxu0 %vm463_vm2, %v8597_v46 }
 0x11e   : > { %v999_v41 = vpop.f32.mrb[18].mxu1  ;;  %7434 = vmatpush3.bf16.msra.mxu0 %v7831_v31  ;;  %7435 = vmatprep.mubr.msk.bf16.mxu0 %vm7927_vm1, %v7926_v2  ;;  %v7840_v40 = vld [vmem:[%s9111_s3 + $0x80] sm:$0xff]  }
 0x11f   : > { %v7120_v42 = vpop.f32.mrb[19].mxu1  ;;  %7445 = vmatprep.subr.bf16.mxu0 %v7926_v2 }
 0x120   : > { %v943_v11 = vpop.f32.mrb[16].mxu0 }
 0x121   : > { %7442 = vmatmul.mubr.msk.bf16.vlgmr.msra.gmra.mrb[124].mxu1 %vm463_vm2, %v8186_v51  ;;  %v949_v20 = vadd.f32 %v943_v11, %v895_v37  ;;  %v7113_v43 = vpop.f32.mrb[17].mxu0 }
 0x122   : > { %7452 = vmatpush3.bf16.msra.mxu1 %v7834_v27  ;;  %7453 = vmatprep.mubr.msk.bf16.mxu1 %vm7927_vm1, %v7926_v2  ;;  %v946_v13 = vpop.f32.mrb[18].mxu0  ;;  %v4207_v43 = vshrl.u32 %v8707_v25, 16 }
 0x123   : > { %7463 = vmatprep.subr.bf16.mxu1 %v7926_v2  ;;  %v7114_v48 = vpop.f32.mrb[19].mxu0  ;;  %v1002_v53 = vadd.f32 %v996_v34, %v949_v20  ;;  %v4209_v34 = vshll.u32 %v8707_v25, 16  ;;  %v4265_v20 = vrot.slane %v8707_v25, 1 }
 0x124   : > { %v1113_v52 = vpop.f32.mrb[20].mxu1  ;;  %v7843_v48 = vld [vmem:[%s9111_s3 + $0x98] sm:$0xff]  }
 0x125   : > { %v7131_v54 = vpop.f32.mrb[21].mxu1  ;;  %7436 = vmatmul.mubr.msk.bf16.vlgmr.msra.gmra.mrb[124].mxu0 %vm463_vm2, %v3804_v44  ;;  %v4211_v13 = vrot.slane %v4209_v34, 1 }
 0x126   : > { %v1116_v51 = vpop.f32.mrb[22].mxu1  ;;  %7446 = vmatpush3.bf16.msra.mxu0 %v7833_v47  ;;  %7447 = vmatprep.mubr.msk.bf16.mxu0 %vm7927_vm1, %v7926_v2 }
 0x127   : > { %v7132_v49 = vpop.f32.mrb[23].mxu1  ;;  %7457 = vmatprep.subr.bf16.mxu0 %v7926_v2 }
 0x128   : > { %v1059_v35 = vpop.f32.mrb[20].mxu0 }
 0x129   : > { %7454 = vmatmul.mubr.msk.bf16.vlgmr.msra.gmra.mrb[128].mxu1 %vm463_vm2, %v8206_v59  ;;  %v1065_v58 = vadd.f32 %v1059_v35, %v1002_v53  ;;  %v7125_v60 = vpop.f32.mrb[21].mxu0  ;;  %v7842_v35 = vld [vmem:[%s9111_s3 + $0x90] sm:$0xff]  }
 0x12a   : > { %7464 = vmatpush3.bf16.msra.mxu1 %v7836_v56  ;;  %7465 = vmatprep.mubr.msk.bf16.mxu1 %vm7927_vm1, %v7926_v2  ;;  %v1062_v61 = vpop.f32.mrb[22].mxu0  ;;  %v8737_v56 = vor.u32 %v4211_v13, %v4207_v43 }
 0x12b   : > { %7475 = vmatprep.subr.bf16.mxu1 %v7926_v2  ;;  %v7126_v36 = vpop.f32.mrb[23].mxu0  ;;  %v1119_v0 = vadd.f32 %v1113_v52, %v1065_v58 }
 0x12c   : > { %v1229_v63 = vpop.f32.mrb[24].mxu1 }
 0x12d   : > { %v7143_v1 = vpop.f32.mrb[25].mxu1  ;;  %7448 = vmatmul.mubr.msk.bf16.vlgmr.msra.gmra.mrb[128].mxu0 %vm463_vm2, %v8233_v5 }
 0x12e   : > { %v1232_v59 = vpop.f32.mrb[26].mxu1  ;;  %7458 = vmatpush3.bf16.msra.mxu0 %v7835_v62  ;;  %7459 = vmatprep.mubr.msk.bf16.mxu0 %vm7927_vm1, %v7926_v2 }
 0x12f   : > { %v7144_v38 = vpop.f32.mrb[27].mxu1  ;;  %7469 = vmatprep.subr.bf16.mxu0 %v7926_v2 }
 0x130   : > { %v1166_v6 = vpop.f32.mrb[24].mxu0 }
 0x131   : > { %7466 = vmatmul.mubr.msk.bf16.vlgmr.msra.gmra.mrb[132].mxu1 %vm463_vm2, %v8465_v55  ;;  %v1172_v7 = vadd.f32 %v1166_v6, %v1119_v0  ;;  %v7137_v8 = vpop.f32.mrb[25].mxu0  ;;  %v7844_v6 = vld [vmem:[%s9111_s3 + $0xa0] sm:$0xff]  }
 0x132   : > { %7476 = vmatpush3.bf16.msra.mxu1 %v7838_v4  ;;  %7477 = vmatprep.mubr.msk.bf16.mxu1 %vm7927_vm1, %v7926_v2  ;;  %v1169_v5 = vpop.f32.mrb[26].mxu0 }
 0x133   : > { %7487 = vmatprep.subr.bf16.mxu1 %v7926_v2  ;;  %v7138_v16 = vpop.f32.mrb[27].mxu0  ;;  %v1235_v21 = vadd.f32 %v1229_v63, %v1172_v7  ;;  %v7845_v63 = vld [vmem:[%s9111_s3 + $0xa8] sm:$0xff]  }
 0x134   : > { %v1336_v17 = vpop.f32.mrb[28].mxu1  ;;  %v7847_v16 = vld [vmem:[%s9111_s3 + $0xb8] sm:$0xff]  }
 0x135   : > { %v7155_v22 = vpop.f32.mrb[29].mxu1  ;;  %7460 = vmatmul.mubr.msk.bf16.vlgmr.msra.gmra.mrb[132].mxu0 %vm463_vm2, %v8433_v57 }
 0x136   : > { %v1339_v23 = vpop.f32.mrb[30].mxu1  ;;  %7470 = vmatpush3.bf16.msra.mxu0 %v7837_v10  ;;  %7471 = vmatprep.mubr.msk.bf16.mxu0 %vm7927_vm1, %v7926_v2 }
 0x137   : > { %v7156_v28 = vpop.f32.mrb[31].mxu1  ;;  %7481 = vmatprep.subr.bf16.mxu0 %v7926_v2 }
 0x138   : > { %v1283_v30 = vpop.f32.mrb[28].mxu0 }
 0x139   : > { %7478 = vmatmul.mubr.msk.bf16.vlgmr.msra.gmra.mrb[136].mxu1 %vm463_vm2, %v8700_v15  ;;  %v1289_v31 = vadd.f32 %v1283_v30, %v1235_v21  ;;  %v7149_v33 = vpop.f32.mrb[29].mxu0  ;;  %v7846_v30 = vld [vmem:[%s9111_s3 + $0xb0] sm:$0xff]  }
 0x13a   : > { %7488 = vmatpush3.bf16.msra.mxu1 %v7841_v26  ;;  %7489 = vmatprep.mubr.msk.bf16.mxu1 %vm7927_vm1, %v7926_v2  ;;  %v1286_v37 = vpop.f32.mrb[30].mxu0 }
 0x13b   : > { %7499 = vmatprep.subr.bf16.mxu1 %v7926_v2  ;;  %v7150_v41 = vpop.f32.mrb[31].mxu0  ;;  %v1342_v42 = vadd.f32 %v1336_v17, %v1289_v31  ;;  %v8767_v17 = vld [vmem:[%s8039_s23 + $0x10] sm:$0x7] }
 0x13c   : > { %v1453_v27 = vpop.f32.mrb[32].mxu1  ;;  %v7849_v41 = vld [vmem:[%s9111_s3 + $0xc8] sm:$0xff]  }
 0x13d   : > { %v7167_v11 = vpop.f32.mrb[33].mxu1  ;;  %7472 = vmatmul.mubr.msk.bf16.vlgmr.msra.gmra.mrb[136].mxu0 %vm463_vm2, %v8493_v3 }
 0x13e   : > { %v1456_v47 = vpop.f32.mrb[34].mxu1  ;;  %7482 = vmatpush3.bf16.msra.mxu0 %v7840_v40  ;;  %7483 = vmatprep.mubr.msk.bf16.mxu0 %vm7927_vm1, %v7926_v2 }
 0x13f   : > { %v7168_v52 = vpop.f32.mrb[35].mxu1  ;;  %7493 = vmatprep.subr.bf16.mxu0 %v7926_v2 }
 0x140   : > { %v1399_v53 = vpop.f32.mrb[32].mxu0 }
 0x141   : > { %7490 = vmatmul.mubr.msk.bf16.vlgmr.msra.gmra.mrb[140].mxu1 %vm463_vm2, %v4265_v20  ;;  %v1405_v54 = vadd.f32 %v1399_v53, %v1342_v42  ;;  %v7161_v51 = vpop.f32.mrb[33].mxu0 }
 0x142   : > { %7500 = vmatpush3.bf16.msra.mxu1 %v7843_v48  ;;  %7501 = vmatprep.mubr.msk.bf16.mxu1 %vm7927_vm1, %v7926_v2  ;;  %v1402_v49 = vpop.f32.mrb[34].mxu0  ;;  %v7848_v48 = vld [vmem:[%s9111_s3 + $0xc0] sm:$0xff]  }
 0x143   : > { %7511 = vmatprep.subr.bf16.mxu1 %v7926_v2  ;;  %v7162_v58 = vpop.f32.mrb[35].mxu0  ;;  %v1459_v61 = vadd.f32 %v1453_v27, %v1405_v54 }
 0x144   : > { %v1569_v60 = vpop.f32.mrb[36].mxu1  ;;  %v7852_v58 = vld [vmem:[%s9111_s3 + $0x8] sm:$0xff]  }
 0x145   : > { %v7179_v62 = vpop.f32.mrb[37].mxu1  ;;  %7484 = vmatmul.mubr.msk.bf16.vlgmr.msra.gmra.mrb[140].mxu0 %vm463_vm2, %v8737_v56 }
 0x146   : > { %v1572_v36 = vpop.f32.mrb[38].mxu1  ;;  %7494 = vmatpush3.bf16.msra.mxu0 %v7842_v35  ;;  %7495 = vmatprep.mubr.msk.bf16.mxu0 %vm7927_vm1, %v7926_v2 }
 0x147   : > { %v7180_v0 = vpop.f32.mrb[39].mxu1  ;;  %7505 = vmatprep.subr.bf16.mxu0 %v7926_v2 }
 0x148   : > { %v1506_v1 = vpop.f32.mrb[36].mxu0  ;;  %v7851_v0 = vld [vmem:[%s9111_s3 + $0xd0] sm:$0xff]  }
 0x149   : > { %7502 = vmatmul.mubr.msk.bf16.vlgmr.msra.gmra.mrb[144].mxu1 %vm463_vm2, %v8301_v32  ;;  %v1512_v59 = vadd.f32 %v1506_v1, %v1459_v61  ;;  %v7173_v4 = vpop.f32.mrb[37].mxu0 }
 0x14a   : > { %7512 = vmatpush3.bf16.msra.mxu1 %v7845_v63  ;;  %7513 = vmatprep.mubr.msk.bf16.mxu1 %vm7927_vm1, %v7926_v2  ;;  %v1509_v38 = vpop.f32.mrb[38].mxu0 }
 0x14b   : > { %7523 = vmatprep.subr.bf16.mxu1 %v7926_v2  ;;  %v7174_v7 = vpop.f32.mrb[39].mxu0  ;;  %v1575_v5 = vadd.f32 %v1569_v60, %v1512_v59 }
 0x14c   : > { %v1676_v8 = vpop.f32.mrb[40].mxu1  ;;  %v7854_v7 = vld [vmem:[%s9111_s3 + $0x10] sm:$0xff]  }
 0x14d   : > { %v7191_v10 = vpop.f32.mrb[41].mxu1  ;;  %7496 = vmatmul.mubr.msk.bf16.vlgmr.msra.gmra.mrb[144].mxu0 %vm463_vm2, %v8250_v9  ;;  %v8776_v9 = vcombine.low %v8767_v17, %v8767_v17 }
 0x14e   : > { %v1679_v32 = vpop.f32.mrb[42].mxu1  ;;  %7506 = vmatpush3.bf16.msra.mxu0 %v7844_v6  ;;  %7507 = vmatprep.mubr.msk.bf16.mxu0 %vm7927_vm1, %v7926_v2 }
 0x14f   : > { %v7192_v21 = vpop.f32.mrb[43].mxu1  ;;  %7517 = vmatprep.subr.bf16.mxu0 %v7926_v2  ;;  %v4670_v37 = vshll.u32 %v8776_v9, 16  ;;  %v4668_v11 = vshrl.u32 %v8776_v9, 16 }
 0x150   : > { %v1623_v22 = vpop.f32.mrb[40].mxu0  ;;  %v4726_v21 = vrot.slane %v8776_v9, 1 }
 0x151   : > { %7514 = vmatmul.mubr.msk.bf16.vlgmr.msra.gmra.mrb[148].mxu1 %vm463_vm2, %v8534_v12  ;;  %v1629_v23 = vadd.f32 %v1623_v22, %v1575_v5  ;;  %v7185_v26 = vpop.f32.mrb[41].mxu0  ;;  %v4672_v43 = vrot.slane %v4670_v37, 1  ;;  %v8831_v5 = vld [vmem:[%s9112_s4] ss:$0 sm:$0xff] }
 0x152   : > { %7524 = vmatpush3.bf16.msra.mxu1 %v7847_v16  ;;  %7525 = vmatprep.mubr.msk.bf16.mxu1 %vm7927_vm1, %v7926_v2  ;;  %v1626_v28 = vpop.f32.mrb[42].mxu0 }
 0x153   : > { %7535 = vmatprep.subr.bf16.mxu1 %v7926_v2  ;;  %v7186_v31 = vpop.f32.mrb[43].mxu0  ;;  %v1682_v12 = vadd.f32 %v1676_v8, %v1629_v23  ;;  %v8802_v49 = vor.u32 %v4672_v43, %v4668_v11  ;;  %v7853_v23 = vld [vmem:[%s9111_s3] sm:$0xff]  }
 0x154   : > { %v1793_v33 = vpop.f32.mrb[44].mxu1 }
 0x155   : > { %v7203_v34 = vpop.f32.mrb[45].mxu1  ;;  %7508 = vmatmul.mubr.msk.bf16.vlgmr.msra.gmra.mrb[148].mxu0 %vm463_vm2, %v8329_v39 }
 0x156   : > { %v1796_v40 = vpop.f32.mrb[46].mxu1  ;;  %7518 = vmatpush3.bf16.msra.mxu0 %v7846_v30  ;;  %7519 = vmatprep.mubr.msk.bf16.mxu0 %vm7927_vm1, %v7926_v2 }
 0x157   : > { %v7204_v27 = vpop.f32.mrb[47].mxu1  ;;  %7529 = vmatprep.subr.bf16.mxu0 %v7926_v2 }
 0x158   : > { %v1739_v42 = vpop.f32.mrb[44].mxu0  ;;  %v7855_v27 = vld [vmem:[%s9111_s3 + $0x18] sm:$0xff]  }
 0x159   : > { %7526 = vmatmul.mubr.msk.bf16.vlgmr.msra.gmra.mrb[152].mxu1 %vm463_vm2, %v8555_v19  ;;  %v1745_v39 = vadd.f32 %v1739_v42, %v1682_v12  ;;  %v7197_v13 = vpop.f32.mrb[45].mxu0 }
 0x15a   : > { %7536 = vmatpush3.bf16.msra.mxu1 %v7849_v41  ;;  %7537 = vmatprep.mubr.msk.bf16.mxu1 %vm7927_vm1, %v7926_v2  ;;  %v1742_v47 = vpop.f32.mrb[46].mxu0  ;;  %v7858_v13 = vld [vmem:[%s9111_s3 + $0x30] sm:$0xff]  }
 0x15b   : > { %7547 = vmatprep.subr.bf16.mxu1 %v7926_v2  ;;  %v7198_v52 = vpop.f32.mrb[47].mxu0  ;;  %v1799_v54 = vadd.f32 %v1793_v33, %v1745_v39  ;;  %v7856_v33 = vld [vmem:[%s9111_s3 + $0x20] sm:$0xff]  }
 0x15c   : > { %v1909_v53 = vpop.f32.mrb[48].mxu1 }
 0x15d   : > { %v7215_v51 = vpop.f32.mrb[49].mxu1  ;;  %7520 = vmatmul.mubr.msk.bf16.vlgmr.msra.gmra.mrb[152].mxu0 %vm463_vm2, %v8567_v24 }
 0x15e   : > { %v1912_v35 = vpop.f32.mrb[50].mxu1  ;;  %7530 = vmatpush3.bf16.msra.mxu0 %v7848_v48  ;;  %7531 = vmatprep.mubr.msk.bf16.mxu0 %vm7927_vm1, %v7926_v2  ;;  %v428_v51 = vld [vmem:[%s8012_s20 + $0x14] sm:$0x7] }
 0x15f   : > { %v7216_v60 = vpop.f32.mrb[51].mxu1  ;;  %7541 = vmatprep.subr.bf16.mxu0 %v7926_v2 }
 0x160   : > { %v1846_v61 = vpop.f32.mrb[48].mxu0 }
 0x161   : > { %7538 = vmatmul.mubr.msk.bf16.vlgmr.msra.gmra.mrb[156].mxu1 %vm463_vm2, %v8802_v49  ;;  %v1852_v62 = vadd.f32 %v1846_v61, %v1799_v54  ;;  %v7209_v36 = vpop.f32.mrb[49].mxu0  ;;  %v7857_v54 = vld [vmem:[%s9111_s3 + $0x28] sm:$0xff]  }
 0x162   : > { %7548 = vmatpush3.bf16.msra.mxu1 %v7852_v58  ;;  %7549 = vmatprep.mubr.msk.bf16.mxu1 %vm7927_vm1, %v7926_v2  ;;  %v1849_v63 = vpop.f32.mrb[50].mxu0  ;;  %v7861_v36 = vld [vmem:[%s9111_s3 + $0x40] sm:$0xff]  }
 0x163   : > { %7559 = vmatprep.subr.bf16.mxu1 %v7926_v2  ;;  %v7210_v1 = vpop.f32.mrb[51].mxu0  ;;  %v1915_v4 = vadd.f32 %v1909_v53, %v1852_v62  ;;  %v6762_v62 = vcombine.low %v428_v51, %v428_v51 }
 0x164   : > { %v2040_v59 = vpop.f32.mrb[52].mxu1 }
 0x165   : > { %v7227_v38 = vpop.f32.mrb[53].mxu1  ;;  %7532 = vmatmul.mubr.msk.bf16.vlgmr.msra.gmra.mrb[156].mxu0 %vm463_vm2, %v8767_v17 }
 0x166   : > { %v2043_v6 = vpop.f32.mrb[54].mxu1  ;;  %7542 = vmatpush3.bf16.msra.mxu0 %v7851_v0  ;;  %7543 = vmatprep.mubr.msk.bf16.mxu0 %vm7927_vm1, %v7926_v2  ;;  %v7860_v38 = vld [vmem:[%s9111_s3 + $0x38] sm:$0xff]  }
 0x167   : > { %v7228_v8 = vpop.f32.mrb[55].mxu1  ;;  %7553 = vmatprep.subr.bf16.mxu0 %v7926_v2 }
 0x168   : > { %v1963_v10 = vpop.f32.mrb[52].mxu0 }
 0x169   : > { %7550 = vmatmul.mubr.msk.bf16.vlgmr.msra.gmra.mrb[160].mxu1 %vm463_vm2, %v8403_v50  ;;  %v1969_v32 = vadd.f32 %v1963_v10, %v1915_v4  ;;  %v7221_v16 = vpop.f32.mrb[53].mxu0  ;;  %v5148_v4 = vshll.u32 %v6762_v62, 16  ;;  %v5204_v10 = vrot.slane %v6762_v62, 1 }
 0x16a   : > { %7560 = vmatpush3.bf16.msra.mxu1 %v7854_v7  ;;  %7561 = vmatprep.mubr.msk.bf16.mxu1 %vm7927_vm1, %v7926_v2  ;;  %v1966_v22 = vpop.f32.mrb[54].mxu0  ;;  %v5146_v16 = vshrl.u32 %v6762_v62, 16  ;;  %v7866_v62 = vld [vmem:[%s9111_s3 + $0x68] sm:$0xff]  }
 0x16b   : > { %7571 = vmatprep.subr.bf16.mxu1 %v7926_v2  ;;  %v8843_v26 = vadd.f32 %v8831_v5, %v1969_v32  ;;  %v7222_v50 = vpop.f32.mrb[55].mxu0  ;;  %v5150_v22 = vrot.slane %v5148_v4, 1  ;;  %v7869_v4 = vld [vmem:[%s9111_s3 + $0x80] sm:$0xff]  }
 0x16c   : > { %v2134_v28 = vpop.f32.mrb[56].mxu1  ;;  %v7863_v50 = vld [vmem:[%s9111_s3 + $0x50] sm:$0xff]  }
 0x16d   : > { %v7239_v30 = vpop.f32.mrb[57].mxu1  ;;  %1978 = vst.msk [vmem:[%s8034_s6] sm:$0xf] %vm1977_vm3, %v8843_v26  ;;  %7544 = vmatmul.mubr.msk.bf16.vlgmr.msra.gmra.mrb[160].mxu0 %vm463_vm2, %v4726_v21  ;;  %v5151_v29 = vor.u32 %v5150_v22, %v5146_v16 }
 0x16e   : > { %v2137_v31 = vpop.f32.mrb[58].mxu1  ;;  %7554 = vmatpush3.bf16.msra.mxu0 %v7853_v23  ;;  %7555 = vmatprep.mubr.msk.bf16.mxu0 %vm7927_vm1, %v7926_v2 }
 0x16f   : > { %v7240_v12 = vpop.f32.mrb[59].mxu1  ;;  %7565 = vmatprep.subr.bf16.mxu0 %v7926_v2 }
 0x170   : > { %v2086_v34 = vpop.f32.mrb[56].mxu0  ;;  %v7862_v12 = vld [vmem:[%s9111_s3 + $0x48] sm:$0xff]  }
 0x171   : > { %7562 = vmatmul.mubr.msk.bf16.vlgmr.msra.gmra.mrb[164].mxu1 %vm463_vm2, %v8391_v45  ;;  %v2087_v37 = vadd.f32 %v2086_v34, %v2040_v59  ;;  %v7233_v40 = vpop.f32.mrb[57].mxu0 }
 0x172   : > { %7572 = vmatpush3.bf16.msra.mxu1 %v7856_v33  ;;  %7573 = vmatprep.mubr.msk.bf16.mxu1 %vm7927_vm1, %v7926_v2  ;;  %v2089_v41 = vpop.f32.mrb[58].mxu0 }
 0x173   : > { %7583 = vmatprep.subr.bf16.mxu1 %v7926_v2  ;;  %v7234_v42 = vpop.f32.mrb[59].mxu0  ;;  %v2140_v43 = vadd.f32 %v2134_v28, %v2087_v37 }
 0x174   : > { %v2232_v11 = vpop.f32.mrb[60].mxu1  ;;  %v7865_v42 = vld [vmem:[%s9111_s3 + $0x60] sm:$0xff]  }
 0x175   : > { %v7251_v39 = vpop.f32.mrb[61].mxu1  ;;  %7556 = vmatmul.mubr.msk.bf16.vlgmr.msra.gmra.mrb[164].mxu0 %vm463_vm2, %v8370_v14 }
 0x176   : > { %v2235_v45 = vpop.f32.mrb[62].mxu1  ;;  %7566 = vmatpush3.bf16.msra.mxu0 %v7855_v27  ;;  %7567 = vmatprep.mubr.msk.bf16.mxu0 %vm7927_vm1, %v7926_v2 }
 0x177   : > { %v7252_v47 = vpop.f32.mrb[63].mxu1  ;;  %7577 = vmatprep.subr.bf16.mxu0 %v7926_v2 }
 0x178   : > { %v2183_v48 = vpop.f32.mrb[60].mxu0  ;;  %v7864_v47 = vld [vmem:[%s9111_s3 + $0x58] sm:$0xff]  }
 0x179   : > { %7574 = vmatmul.mubr.msk.bf16.vlgmr.msra.gmra.mrb[168].mxu1 %vm463_vm2, %v8632_v18  ;;  %v2189_v52 = vadd.f32 %v2183_v48, %v2140_v43  ;;  %v7245_v53 = vpop.f32.mrb[61].mxu0 }
 0x17a   : > { %7584 = vmatpush3.bf16.msra.mxu1 %v7858_v13  ;;  %7585 = vmatprep.mubr.msk.bf16.mxu1 %vm7927_vm1, %v7926_v2  ;;  %v2186_v14 = vpop.f32.mrb[62].mxu0 }
 0x17b   : > { %7595 = vmatprep.subr.bf16.mxu1 %v7926_v2  ;;  %v7246_v35 = vpop.f32.mrb[63].mxu0  ;;  %v2238_v60 = vadd.f32 %v2232_v11, %v2189_v52 }
 0x17c   : > { %v2333_v58 = vpop.f32.mrb[64].mxu1 }
 0x17d   : > { %v7263_v61 = vpop.f32.mrb[65].mxu1  ;;  %7568 = vmatmul.mubr.msk.bf16.vlgmr.msra.gmra.mrb[168].mxu0 %vm463_vm2, %v8597_v46 }
 0x17e   : > { %v2336_v18 = vpop.f32.mrb[66].mxu1  ;;  %7578 = vmatpush3.bf16.msra.mxu0 %v7857_v54  ;;  %7579 = vmatprep.mubr.msk.bf16.mxu0 %vm7927_vm1, %v7926_v2  ;;  %v7867_v54 = vld [vmem:[%s9111_s3 + $0x70] sm:$0xff]  }
 0x17f   : > { %v7264_v63 = vpop.f32.mrb[67].mxu1  ;;  %7589 = vmatprep.subr.bf16.mxu0 %v7926_v2 }
 0x180   : > { %v2281_v0 = vpop.f32.mrb[64].mxu0 }
 0x181   : > { %7586 = vmatmul.mubr.msk.bf16.vlgmr.msra.gmra.mrb[172].mxu1 %vm463_vm2, %v428_v51  ;;  %v2287_v1 = vadd.f32 %v2281_v0, %v2238_v60  ;;  %v7257_v59 = vpop.f32.mrb[65].mxu0  ;;  %v8934_v51 = vld [vmem:[%s8022_s12 + $0x14] sm:$0x7] }
 0x182   : > { %7596 = vmatpush3.bf16.msra.mxu1 %v7861_v36  ;;  %7597 = vmatprep.mubr.msk.bf16.mxu1 %vm7927_vm1, %v7926_v2  ;;  %v2284_v46 = vpop.f32.mrb[66].mxu0 }
 0x183   : > { %7607 = vmatprep.subr.bf16.mxu1 %v7926_v2  ;;  %v7258_v6 = vpop.f32.mrb[67].mxu0  ;;  %v2339_v8 = vadd.f32 %v2333_v58, %v2287_v1 }
 0x184   : > { %v2448_v7 = vpop.f32.mrb[68].mxu1 }
 0x185   : > { %v7275_v32 = vpop.f32.mrb[69].mxu1  ;;  %7580 = vmatmul.mubr.msk.bf16.vlgmr.msra.gmra.mrb[172].mxu0 %vm463_vm2, %v3804_v44 }
 0x186   : > { %v2451_v23 = vpop.f32.mrb[70].mxu1  ;;  %7590 = vmatpush3.bf16.msra.mxu0 %v7860_v38  ;;  %7591 = vmatprep.mubr.msk.bf16.mxu0 %vm7927_vm1, %v7926_v2  ;;  %v7868_v32 = vld [vmem:[%s9111_s3 + $0x78] sm:$0xff]  }
 0x187   : > { %v7276_v28 = vpop.f32.mrb[71].mxu1  ;;  %7601 = vmatprep.subr.bf16.mxu0 %v7926_v2 }
 0x188   : > { %v2395_v30 = vpop.f32.mrb[68].mxu0  ;;  %v7872_v28 = vld [vmem:[%s9111_s3 + $0x90] sm:$0xff]  }
 0x189   : > { %7598 = vmatmul.mubr.msk.bf16.vlgmr.msra.gmra.mrb[176].mxu1 %vm463_vm2, %v5204_v10  ;;  %v2401_v31 = vadd.f32 %v2395_v30, %v2339_v8  ;;  %v7269_v33 = vpop.f32.mrb[69].mxu0 }
 0x18a   : > { %7608 = vmatpush3.bf16.msra.mxu1 %v7863_v50  ;;  %7609 = vmatprep.mubr.msk.bf16.mxu1 %vm7927_vm1, %v7926_v2  ;;  %v2398_v44 = vpop.f32.mrb[70].mxu0 }
 0x18b   : > { %7619 = vmatprep.subr.bf16.mxu1 %v7926_v2  ;;  %v7270_v34 = vpop.f32.mrb[71].mxu0  ;;  %v2454_v40 = vadd.f32 %v2448_v7, %v2401_v31  ;;  %v7871_v44 = vld [vmem:[%s9111_s3 + $0x88] sm:$0xff]  }
 0x18c   : > { %v2546_v37 = vpop.f32.mrb[72].mxu1 }
 0x18d   : > { %v7287_v41 = vpop.f32.mrb[73].mxu1  ;;  %7592 = vmatmul.mubr.msk.bf16.vlgmr.msra.gmra.mrb[176].mxu0 %vm463_vm2, %v5151_v29 }
 0x18e   : > { %v2549_v27 = vpop.f32.mrb[74].mxu1  ;;  %7602 = vmatpush3.bf16.msra.mxu0 %v7862_v12  ;;  %7603 = vmatprep.mubr.msk.bf16.mxu0 %vm7927_vm1, %v7926_v2 }
 0x18f   : > { %v7288_v11 = vpop.f32.mrb[75].mxu1  ;;  %7613 = vmatprep.subr.bf16.mxu0 %v7926_v2  ;;  %v7874_v27 = vld [vmem:[%s9111_s3 + $0xa0] sm:$0xff]  }
 0x190   : > { %v2497_v43 = vpop.f32.mrb[72].mxu0 }
 0x191   : > { %7610 = vmatmul.mubr.msk.bf16.vlgmr.msra.gmra.mrb[180].mxu1 %vm463_vm2, %v8465_v55  ;;  %v2503_v39 = vadd.f32 %v2497_v43, %v2454_v40  ;;  %v7281_v45 = vpop.f32.mrb[73].mxu0  ;;  %v7883_v43 = vld [vmem:[%s8039_s23 + $0xc] sm:$0x7] }
 0x192   : > { %7620 = vmatpush3.bf16.msra.mxu1 %v7865_v42  ;;  %7621 = vmatprep.mubr.msk.bf16.mxu1 %vm7927_vm1, %v7926_v2  ;;  %v2500_v13 = vpop.f32.mrb[74].mxu0 }
 0x193   : > { %7631 = vmatprep.subr.bf16.mxu1 %v7926_v2  ;;  %v7282_v48 = vpop.f32.mrb[75].mxu0  ;;  %v2552_v53 = vadd.f32 %v2546_v37, %v2503_v39 }
 0x194   : > { %v2644_v52 = vpop.f32.mrb[76].mxu1  ;;  %v7873_v48 = vld [vmem:[%s9111_s3 + $0x98] sm:$0xff]  }
 0x195   : > { %v7299_v14 = vpop.f32.mrb[77].mxu1  ;;  %7604 = vmatmul.mubr.msk.bf16.vlgmr.msra.gmra.mrb[180].mxu0 %vm463_vm2, %v8433_v57  ;;  %v8943_v57 = vcombine.low %v8934_v51, %v8934_v51 }
 0x196   : > { %v2647_v55 = vpop.f32.mrb[78].mxu1  ;;  %7614 = vmatpush3.bf16.msra.mxu0 %v7864_v47  ;;  %7615 = vmatprep.mubr.msk.bf16.mxu0 %vm7927_vm1, %v7926_v2 }
 0x197   : > { %v7300_v35 = vpop.f32.mrb[79].mxu1  ;;  %7625 = vmatprep.subr.bf16.mxu0 %v7926_v2  ;;  %v5609_v1 = vshll.u32 %v8943_v57, 16  ;;  %v5607_v6 = vshrl.u32 %v8943_v57, 16  ;;  %v5665_v13 = vrot.slane %v8943_v57, 1 }
 0x198   : > { %v2595_v58 = vpop.f32.mrb[76].mxu0 }
 0x199   : > { %7622 = vmatmul.mubr.msk.bf16.vlgmr.msra.gmra.mrb[184].mxu1 %vm463_vm2, %v8700_v15  ;;  %v2601_v60 = vadd.f32 %v2595_v58, %v2552_v53  ;;  %v7293_v61 = vpop.f32.mrb[77].mxu0 }
 0x19a   : > { %7632 = vmatpush3.bf16.msra.mxu1 %v7867_v54  ;;  %7633 = vmatprep.mubr.msk.bf16.mxu1 %vm7927_vm1, %v7926_v2  ;;  %v2598_v18 = vpop.f32.mrb[78].mxu0 }
 0x19b   : > { %7643 = vmatprep.subr.bf16.mxu1 %v7926_v2  ;;  %v7294_v36 = vpop.f32.mrb[79].mxu0  ;;  %v2650_v15 = vadd.f32 %v2644_v52, %v2601_v60  ;;  %v7875_v18 = vld [vmem:[%s9111_s3 + $0xa8] sm:$0xff]  }
 0x19c   : > { %v2742_v63 = vpop.f32.mrb[80].mxu1 }
 0x19d   : > { %v7311_v0 = vpop.f32.mrb[81].mxu1  ;;  %7616 = vmatmul.mubr.msk.bf16.vlgmr.msra.gmra.mrb[184].mxu0 %vm463_vm2, %v8493_v3  ;;  %v5611_v3 = vrot.slane %v5609_v1, 1 }
 0x19e   : > { %v2745_v59 = vpop.f32.mrb[82].mxu1  ;;  %7626 = vmatpush3.bf16.msra.mxu0 %v7866_v62  ;;  %7627 = vmatprep.mubr.msk.bf16.mxu0 %vm7927_vm1, %v7926_v2  ;;  %v7878_v0 = vld [vmem:[%s9111_s3 + $0xc0] sm:$0xff]  }
 0x19f   : > { %v7312_v46 = vpop.f32.mrb[83].mxu1  ;;  %7637 = vmatprep.subr.bf16.mxu0 %v7926_v2  ;;  %v5612_v23 = vor.u32 %v5611_v3, %v5607_v6  ;;  %v440_v6 = vld [vmem:[%s8039_s23 + $0x14] sm:$0x7] }
 0x1a0   : > { %v2693_v38 = vpop.f32.mrb[80].mxu0 }
 0x1a1   : > { %7634 = vmatmul.mubr.msk.bf16.vlgmr.msra.gmra.mrb[188].mxu1 %vm463_vm2, %v4265_v20  ;;  %v2699_v7 = vadd.f32 %v2693_v38, %v2650_v15  ;;  %v7305_v8 = vpop.f32.mrb[81].mxu0  ;;  %v7877_v38 = vld [vmem:[%s9111_s3 + $0xb8] sm:$0xff]  }
 0x1a2   : > { %7644 = vmatpush3.bf16.msra.mxu1 %v7869_v4  ;;  %7645 = vmatprep.mubr.msk.bf16.mxu1 %vm7927_vm1, %v7926_v2  ;;  %v2696_v10 = vpop.f32.mrb[82].mxu0 }
 0x1a3   : > { %7655 = vmatprep.subr.bf16.mxu1 %v7926_v2  ;;  %v7306_v16 = vpop.f32.mrb[83].mxu0  ;;  %v2748_v22 = vadd.f32 %v2742_v63, %v2699_v7 }
 0x1a4   : > { %v2856_v25 = vpop.f32.mrb[84].mxu1  ;;  %v7881_v16 = vld [vmem:[%s9111_s3 + $0xd0] sm:$0xff]  }
 0x1a5   : > { %v7323_v20 = vpop.f32.mrb[85].mxu1  ;;  %7628 = vmatmul.mubr.msk.bf16.vlgmr.msra.gmra.mrb[188].mxu0 %vm463_vm2, %v8737_v56 }
 0x1a6   : > { %v2859_v50 = vpop.f32.mrb[86].mxu1  ;;  %7638 = vmatpush3.bf16.msra.mxu0 %v7868_v32  ;;  %7639 = vmatprep.mubr.msk.bf16.mxu0 %vm7927_vm1, %v7926_v2  ;;  %v6836_v32 = vcombine.low %v440_v6, %v440_v6  ;;  %v1987_v20 = vmul.f32 %v8843_v26, %v8843_v26 }
 0x1a7   : > { %v7324_v30 = vpop.f32.mrb[87].mxu1  ;;  %7649 = vmatprep.subr.bf16.mxu0 %v7926_v2 }
 0x1a8   : > { %v2794_v31 = vpop.f32.mrb[84].mxu0  ;;  %v6070_v50 = vshll.u32 %v6836_v32, 16  ;;  %v7880_v30 = vld [vmem:[%s9111_s3 + $0xc8] sm:$0xff]  }
 0x1a9   : > { %7646 = vmatmul.mubr.msk.bf16.vlgmr.msra.gmra.mrb[192].mxu1 %vm463_vm2, %v5612_v23  ;;  %v2800_v33 = vadd.f32 %v2794_v31, %v2748_v22  ;;  %v7317_v29 = vpop.f32.mrb[85].mxu0  ;;  %v1979_v31 = vsel %vm1977_vm3, %v8843_v26, 0.0 }
 0x1aa   : > { %7656 = vmatpush3.bf16.msra.mxu1 %v7872_v28  ;;  %7657 = vmatprep.mubr.msk.bf16.mxu1 %vm7927_vm1, %v7926_v2  ;;  %v2797_v56 = vpop.f32.mrb[86].mxu0 }
 0x1ab   : > { %7667 = vmatprep.subr.bf16.mxu1 %v7926_v2  ;;  %v7318_v12 = vpop.f32.mrb[87].mxu0  ;;  %v2862_v37 = vadd.f32 %v2856_v25, %v2800_v33 }
 0x1ac   : > { %v2958_v34 = vpop.f32.mrb[88].mxu1 }
 0x1ad   : > { %v7335_v40 = vpop.f32.mrb[89].mxu1  ;;  %7640 = vmatmul.mubr.msk.bf16.vlgmr.msra.gmra.mrb[192].mxu0 %vm463_vm2, %v8934_v51  ;;  %v7876_v51 = vld [vmem:[%s9111_s3 + $0xb0] sm:$0xff]  }
 0x1ae   : > { %v2961_v41 = vpop.f32.mrb[90].mxu1  ;;  %7650 = vmatpush3.bf16.msra.mxu0 %v7871_v44  ;;  %7651 = vmatprep.mubr.msk.bf16.mxu0 %vm7927_vm1, %v7926_v2  ;;  %v6126_v44 = vrot.slane %v6836_v32, 1  ;;  %v6072_v40 = vrot.slane %v6070_v50, 1 }
 0x1af   : > { %v7336_v42 = vpop.f32.mrb[91].mxu1  ;;  %7661 = vmatprep.subr.bf16.mxu0 %v7926_v2 }
 0x1b0   : > { %v2909_v11 = vpop.f32.mrb[88].mxu0 }
 0x1b1   : > { %7658 = vmatmul.mubr.msk.bf16.vlgmr.msra.gmra.mrb[196].mxu1 %vm463_vm2, %v7883_v43  ;;  %v2915_v39 = vadd.f32 %v2909_v11, %v2862_v37  ;;  %v7329_v45 = vpop.f32.mrb[89].mxu0  ;;  %v6068_v37 = vshrl.u32 %v6836_v32, 16 }
 0x1b2   : > { %7668 = vmatpush3.bf16.msra.mxu1 %v7874_v27  ;;  %7669 = vmatprep.mubr.msk.bf16.mxu1 %vm7927_vm1, %v7926_v2  ;;  %v2912_v47 = vpop.f32.mrb[90].mxu0  ;;  %v1980_v27 = vrot.slane %v1979_v31, 4 }
 0x1b3   : > { %7679 = vmatprep.subr.bf16.mxu1 %v7926_v2  ;;  %v7330_v52 = vpop.f32.mrb[91].mxu0  ;;  %v2964_v14 = vadd.f32 %v2958_v34, %v2915_v39  ;;  %v1988_v34 = vsel %vm1977_vm3, %v1987_v20, 0.0  ;;  %v6073_v45 = vor.u32 %v6072_v40, %v6068_v37 }
 0x1b4   : > { %v3056_v53 = vpop.f32.mrb[92].mxu1  ;;  %v1989_v26 = vrot.slane %v1988_v34, 4 }
 0x1b5   : > { %v7347_v55 = vpop.f32.mrb[93].mxu1  ;;  %7652 = vmatmul.mubr.msk.bf16.vlgmr.msra.gmra.mrb[196].mxu0 %vm463_vm2, %v5665_v13  ;;  %v1981_v13 = vadd.f32 %v1980_v27, %v1979_v31 }
 0x1b6   : > { %v3059_v54 = vpop.f32.mrb[94].mxu1  ;;  %7662 = vmatpush3.bf16.msra.mxu0 %v7873_v48  ;;  %7663 = vmatprep.mubr.msk.bf16.mxu0 %vm7927_vm1, %v7926_v2  ;;  %v1990_v52 = vadd.f32 %v1989_v26, %v1988_v34 }
 0x1b7   : > { %v7348_v35 = vpop.f32.mrb[95].mxu1  ;;  %7673 = vmatprep.subr.bf16.mxu0 %v7926_v2  ;;  %v1982_v55 = vrot.slane %v1981_v13, 2 }
 0x1b8   : > { %v3007_v58 = vpop.f32.mrb[92].mxu0 }
 0x1b9   : > { %7670 = vmatmul.mubr.msk.bf16.vlgmr.msra.gmra.mrb[200].mxu1 %vm463_vm2, %v8555_v19  ;;  %v3013_v57 = vadd.f32 %v3007_v58, %v2964_v14  ;;  %v7341_v60 = vpop.f32.mrb[93].mxu0  ;;  %v1991_v58 = vrot.slane %v1990_v52, 2 }
 0x1ba   : > { %7680 = vmatpush3.bf16.msra.mxu1 %v7876_v51  ;;  %7681 = vmatprep.mubr.msk.bf16.mxu1 %vm7927_vm1, %v7926_v2  ;;  %v3010_v61 = vpop.f32.mrb[94].mxu0 }
 0x1bb   : > { %7691 = vmatprep.subr.bf16.mxu1 %v7926_v2  ;;  %v7342_v62 = vpop.f32.mrb[95].mxu0  ;;  %v3062_v63 = vadd.f32 %v3056_v53, %v3013_v57 }
 0x1bc   : > { %v3154_v36 = vpop.f32.mrb[96].mxu1 }
 0x1bd   : > { %v7359_v15 = vpop.f32.mrb[97].mxu1  ;;  %7664 = vmatmul.mubr.msk.bf16.vlgmr.msra.gmra.mrb[200].mxu0 %vm463_vm2, %v8567_v24 }
 0x1be   : > { %v3157_v19 = vpop.f32.mrb[98].mxu1  ;;  %7674 = vmatpush3.bf16.msra.mxu0 %v7875_v18  ;;  %7675 = vmatprep.mubr.msk.bf16.mxu0 %vm7927_vm1, %v7926_v2 }
 0x1bf   : > { %v7360_v1 = vpop.f32.mrb[99].mxu1  ;;  %7685 = vmatprep.subr.bf16.mxu0 %v7926_v2 }
 0x1c0   : > { %v3105_v59 = vpop.f32.mrb[96].mxu0 }
 0x1c1   : > { %7682 = vmatmul.mubr.msk.bf16.vlgmr.msra.gmra.mrb[204].mxu1 %vm463_vm2, %v8802_v49  ;;  %v3111_v4 = vadd.f32 %v3105_v59, %v3062_v63  ;;  %v7353_v46 = vpop.f32.mrb[97].mxu0  ;;  %v1992_v59 = vadd.f32 %v1991_v58, %v1990_v52 }
 0x1c2   : > { %7692 = vmatpush3.bf16.msra.mxu1 %v7878_v0  ;;  %7693 = vmatprep.mubr.msk.bf16.mxu1 %vm7927_vm1, %v7926_v2  ;;  %v3108_v24 = vpop.f32.mrb[98].mxu0 }
 0x1c3   : > { %7703 = vmatprep.subr.bf16.mxu1 %v7926_v2  ;;  %v7354_v3 = vpop.f32.mrb[99].mxu0  ;;  %v3160_v8 = vadd.f32 %v3154_v36, %v3111_v4  ;;  %v1983_v36 = vadd.f32 %v1982_v55, %v1981_v13 }
 0x1c4   : > { %v3255_v7 = vpop.f32.mrb[100].mxu1 }
 0x1c5   : > { %v7371_v10 = vpop.f32.mrb[101].mxu1  ;;  %7676 = vmatmul.mubr.msk.bf16.vlgmr.msra.gmra.mrb[204].mxu0 %vm463_vm2, %v8767_v17 }
 0x1c6   : > { %v3258_v49 = vpop.f32.mrb[102].mxu1  ;;  %7686 = vmatpush3.bf16.msra.mxu0 %v7877_v38  ;;  %7687 = vmatprep.mubr.msk.bf16.mxu0 %vm7927_vm1, %v7926_v2  ;;  %v1993_v10 = vrot.slane %v1992_v59, 1 }
 0x1c7   : > { %v7372_v25 = vpop.f32.mrb[103].mxu1  ;;  %7697 = vmatprep.subr.bf16.mxu0 %v7926_v2 }
 0x1c8   : > { %v3203_v22 = vpop.f32.mrb[100].mxu0 }
 0x1c9   : > { %7694 = vmatmul.mubr.msk.bf16.vlgmr.msra.gmra.mrb[208].mxu1 %vm463_vm2, %v440_v6  ;;  %v3209_v17 = vadd.f32 %v3203_v22, %v3160_v8  ;;  %v7365_v23 = vpop.f32.mrb[101].mxu0  ;;  %v1984_v6 = vrot.slane %v1983_v36, 1 }
 0x1ca   : > { %7704 = vmatpush3.bf16.msra.mxu1 %v7881_v16  ;;  %7705 = vmatprep.mubr.msk.bf16.mxu1 %vm7927_vm1, %v7926_v2  ;;  %v3206_v28 = vpop.f32.mrb[102].mxu0 }
 0x1cb   : > { %v7366_v33 = vpop.f32.mrb[103].mxu0  ;;  %v3261_v56 = vadd.f32 %v3255_v7, %v3209_v17  ;;  %v1985_v20 = vadd.f32 %v1984_v6, %v1983_v36 }
 0x1cc   : > { %v3370_v29 = vpop.f32.mrb[104].mxu1  ;;  %v1994_v33 = vadd.f32 %v1993_v10, %v1992_v59 }
 0x1cd   : > { %v7383_v12 = vpop.f32.mrb[105].mxu1  ;;  %7688 = vmatmul.mubr.msk.bf16.vlgmr.msra.gmra.mrb[208].mxu0 %vm463_vm2, %v4726_v21 }
 0x1ce   : > { %v3373_v41 = vpop.f32.mrb[106].mxu1  ;;  %7698 = vmatpush3.bf16.msra.mxu0 %v7880_v30  ;;  %7699 = vmatprep.mubr.msk.bf16.mxu0 %vm7927_vm1, %v7926_v2 }
 0x1cf   : > { %v7384_v42 = vpop.f32.mrb[107].mxu1 }
 0x1d0   : > { %v3317_v11 = vpop.f32.mrb[104].mxu0 }
 0x1d1   : > { %7706 = vmatmul.mubr.msk.bf16.vlgmr.msra.gmra.mrb[212].mxu1 %vm463_vm2, %v6126_v44  ;;  %v3323_v43 = vadd.f32 %v3317_v11, %v3261_v56  ;;  %v7377_v39 = vpop.f32.mrb[105].mxu0 }
 0x1d2   : > { %v3320_v47 = vpop.f32.mrb[106].mxu0 }
 0x1d3   : > { %v3376_v9 = vadd.f32 %v3370_v29, %v3323_v43  ;;  %v7378_v48 = vpop.f32.mrb[107].mxu0 }
 0x1d4   : > { %v3486_v21 = vpop.f32.mrb[108].mxu1 }
 0x1d5   : > { %v7395_v53 = vpop.f32.mrb[109].mxu1  ;;  %v3377_v14 = vadd.f32 %v8831_v5, %v3376_v9  ;;  %7700 = vmatmul.mubr.msk.bf16.vlgmr.msra.gmra.mrb[212].mxu0 %vm463_vm2, %v6073_v45 }
 0x1d6   : > { %v3489_v2 = vpop.f32.mrb[110].mxu1 }
 0x1d7   : > { %v7396_v54 = vpop.f32.mrb[111].mxu1  ;;  %3378 = vst.msk [vmem:[%s8034_s6 + $0x4] sm:$0xf] %vm1977_vm3, %v3377_v14  ;;  %v3379_v51 = vsel %vm1977_vm3, %v3377_v14, 0.0  ;;  %v3387_v35 = vmul.f32 %v3377_v14, %v3377_v14 }
 0x1d8   : > { %v3380_v57 = vrot.slane %v3379_v51, 4  ;;  %v3440_v60 = vpop.f32.mrb[108].mxu0 }
 0x1d9   : > { %v3388_v61 = vsel %vm1977_vm3, %v3387_v35, 0.0  ;;  %v3487_v18 = vadd.f32 %v3486_v21, %v3440_v60  ;;  %v7389_v62 = vpop.f32.mrb[109].mxu0 }
 0x1da   : > { %v3381_v63 = vadd.f32 %v3380_v57, %v3379_v51  ;;  %v3389_v15 = vrot.slane %v3388_v61, 4  ;;  %v3443_v19 = vpop.f32.mrb[110].mxu0 }
 0x1db   : > { %v7390_v0 = vpop.f32.mrb[111].mxu0 }
 0x1dc   : > { %v3583_v1 = vpop.f32.mrb[112].mxu1  ;;  %v3382_v4 = vrot.slane %v3381_v63, 2  ;;  %v3390_v46 = vadd.f32 %v3389_v15, %v3388_v61 }
 0x1dd   : > { %v7407_v24 = vpop.f32.mrb[113].mxu1 }
 0x1de   : > { %v3586_v38 = vpop.f32.mrb[114].mxu1  ;;  %v3383_v3 = vadd.f32 %v3382_v4, %v3381_v63  ;;  %v3391_v7 = vrot.slane %v3390_v46, 2 }
 0x1df   : > { %v7408_v8 = vpop.f32.mrb[115].mxu1 }
 0x1e0   : > { %v3384_v49 = vrot.slane %v3383_v3, 1  ;;  %v3392_v32 = vadd.f32 %v3391_v7, %v3390_v46  ;;  %v3534_v16 = vpop.f32.mrb[112].mxu0 }
 0x1e1   : > { %v3540_v25 = vadd.f32 %v3534_v16, %v3487_v18  ;;  %v7401_v22 = vpop.f32.mrb[113].mxu0 }
 0x1e2   : > { %v3385_v17 = vadd.f32 %v3384_v49, %v3383_v3  ;;  %v3393_v23 = vrot.slane %v3392_v32, 1  ;;  %v3537_v50 = vpop.f32.mrb[114].mxu0 }
 0x1e3   : > { %v7402_v28 = vpop.f32.mrb[115].mxu0  ;;  %v3589_v31 = vadd.f32 %v3583_v1, %v3540_v25 }
 0x1e4   : > { %v3681_v30 = vpop.f32.mrb[116].mxu1  ;;  %v3394_v29 = vadd.f32 %v3393_v23, %v3392_v32  ;;  %v9065_v44 = vadd.f32 %v3385_v17, %v1985_v20 }
 0x1e5   : > { %v7419_v56 = vpop.f32.mrb[117].mxu1 }
 0x1e6   : > { %v3684_v12 = vpop.f32.mrb[118].mxu1  ;;  %v9067_v37 = vadd.f32 %v3394_v29, %v1994_v33 }
 0x1e7   : > { %v7420_v34 = vpop.f32.mrb[119].mxu1 }
 0x1e8   : > { %v3632_v40 = vpop.f32.mrb[116].mxu0 }
 0x1e9   : > { %v3638_v41 = vadd.f32 %v3632_v40, %v3589_v31  ;;  %v7413_v27 = vpop.f32.mrb[117].mxu0 }
 0x1ea   : > { %v3635_v42 = vpop.f32.mrb[118].mxu0 }
 0x1eb   : > { %v7414_v26 = vpop.f32.mrb[119].mxu0  ;;  %v3687_v43 = vadd.f32 %v3681_v30, %v3638_v41 }
 0x1ec   : > { %v3795_v11 = vpop.f32.mrb[120].mxu1 }
 0x1ed   : > { %v7431_v39 = vpop.f32.mrb[121].mxu1 }
 0x1ee   : > { %v3798_v45 = vpop.f32.mrb[122].mxu1 }
 0x1ef   : > { %v7432_v13 = vpop.f32.mrb[123].mxu1 }
 0x1f0   : > { %v3733_v47 = vpop.f32.mrb[120].mxu0 }
 0x1f1   : > { %v3739_v9 = vadd.f32 %v3733_v47, %v3687_v43  ;;  %v7425_v48 = vpop.f32.mrb[121].mxu0 }
 0x1f2   : > { %v3736_v21 = vpop.f32.mrb[122].mxu0 }
 0x1f3   : > { %v7426_v52 = vpop.f32.mrb[123].mxu0  ;;  %v3801_v14 = vadd.f32 %v3795_v11, %v3739_v9 }
 0x1f4   : > { %v3897_v53 = vpop.f32.mrb[124].mxu1 }
 0x1f5   : > { %v7443_v2 = vpop.f32.mrb[125].mxu1 }
 0x1f6   : > { %v3900_v55 = vpop.f32.mrb[126].mxu1 }
 0x1f7   : > { %v7444_v54 = vpop.f32.mrb[127].mxu1 }
 0x1f8   : > { %v3848_v51 = vpop.f32.mrb[124].mxu0 }
 0x1f9   : > { %v3854_v35 = vadd.f32 %v3848_v51, %v3801_v14  ;;  %v7437_v58 = vpop.f32.mrb[125].mxu0 }
 0x1fa   : > { %v3851_v57 = vpop.f32.mrb[126].mxu0 }
 0x1fb   : > { %v7438_v60 = vpop.f32.mrb[127].mxu0  ;;  %v3903_v18 = vadd.f32 %v3897_v53, %v3854_v35 }
 0x1fc   : > { %v3995_v61 = vpop.f32.mrb[128].mxu1 }
 0x1fd   : > { %v7455_v62 = vpop.f32.mrb[129].mxu1 }
 0x1fe   : > { %v3998_v36 = vpop.f32.mrb[130].mxu1 }
 0x1ff   : > { %v7456_v63 = vpop.f32.mrb[131].mxu1 }
 0x200   : > { %v3946_v15 = vpop.f32.mrb[128].mxu0 }
 0x201   : > { %v3952_v19 = vadd.f32 %v3946_v15, %v3903_v18  ;;  %v7449_v0 = vpop.f32.mrb[129].mxu0 }
 0x202   : > { %v3949_v1 = vpop.f32.mrb[130].mxu0 }
 0x203   : > { %v7450_v59 = vpop.f32.mrb[131].mxu0  ;;  %v4001_v46 = vadd.f32 %v3995_v61, %v3952_v19 }
 0x204   : > { %v4093_v4 = vpop.f32.mrb[132].mxu1 }
 0x205   : > { %v7467_v24 = vpop.f32.mrb[133].mxu1 }
 0x206   : > { %v4096_v38 = vpop.f32.mrb[134].mxu1 }
 0x207   : > { %v7468_v6 = vpop.f32.mrb[135].mxu1 }
 0x208   : > { %v4044_v3 = vpop.f32.mrb[132].mxu0 }
 0x209   : > { %v4050_v7 = vadd.f32 %v4044_v3, %v4001_v46  ;;  %v7461_v8 = vpop.f32.mrb[133].mxu0 }
 0x20a   : > { %v4047_v10 = vpop.f32.mrb[134].mxu0 }
 0x20b   : > { %v7462_v49 = vpop.f32.mrb[135].mxu0  ;;  %v4099_v16 = vadd.f32 %v4093_v4, %v4050_v7 }
 0x20c   : > { %v4194_v32 = vpop.f32.mrb[136].mxu1 }
 0x20d   : > { %v7479_v25 = vpop.f32.mrb[137].mxu1 }
 0x20e   : > { %v4197_v22 = vpop.f32.mrb[138].mxu1 }
 0x20f   : > { %v7480_v20 = vpop.f32.mrb[139].mxu1 }
 0x210   : > { %v4142_v17 = vpop.f32.mrb[136].mxu0 }
 0x211   : > { %v4148_v23 = vadd.f32 %v4142_v17, %v4099_v16  ;;  %v7473_v50 = vpop.f32.mrb[137].mxu0 }
 0x212   : > { %v4145_v28 = vpop.f32.mrb[138].mxu0 }
 0x213   : > { %v7474_v30 = vpop.f32.mrb[139].mxu0  ;;  %v4200_v33 = vadd.f32 %v4194_v32, %v4148_v23 }
 0x214   : > { %v4309_v31 = vpop.f32.mrb[140].mxu1 }
 0x215   : > { %v7491_v29 = vpop.f32.mrb[141].mxu1 }
 0x216   : > { %v4312_v56 = vpop.f32.mrb[142].mxu1 }
 0x217   : > { %v7492_v12 = vpop.f32.mrb[143].mxu1 }
 0x218   : > { %v4256_v34 = vpop.f32.mrb[140].mxu0 }
 0x219   : > { %v4262_v40 = vadd.f32 %v4256_v34, %v4200_v33  ;;  %v7485_v41 = vpop.f32.mrb[141].mxu0 }
 0x21a   : > { %v4259_v27 = vpop.f32.mrb[142].mxu0 }
 0x21b   : > { %v7486_v42 = vpop.f32.mrb[143].mxu0  ;;  %v4315_v11 = vadd.f32 %v4309_v31, %v4262_v40 }
 0x21c   : > { %v4407_v26 = vpop.f32.mrb[144].mxu1 }
 0x21d   : > { %v7503_v43 = vpop.f32.mrb[145].mxu1 }
 0x21e   : > { %v4410_v39 = vpop.f32.mrb[146].mxu1 }
 0x21f   : > { %v7504_v45 = vpop.f32.mrb[147].mxu1 }
 0x220   : > { %v4358_v13 = vpop.f32.mrb[144].mxu0 }
 0x221   : > { %v4364_v47 = vadd.f32 %v4358_v13, %v4315_v11  ;;  %v7497_v9 = vpop.f32.mrb[145].mxu0 }
 0x222   : > { %v4361_v48 = vpop.f32.mrb[146].mxu0 }
 0x223   : > { %v7498_v21 = vpop.f32.mrb[147].mxu0  ;;  %v4413_v53 = vadd.f32 %v4407_v26, %v4364_v47 }
 0x224   : > { %v4505_v52 = vpop.f32.mrb[148].mxu1 }
 0x225   : > { %v7515_v14 = vpop.f32.mrb[149].mxu1 }
 0x226   : > { %v4508_v2 = vpop.f32.mrb[150].mxu1 }
 0x227   : > { %v7516_v55 = vpop.f32.mrb[151].mxu1 }
 0x228   : > { %v4456_v54 = vpop.f32.mrb[148].mxu0 }
 0x229   : > { %v4462_v51 = vadd.f32 %v4456_v54, %v4413_v53  ;;  %v7509_v35 = vpop.f32.mrb[149].mxu0 }
 0x22a   : > { %v4459_v58 = vpop.f32.mrb[150].mxu0 }
 0x22b   : > { %v7510_v57 = vpop.f32.mrb[151].mxu0  ;;  %v4511_v61 = vadd.f32 %v4505_v52, %v4462_v51 }
 0x22c   : > { %v4603_v60 = vpop.f32.mrb[152].mxu1 }
 0x22d   : > { %v7527_v18 = vpop.f32.mrb[153].mxu1 }
 0x22e   : > { %v4606_v62 = vpop.f32.mrb[154].mxu1 }
 0x22f   : > { %v7528_v36 = vpop.f32.mrb[155].mxu1 }
 0x230   : > { %v4554_v63 = vpop.f32.mrb[152].mxu0 }
 0x231   : > { %v4560_v15 = vadd.f32 %v4554_v63, %v4511_v61  ;;  %v7521_v19 = vpop.f32.mrb[153].mxu0 }
 0x232   : > { %v4557_v0 = vpop.f32.mrb[154].mxu0 }
 0x233   : > { %v7522_v1 = vpop.f32.mrb[155].mxu0  ;;  %v4609_v4 = vadd.f32 %v4603_v60, %v4560_v15 }
 0x234   : > { %v4717_v59 = vpop.f32.mrb[156].mxu1 }
 0x235   : > { %v7539_v46 = vpop.f32.mrb[157].mxu1 }
 0x236   : > { %v4720_v24 = vpop.f32.mrb[158].mxu1 }
 0x237   : > { %v7540_v38 = vpop.f32.mrb[159].mxu1 }
 0x238   : > { %v4655_v6 = vpop.f32.mrb[156].mxu0 }
 0x239   : > { %v4661_v3 = vadd.f32 %v4655_v6, %v4609_v4  ;;  %v7533_v7 = vpop.f32.mrb[157].mxu0 }
 0x23a   : > { %v4658_v8 = vpop.f32.mrb[158].mxu0 }
 0x23b   : > { %v7534_v10 = vpop.f32.mrb[159].mxu0  ;;  %v4723_v32 = vadd.f32 %v4717_v59, %v4661_v3 }
 0x23c   : > { %v4840_v49 = vpop.f32.mrb[160].mxu1 }
 0x23d   : > { %v7551_v16 = vpop.f32.mrb[161].mxu1 }
 0x23e   : > { %v4843_v25 = vpop.f32.mrb[162].mxu1 }
 0x23f   : > { %v7552_v22 = vpop.f32.mrb[163].mxu1 }
 0x240   : > { %v4770_v20 = vpop.f32.mrb[160].mxu0 }
 0x241   : > { %v4776_v17 = vadd.f32 %v4770_v20, %v4723_v32  ;;  %v7545_v23 = vpop.f32.mrb[161].mxu0 }
 0x242   : > { %v4773_v50 = vpop.f32.mrb[162].mxu0 }
 0x243   : > { %v4777_v28 = vadd.f32 %v8831_v5, %v4776_v17  ;;  %v7546_v30 = vpop.f32.mrb[163].mxu0 }
 0x244   : > { %v4934_v31 = vpop.f32.mrb[164].mxu1 }
 0x245   : > { %v7563_v33 = vpop.f32.mrb[165].mxu1  ;;  %4778 = vst.msk [vmem:[%s8034_s6 + $0x8] sm:$0xf] %vm1977_vm3, %v4777_v28  ;;  %v4779_v29 = vsel %vm1977_vm3, %v4777_v28, 0.0  ;;  %v4787_v56 = vmul.f32 %v4777_v28, %v4777_v28 }
 0x246   : > { %v4937_v12 = vpop.f32.mrb[166].mxu1  ;;  %v4780_v34 = vrot.slane %v4779_v29, 4 }
 0x247   : > { %v7564_v40 = vpop.f32.mrb[167].mxu1  ;;  %v4788_v41 = vsel %vm1977_vm3, %v4787_v56, 0.0 }
 0x248   : > { %v4781_v27 = vadd.f32 %v4780_v34, %v4779_v29  ;;  %v4789_v42 = vrot.slane %v4788_v41, 4  ;;  %v4886_v26 = vpop.f32.mrb[164].mxu0 }
 0x249   : > { %v4887_v11 = vadd.f32 %v4886_v26, %v4840_v49  ;;  %v7557_v43 = vpop.f32.mrb[165].mxu0 }
 0x24a   : > { %v4782_v39 = vrot.slane %v4781_v27, 2  ;;  %v4790_v5 = vadd.f32 %v4789_v42, %v4788_v41  ;;  %v4889_v45 = vpop.f32.mrb[166].mxu0 }
 0x24b   : > { %v7558_v13 = vpop.f32.mrb[167].mxu0  ;;  %v4940_v9 = vadd.f32 %v4934_v31, %v4887_v11 }
 0x24c   : > { %v5032_v47 = vpop.f32.mrb[168].mxu1  ;;  %v4783_v48 = vadd.f32 %v4782_v39, %v4781_v27  ;;  %v4791_v21 = vrot.slane %v4790_v5, 2 }
 0x24d   : > { %v7575_v52 = vpop.f32.mrb[169].mxu1 }
 0x24e   : > { %v5035_v53 = vpop.f32.mrb[170].mxu1  ;;  %v4784_v14 = vrot.slane %v4783_v48, 1  ;;  %v4792_v2 = vadd.f32 %v4791_v21, %v4790_v5 }
 0x24f   : > { %v7576_v55 = vpop.f32.mrb[171].mxu1 }
 0x250   : > { %v4785_v54 = vadd.f32 %v4784_v14, %v4783_v48  ;;  %v4793_v51 = vrot.slane %v4792_v2, 1  ;;  %v4983_v35 = vpop.f32.mrb[168].mxu0 }
 0x251   : > { %v4989_v58 = vadd.f32 %v4983_v35, %v4940_v9  ;;  %v7569_v57 = vpop.f32.mrb[169].mxu0 }
 0x252   : > { %v9075_v60 = vadd.f32 %v4785_v54, %v9065_v44  ;;  %v4794_v61 = vadd.f32 %v4793_v51, %v4792_v2  ;;  %v4986_v18 = vpop.f32.mrb[170].mxu0 }
 0x253   : > { %v7570_v62 = vpop.f32.mrb[171].mxu0  ;;  %v5038_v63 = vadd.f32 %v5032_v47, %v4989_v58 }
 0x254   : > { %v5133_v36 = vpop.f32.mrb[172].mxu1  ;;  %v9078_v15 = vadd.f32 %v4794_v61, %v9067_v37 }
 0x255   : > { %v7587_v19 = vpop.f32.mrb[173].mxu1 }
 0x256   : > { %v5136_v0 = vpop.f32.mrb[174].mxu1 }
 0x257   : > { %v7588_v1 = vpop.f32.mrb[175].mxu1 }
 0x258   : > { %v5081_v59 = vpop.f32.mrb[172].mxu0 }
 0x259   : > { %v5087_v4 = vadd.f32 %v5081_v59, %v5038_v63  ;;  %v7581_v46 = vpop.f32.mrb[173].mxu0 }
 0x25a   : > { %v5084_v24 = vpop.f32.mrb[174].mxu0 }
 0x25b   : > { %v7582_v38 = vpop.f32.mrb[175].mxu0  ;;  %v5139_v3 = vadd.f32 %v5133_v36, %v5087_v4 }
 0x25c   : > { %v5248_v6 = vpop.f32.mrb[176].mxu1 }
 0x25d   : > { %v7599_v44 = vpop.f32.mrb[177].mxu1 }
 0x25e   : > { %v5251_v7 = vpop.f32.mrb[178].mxu1 }
 0x25f   : > { %v7600_v8 = vpop.f32.mrb[179].mxu1 }
 0x260   : > { %v5195_v10 = vpop.f32.mrb[176].mxu0 }
 0x261   : > { %v5201_v49 = vadd.f32 %v5195_v10, %v5139_v3  ;;  %v7593_v32 = vpop.f32.mrb[177].mxu0 }
 0x262   : > { %v5198_v16 = vpop.f32.mrb[178].mxu0 }
 0x263   : > { %v7594_v25 = vpop.f32.mrb[179].mxu0  ;;  %v5254_v22 = vadd.f32 %v5248_v6, %v5201_v49 }
 0x264   : > { %v5346_v37 = vpop.f32.mrb[180].mxu1 }
 0x265   : > { %v7611_v20 = vpop.f32.mrb[181].mxu1 }
 0x266   : > { %v5349_v17 = vpop.f32.mrb[182].mxu1 }
 0x267   : > { %v7612_v23 = vpop.f32.mrb[183].mxu1 }
 0x268   : > { %v5297_v50 = vpop.f32.mrb[180].mxu0 }
 0x269   : > { %v5303_v28 = vadd.f32 %v5297_v50, %v5254_v22  ;;  %v7605_v30 = vpop.f32.mrb[181].mxu0 }
 0x26a   : > { %v5300_v31 = vpop.f32.mrb[182].mxu0 }
 0x26b   : > { %v7606_v33 = vpop.f32.mrb[183].mxu0  ;;  %v5352_v56 = vadd.f32 %v5346_v37, %v5303_v28 }
 0x26c   : > { %v5444_v29 = vpop.f32.mrb[184].mxu1 }
 0x26d   : > { %v7623_v12 = vpop.f32.mrb[185].mxu1 }
 0x26e   : > { %v5447_v34 = vpop.f32.mrb[186].mxu1 }
 0x26f   : > { %v7624_v40 = vpop.f32.mrb[187].mxu1 }
 0x270   : > { %v5395_v41 = vpop.f32.mrb[184].mxu0 }
 0x271   : > { %v5401_v27 = vadd.f32 %v5395_v41, %v5352_v56  ;;  %v7617_v42 = vpop.f32.mrb[185].mxu0 }
 0x272   : > { %v5398_v26 = vpop.f32.mrb[186].mxu0 }
 0x273   : > { %v7618_v11 = vpop.f32.mrb[187].mxu0  ;;  %v5450_v39 = vadd.f32 %v5444_v29, %v5401_v27 }
 0x274   : > { %v5542_v43 = vpop.f32.mrb[188].mxu1 }
 0x275   : > { %v7635_v5 = vpop.f32.mrb[189].mxu1 }
 0x276   : > { %v5545_v45 = vpop.f32.mrb[190].mxu1 }
 0x277   : > { %v7636_v13 = vpop.f32.mrb[191].mxu1 }
 0x278   : > { %v5493_v47 = vpop.f32.mrb[188].mxu0 }
 0x279   : > { %v5499_v9 = vadd.f32 %v5493_v47, %v5450_v39  ;;  %v7629_v48 = vpop.f32.mrb[189].mxu0 }
 0x27a   : > { %v5496_v21 = vpop.f32.mrb[190].mxu0 }
 0x27b   : > { %v7630_v52 = vpop.f32.mrb[191].mxu0  ;;  %v5548_v14 = vadd.f32 %v5542_v43, %v5499_v9 }
 0x27c   : > { %v5656_v53 = vpop.f32.mrb[192].mxu1  ;;  %v7884_v52 = vld [vmem:[%s9112_s4] ss:$0 sm:$0xff] }
 0x27d   : > { %v7647_v2 = vpop.f32.mrb[193].mxu1 }
 0x27e   : > { %v5659_v55 = vpop.f32.mrb[194].mxu1 }
 0x27f   : > { %v7648_v54 = vpop.f32.mrb[195].mxu1 }
 0x280   : > { %v5594_v51 = vpop.f32.mrb[192].mxu0 }
 0x281   : > { %v5600_v35 = vadd.f32 %v5594_v51, %v5548_v14  ;;  %v7641_v58 = vpop.f32.mrb[193].mxu0 }
 0x282   : > { %v5597_v57 = vpop.f32.mrb[194].mxu0 }
 0x283   : > { %v7642_v61 = vpop.f32.mrb[195].mxu0  ;;  %v5662_v62 = vadd.f32 %v5656_v53, %v5600_v35 }
 0x284   : > { %v5758_v18 = vpop.f32.mrb[196].mxu1 }
 0x285   : > { %v7659_v36 = vpop.f32.mrb[197].mxu1 }
 0x286   : > { %v5761_v63 = vpop.f32.mrb[198].mxu1 }
 0x287   : > { %v7660_v19 = vpop.f32.mrb[199].mxu1 }
 0x288   : > { %v5709_v0 = vpop.f32.mrb[196].mxu0 }
 0x289   : > { %v5715_v1 = vadd.f32 %v5709_v0, %v5662_v62  ;;  %v7653_v59 = vpop.f32.mrb[197].mxu0  ;;  %v6196_v0 = vld [vmem:[%s8017_s29] sm:$0x1] }
 0x28a   : > { %v5712_v4 = vpop.f32.mrb[198].mxu0 }
 0x28b   : > { %v7654_v46 = vpop.f32.mrb[199].mxu0  ;;  %v5764_v38 = vadd.f32 %v5758_v18, %v5715_v1  ;;  %v6200_v4 = vld [vmem:[%s8027_s18] sm:$0x1] }
 0x28c   : > { %v5856_v24 = vpop.f32.mrb[200].mxu1 }
 0x28d   : > { %v7671_v6 = vpop.f32.mrb[201].mxu1 }
 0x28e   : > { %v5859_v3 = vpop.f32.mrb[202].mxu1 }
 0x28f   : > { %v7672_v44 = vpop.f32.mrb[203].mxu1 }
 0x290   : > { %v5807_v7 = vpop.f32.mrb[200].mxu0 }
 0x291   : > { %v5813_v8 = vadd.f32 %v5807_v7, %v5764_v38  ;;  %v7665_v10 = vpop.f32.mrb[201].mxu0 }
 0x292   : > { %v5810_v49 = vpop.f32.mrb[202].mxu0 }
 0x293   : > { %v7666_v32 = vpop.f32.mrb[203].mxu0  ;;  %v5862_v25 = vadd.f32 %v5856_v24, %v5813_v8 }
 0x294   : > { %v5954_v16 = vpop.f32.mrb[204].mxu1 }
 0x295   : > { %v7683_v37 = vpop.f32.mrb[205].mxu1 }
 0x296   : > { %v5957_v22 = vpop.f32.mrb[206].mxu1 }
 0x297   : > { %v7684_v20 = vpop.f32.mrb[207].mxu1 }
 0x298   : > { %v5905_v17 = vpop.f32.mrb[204].mxu0 }
 0x299   : > { %v5911_v23 = vadd.f32 %v5905_v17, %v5862_v25  ;;  %v7677_v50 = vpop.f32.mrb[205].mxu0 }
 0x29a   : > { %v5908_v28 = vpop.f32.mrb[206].mxu0 }
 0x29b   : > { %v7678_v30 = vpop.f32.mrb[207].mxu0  ;;  %v5960_v33 = vadd.f32 %v5954_v16, %v5911_v23 }
 0x29c   : > { %v6055_v31 = vpop.f32.mrb[208].mxu1 }
 0x29d   : > { %v7695_v29 = vpop.f32.mrb[209].mxu1 }
 0x29e   : > { %v6058_v56 = vpop.f32.mrb[210].mxu1 }
 0x29f   : > { %v7696_v12 = vpop.f32.mrb[211].mxu1 }
 0x2a0   : > { %v6003_v34 = vpop.f32.mrb[208].mxu0 }
 0x2a1   : > { %v6009_v40 = vadd.f32 %v6003_v34, %v5960_v33  ;;  %v7689_v41 = vpop.f32.mrb[209].mxu0 }
 0x2a2   : > { %v6006_v27 = vpop.f32.mrb[210].mxu0 }
 0x2a3   : > { %v7690_v42 = vpop.f32.mrb[211].mxu0  ;;  %v6061_v11 = vadd.f32 %v6055_v31, %v6009_v40 }
 0x2a4   : > { %v6170_v26 = vpop.f32.mrb[212].mxu1 }
 0x2a5   : > { %v7707_v43 = vpop.f32.mrb[213].mxu1 }
 0x2a6   : > { %v6173_v39 = vpop.f32.mrb[214].mxu1 }
 0x2a7   : > { %v7708_v5 = vpop.f32.mrb[215].mxu1 }
 0x2a8   : > { %v6117_v45 = vpop.f32.mrb[212].mxu0 }
 0x2a9   : > { %v6123_v13 = vadd.f32 %v6117_v45, %v6061_v11  ;;  %v7701_v47 = vpop.f32.mrb[213].mxu0 }
 0x2aa   : > { %v6120_v9 = vpop.f32.mrb[214].mxu0 }
 0x2ab   : > { %v6176_v48 = vadd.f32 %v6170_v26, %v6123_v13  ;;  %v7702_v21 = vpop.f32.mrb[215].mxu0 }
 0x2ad   : > { %v6177_v53 = vadd.f32 %v7884_v52, %v6176_v48 }
 0x2af   : > { %6178 = vst.msk [vmem:[%s8034_s6 + $0xc] sm:$0xf] %vm1977_vm3, %v6177_v53  ;;  %v6179_v14 = vsel %vm1977_vm3, %v6177_v53, 0.0  ;;  %v6187_v2 = vmul.f32 %v6177_v53, %v6177_v53 }
 0x2b0   : > { %v6180_v55 = vrot.slane %v6179_v14, 4 }
 0x2b1   : > { %v6188_v54 = vsel %vm1977_vm3, %v6187_v2, 0.0 }
 0x2b2   : > { %v6181_v51 = vadd.f32 %v6180_v55, %v6179_v14  ;;  %v6189_v35 = vrot.slane %v6188_v54, 4 }
 0x2b4   : > { %v6182_v58 = vrot.slane %v6181_v51, 2  ;;  %v6190_v57 = vadd.f32 %v6189_v35, %v6188_v54 }
 0x2b6   : > { %v6183_v61 = vadd.f32 %v6182_v58, %v6181_v51  ;;  %v6191_v18 = vrot.slane %v6190_v57, 2 }
 0x2b8   : > { %v6184_v62 = vrot.slane %v6183_v61, 1  ;;  %v6192_v36 = vadd.f32 %v6191_v18, %v6190_v57 }
 0x2ba   : > { %v6185_v63 = vadd.f32 %v6184_v62, %v6183_v61  ;;  %v6193_v19 = vrot.slane %v6192_v36, 1 }
 0x2bc   : > { %v6186_v1 = vadd.f32 %v6185_v63, %v9075_v60  ;;  %v6194_v59 = vadd.f32 %v6193_v19, %v6192_v36 }
 0x2be   : > { %v6195_v46 = vadd.f32 %v6194_v59, %v9078_v15  ;;  %v6197_v24 = vadd.f32 %v6196_v0, %v6186_v1 }
 0x2c0   : > { %6199 = vst.msk [vmem:[%s8017_s29] sm:$0x1] %vm6198_vm4, %v6197_v24  ;;  %v6201_v38 = vadd.f32 %v6200_v4, %v6195_v46 }
 0x2c2   : > { %6202 = vst.msk [vmem:[%s8027_s18] sm:$0x1] %vm6198_vm4, %v6201_v38 }
 0x2c3 PF: > { %s18_s28 = sadd.s32 1, %s7923_s28   ;;  %s9127_s24 = sld [smem:[#allocation2_spill]] }
 0x2c4   : > { %p15_p11 = scmp.ge.s32.totalorder %s18_s28, 10   ;;  %s9128_s25 = sld [smem:[#allocation3_spill]] }
 0x2c5   : > { %s9129_s26 = sld [smem:[#allocation4_spill]]  ;;  %s9130_s27 = sld [smem:[#allocation5_spill]] }
 0x2c6   :  { %17 = sbr.rel (!%p15_p11) target bundleno = 4 (0x4), region = 130 }

</bundles_post_ra>
